<compile_context>
chip_gen: v5e
topology: v5e:2x2
jax: 0.10.0
libtpu: 0.0.40
codegen_flags: <defaults>
</compile_context>

<pallas_src>
import jax
import jax.numpy as jnp
from jax.experimental import pallas as pl
from jax.experimental.pallas import tpu as pltpu

KH = KW = 3


def relu_conv_kernel(x_ref, w_ref, o_ref):
    # x_ref: (1, H+2, W, KW*Cin)  KW-unfolded, ReLU'd, zero-padded image (bf16),
    #        VMEM-resident across the row-tile grid axis.
    # w_ref: (KH, KW*Cin, Cout)   folded weights (bf16), resident.
    # o_ref: (1, TH, W, Cout)     output row tile (f32).
    r = pl.program_id(1)
    TH = o_ref.shape[1]
    W = o_ref.shape[2]
    Cout = o_ref.shape[3]
    KWC = w_ref.shape[1]

    row0 = r * TH
    acc = None
    for kh in range(KH):                                   # static unroll: 3 taps
        rows = x_ref[0, pl.ds(row0 + kh, TH)]              # (TH, W, KW*Cin), aligned
        patch = rows.reshape(TH * W, KWC)                  # W % 8 == 0 -> free collapse
        part = jnp.dot(patch, w_ref[kh],
                       preferred_element_type=jnp.float32)  # MXU, f32 accumulate
        acc = part if acc is None else acc + part
    # (TH*W, Cout) -> (TH, W, Cout) is tile-aligned (W % 8 == 0): free reshape.
    o_ref[0] = acc.reshape(TH, W, Cout).astype(o_ref.dtype)


def relu_conv2d(x_nchw, w_oihw, *, tile_h=28, compute_dtype=jnp.bfloat16):
    """ReLU followed by 3x3 / stride 1 / pad 1 conv (no bias). NCHW in/out."""
    N, C, H, W = x_nchw.shape
    Cout, Cin, kh_, kw_ = w_oihw.shape
    assert (kh_, kw_) == (KH, KW) and Cin == C
    assert H % tile_h == 0

    # ReLU in f32 (exact, v5e-friendly), then cast + layout prep.  All of the
    # following (transpose, relu, cast, pad, KW-unfold) is one fused XLA
    # producer of the unfolded slab.
    x_nhwc = jnp.maximum(jnp.transpose(x_nchw, (0, 2, 3, 1)), 0.0)
    x_nhwc = x_nhwc.astype(compute_dtype)
    x_pad = jnp.pad(x_nhwc, ((0, 0), (1, 1), (1, 1), (0, 0)))
    # KW-unfold: x_unf[n, h, w, kw*Cin + ci] = x_pad[n, h, w + kw, ci]
    x_unf = jnp.concatenate([x_pad[:, :, kw:kw + W, :] for kw in range(KW)],
                            axis=-1)                       # (N, H+2, W, KW*Cin)

    # OIHW -> (KH, KW, Cin, Cout) -> (KH, KW*Cin, Cout); (kw, ci) order matches
    # the unfold's concat order.
    w_fold = jnp.transpose(w_oihw, (2, 3, 1, 0)).reshape(KH, KW * Cin, Cout)
    w_fold = w_fold.astype(compute_dtype)

    flops = 2 * N * H * W * KH * KW * Cin * Cout
    bytes_accessed = (x_unf.size * jnp.dtype(compute_dtype).itemsize
                      + w_fold.size * jnp.dtype(compute_dtype).itemsize
                      + N * H * W * Cout * jnp.dtype(x_nchw.dtype).itemsize)

    out_nhwc = pl.pallas_call(
        relu_conv_kernel,
        out_shape=jax.ShapeDtypeStruct((N, H, W, Cout), x_nchw.dtype),
        grid_spec=pltpu.PrefetchScalarGridSpec(
            num_scalar_prefetch=0,
            grid=(N, H // tile_h),
            in_specs=[
                # Whole unfolded image: block index independent of r -> stays
                # resident in VMEM across row tiles (no re-DMA per tile).
                pl.BlockSpec((1, H + 2, W, KW * Cin), lambda n, r: (n, 0, 0, 0)),
                pl.BlockSpec((KH, KW * Cin, Cout), lambda n, r: (0, 0, 0)),
            ],
            out_specs=pl.BlockSpec((1, tile_h, W, Cout),
                                   lambda n, r: (n, r, 0, 0)),
        ),
        compiler_params=pltpu.CompilerParams(
            dimension_semantics=("parallel", "parallel")),
        cost_estimate=pl.CostEstimate(flops=flops, transcendentals=0,
                                      bytes_accessed=bytes_accessed),
    )(x_unf, w_fold)

    return jnp.transpose(out_nhwc, (0, 3, 1, 2))


if __name__ == "__main__":
    # Shapes implied by the module's traced input: x13 = (1, 64, 56, 56).
    N, C, H, W = 1, 64, 56, 56
    key = jax.random.PRNGKey(0)
    kx, kw_ = jax.random.split(key)
    x = jax.random.normal(kx, (N, C, H, W), dtype=jnp.float32)
    w = jax.random.normal(kw_, (64, 64, KH, KW), dtype=jnp.float32) * 0.05

    fn = jax.jit(relu_conv2d)
    out = jax.block_until_ready(fn(x, w))

    # Reference: ReLU + conv via XLA (f32), same NCHW/OIHW convention as PyTorch.
    ref = jax.lax.conv_general_dilated(
        jnp.maximum(x, 0.0), w, window_strides=(1, 1),
        padding=((1, 1), (1, 1)),
        dimension_numbers=("NCHW", "OIHW", "NCHW"))

    assert out.shape == (N, 64, H, W)
    # bf16 operands / f32 accumulation vs. an all-f32 reference: expected max
    # abs error ~1e-2 on outputs of magnitude ~1.
    assert jnp.allclose(out, ref, atol=3e-2, rtol=3e-2), \
        float(jnp.max(jnp.abs(out - ref)))

    print("KERNEL_OK")
</pallas_src>

<mosaic_0001>
module attributes {stable_mosaic.version = 11 : i64} {
  func.func @relu_conv_kernel(%arg0: i32, %arg1: i32, %arg2: memref<1x58x56x192xbf16, #tpu.memory_space<vmem>>, %arg3: memref<3x192x64xbf16, #tpu.memory_space<vmem>>, %arg4: memref<1x28x56x64xf32, #tpu.memory_space<vmem>>) attributes {dimension_semantics = [#tpu.dimension_semantics<parallel>, #tpu.dimension_semantics<parallel>], iteration_bounds = array<i64: 1, 2>, scalar_prefetch = 0 : i64, scratch_operands = 0 : i64, tpu.core_type = #tpu.core_type<tc>, window_params = [{transform_indices = @transform_0, window_bounds = array<i64: 1, 58, 56, 192>}, {pipeline_mode = #tpu.pipeline_mode<synchronous>, transform_indices = @transform_1, window_bounds = array<i64: 3, 192, 64>}, {transform_indices = @transform_2, window_bounds = array<i64: 1, 28, 56, 64>}]} {
    %c28_i32 = arith.constant 28 : i32
    %0 = arith.muli %arg1, %c28_i32 : i32
    %c0_i32 = arith.constant 0 : i32
    %1 = arith.addi %0, %c0_i32 : i32
    %c0 = arith.constant 0 : index
    %2 = arith.index_cast %1 : i32 to index
    %c0_0 = arith.constant 0 : index
    %c0_1 = arith.constant 0 : index
    %3 = vector.load %arg2[%c0, %2, %c0_0, %c0_1] : memref<1x58x56x192xbf16, #tpu.memory_space<vmem>>, vector<1x28x56x192xbf16>
    %4 = vector.shape_cast %3 : vector<1x28x56x192xbf16> to vector<28x56x192xbf16>
    %5 = vector.shape_cast %4 : vector<28x56x192xbf16> to vector<1568x192xbf16>
    %c0_2 = arith.constant 0 : index
    %c0_3 = arith.constant 0 : index
    %c0_4 = arith.constant 0 : index
    %6 = vector.load %arg3[%c0_2, %c0_3, %c0_4] : memref<3x192x64xbf16, #tpu.memory_space<vmem>>, vector<1x192x64xbf16>
    %7 = vector.shape_cast %6 : vector<1x192x64xbf16> to vector<192x64xbf16>
    %cst = arith.constant dense<0.000000e+00> : vector<1568x64xf32>
    %8 = tpu.matmul %5, %7, %cst {dimension_numbers = #tpu.dot_dimension_numbers<[1], [0], [0], [1], [0, 0, 1, 1], [], []>} : vector<1568x192xbf16>, vector<192x64xbf16>, vector<1568x64xf32> -> vector<1568x64xf32>
    %c1_i32 = arith.constant 1 : i32
    %9 = arith.addi %0, %c1_i32 : i32
    %c0_5 = arith.constant 0 : index
    %10 = arith.index_cast %9 : i32 to index
    %c0_6 = arith.constant 0 : index
    %c0_7 = arith.constant 0 : index
    %11 = vector.load %arg2[%c0_5, %10, %c0_6, %c0_7] : memref<1x58x56x192xbf16, #tpu.memory_space<vmem>>, vector<1x28x56x192xbf16>
    %12 = vector.shape_cast %11 : vector<1x28x56x192xbf16> to vector<28x56x192xbf16>
    %13 = vector.shape_cast %12 : vector<28x56x192xbf16> to vector<1568x192xbf16>
    %c1 = arith.constant 1 : index
    %c0_8 = arith.constant 0 : index
    %c0_9 = arith.constant 0 : index
    %14 = vector.load %arg3[%c1, %c0_8, %c0_9] : memref<3x192x64xbf16, #tpu.memory_space<vmem>>, vector<1x192x64xbf16>
    %15 = vector.shape_cast %14 : vector<1x192x64xbf16> to vector<192x64xbf16>
    %cst_10 = arith.constant dense<0.000000e+00> : vector<1568x64xf32>
    %16 = tpu.matmul %13, %15, %cst_10 {dimension_numbers = #tpu.dot_dimension_numbers<[1], [0], [0], [1], [0, 0, 1, 1], [], []>} : vector<1568x192xbf16>, vector<192x64xbf16>, vector<1568x64xf32> -> vector<1568x64xf32>
    %17 = arith.addf %8, %16 : vector<1568x64xf32>
    %c2_i32 = arith.constant 2 : i32
    %18 = arith.addi %0, %c2_i32 : i32
    %c0_11 = arith.constant 0 : index
    %19 = arith.index_cast %18 : i32 to index
    %c0_12 = arith.constant 0 : index
    %c0_13 = arith.constant 0 : index
    %20 = vector.load %arg2[%c0_11, %19, %c0_12, %c0_13] : memref<1x58x56x192xbf16, #tpu.memory_space<vmem>>, vector<1x28x56x192xbf16>
    %21 = vector.shape_cast %20 : vector<1x28x56x192xbf16> to vector<28x56x192xbf16>
    %22 = vector.shape_cast %21 : vector<28x56x192xbf16> to vector<1568x192xbf16>
    %c2 = arith.constant 2 : index
    %c0_14 = arith.constant 0 : index
    %c0_15 = arith.constant 0 : index
    %23 = vector.load %arg3[%c2, %c0_14, %c0_15] : memref<3x192x64xbf16, #tpu.memory_space<vmem>>, vector<1x192x64xbf16>
    %24 = vector.shape_cast %23 : vector<1x192x64xbf16> to vector<192x64xbf16>
    %cst_16 = arith.constant dense<0.000000e+00> : vector<1568x64xf32>
    %25 = tpu.matmul %22, %24, %cst_16 {dimension_numbers = #tpu.dot_dimension_numbers<[1], [0], [0], [1], [0, 0, 1, 1], [], []>} : vector<1568x192xbf16>, vector<192x64xbf16>, vector<1568x64xf32> -> vector<1568x64xf32>
    %26 = arith.addf %17, %25 : vector<1568x64xf32>
    %27 = vector.shape_cast %26 : vector<1568x64xf32> to vector<28x56x64xf32>
    %c0_17 = arith.constant 0 : index
    %c0_18 = arith.constant 0 : index
    %c0_19 = arith.constant 0 : index
    %c0_20 = arith.constant 0 : index
    %28 = vector.load %arg4[%c0_17, %c0_18, %c0_19, %c0_20] : memref<1x28x56x64xf32, #tpu.memory_space<vmem>>, vector<1x28x56x64xf32>
    %29 = vector.shape_cast %28 : vector<1x28x56x64xf32> to vector<28x56x64xf32>
    %30 = vector.shape_cast %27 : vector<28x56x64xf32> to vector<1x28x56x64xf32>
    tpu.vector_store %arg4[%c0_17, %c0_18, %c0_19, %c0_20], %30 {strides = array<i32>} : memref<1x28x56x64xf32, #tpu.memory_space<vmem>>, vector<1x28x56x64xf32>,
    return
  }
  func.func @transform_0(%arg0: i32, %arg1: i32) -> (i32, i32, i32, i32) {
    %c0_i32 = arith.constant 0 : i32
    %c0_i32_0 = arith.constant 0 : i32
    %c0_i32_1 = arith.constant 0 : i32
    %c0_i32_2 = arith.constant 0 : i32
    return %arg0, %c0_i32, %c0_i32_0, %c0_i32_1 : i32, i32, i32, i32
  }
  func.func @transform_1(%arg0: i32, %arg1: i32) -> (i32, i32, i32) {
    %c0_i32 = arith.constant 0 : i32
    %c0_i32_0 = arith.constant 0 : i32
    %c0_i32_1 = arith.constant 0 : i32
    %c0_i32_2 = arith.constant 0 : i32
    return %c0_i32, %c0_i32_0, %c0_i32_1 : i32, i32, i32
  }
  func.func @transform_2(%arg0: i32, %arg1: i32) -> (i32, i32, i32, i32) {
    %c0_i32 = arith.constant 0 : i32
    %c0_i32_0 = arith.constant 0 : i32
    %c0_i32_1 = arith.constant 0 : i32
    return %arg0, %arg1, %c0_i32, %c0_i32_0 : i32, i32, i32, i32
  }
}

</mosaic_0001>

<bundles_post_ra>
// kernel: relu_conv2d.1
= control target key start
LH: loop header
LB: loop body
LE: loop exit
PB: predicated region body
PF: predicated region fallthrough
CT: control target
= control target key end

     0   :  { %7 = vsyncpa [#allocation3], 0  ;;  %s15970_s0 = inlined_call_operand.vmem [shape: bf16[1,58,56,192], index: 0, kind: input, shape index: {}]   ;;  %s15971_s1 = inlined_call_operand.vmem [shape: bf16[3,192,64], index: 1, kind: input, shape index: {}]   ;;  %s15972_s2 = inlined_call_operand.hbm [shape: f32[1,56,56,64], index: 2, kind: output, shape index: {}]  }
   0x1   :  { %9 = vsyncpa [#allocation3 + $0x1], 0  ;;  %s12100_s9 = smov 0   ;;  %s12102_s10 = smov 0  }
   0x2   :  { %s12104_s11 = smov 0   ;;  %s12106_s12 = smov 0  }
   0x3   :  { %s12108_s13 = smov 0   ;;  %s12110_s14 = smov 0  }
   0x4 LB: > { %s8068_s15 = sadd.s32 4294967295, %s12081_s14   ;;  %s8069_s16 = sadd.s32 4294967294, %s12081_s14   ;;  %s12081_s14 = sphi %s12110_s14, %s15_s14   ;;  %s12077_s13 = sphi %s12108_s13, %s16989_s13   ;;  %s12073_s12 = sphi %s12106_s12, %s16988_s12   ;;  %s12069_s11 = sphi %s12104_s11, %s16987_s11   ;;  %s12065_s10 = sphi %s12102_s10, %s16986_s10   ;;  %s12061_s9 = sphi %s12100_s9, %s16985_s9  }
   0x5   : > { %s24_s17 = sadd.s32 1, %s12077_s13  ;;  %s83_s18 = sadd.s32 1, %s12069_s11 }
   0x6   : > { %p25_p0 = scmp.ge.s32.totalorder %s24_s17, 2  ;;  %p93_p1 = scmp.ne.s32.totalorder %s12069_s11, %s12065_s10 }
   0x7   : > { %p94_p2 = scmp.eq.s32.totalorder %s8068_s15, 1  ;;  %p99_p3 = scmp.ne.s32.totalorder %s12065_s10, %s12061_s9 }
   0x8   : > { %s16991_s17 = smov (%p25_p0, %s24_s17), 0  ;;  %p100_p5 = scmp.eq.s32.totalorder %s8069_s16, 1 }
   0x9   : > { %p12140_p4 = por %p94_p2, %p93_p1  ;;  %s79_s20 = ssub.s32 %s12077_s13, %s16991_s17 }
   0xa   : > { %p8072_p6 = scmp.ge.s32.totalorder %s12081_s14, 1  ;;  %p81_p7 = scmp.eq.s32.totalorder %s79_s20, 0 }
   0xb   : > { %p12147_p8 = por %p100_p5, %p99_p3  ;;  %p129_p9 = scmp.lt.s32.totalorder %s12081_s14, 3 }
   0xc   : > { %s12153_s22 = scalar_select %p81_p7, %s12069_s11, %s83_s18  }
   0xd   : > { %p130_p10 = pnand %p8072_p6, %p129_p9 }
   0xf   : > { %133 = sbr.rel (%p130_p10) target bundleno = 2539 (0x9eb), region = 28 }
  0x14   : > { %v11722_v0 = vld [vmem:[%s15971_s1 + $0x98] sm:$0xff]  ;;  %v11721_v4 = vld [vmem:[%s15971_s1 + $0x90] sm:$0xff]  ;;  %s11310_s18 = smul.u32 1568, %s12073_s12  ;;  %v11720_v8 = vld [vmem:[%s15971_s1 + $0x88] sm:$0xff]  ;;  %vm1561_vm0 = vcmask 523264   ;;  %s148_s5 = sand.u32 1, %s12065_s10  }
  0x15   : > { %v12161_v1 = vld [vmem:[%s15971_s1 + $0xb8] sm:$0xff]  ;;  %1856 = vmatpush.bf16.msra.mxu0 %v11722_v0  ;;  %v12178_v5 = vld [vmem:[%s15971_s1 + $0xb0] sm:$0xff]  ;;  %v12197_v9 = vld [vmem:[%s15971_s1 + $0xa8] sm:$0xff]  ;;  %s11943_s6 = smul.u32 1568, %s148_s5  ;;  %s7964_s12 = scalar_lea.sflag [#allocation3], %s148_s5 }
  0x16   : > { %v11514_v2 = vld [vmem:[%s15971_s1 + $0x38] sm:$0xff]  ;;  %11935 = vmatpush.bf16.msra.mxu1 %v12161_v1  ;;  %v11513_v6 = vld [vmem:[%s15971_s1 + $0x30] sm:$0xff]  ;;  %v11512_v10 = vld [vmem:[%s15971_s1 + $0x28] sm:$0xff]  ;;  %s12213_s4 = scalar_lea.vmem %s15970_s0, %s11310_s18  ;;  %s7978_s15 = scalar_lea.hbm %s15972_s2, %s11310_s18 }
  0x17   : > { %v12169_v3 = vld [vmem:[%s15971_s1 + $0x58] sm:$0xff]  ;;  %4102 = vmatpush.bf16.msra.mxu2 %v11514_v2  ;;  %v12187_v7 = vld [vmem:[%s15971_s1 + $0x50] sm:$0xff]  ;;  %v12206_v11 = vld [vmem:[%s15971_s1 + $0x48] sm:$0xff]  ;;  %s14605_s7 = scalar_lea.vmem [#allocation2], %s11943_s6  ;;  %s7981_s20 = sshll.u32 %s7978_s15, 4  ;;  %s7982_s20 = int_to_ptr.hbm [resolvable:$true] %s7981_s20 }
  0x18   : > { %11939 = vmatpush.bf16.msra.mxu3 %v12169_v3  ;;  %v11719_v12 = vld [vmem:[%s15971_s1 + $0x80] sm:$0xff]  ;;  %v11615_v15 = vld [vmem:[%s12213_s4 + $0x33c] sm:$0xf]  ;;  %v9614_v19 = vld [vmem:[%s12213_s4 + $0x308] sm:$0xf0]  ;;  %s7979_s16 = sshll.u32 %s14605_s7, 4  ;;  %s7980_s16 = int_to_ptr.vmem [resolvable:$true] %s7979_s16 }
  0x19   : > { %1857 = vmatpush.bf16.msra.mxu0 %v11721_v4  ;;  %v12221_v13 = vld [vmem:[%s15971_s1 + $0xa0] sm:$0xff]  ;;  %v11934_v20 = vld [vmem:[%s15971_s1 + $0x118] sm:$0xff]  ;;  %v11717_v26 = vld [vmem:[%s15971_s1 + $0x70] sm:$0xff]  ;;  %s12017_s23 = sshra.s32 %s7982_s20, 4  ;;  %s12023_s26 = scalar_lea.hbm %s15972_s2, 3136  ;;  %s12018_s23 = int_to_ptr.hbm [resolvable:$true] %s12017_s23 }
  0x1a   : > { %11936 = vmatpush.bf16.msra.mxu1 %v12178_v5  ;;  %v11511_v14 = vld [vmem:[%s15971_s1 + $0x20] sm:$0xff]  ;;  %v11930_v21 = vld [vmem:[%s15971_s1 + $0xf8] sm:$0xff]  ;;  %v11509_v27 = vld [vmem:[%s15971_s1 + $0x10] sm:$0xff]  ;;  %s12019_s18 = scalar_lea.hbm %s12018_s23, 1568  ;;  %p12024_p0 = scmp.lt.s32.totalorder %s12018_s23, %s15972_s2 }
  0x1b   : > { %4103 = vmatpush.bf16.msra.mxu2 %v11513_v6  ;;  %v8684_v16 = vld [vmem:[%s12213_s4 + $0x340] sm:$0xf0]  ;;  %v11718_v24 = vld [vmem:[%s15971_s1 + $0x78] sm:$0xff]  ;;  %v11716_v28 = vld [vmem:[%s15971_s1 + $0x68] sm:$0xff]  ;;  %p12020_p11 = scmp.ne.s32.totalorder %s12018_s23, %s12019_s18  ;;  %p12025_p1 = scmp.lt.s32.totalorder %s12023_s26, %s12019_s18 }
  0x1c   : > { %11940 = vmatpush.bf16.msra.mxu3 %v12187_v7  ;;  %v11515_v17 = vld [vmem:[%s15971_s1 + $0x40] sm:$0xff]  ;;  %v8687_v22 = vor.u32 %v11615_v15, %v8684_v16  ;;  %v11510_v25 = vld [vmem:[%s15971_s1 + $0x18] sm:$0xff]  ;;  %v11508_v29 = vld [vmem:[%s15971_s1 + $0x8] sm:$0xff] }
  0x1d   : > { %1858 = vmatpush.bf16.msra.mxu0 %v11720_v8  ;;  %v11407_v18 = vld [vmem:[%s12213_s4 + $0x304] sm:$0xf]  ;;  %v8298_v32 = vld [vmem:[%s12213_s4 + $0x38] sm:$0xf]  ;;  %v11520_v33 = vld [vmem:[%s12213_s4 + $0x3c] sm:$0xf0]  ;;  %p12021_p12 = pnand %p12020_p11, %p12140_p4  ;;  %p12026_p2 = por %p12025_p1, %p12024_p0 }
  0x1e   : > { %11937 = vmatpush.bf16.msra.mxu1 %v12197_v9  ;;  %v9617_v23 = vor.u32 %v11407_v18, %v9614_v19  ;;  %v11715_v30 = vld [vmem:[%s15971_s1 + $0x60] sm:$0xff]  ;;  %v11617_v34 = vld [vmem:[%s12213_s4 + $0x34c] sm:$0xf]  ;;  %v8692_v35 = vld [vmem:[%s12213_s4 + $0x350] sm:$0xf0]  ;;  %v8299_v40 = vor.u32 %v11520_v33, %v8298_v32 }
  0x1f   : > { %4104 = vmatpush.bf16.msra.mxu2 %v11512_v10  ;;  %v11507_v31 = vld [vmem:[%s15971_s1] sm:$0xff]  ;;  %v11312_v37 = vld [vmem:[%s12213_s4 + $0x4] sm:$0xf0]  ;;  %v11409_v38 = vld [vmem:[%s12213_s4 + $0x314] sm:$0xf]  ;;  %v8695_v41 = vor.u32 %v11617_v34, %v8692_v35  ;;  %p12022_p13 = pneg %p12021_p12 }
  0x20   : > { %11941 = vmatpush.bf16.msra.mxu3 %v12206_v11  ;;  %v9228_v36 = vld [vmem:[%s12213_s4] sm:$0xf]  ;;  %v9622_v39 = vld [vmem:[%s12213_s4 + $0x318] sm:$0xf0]  ;;  %v8306_v44 = vld [vmem:[%s12213_s4 + $0x48] sm:$0xf] }
  0x21   : > { %1859 = vmatpush.bf16.msra.mxu0 %v11719_v12  ;;  %v9229_v42 = vor.u32 %v11312_v37, %v9228_v36  ;;  %v9625_v43 = vor.u32 %v11409_v38, %v9622_v39  ;;  %v11522_v45 = vld [vmem:[%s12213_s4 + $0x4c] sm:$0xf0]  ;;  %v11619_v46 = vld [vmem:[%s12213_s4 + $0x35c] sm:$0xf]  ;;  %v8700_v47 = vld [vmem:[%s12213_s4 + $0x360] sm:$0xf0]  ;;  %p12027_p3 = pnand %p12026_p2, %p12022_p13 }
  0x22   : > { %11938 = vmatpush.bf16.msra.mxu1 %v12221_v13  ;;  %v9236_v48 = vld [vmem:[%s12213_s4 + $0x10] sm:$0xf]  ;;  %v11314_v49 = vld [vmem:[%s12213_s4 + $0x14] sm:$0xf0]  ;;  %v11411_v50 = vld [vmem:[%s12213_s4 + $0x324] sm:$0xf]  ;;  %v8307_v52 = vor.u32 %v11522_v45, %v8306_v44  ;;  %v8703_v53 = vor.u32 %v11619_v46, %v8700_v47 }
  0x23   : > { %4105 = vmatpush.bf16.msra.mxu2 %v11511_v14  ;;  %v9630_v51 = vld [vmem:[%s12213_s4 + $0x328] sm:$0xf0]  ;;  %v9237_v54 = vor.u32 %v11314_v49, %v9236_v48  ;;  %v8314_v56 = vld [vmem:[%s12213_s4 + $0x58] sm:$0xf]  ;;  %v11524_v57 = vld [vmem:[%s12213_s4 + $0x5c] sm:$0xf0] }
  0x24   : > { %11942 = vmatpush.bf16.msra.mxu3 %v11515_v17  ;;  %v9633_v55 = vor.u32 %v11411_v50, %v9630_v51  ;;  %v11621_v58 = vld [vmem:[%s12213_s4 + $0x36c] sm:$0xf]  ;;  %v8708_v59 = vld [vmem:[%s12213_s4 + $0x370] sm:$0xf0]  ;;  %v9244_v60 = vld [vmem:[%s12213_s4 + $0x20] sm:$0xf]  ;;  %v8315_v0 = vor.u32 %v11524_v57, %v8314_v56 }
  0x25   : > { %9176 = vmatmul.msk.bf16.vlgmr.msra.gmra.mxu1 %vm1561_vm0, %v8687_v22  ;;  %1860 = vmatpush.bf16.msra.mxu0 %v11718_v24  ;;  %v11316_v61 = vld [vmem:[%s12213_s4 + $0x24] sm:$0xf0]  ;;  %v11413_v62 = vld [vmem:[%s12213_s4 + $0x334] sm:$0xf]  ;;  %v9638_v63 = vld [vmem:[%s12213_s4 + $0x338] sm:$0xf0] }
  0x26   : > { %6573 = vmatpush.bf16.msrb.mxu1 %v11930_v21  ;;  %v9245_v2 = vor.u32 %v11316_v61, %v9244_v60  ;;  %v8322_v4 = vld [vmem:[%s12213_s4 + $0x68] sm:$0xf]  ;;  %v11623_v6 = vld [vmem:[%s12213_s4 + $0x37c] sm:$0xf]  ;;  %v9252_v8 = vld [vmem:[%s12213_s4 + $0x30] sm:$0xf] }
  0x27   : > { %10106 = vmatmul.msk.bf16.vlgmr.msra.gmra.mxu3 %vm1561_vm0, %v9617_v23  ;;  %4106 = vmatpush.bf16.msra.mxu2 %v11510_v25  ;;  %v11415_v10 = vld [vmem:[%s12213_s4 + $0x344] sm:$0xf]  ;;  %v11929_v16 = vld [vmem:[%s15971_s1 + $0xf0] sm:$0xff]  ;;  %v11528_v18 = vld [vmem:[%s12213_s4 + $0x7c] sm:$0xf0] }
  0x28   : > { %7076 = vmatpush.bf16.msrb.mxu3 %v11934_v20  ;;  %v11625_v19 = vld [vmem:[%s12213_s4 + $0x38c] sm:$0xf]  ;;  %v8724_v20 = vld [vmem:[%s12213_s4 + $0x390] sm:$0xf0]  ;;  %v9260_v21 = vld [vmem:[%s12213_s4 + $0x40] sm:$0xf] }
  0x29   : > { %1861 = vmatpush.bf16.msra.mxu0 %v11717_v26  ;;  %v11320_v22 = vld [vmem:[%s12213_s4 + $0x44] sm:$0xf0]  ;;  %v11417_v23 = vld [vmem:[%s12213_s4 + $0x354] sm:$0xf]  ;;  %v9654_v24 = vld [vmem:[%s12213_s4 + $0x358] sm:$0xf0]  ;;  %v8727_v26 = vor.u32 %v11625_v19, %v8724_v20 }
  0x2a   : > { %6574 = vmatpush.bf16.msrb.mxu1 %v11929_v16  ;;  %v8732_v32 = vld [vmem:[%s12213_s4 + $0x3a0] sm:$0xf0]  ;;  %v9268_v33 = vld [vmem:[%s12213_s4 + $0x50] sm:$0xf]  ;;  %v11322_v34 = vld [vmem:[%s12213_s4 + $0x54] sm:$0xf0] }
  0x2b   : > { %4107 = vmatpush.bf16.msra.mxu2 %v11509_v27  ;;  %v9261_v27 = vor.u32 %v11320_v22, %v9260_v21  ;;  %v11419_v35 = vld [vmem:[%s12213_s4 + $0x364] sm:$0xf]  ;;  %v9662_v36 = vld [vmem:[%s12213_s4 + $0x368] sm:$0xf0]  ;;  %v9269_v39 = vor.u32 %v11322_v34, %v9268_v33  ;;  %v8740_v44 = vld [vmem:[%s12213_s4 + $0x3b0] sm:$0xf0] }
  0x2c   : > { %v9276_v45 = vld [vmem:[%s12213_s4 + $0x60] sm:$0xf]  ;;  %v11324_v46 = vld [vmem:[%s12213_s4 + $0x64] sm:$0xf0]  ;;  %v11421_v47 = vld [vmem:[%s12213_s4 + $0x374] sm:$0xf] }
  0x2d   : > { %1862 = vmatpush.bf16.msra.mxu0 %v11716_v28  ;;  %v9657_v28 = vor.u32 %v11417_v23, %v9654_v24  ;;  %v9670_v48 = vld [vmem:[%s12213_s4 + $0x378] sm:$0xf0]  ;;  %v9277_v51 = vor.u32 %v11324_v46, %v9276_v45  ;;  %v8748_v56 = vld [vmem:[%s12213_s4 + $0x3c0] sm:$0xf0]  ;;  %v9284_v57 = vld [vmem:[%s12213_s4 + $0x70] sm:$0xf] }
  0x2e   : > { %v9678_v60 = vld [vmem:[%s12213_s4 + $0x388] sm:$0xf0]  ;;  %v8370_v23 = vld [vmem:[%s12213_s4 + $0xc8] sm:$0xf]  ;;  %v11538_v24 = vld [vmem:[%s12213_s4 + $0xcc] sm:$0xf0] }
  0x2f   : > { %4108 = vmatpush.bf16.msra.mxu2 %v11508_v29  ;;  %v8338_v29 = vld [vmem:[%s12213_s4 + $0x88] sm:$0xf]  ;;  %v8371_v33 = vor.u32 %v11538_v24, %v8370_v23  ;;  %v11540_v45 = vld [vmem:[%s12213_s4 + $0xdc] sm:$0xf0]  ;;  %v11637_v46 = vld [vmem:[%s12213_s4 + $0x3ec] sm:$0xf] }
  0x31   : > { %1863 = vmatpush.bf16.msra.mxu0 %v11715_v30  ;;  %v11530_v30 = vld [vmem:[%s12213_s4 + $0x8c] sm:$0xf0] }
  0x32   : > { %v8339_v37 = vor.u32 %v11530_v30, %v8338_v29  ;;  %v11427_v29 = vld [vmem:[%s12213_s4 + $0x3a4] sm:$0xf]  ;;  %v9694_v30 = vld [vmem:[%s12213_s4 + $0x3a8] sm:$0xf0] }
  0x33   : > { %4109 = vmatpush.bf16.msra.mxu2 %v11507_v31  ;;  %v11627_v31 = vld [vmem:[%s12213_s4 + $0x39c] sm:$0xf] }
  0x34   : > { %1864 = vmatmul.bf16.vlgmr.msra.gmra.mxu0 %v8299_v40  ;;  %v8735_v38 = vor.u32 %v11627_v31, %v8732_v32  ;;  %v9665_v40 = vor.u32 %v11419_v35, %v9662_v36 }
  0x35   : > { %2359 = vmatpush.bf16.msrb.mxu0 %v12161_v1  ;;  %9177 = vmatmul.msk.bf16.gmra.mxu1 %vm1561_vm0, %v8695_v41  ;;  %v8711_v1 = vor.u32 %v11621_v58, %v8708_v59  ;;  %v8346_v41 = vld [vmem:[%s12213_s4 + $0x98] sm:$0xf]  ;;  %v11423_v59 = vld [vmem:[%s12213_s4 + $0x384] sm:$0xf] }
  0x36   : > { %4110 = vmatmul.bf16.vlgmr.msra.gmra.mxu2 %v9229_v42  ;;  %v11532_v42 = vld [vmem:[%s12213_s4 + $0x9c] sm:$0xf0]  ;;  %v11326_v58 = vld [vmem:[%s12213_s4 + $0x74] sm:$0xf0] }
  0x37   : > { %4605 = vmatpush.bf16.msrb.mxu2 %v12169_v3  ;;  %10107 = vmatmul.msk.bf16.gmra.mxu3 %vm1561_vm0, %v9625_v43  ;;  %v9641_v3 = vor.u32 %v11413_v62, %v9638_v63  ;;  %v11629_v43 = vld [vmem:[%s12213_s4 + $0x3ac] sm:$0xf]  ;;  %v8347_v49 = vor.u32 %v11532_v42, %v8346_v41 }
  0x38   : > { %v8743_v50 = vor.u32 %v11629_v43, %v8740_v44  ;;  %v11933_v43 = vld [vmem:[%s15971_s1 + $0x110] sm:$0xff]  ;;  %v8378_v44 = vld [vmem:[%s12213_s4 + $0xd8] sm:$0xf] }
  0x39   : > { %2360 = vmatpush.bf16.msrb.mxu0 %v12178_v5  ;;  %v11526_v5 = vld [vmem:[%s12213_s4 + $0x6c] sm:$0xf0]  ;;  %7077 = vmatpush.bf16.msrb.mxu3 %v11933_v43  ;;  %v9324_v43 = vld [vmem:[%s12213_s4 + $0xc0] sm:$0xf] }
  0x3a   : > { %v8323_v12 = vor.u32 %v11526_v5, %v8322_v4  ;;  %v8362_v4 = vld [vmem:[%s12213_s4 + $0xb8] sm:$0xf]  ;;  %v11536_v5 = vld [vmem:[%s12213_s4 + $0xbc] sm:$0xf0] }
  0x3b   : > { %4606 = vmatpush.bf16.msrb.mxu2 %v12187_v7  ;;  %v8716_v7 = vld [vmem:[%s12213_s4 + $0x380] sm:$0xf0] }
  0x3d   : > { %2361 = vmatpush.bf16.msrb.mxu0 %v12197_v9  ;;  %v11318_v9 = vld [vmem:[%s12213_s4 + $0x34] sm:$0xf0] }
  0x3e   : > { %v9253_v14 = vor.u32 %v11318_v9, %v9252_v8  ;;  %v9292_v8 = vld [vmem:[%s12213_s4 + $0x80] sm:$0xf]  ;;  %v11328_v9 = vld [vmem:[%s12213_s4 + $0x84] sm:$0xf0] }
  0x3f   : > { %4607 = vmatpush.bf16.msrb.mxu2 %v12206_v11  ;;  %v9646_v11 = vld [vmem:[%s12213_s4 + $0x348] sm:$0xf0] }
  0x40   : > { %v9649_v15 = vor.u32 %v11415_v10, %v9646_v11  ;;  %v11425_v10 = vld [vmem:[%s12213_s4 + $0x394] sm:$0xf]  ;;  %v9686_v11 = vld [vmem:[%s12213_s4 + $0x398] sm:$0xf0] }
  0x41   : > { %2362 = vmatpush.bf16.msrb.mxu0 %v12221_v13  ;;  %v8719_v13 = vor.u32 %v11623_v6, %v8716_v7  ;;  %v11633_v6 = vld [vmem:[%s12213_s4 + $0x3cc] sm:$0xf]  ;;  %v8756_v7 = vld [vmem:[%s12213_s4 + $0x3d0] sm:$0xf0] }
  0x43   : > { %4608 = vmatpush.bf16.msrb.mxu2 %v11515_v17  ;;  %v8330_v17 = vld [vmem:[%s12213_s4 + $0x78] sm:$0xf] }
  0x44   : > { %1869 = vmatmul.bf16.gmra.mxu0 %v8307_v52  ;;  %v8331_v25 = vor.u32 %v11528_v18, %v8330_v17  ;;  %v9673_v52 = vor.u32 %v11421_v47, %v9670_v48  ;;  %v9293_v17 = vor.u32 %v11328_v9, %v9292_v8  ;;  %v9689_v18 = vor.u32 %v11425_v10, %v9686_v11  ;;  %v8772_v47 = vld [vmem:[%s12213_s4 + $0x3f0] sm:$0xf0]  ;;  %v9308_v48 = vld [vmem:[%s12213_s4 + $0xa0] sm:$0xf]  ;;  %v9316_v8 = vld [vmem:[%s12213_s4 + $0xb0] sm:$0xf] }
  0x45   : > { %9178 = vmatmul.msk.bf16.gmra.mxu1 %vm1561_vm0, %v8703_v53  ;;  %v8354_v53 = vld [vmem:[%s12213_s4 + $0xa8] sm:$0xf]  ;;  %v11334_v9 = vld [vmem:[%s12213_s4 + $0xb4] sm:$0xf0]  ;;  %v11431_v10 = vld [vmem:[%s12213_s4 + $0x3c4] sm:$0xf] }
  0x46   : > { %4115 = vmatmul.bf16.gmra.mxu2 %v9237_v54  ;;  %v11534_v54 = vld [vmem:[%s12213_s4 + $0xac] sm:$0xf0]  ;;  %v9710_v11 = vld [vmem:[%s12213_s4 + $0x3c8] sm:$0xf0] }
  0x47   : > { %10108 = vmatmul.msk.bf16.gmra.mxu3 %vm1561_vm0, %v9633_v55  ;;  %v11631_v55 = vld [vmem:[%s12213_s4 + $0x3bc] sm:$0xf]  ;;  %v8355_v61 = vor.u32 %v11534_v54, %v8354_v53  ;;  %v8379_v54 = vor.u32 %v11540_v45, %v8378_v44  ;;  %v11336_v44 = vld [vmem:[%s12213_s4 + $0xc4] sm:$0xf0]  ;;  %v11433_v45 = vld [vmem:[%s12213_s4 + $0x3d4] sm:$0xf] }
  0x48   : > { %v8751_v62 = vor.u32 %v11631_v55, %v8748_v56  ;;  %v8775_v55 = vor.u32 %v11637_v46, %v8772_v47  ;;  %v9718_v46 = vld [vmem:[%s12213_s4 + $0x3d8] sm:$0xf0] }
  0x54   : > { %1874 = vmatmul.bf16.gmra.mxu0 %v8315_v0  ;;  %v9285_v0 = vor.u32 %v11326_v58, %v9284_v57 }
  0x55   : > { %9179 = vmatmul.msk.bf16.gmra.mxu1 %vm1561_vm0, %v8711_v1  ;;  %v9681_v1 = vor.u32 %v11423_v59, %v9678_v60  ;;  %v11928_v60 = vld [vmem:[%s15971_s1 + $0xe8] sm:$0xff] }
  0x56   : > { %4120 = vmatmul.bf16.gmra.mxu2 %v9245_v2  ;;  %6575 = vmatpush.bf16.msrb.mxu1 %v11928_v60 }
  0x57   : > { %10109 = vmatmul.msk.bf16.gmra.mxu3 %vm1561_vm0, %v9641_v3 }
  0x64   : > { %1879 = vmatmul.bf16.gmra.mxu0 %v8323_v12 }
  0x65   : > { %9180 = vmatmul.msk.bf16.gmra.mxu1 %vm1561_vm0, %v8719_v13  ;;  %v8363_v13 = vor.u32 %v11536_v5, %v8362_v4  ;;  %v8386_v4 = vld [vmem:[%s12213_s4 + $0xe8] sm:$0xf]  ;;  %v11542_v5 = vld [vmem:[%s12213_s4 + $0xec] sm:$0xf0] }
  0x66   : > { %4125 = vmatmul.bf16.gmra.mxu2 %v9253_v14  ;;  %v8759_v14 = vor.u32 %v11633_v6, %v8756_v7  ;;  %v11639_v6 = vld [vmem:[%s12213_s4 + $0x3fc] sm:$0xf]  ;;  %v8780_v7 = vld [vmem:[%s12213_s4 + $0x400] sm:$0xf0] }
  0x67   : > { %10110 = vmatmul.msk.bf16.gmra.mxu3 %vm1561_vm0, %v9649_v15 }
  0x74   : > { %1884 = vmatmul.bf16.gmra.mxu0 %v8331_v25  ;;  %v11635_v25 = vld [vmem:[%s12213_s4 + $0x3dc] sm:$0xf] }
  0x75   : > { %9181 = vmatmul.msk.bf16.gmra.mxu1 %vm1561_vm0, %v8727_v26  ;;  %v8764_v26 = vld [vmem:[%s12213_s4 + $0x3e0] sm:$0xf0] }
  0x76   : > { %4130 = vmatmul.bf16.gmra.mxu2 %v9261_v27  ;;  %v9300_v27 = vld [vmem:[%s12213_s4 + $0x90] sm:$0xf]  ;;  %v8767_v34 = vor.u32 %v11635_v25, %v8764_v26  ;;  %v9317_v25 = vor.u32 %v11334_v9, %v9316_v8  ;;  %v9713_v26 = vor.u32 %v11431_v10, %v9710_v11  ;;  %v11643_v8 = vld [vmem:[%s12213_s4 + $0x41c] sm:$0xf]  ;;  %v8796_v9 = vld [vmem:[%s12213_s4 + $0x420] sm:$0xf0] }
  0x77   : > { %10111 = vmatmul.msk.bf16.gmra.mxu3 %vm1561_vm0, %v9657_v28  ;;  %v11330_v28 = vld [vmem:[%s12213_s4 + $0x94] sm:$0xf0]  ;;  %v9332_v10 = vld [vmem:[%s12213_s4 + $0xd0] sm:$0xf] }
  0x78   : > { %v11338_v11 = vld [vmem:[%s12213_s4 + $0xd4] sm:$0xf0] }
  0x84   : > { %1889 = vmatmul.bf16.gmra.mxu0 %v8339_v37  ;;  %v9301_v37 = vor.u32 %v11330_v28, %v9300_v27 }
  0x85   : > { %9182 = vmatmul.msk.bf16.gmra.mxu1 %vm1561_vm0, %v8735_v38  ;;  %v9697_v38 = vor.u32 %v11427_v29, %v9694_v30 }
  0x86   : > { %4135 = vmatmul.bf16.gmra.mxu2 %v9269_v39 }
  0x87   : > { %10112 = vmatmul.msk.bf16.gmra.mxu3 %vm1561_vm0, %v9665_v40 }
  0x94   : > { %1894 = vmatmul.bf16.gmra.mxu0 %v8347_v49  ;;  %v11332_v49 = vld [vmem:[%s12213_s4 + $0xa4] sm:$0xf0] }
  0x95   : > { %9183 = vmatmul.msk.bf16.gmra.mxu1 %vm1561_vm0, %v8743_v50  ;;  %v11429_v50 = vld [vmem:[%s12213_s4 + $0x3b4] sm:$0xf]  ;;  %v9309_v58 = vor.u32 %v11332_v49, %v9308_v48 }
  0x96   : > { %4140 = vmatmul.bf16.gmra.mxu2 %v9277_v51  ;;  %v9702_v51 = vld [vmem:[%s12213_s4 + $0x3b8] sm:$0xf0] }
  0x97   : > { %10113 = vmatmul.msk.bf16.gmra.mxu3 %vm1561_vm0, %v9673_v52  ;;  %v9705_v59 = vor.u32 %v11429_v50, %v9702_v51 }
  0xa2   : > { %v12356_v63 = vpop.f32.mrf.mxu1 }
  0xa4   : > { %1899 = vmatmul.bf16.gmra.mxu0 %v8355_v61 }
  0xa5   : > { %9184 = vmatmul.msk.bf16.gmra.mxu1 %vm1561_vm0, %v8751_v62 }
  0xa6   : > { %4145 = vmatmul.bf16.gmra.mxu2 %v9285_v0 }
  0xa7   : > { %10114 = vmatmul.msk.bf16.gmra.mxu3 %vm1561_vm0, %v9681_v1 }
  0xaa   : > { %v12360_v2 = vpop.f32.mrf.mxu3  ;;  %v12362_v3 = vpop.f32.mrf.mxu1 }
  0xab   : > { %15975 = vst [vmem:[#allocation5_spill] sm:$0xff] %v12360_v2 }
  0xb1   : > { %v12374_v15 = vpop.f32.mrf.mxu0 }
  0xb2   : > { %v12372_v12 = vpop.f32.mrf.mxu3  ;;  %15977 = vst [vmem:[#allocation7_spill] sm:$0xff] %v12374_v15  ;;  %v12376_v16 = vpop.f32.mrf.mxu1 }
  0xb3   : > { %15976 = vst [vmem:[#allocation6_spill] sm:$0xff] %v12372_v12 }
  0xb4   : > { %1904 = vmatmul.bf16.gmra.mxu0 %v8363_v13 }
  0xb5   : > { %9185 = vmatmul.msk.bf16.gmra.mxu1 %vm1561_vm0, %v8759_v14 }
  0xb6   : > { %4150 = vmatmul.bf16.gmra.mxu2 %v9293_v17  ;;  %v8387_v17 = vor.u32 %v11542_v5, %v8386_v4 }
  0xb7   : > { %10115 = vmatmul.msk.bf16.gmra.mxu3 %vm1561_vm0, %v9689_v18  ;;  %v8783_v18 = vor.u32 %v11639_v6, %v8780_v7  ;;  %v8402_v6 = vld [vmem:[%s12213_s4 + $0x108] sm:$0xf]  ;;  %v11546_v7 = vld [vmem:[%s12213_s4 + $0x10c] sm:$0xf0] }
  0xb9   : > { %v12380_v19 = vpop.f32.mrf.mxu2  ;;  %v12384_v21 = vpop.f32.mrf.mxu0 }
  0xba   : > { %15978 = vst [vmem:[#allocation8_spill] sm:$0xff] %v12380_v19  ;;  %v12382_v20 = vpop.f32.mrf.mxu3  ;;  %v12386_v22 = vpop.f32.mrf.mxu1 }
  0xbb   : > { %15979 = vst [vmem:[#allocation9_spill] sm:$0xff] %v12382_v20 }
  0xbc   : > { %15980 = vst [vmem:[#allocation10_spill] sm:$0xff] %v12384_v21 }
  0xc1   : > { %v12396_v31 = vpop.f32.mrf.mxu2  ;;  %v12400_v35 = vpop.f32.mrf.mxu0 }
  0xc2   : > { %15981 = vst [vmem:[#allocation11_spill] sm:$0xff] %v12396_v31  ;;  %v12398_v32 = vpop.f32.mrf.mxu3  ;;  %v12402_v36 = vpop.f32.mrf.mxu1 }
  0xc3   : > { %15982 = vst [vmem:[#allocation12_spill] sm:$0xff] %v12398_v32 }
  0xc4   : > { %15983 = vst [vmem:[#allocation13_spill] sm:$0xff] %v12400_v35  ;;  %1909 = vmatmul.bf16.gmra.mxu0 %v8371_v33  ;;  %v8394_v33 = vld [vmem:[%s12213_s4 + $0xf8] sm:$0xf] }
  0xc5   : > { %9186 = vmatmul.msk.bf16.gmra.mxu1 %vm1561_vm0, %v8767_v34  ;;  %v11544_v34 = vld [vmem:[%s12213_s4 + $0xfc] sm:$0xf0] }
  0xc6   : > { %4155 = vmatmul.bf16.gmra.mxu2 %v9301_v37  ;;  %v11641_v37 = vld [vmem:[%s12213_s4 + $0x40c] sm:$0xf]  ;;  %v8395_v49 = vor.u32 %v11544_v34, %v8394_v33  ;;  %v8403_v33 = vor.u32 %v11546_v7, %v8402_v6  ;;  %v8799_v34 = vor.u32 %v11643_v8, %v8796_v9  ;;  %v8804_v7 = vld [vmem:[%s12213_s4 + $0x430] sm:$0xf0]  ;;  %v9340_v8 = vld [vmem:[%s12213_s4 + $0xe0] sm:$0xf] }
  0xc7   : > { %10116 = vmatmul.msk.bf16.gmra.mxu3 %vm1561_vm0, %v9697_v38  ;;  %v8788_v38 = vld [vmem:[%s12213_s4 + $0x410] sm:$0xf0]  ;;  %v11645_v6 = vld [vmem:[%s12213_s4 + $0x42c] sm:$0xf]  ;;  %v11340_v9 = vld [vmem:[%s12213_s4 + $0xe4] sm:$0xf0] }
  0xc8   : > { %v8791_v50 = vor.u32 %v11641_v37, %v8788_v38 }
  0xc9   : > { %v12406_v39 = vpop.f32.mrf.mxu2  ;;  %v12410_v41 = vpop.f32.mrf.mxu0 }
  0xca   : > { %15984 = vst [vmem:[#allocation14_spill] sm:$0xff] %v12406_v39  ;;  %v12408_v40 = vpop.f32.mrf.mxu3  ;;  %v12412_v42 = vpop.f32.mrf.mxu1 }
  0xcb   : > { %15985 = vst [vmem:[#allocation15_spill] sm:$0xff] %v12408_v40 }
  0xcc   : > { %15986 = vst [vmem:[#allocation16_spill] sm:$0xff] %v12410_v41 }
  0xd1   : > { %v12425_v52 = vpop.f32.mrf.mxu2  ;;  %v12429_v56 = vpop.f32.mrf.mxu0 }
  0xd2   : > { %15987 = vst [vmem:[#allocation17_spill] sm:$0xff] %v12425_v52  ;;  %v12427_v53 = vpop.f32.mrf.mxu3  ;;  %v12431_v57 = vpop.f32.mrf.mxu1 }
  0xd3   : > { %15988 = vst [vmem:[#allocation18_spill] sm:$0xff] %v12427_v53 }
  0xd4   : > { %15989 = vst [vmem:[#allocation19_spill] sm:$0xff] %v12429_v56  ;;  %1914 = vmatmul.bf16.gmra.mxu0 %v8379_v54 }
  0xd5   : > { %9187 = vmatmul.msk.bf16.gmra.mxu1 %vm1561_vm0, %v8775_v55  ;;  %v9325_v55 = vor.u32 %v11336_v44, %v9324_v43  ;;  %v9333_v43 = vor.u32 %v11338_v11, %v9332_v10  ;;  %v11437_v10 = vld [vmem:[%s12213_s4 + $0x3f4] sm:$0xf]  ;;  %v9734_v11 = vld [vmem:[%s12213_s4 + $0x3f8] sm:$0xf0] }
  0xd6   : > { %4160 = vmatmul.bf16.gmra.mxu2 %v9309_v58  ;;  %v9721_v58 = vor.u32 %v11433_v45, %v9718_v46 }
  0xd7   : > { %10117 = vmatmul.msk.bf16.gmra.mxu3 %vm1561_vm0, %v9705_v59 }
  0xd9   : > { %v12438_v61 = vpop.f32.mrf.mxu2  ;;  %v12442_v0 = vpop.f32.mrf.mxu0 }
  0xda   : > { %15990 = vst [vmem:[#allocation20_spill] sm:$0xff] %v12438_v61  ;;  %v12440_v62 = vpop.f32.mrf.mxu3  ;;  %v12444_v1 = vpop.f32.mrf.mxu1 }
  0xdb   : > { %15991 = vst [vmem:[#allocation21_spill] sm:$0xff] %v12440_v62 }
  0xdc   : > { %15992 = vst [vmem:[#allocation22_spill] sm:$0xff] %v12442_v0 }
  0xe1   : > { %v12454_v13 = vpop.f32.mrf.mxu2  ;;  %v12458_v23 = vpop.f32.mrf.mxu0 }
  0xe2   : > { %15993 = vst [vmem:[#allocation23_spill] sm:$0xff] %v12454_v13  ;;  %v12456_v14 = vpop.f32.mrf.mxu3  ;;  %v12460_v24 = vpop.f32.mrf.mxu1 }
  0xe3   : > { %15994 = vst [vmem:[#allocation24_spill] sm:$0xff] %v12456_v14 }
  0xe4   : > { %15995 = vst [vmem:[#allocation25_spill] sm:$0xff] %v12458_v23  ;;  %1919 = vmatmul.bf16.gmra.mxu0 %v8387_v17  ;;  %v11435_v17 = vld [vmem:[%s12213_s4 + $0x3e4] sm:$0xf] }
  0xe5   : > { %9188 = vmatmul.msk.bf16.gmra.mxu1 %vm1561_vm0, %v8783_v18  ;;  %v9726_v18 = vld [vmem:[%s12213_s4 + $0x3e8] sm:$0xf0] }
  0xe6   : > { %4165 = vmatmul.bf16.gmra.mxu2 %v9317_v25  ;;  %v9729_v44 = vor.u32 %v11435_v17, %v9726_v18 }
  0xe7   : > { %10118 = vmatmul.msk.bf16.gmra.mxu3 %vm1561_vm0, %v9713_v26 }
  0xe9   : > { %v12464_v27 = vpop.f32.mrf.mxu2  ;;  %v12468_v29 = vpop.f32.mrf.mxu0 }
  0xea   : > { %15996 = vst [vmem:[#allocation26_spill] sm:$0xff] %v12464_v27  ;;  %v12466_v28 = vpop.f32.mrf.mxu3  ;;  %v12470_v30 = vpop.f32.mrf.mxu1 }
  0xeb   : > { %15997 = vst [vmem:[#allocation27_spill] sm:$0xff] %v12466_v28 }
  0xec   : > { %15998 = vst [vmem:[#allocation28_spill] sm:$0xff] %v12468_v29 }
  0xf1   : > { %v12480_v47 = vpop.f32.mrf.mxu2  ;;  %v12484_v51 = vpop.f32.mrf.mxu0 }
  0xf2   : > { %15999 = vst [vmem:[#allocation29_spill] sm:$0xff] %v12480_v47  ;;  %v12482_v48 = vpop.f32.mrf.mxu3  ;;  %v12486_v54 = vpop.f32.mrf.mxu1 }
  0xf3   : > { %16000 = vst [vmem:[#allocation30_spill] sm:$0xff] %v12482_v48 }
  0xf4   : > { %16001 = vst [vmem:[#allocation31_spill] sm:$0xff] %v12484_v51  ;;  %1924 = vmatmul.bf16.gmra.mxu0 %v8395_v49 }
  0xf5   : > { %9189 = vmatmul.msk.bf16.gmra.mxu1 %vm1561_vm0, %v8791_v50 }
  0xf6   : > { %4170 = vmatmul.bf16.gmra.mxu2 %v9325_v55  ;;  %v8410_v55 = vld [vmem:[%s12213_s4 + $0x118] sm:$0xf] }
  0xf7   : > { %10119 = vmatmul.msk.bf16.gmra.mxu3 %vm1561_vm0, %v9721_v58  ;;  %v11548_v58 = vld [vmem:[%s12213_s4 + $0x11c] sm:$0xf0] }
  0xf9   : > { %v12490_v59 = vpop.f32.mrf.mxu2  ;;  %v12494_v4 = vpop.f32.mrf.mxu0 }
  0xfa   : > { %16002 = vst [vmem:[#allocation32_spill] sm:$0xff] %v12490_v59  ;;  %v12492_v60 = vpop.f32.mrf.mxu3  ;;  %v12496_v5 = vpop.f32.mrf.mxu1 }
  0xfb   : > { %16003 = vst [vmem:[#allocation33_spill] sm:$0xff] %v12492_v60 }
  0xfc   : > { %16004 = vst [vmem:[#allocation34_spill] sm:$0xff] %v12494_v4 }
 0x101   : > { %v12506_v25 = vpop.f32.mrf.mxu2  ;;  %v12510_v37 = vpop.f32.mrf.mxu0 }
 0x102   : > { %16005 = vst [vmem:[#allocation35_spill] sm:$0xff] %v12506_v25  ;;  %v12508_v26 = vpop.f32.mrf.mxu3  ;;  %v12512_v38 = vpop.f32.mrf.mxu1 }
 0x103   : > { %16006 = vst [vmem:[#allocation36_spill] sm:$0xff] %v12508_v26 }
 0x104   : > { %16007 = vst [vmem:[#allocation37_spill] sm:$0xff] %v12510_v37  ;;  %1929 = vmatmul.bf16.gmra.mxu0 %v8403_v33  ;;  %v8411_v33 = vor.u32 %v11548_v58, %v8410_v55 }
 0x105   : > { %9190 = vmatmul.msk.bf16.gmra.mxu1 %vm1561_vm0, %v8799_v34  ;;  %v8807_v34 = vor.u32 %v11645_v6, %v8804_v7 }
 0x106   : > { %4175 = vmatmul.bf16.gmra.mxu2 %v9333_v43 }
 0x107   : > { %10120 = vmatmul.msk.bf16.gmra.mxu3 %vm1561_vm0, %v9729_v44 }
 0x109   : > { %v12516_v45 = vpop.f32.mrf.mxu2  ;;  %v12520_v49 = vpop.f32.mrf.mxu0 }
 0x10a   : > { %16008 = vst [vmem:[#allocation38_spill] sm:$0xff] %v12516_v45  ;;  %v12518_v46 = vpop.f32.mrf.mxu3  ;;  %v12522_v50 = vpop.f32.mrf.mxu1 }
 0x10b   : > { %16009 = vst [vmem:[#allocation39_spill] sm:$0xff] %v12518_v46  ;;  %v9737_v46 = vor.u32 %v11437_v10, %v9734_v11  ;;  %v9348_v10 = vld [vmem:[%s12213_s4 + $0xf0] sm:$0xf]  ;;  %v11342_v11 = vld [vmem:[%s12213_s4 + $0xf4] sm:$0xf0] }
 0x10c   : > { %16010 = vst [vmem:[#allocation40_spill] sm:$0xff] %v12520_v49  ;;  %v9341_v49 = vor.u32 %v11340_v9, %v9340_v8  ;;  %v11647_v8 = vld [vmem:[%s12213_s4 + $0x43c] sm:$0xf]  ;;  %v8812_v9 = vld [vmem:[%s12213_s4 + $0x440] sm:$0xf0]  ;;  %v9349_v45 = vor.u32 %v11342_v11, %v9348_v10 }
 0x10d   : > { %v11649_v10 = vld [vmem:[%s12213_s4 + $0x44c] sm:$0xf]  ;;  %v8820_v11 = vld [vmem:[%s12213_s4 + $0x450] sm:$0xf0] }
 0x111   : > { %v12532_v17 = vpop.f32.mrf.mxu2  ;;  %v12536_v43 = vpop.f32.mrf.mxu0 }
 0x112   : > { %16011 = vst [vmem:[#allocation41_spill] sm:$0xff] %v12532_v17  ;;  %v12534_v18 = vpop.f32.mrf.mxu3  ;;  %v12538_v44 = vpop.f32.mrf.mxu1  ;;  %v9742_v17 = vld [vmem:[%s12213_s4 + $0x408] sm:$0xf0] }
 0x113   : > { %16012 = vst [vmem:[#allocation42_spill] sm:$0xff] %v12534_v18  ;;  %v11550_v18 = vld [vmem:[%s12213_s4 + $0x12c] sm:$0xf0] }
 0x114   : > { %16013 = vst [vmem:[#allocation43_spill] sm:$0xff] %v12536_v43  ;;  %1934 = vmatmul.bf16.gmra.mxu0 %v8411_v33  ;;  %v8418_v43 = vld [vmem:[%s12213_s4 + $0x128] sm:$0xf]  ;;  %v11439_v33 = vld [vmem:[%s12213_s4 + $0x404] sm:$0xf] }
 0x115   : > { %9191 = vmatmul.msk.bf16.gmra.mxu1 %vm1561_vm0, %v8807_v34  ;;  %v9745_v37 = vor.u32 %v11439_v33, %v9742_v17  ;;  %v9356_v17 = vld [vmem:[%s12213_s4 + $0x100] sm:$0xf]  ;;  %v11344_v33 = vld [vmem:[%s12213_s4 + $0x104] sm:$0xf0] }
 0x116   : > { %4180 = vmatmul.bf16.gmra.mxu2 %v9341_v49  ;;  %v8419_v49 = vor.u32 %v11550_v18, %v8418_v43  ;;  %v9357_v26 = vor.u32 %v11344_v33, %v9356_v17  ;;  %v8434_v17 = vld [vmem:[%s12213_s4 + $0x148] sm:$0xf]  ;;  %v11554_v33 = vld [vmem:[%s12213_s4 + $0x14c] sm:$0xf0] }
 0x117   : > { %10121 = vmatmul.msk.bf16.gmra.mxu3 %vm1561_vm0, %v9737_v46 }
 0x119   : > { %v12542_v55 = vpop.f32.mrf.mxu2  ;;  %v12546_v6 = vpop.f32.mrf.mxu0 }
 0x11a   : > { %16014 = vst [vmem:[#allocation44_spill] sm:$0xff] %v12542_v55  ;;  %v12544_v58 = vpop.f32.mrf.mxu3  ;;  %v12548_v7 = vpop.f32.mrf.mxu1 }
 0x11b   : > { %16015 = vst [vmem:[#allocation45_spill] sm:$0xff] %v12544_v58  ;;  %v8815_v58 = vor.u32 %v11647_v8, %v8812_v9 }
 0x11c   : > { %16016 = vst [vmem:[#allocation46_spill] sm:$0xff] %v12546_v6 }
 0x121   : > { %v12558_v34 = vpop.f32.mrf.mxu2  ;;  %v12562_v6 = vpop.f32.mrf.mxu0 }
 0x122   : > { %16017 = vst [vmem:[#allocation47_spill] sm:$0xff] %v12558_v34  ;;  %v12560_v46 = vpop.f32.mrf.mxu3  ;;  %v12564_v55 = vpop.f32.mrf.mxu1  ;;  %v9750_v34 = vld [vmem:[%s12213_s4 + $0x418] sm:$0xf0] }
 0x123   : > { %16018 = vst [vmem:[#allocation48_spill] sm:$0xff] %v12560_v46  ;;  %v11552_v46 = vld [vmem:[%s12213_s4 + $0x13c] sm:$0xf0] }
 0x124   : > { %16019 = vst [vmem:[#allocation49_spill] sm:$0xff] %v12562_v6  ;;  %1939 = vmatmul.bf16.gmra.mxu0 %v8419_v49  ;;  %v8426_v6 = vld [vmem:[%s12213_s4 + $0x138] sm:$0xf]  ;;  %v11441_v49 = vld [vmem:[%s12213_s4 + $0x414] sm:$0xf] }
 0x125   : > { %9192 = vmatmul.msk.bf16.gmra.mxu1 %vm1561_vm0, %v8815_v58  ;;  %v9753_v25 = vor.u32 %v11441_v49, %v9750_v34  ;;  %v8828_v49 = vld [vmem:[%s12213_s4 + $0x460] sm:$0xf0] }
 0x126   : > { %4185 = vmatmul.bf16.gmra.mxu2 %v9349_v45 }
 0x127   : > { %10122 = vmatmul.msk.bf16.gmra.mxu3 %vm1561_vm0, %v9745_v37  ;;  %v8427_v37 = vor.u32 %v11552_v46, %v8426_v6  ;;  %v11927_v6 = vld [vmem:[%s15971_s1 + $0xe0] sm:$0xff] }
 0x128   : > { %6576 = vmatpush.bf16.msrb.mxu1 %v11927_v6 }
 0x129   : > { %v12568_v18 = vpop.f32.mrf.mxu2  ;;  %v12572_v8 = vpop.f32.mrf.mxu0 }
 0x12a   : > { %16020 = vst [vmem:[#allocation50_spill] sm:$0xff] %v12568_v18  ;;  %v12570_v43 = vpop.f32.mrf.mxu3  ;;  %v12574_v9 = vpop.f32.mrf.mxu1  ;;  %v8823_v18 = vor.u32 %v11649_v10, %v8820_v11 }
 0x12b   : > { %16021 = vst [vmem:[#allocation51_spill] sm:$0xff] %v12570_v43 }
 0x12c   : > { %16022 = vst [vmem:[#allocation52_spill] sm:$0xff] %v12572_v8 }
 0x131   : > { %v12584_v58 = vpop.f32.mrf.mxu2  ;;  %v12588_v43 = vpop.f32.mrf.mxu0 }
 0x132   : > { %16023 = vst [vmem:[#allocation53_spill] sm:$0xff] %v12584_v58  ;;  %v12586_v45 = vpop.f32.mrf.mxu3  ;;  %v12590_v8 = vpop.f32.mrf.mxu1 }
 0x133   : > { %16024 = vst [vmem:[#allocation54_spill] sm:$0xff] %v12586_v45 }
 0x134   : > { %16025 = vst [vmem:[#allocation55_spill] sm:$0xff] %v12588_v43  ;;  %1944 = vmatmul.bf16.gmra.mxu0 %v8427_v37  ;;  %v11346_v37 = vld [vmem:[%s12213_s4 + $0x114] sm:$0xf0]  ;;  %v9758_v43 = vld [vmem:[%s12213_s4 + $0x428] sm:$0xf0] }
 0x135   : > { %9193 = vmatmul.msk.bf16.gmra.mxu1 %vm1561_vm0, %v8823_v18  ;;  %v11651_v18 = vld [vmem:[%s12213_s4 + $0x45c] sm:$0xf] }
 0x136   : > { %4190 = vmatmul.bf16.gmra.mxu2 %v9357_v26  ;;  %v9364_v26 = vld [vmem:[%s12213_s4 + $0x110] sm:$0xf] }
 0x137   : > { %10123 = vmatmul.msk.bf16.gmra.mxu3 %vm1561_vm0, %v9753_v25  ;;  %v11443_v25 = vld [vmem:[%s12213_s4 + $0x424] sm:$0xf]  ;;  %v9365_v4 = vor.u32 %v11346_v37, %v9364_v26  ;;  %v11653_v26 = vld [vmem:[%s12213_s4 + $0x46c] sm:$0xf]  ;;  %v8836_v37 = vld [vmem:[%s12213_s4 + $0x470] sm:$0xf0] }
 0x138   : > { %v9761_v60 = vor.u32 %v11443_v25, %v9758_v43  ;;  %v9372_v43 = vld [vmem:[%s12213_s4 + $0x120] sm:$0xf]  ;;  %v11348_v25 = vld [vmem:[%s12213_s4 + $0x124] sm:$0xf0] }
 0x139   : > { %v12597_v46 = vpop.f32.mrf.mxu2  ;;  %v12601_v11 = vpop.f32.mrf.mxu0  ;;  %v9373_v59 = vor.u32 %v11348_v25, %v9372_v43  ;;  %v11655_v43 = vld [vmem:[%s12213_s4 + $0x47c] sm:$0xf]  ;;  %v8844_v25 = vld [vmem:[%s12213_s4 + $0x480] sm:$0xf0] }
 0x13a   : > { %16026 = vst [vmem:[#allocation56_spill] sm:$0xff] %v12597_v46  ;;  %v12599_v10 = vpop.f32.mrf.mxu3  ;;  %v12603_v34 = vpop.f32.mrf.mxu1  ;;  %v8435_v46 = vor.u32 %v11554_v33, %v8434_v17 }
 0x13b   : > { %16027 = vst [vmem:[#allocation57_spill] sm:$0xff] %v12599_v10  ;;  %v8831_v10 = vor.u32 %v11651_v18, %v8828_v49 }
 0x13c   : > { %16028 = vst [vmem:[#allocation58_spill] sm:$0xff] %v12601_v11 }
 0x141   : > { %v12613_v45 = vpop.f32.mrf.mxu2  ;;  %v12617_v11 = vpop.f32.mrf.mxu0 }
 0x142   : > { %16029 = vst [vmem:[#allocation59_spill] sm:$0xff] %v12613_v45  ;;  %v12615_v6 = vpop.f32.mrf.mxu3  ;;  %v12619_v58 = vpop.f32.mrf.mxu1  ;;  %v9766_v45 = vld [vmem:[%s12213_s4 + $0x438] sm:$0xf0] }
 0x143   : > { %16030 = vst [vmem:[#allocation60_spill] sm:$0xff] %v12615_v6  ;;  %v11556_v6 = vld [vmem:[%s12213_s4 + $0x15c] sm:$0xf0] }
 0x144   : > { %16031 = vst [vmem:[#allocation61_spill] sm:$0xff] %v12617_v11  ;;  %1949 = vmatmul.bf16.gmra.mxu0 %v8435_v46  ;;  %v8442_v11 = vld [vmem:[%s12213_s4 + $0x158] sm:$0xf]  ;;  %v11445_v46 = vld [vmem:[%s12213_s4 + $0x434] sm:$0xf] }
 0x145   : > { %9194 = vmatmul.msk.bf16.gmra.mxu1 %vm1561_vm0, %v8831_v10  ;;  %v9769_v51 = vor.u32 %v11445_v46, %v9766_v45  ;;  %v9380_v45 = vld [vmem:[%s12213_s4 + $0x130] sm:$0xf]  ;;  %v11350_v46 = vld [vmem:[%s12213_s4 + $0x134] sm:$0xf0] }
 0x146   : > { %4195 = vmatmul.bf16.gmra.mxu2 %v9365_v4  ;;  %v8443_v4 = vor.u32 %v11556_v6, %v8442_v11  ;;  %v9381_v48 = vor.u32 %v11350_v46, %v9380_v45  ;;  %v11657_v45 = vld [vmem:[%s12213_s4 + $0x48c] sm:$0xf]  ;;  %v8852_v46 = vld [vmem:[%s12213_s4 + $0x490] sm:$0xf0] }
 0x147   : > { %10124 = vmatmul.msk.bf16.gmra.mxu3 %vm1561_vm0, %v9761_v60 }
 0x149   : > { %v12623_v17 = vpop.f32.mrf.mxu2  ;;  %v12627_v18 = vpop.f32.mrf.mxu0 }
 0x14a   : > { %16032 = vst [vmem:[#allocation62_spill] sm:$0xff] %v12623_v17  ;;  %v12625_v33 = vpop.f32.mrf.mxu3  ;;  %v12629_v49 = vpop.f32.mrf.mxu1 }
 0x14b   : > { %16033 = vst [vmem:[#allocation63_spill] sm:$0xff] %v12625_v33  ;;  %v8839_v33 = vor.u32 %v11653_v26, %v8836_v37 }
 0x14c   : > { %16034 = vst [vmem:[#allocation64_spill] sm:$0xff] %v12627_v18 }
 0x151   : > { %v12639_v10 = vpop.f32.mrf.mxu2  ;;  %v12643_v18 = vpop.f32.mrf.mxu0 }
 0x152   : > { %16035 = vst [vmem:[#allocation65_spill] sm:$0xff] %v12639_v10  ;;  %v12641_v60 = vpop.f32.mrf.mxu3  ;;  %v12645_v17 = vpop.f32.mrf.mxu1  ;;  %v9774_v10 = vld [vmem:[%s12213_s4 + $0x448] sm:$0xf0] }
 0x153   : > { %16036 = vst [vmem:[#allocation66_spill] sm:$0xff] %v12641_v60  ;;  %v11558_v60 = vld [vmem:[%s12213_s4 + $0x16c] sm:$0xf0] }
 0x154   : > { %16037 = vst [vmem:[#allocation67_spill] sm:$0xff] %v12643_v18  ;;  %1954 = vmatmul.bf16.gmra.mxu0 %v8443_v4  ;;  %v8450_v18 = vld [vmem:[%s12213_s4 + $0x168] sm:$0xf]  ;;  %v11447_v4 = vld [vmem:[%s12213_s4 + $0x444] sm:$0xf] }
 0x155   : > { %9195 = vmatmul.msk.bf16.gmra.mxu1 %vm1561_vm0, %v8839_v33  ;;  %v9777_v47 = vor.u32 %v11447_v4, %v9774_v10  ;;  %v9388_v10 = vld [vmem:[%s12213_s4 + $0x140] sm:$0xf]  ;;  %v11352_v4 = vld [vmem:[%s12213_s4 + $0x144] sm:$0xf0] }
 0x156   : > { %4200 = vmatmul.bf16.gmra.mxu2 %v9373_v59  ;;  %v8451_v59 = vor.u32 %v11558_v60, %v8450_v18  ;;  %v9389_v29 = vor.u32 %v11352_v4, %v9388_v10  ;;  %v11659_v10 = vld [vmem:[%s12213_s4 + $0x49c] sm:$0xf]  ;;  %v8860_v4 = vld [vmem:[%s12213_s4 + $0x4a0] sm:$0xf0] }
 0x157   : > { %10125 = vmatmul.msk.bf16.gmra.mxu3 %vm1561_vm0, %v9769_v51 }
 0x159   : > { %v12649_v11 = vpop.f32.mrf.mxu2  ;;  %v12653_v26 = vpop.f32.mrf.mxu0 }
 0x15a   : > { %16038 = vst [vmem:[#allocation68_spill] sm:$0xff] %v12649_v11  ;;  %v12651_v6 = vpop.f32.mrf.mxu3  ;;  %v12655_v37 = vpop.f32.mrf.mxu1 }
 0x15b   : > { %16039 = vst [vmem:[#allocation69_spill] sm:$0xff] %v12651_v6  ;;  %v8847_v6 = vor.u32 %v11655_v43, %v8844_v25 }
 0x15c   : > { %16040 = vst [vmem:[#allocation70_spill] sm:$0xff] %v12653_v26 }
 0x161   : > { %v12665_v33 = vpop.f32.mrf.mxu2  ;;  %v12669_v26 = vpop.f32.mrf.mxu0 }
 0x162   : > { %16041 = vst [vmem:[#allocation71_spill] sm:$0xff] %v12665_v33  ;;  %v12667_v51 = vpop.f32.mrf.mxu3  ;;  %v12671_v11 = vpop.f32.mrf.mxu1  ;;  %v9782_v33 = vld [vmem:[%s12213_s4 + $0x458] sm:$0xf0] }
 0x163   : > { %16042 = vst [vmem:[#allocation72_spill] sm:$0xff] %v12667_v51  ;;  %v11560_v51 = vld [vmem:[%s12213_s4 + $0x17c] sm:$0xf0] }
 0x164   : > { %16043 = vst [vmem:[#allocation73_spill] sm:$0xff] %v12669_v26  ;;  %1959 = vmatmul.bf16.gmra.mxu0 %v8451_v59  ;;  %v8458_v26 = vld [vmem:[%s12213_s4 + $0x178] sm:$0xf]  ;;  %v11449_v59 = vld [vmem:[%s12213_s4 + $0x454] sm:$0xf] }
 0x165   : > { %9196 = vmatmul.msk.bf16.gmra.mxu1 %vm1561_vm0, %v8847_v6  ;;  %v9785_v28 = vor.u32 %v11449_v59, %v9782_v33  ;;  %v9396_v33 = vld [vmem:[%s12213_s4 + $0x150] sm:$0xf]  ;;  %v11354_v59 = vld [vmem:[%s12213_s4 + $0x154] sm:$0xf0] }
 0x166   : > { %4205 = vmatmul.bf16.gmra.mxu2 %v9381_v48  ;;  %v8459_v48 = vor.u32 %v11560_v51, %v8458_v26  ;;  %v9397_v27 = vor.u32 %v11354_v59, %v9396_v33  ;;  %v11661_v33 = vld [vmem:[%s12213_s4 + $0x4ac] sm:$0xf]  ;;  %v8868_v59 = vld [vmem:[%s12213_s4 + $0x4b0] sm:$0xf0] }
 0x167   : > { %10126 = vmatmul.msk.bf16.gmra.mxu3 %vm1561_vm0, %v9777_v47 }
 0x169   : > { %v12675_v18 = vpop.f32.mrf.mxu2  ;;  %v12679_v43 = vpop.f32.mrf.mxu0 }
 0x16a   : > { %16044 = vst [vmem:[#allocation74_spill] sm:$0xff] %v12675_v18  ;;  %v12677_v60 = vpop.f32.mrf.mxu3  ;;  %v12681_v25 = vpop.f32.mrf.mxu1 }
 0x16b   : > { %16045 = vst [vmem:[#allocation75_spill] sm:$0xff] %v12677_v60  ;;  %v8855_v60 = vor.u32 %v11657_v45, %v8852_v46 }
 0x16c   : > { %16046 = vst [vmem:[#allocation76_spill] sm:$0xff] %v12679_v43 }
 0x171   : > { %v12691_v6 = vpop.f32.mrf.mxu2  ;;  %v12695_v43 = vpop.f32.mrf.mxu0 }
 0x172   : > { %16047 = vst [vmem:[#allocation77_spill] sm:$0xff] %v12691_v6  ;;  %v12693_v47 = vpop.f32.mrf.mxu3  ;;  %v12697_v18 = vpop.f32.mrf.mxu1  ;;  %v9790_v6 = vld [vmem:[%s12213_s4 + $0x468] sm:$0xf0] }
 0x173   : > { %16048 = vst [vmem:[#allocation78_spill] sm:$0xff] %v12693_v47  ;;  %v11562_v47 = vld [vmem:[%s12213_s4 + $0x18c] sm:$0xf0] }
 0x174   : > { %16049 = vst [vmem:[#allocation79_spill] sm:$0xff] %v12695_v43  ;;  %1964 = vmatmul.bf16.gmra.mxu0 %v8459_v48  ;;  %v8466_v43 = vld [vmem:[%s12213_s4 + $0x188] sm:$0xf]  ;;  %v11451_v48 = vld [vmem:[%s12213_s4 + $0x464] sm:$0xf] }
 0x175   : > { %9197 = vmatmul.msk.bf16.gmra.mxu1 %vm1561_vm0, %v8855_v60  ;;  %v9793_v23 = vor.u32 %v11451_v48, %v9790_v6  ;;  %v9404_v6 = vld [vmem:[%s12213_s4 + $0x160] sm:$0xf]  ;;  %v11356_v48 = vld [vmem:[%s12213_s4 + $0x164] sm:$0xf0] }
 0x176   : > { %4210 = vmatmul.bf16.gmra.mxu2 %v9389_v29  ;;  %v8467_v29 = vor.u32 %v11562_v47, %v8466_v43 }
 0x177   : > { %10127 = vmatmul.msk.bf16.gmra.mxu3 %vm1561_vm0, %v9785_v28 }
 0x179   : > { %v12701_v26 = vpop.f32.mrf.mxu2  ;;  %v12705_v45 = vpop.f32.mrf.mxu0 }
 0x17a   : > { %16050 = vst [vmem:[#allocation80_spill] sm:$0xff] %v12701_v26  ;;  %v12703_v51 = vpop.f32.mrf.mxu3  ;;  %v12707_v46 = vpop.f32.mrf.mxu1 }
 0x17b   : > { %16051 = vst [vmem:[#allocation81_spill] sm:$0xff] %v12703_v51  ;;  %v8863_v51 = vor.u32 %v11659_v10, %v8860_v4 }
 0x17c   : > { %16052 = vst [vmem:[#allocation82_spill] sm:$0xff] %v12705_v45 }
 0x181   : > { %v12717_v60 = vpop.f32.mrf.mxu2  ;;  %v12721_v45 = vpop.f32.mrf.mxu0 }
 0x182   : > { %16053 = vst [vmem:[#allocation83_spill] sm:$0xff] %v12717_v60  ;;  %v12719_v28 = vpop.f32.mrf.mxu3  ;;  %v12723_v26 = vpop.f32.mrf.mxu1  ;;  %v9798_v60 = vld [vmem:[%s12213_s4 + $0x478] sm:$0xf0] }
 0x183   : > { %16054 = vst [vmem:[#allocation84_spill] sm:$0xff] %v12719_v28  ;;  %v11564_v28 = vld [vmem:[%s12213_s4 + $0x19c] sm:$0xf0] }
 0x184   : > { %16055 = vst [vmem:[#allocation85_spill] sm:$0xff] %v12721_v45  ;;  %1969 = vmatmul.bf16.gmra.mxu0 %v8467_v29  ;;  %v8474_v45 = vld [vmem:[%s12213_s4 + $0x198] sm:$0xf]  ;;  %v11453_v29 = vld [vmem:[%s12213_s4 + $0x474] sm:$0xf] }
 0x185   : > { %9198 = vmatmul.msk.bf16.gmra.mxu1 %vm1561_vm0, %v8863_v51  ;;  %v9801_v13 = vor.u32 %v11453_v29, %v9798_v60  ;;  %v9412_v29 = vld [vmem:[%s12213_s4 + $0x170] sm:$0xf] }
 0x186   : > { %4215 = vmatmul.bf16.gmra.mxu2 %v9397_v27 }
 0x187   : > { %10128 = vmatmul.msk.bf16.gmra.mxu3 %vm1561_vm0, %v9793_v23  ;;  %v8475_v23 = vor.u32 %v11564_v28, %v8474_v45  ;;  %v11932_v45 = vld [vmem:[%s15971_s1 + $0x108] sm:$0xff] }
 0x188   : > { %7078 = vmatpush.bf16.msrb.mxu3 %v11932_v45  ;;  %v11455_v45 = vld [vmem:[%s12213_s4 + $0x484] sm:$0xf] }
 0x189   : > { %v12727_v43 = vpop.f32.mrf.mxu2  ;;  %v12731_v10 = vpop.f32.mrf.mxu0 }
 0x18a   : > { %16056 = vst [vmem:[#allocation86_spill] sm:$0xff] %v12727_v43  ;;  %v12729_v47 = vpop.f32.mrf.mxu3  ;;  %v12733_v4 = vpop.f32.mrf.mxu1  ;;  %v8871_v43 = vor.u32 %v11661_v33, %v8868_v59 }
 0x18b   : > { %16057 = vst [vmem:[#allocation87_spill] sm:$0xff] %v12729_v47  ;;  %v9405_v47 = vor.u32 %v11356_v48, %v9404_v6  ;;  %v11663_v6 = vld [vmem:[%s12213_s4 + $0x4bc] sm:$0xf]  ;;  %v8876_v48 = vld [vmem:[%s12213_s4 + $0x4c0] sm:$0xf0] }
 0x18c   : > { %16058 = vst [vmem:[#allocation88_spill] sm:$0xff] %v12731_v10 }
 0x191   : > { %v12743_v51 = vpop.f32.mrf.mxu2  ;;  %v12747_v14 = vpop.f32.mrf.mxu0 }
 0x192   : > { %16059 = vst [vmem:[#allocation89_spill] sm:$0xff] %v12743_v51  ;;  %v12745_v27 = vpop.f32.mrf.mxu3  ;;  %v12749_v10 = vpop.f32.mrf.mxu1 }
 0x193   : > { %16060 = vst [vmem:[#allocation90_spill] sm:$0xff] %v12745_v27  ;;  %v8879_v27 = vor.u32 %v11663_v6, %v8876_v48 }
 0x194   : > { %16061 = vst [vmem:[#allocation91_spill] sm:$0xff] %v12747_v14  ;;  %1974 = vmatmul.bf16.gmra.mxu0 %v8475_v23  ;;  %v11358_v23 = vld [vmem:[%s12213_s4 + $0x174] sm:$0xf0]  ;;  %v9806_v14 = vld [vmem:[%s12213_s4 + $0x488] sm:$0xf0] }
 0x195   : > { %9199 = vmatmul.msk.bf16.gmra.mxu1 %vm1561_vm0, %v8871_v43  ;;  %v11926_v43 = vld [vmem:[%s15971_s1 + $0xd8] sm:$0xff]  ;;  %v9413_v0 = vor.u32 %v11358_v23, %v9412_v29  ;;  %v9809_v62 = vor.u32 %v11455_v45, %v9806_v14  ;;  %v11665_v29 = vld [vmem:[%s12213_s4 + $0x4cc] sm:$0xf]  ;;  %v8884_v23 = vld [vmem:[%s12213_s4 + $0x4d0] sm:$0xf0] }
 0x196   : > { %4220 = vmatmul.bf16.gmra.mxu2 %v9405_v47  ;;  %6577 = vmatpush.bf16.msrb.mxu1 %v11926_v43  ;;  %v11566_v47 = vld [vmem:[%s12213_s4 + $0x1ac] sm:$0xf0]  ;;  %v9420_v14 = vld [vmem:[%s12213_s4 + $0x180] sm:$0xf]  ;;  %v11360_v45 = vld [vmem:[%s12213_s4 + $0x184] sm:$0xf0] }
 0x197   : > { %10129 = vmatmul.msk.bf16.gmra.mxu3 %vm1561_vm0, %v9801_v13  ;;  %v8482_v13 = vld [vmem:[%s12213_s4 + $0x1a8] sm:$0xf]  ;;  %v9421_v61 = vor.u32 %v11360_v45, %v9420_v14  ;;  %v11667_v14 = vld [vmem:[%s12213_s4 + $0x4dc] sm:$0xf]  ;;  %v8892_v45 = vld [vmem:[%s12213_s4 + $0x4e0] sm:$0xf0] }
 0x199   : > { %v12756_v28 = vpop.f32.mrf.mxu2  ;;  %v12760_v60 = vpop.f32.mrf.mxu0 }
 0x19a   : > { %16062 = vst [vmem:[#allocation92_spill] sm:$0xff] %v12756_v28  ;;  %v12758_v33 = vpop.f32.mrf.mxu3  ;;  %v12762_v59 = vpop.f32.mrf.mxu1 }
 0x19b   : > { %16063 = vst [vmem:[#allocation93_spill] sm:$0xff] %v12758_v33 }
 0x19c   : > { %16064 = vst [vmem:[#allocation94_spill] sm:$0xff] %v12760_v60  ;;  %v8483_v60 = vor.u32 %v11566_v47, %v8482_v13 }
 0x1a1   : > { %v12775_v28 = vpop.f32.mrf.mxu2  ;;  %v12779_v51 = vpop.f32.mrf.mxu0 }
 0x1a2   : > { %16065 = vst [vmem:[#allocation95_spill] sm:$0xff] %v12775_v28  ;;  %v12777_v33 = vpop.f32.mrf.mxu3  ;;  %v12781_v43 = vpop.f32.mrf.mxu1  ;;  %v9814_v28 = vld [vmem:[%s12213_s4 + $0x498] sm:$0xf0] }
 0x1a3   : > { %16066 = vst [vmem:[#allocation96_spill] sm:$0xff] %v12777_v33  ;;  %v11568_v33 = vld [vmem:[%s12213_s4 + $0x1bc] sm:$0xf0] }
 0x1a4   : > { %16067 = vst [vmem:[#allocation97_spill] sm:$0xff] %v12779_v51  ;;  %1979 = vmatmul.bf16.gmra.mxu0 %v8483_v60  ;;  %v8490_v51 = vld [vmem:[%s12213_s4 + $0x1b8] sm:$0xf]  ;;  %v11457_v60 = vld [vmem:[%s12213_s4 + $0x494] sm:$0xf] }
 0x1a5   : > { %9200 = vmatmul.msk.bf16.gmra.mxu1 %vm1561_vm0, %v8879_v27  ;;  %v9817_v56 = vor.u32 %v11457_v60, %v9814_v28  ;;  %v9428_v28 = vld [vmem:[%s12213_s4 + $0x190] sm:$0xf]  ;;  %v11362_v60 = vld [vmem:[%s12213_s4 + $0x194] sm:$0xf0] }
 0x1a6   : > { %4225 = vmatmul.bf16.gmra.mxu2 %v9413_v0  ;;  %v8491_v0 = vor.u32 %v11568_v33, %v8490_v51  ;;  %v9429_v53 = vor.u32 %v11362_v60, %v9428_v28  ;;  %v11669_v28 = vld [vmem:[%s12213_s4 + $0x4ec] sm:$0xf]  ;;  %v8900_v60 = vld [vmem:[%s12213_s4 + $0x4f0] sm:$0xf0] }
 0x1a7   : > { %10130 = vmatmul.msk.bf16.gmra.mxu3 %vm1561_vm0, %v9809_v62 }
 0x1a9   : > { %v12785_v13 = vpop.f32.mrf.mxu2  ;;  %v12789_v6 = vpop.f32.mrf.mxu0 }
 0x1aa   : > { %16068 = vst [vmem:[#allocation98_spill] sm:$0xff] %v12785_v13  ;;  %v12787_v47 = vpop.f32.mrf.mxu3  ;;  %v12791_v48 = vpop.f32.mrf.mxu1 }
 0x1ab   : > { %16069 = vst [vmem:[#allocation99_spill] sm:$0xff] %v12787_v47  ;;  %v8887_v47 = vor.u32 %v11665_v29, %v8884_v23 }
 0x1ac   : > { %16070 = vst [vmem:[#allocation100_spill] sm:$0xff] %v12789_v6 }
 0x1b1   : > { %v12801_v27 = vpop.f32.mrf.mxu2  ;;  %v12805_v6 = vpop.f32.mrf.mxu0 }
 0x1b2   : > { %16071 = vst [vmem:[#allocation101_spill] sm:$0xff] %v12801_v27  ;;  %v12803_v62 = vpop.f32.mrf.mxu3  ;;  %v12807_v13 = vpop.f32.mrf.mxu1  ;;  %v9822_v27 = vld [vmem:[%s12213_s4 + $0x4a8] sm:$0xf0] }
 0x1b3   : > { %16072 = vst [vmem:[#allocation102_spill] sm:$0xff] %v12803_v62  ;;  %v11570_v62 = vld [vmem:[%s12213_s4 + $0x1cc] sm:$0xf0] }
 0x1b4   : > { %16073 = vst [vmem:[#allocation103_spill] sm:$0xff] %v12805_v6  ;;  %1984 = vmatmul.bf16.gmra.mxu0 %v8491_v0  ;;  %v8498_v6 = vld [vmem:[%s12213_s4 + $0x1c8] sm:$0xf]  ;;  %v11459_v0 = vld [vmem:[%s12213_s4 + $0x4a4] sm:$0xf] }
 0x1b5   : > { %9201 = vmatmul.msk.bf16.gmra.mxu1 %vm1561_vm0, %v8887_v47  ;;  %v9825_v52 = vor.u32 %v11459_v0, %v9822_v27  ;;  %v9436_v27 = vld [vmem:[%s12213_s4 + $0x1a0] sm:$0xf]  ;;  %v11364_v0 = vld [vmem:[%s12213_s4 + $0x1a4] sm:$0xf0] }
 0x1b6   : > { %4230 = vmatmul.bf16.gmra.mxu2 %v9421_v61  ;;  %v8499_v61 = vor.u32 %v11570_v62, %v8498_v6  ;;  %v9437_v41 = vor.u32 %v11364_v0, %v9436_v27  ;;  %v11671_v27 = vld [vmem:[%s12213_s4 + $0x4fc] sm:$0xf]  ;;  %v8908_v0 = vld [vmem:[%s12213_s4 + $0x500] sm:$0xf0] }
 0x1b7   : > { %10131 = vmatmul.msk.bf16.gmra.mxu3 %vm1561_vm0, %v9817_v56 }
 0x1b9   : > { %v12811_v51 = vpop.f32.mrf.mxu2  ;;  %v12815_v29 = vpop.f32.mrf.mxu0 }
 0x1ba   : > { %16074 = vst [vmem:[#allocation104_spill] sm:$0xff] %v12811_v51  ;;  %v12813_v33 = vpop.f32.mrf.mxu3  ;;  %v12817_v23 = vpop.f32.mrf.mxu1 }
 0x1bb   : > { %16075 = vst [vmem:[#allocation105_spill] sm:$0xff] %v12813_v33  ;;  %v8895_v33 = vor.u32 %v11667_v14, %v8892_v45 }
 0x1bc   : > { %16076 = vst [vmem:[#allocation106_spill] sm:$0xff] %v12815_v29 }
 0x1c1   : > { %v12827_v47 = vpop.f32.mrf.mxu2  ;;  %v12831_v29 = vpop.f32.mrf.mxu0 }
 0x1c2   : > { %16077 = vst [vmem:[#allocation107_spill] sm:$0xff] %v12827_v47  ;;  %v12829_v56 = vpop.f32.mrf.mxu3  ;;  %v12833_v51 = vpop.f32.mrf.mxu1  ;;  %v9830_v47 = vld [vmem:[%s12213_s4 + $0x4b8] sm:$0xf0] }
 0x1c3   : > { %16078 = vst [vmem:[#allocation108_spill] sm:$0xff] %v12829_v56  ;;  %v11572_v56 = vld [vmem:[%s12213_s4 + $0x1dc] sm:$0xf0] }
 0x1c4   : > { %16079 = vst [vmem:[#allocation109_spill] sm:$0xff] %v12831_v29  ;;  %1989 = vmatmul.bf16.gmra.mxu0 %v8499_v61  ;;  %v8506_v29 = vld [vmem:[%s12213_s4 + $0x1d8] sm:$0xf]  ;;  %v11461_v61 = vld [vmem:[%s12213_s4 + $0x4b4] sm:$0xf] }
 0x1c5   : > { %9202 = vmatmul.msk.bf16.gmra.mxu1 %vm1561_vm0, %v8895_v33  ;;  %v9833_v40 = vor.u32 %v11461_v61, %v9830_v47  ;;  %v9444_v47 = vld [vmem:[%s12213_s4 + $0x1b0] sm:$0xf]  ;;  %v11366_v61 = vld [vmem:[%s12213_s4 + $0x1b4] sm:$0xf0] }
 0x1c6   : > { %4235 = vmatmul.bf16.gmra.mxu2 %v9429_v53  ;;  %v8507_v53 = vor.u32 %v11572_v56, %v8506_v29  ;;  %v9445_v39 = vor.u32 %v11366_v61, %v9444_v47  ;;  %v11673_v47 = vld [vmem:[%s12213_s4 + $0x50c] sm:$0xf]  ;;  %v8916_v61 = vld [vmem:[%s12213_s4 + $0x510] sm:$0xf0] }
 0x1c7   : > { %10132 = vmatmul.msk.bf16.gmra.mxu3 %vm1561_vm0, %v9825_v52 }
 0x1c9   : > { %v12837_v6 = vpop.f32.mrf.mxu2  ;;  %v12841_v14 = vpop.f32.mrf.mxu0 }
 0x1ca   : > { %16080 = vst [vmem:[#allocation110_spill] sm:$0xff] %v12837_v6  ;;  %v12839_v62 = vpop.f32.mrf.mxu3  ;;  %v12843_v45 = vpop.f32.mrf.mxu1 }
 0x1cb   : > { %16081 = vst [vmem:[#allocation111_spill] sm:$0xff] %v12839_v62  ;;  %v8903_v62 = vor.u32 %v11669_v28, %v8900_v60 }
 0x1cc   : > { %16082 = vst [vmem:[#allocation112_spill] sm:$0xff] %v12841_v14 }
 0x1d1   : > { %v12853_v33 = vpop.f32.mrf.mxu2  ;;  %v12857_v14 = vpop.f32.mrf.mxu0 }
 0x1d2   : > { %16083 = vst [vmem:[#allocation113_spill] sm:$0xff] %v12853_v33  ;;  %v12855_v52 = vpop.f32.mrf.mxu3  ;;  %v12859_v6 = vpop.f32.mrf.mxu1  ;;  %v9838_v33 = vld [vmem:[%s12213_s4 + $0x4c8] sm:$0xf0] }
 0x1d3   : > { %16084 = vst [vmem:[#allocation114_spill] sm:$0xff] %v12855_v52  ;;  %v11574_v52 = vld [vmem:[%s12213_s4 + $0x1ec] sm:$0xf0] }
 0x1d4   : > { %16085 = vst [vmem:[#allocation115_spill] sm:$0xff] %v12857_v14  ;;  %1994 = vmatmul.bf16.gmra.mxu0 %v8507_v53  ;;  %v8514_v14 = vld [vmem:[%s12213_s4 + $0x1e8] sm:$0xf]  ;;  %v11463_v53 = vld [vmem:[%s12213_s4 + $0x4c4] sm:$0xf] }
 0x1d5   : > { %9203 = vmatmul.msk.bf16.gmra.mxu1 %vm1561_vm0, %v8903_v62  ;;  %v9841_v35 = vor.u32 %v11463_v53, %v9838_v33  ;;  %v9452_v33 = vld [vmem:[%s12213_s4 + $0x1c0] sm:$0xf]  ;;  %v11368_v53 = vld [vmem:[%s12213_s4 + $0x1c4] sm:$0xf0] }
 0x1d6   : > { %4240 = vmatmul.bf16.gmra.mxu2 %v9437_v41  ;;  %v8515_v41 = vor.u32 %v11574_v52, %v8514_v14  ;;  %v9453_v32 = vor.u32 %v11368_v53, %v9452_v33  ;;  %v8530_v33 = vld [vmem:[%s12213_s4 + $0x208] sm:$0xf]  ;;  %v11578_v53 = vld [vmem:[%s12213_s4 + $0x20c] sm:$0xf0] }
 0x1d7   : > { %10133 = vmatmul.msk.bf16.gmra.mxu3 %vm1561_vm0, %v9833_v40 }
 0x1d9   : > { %v12863_v29 = vpop.f32.mrf.mxu2  ;;  %v12867_v28 = vpop.f32.mrf.mxu0 }
 0x1da   : > { %16086 = vst [vmem:[#allocation116_spill] sm:$0xff] %v12863_v29  ;;  %v12865_v56 = vpop.f32.mrf.mxu3  ;;  %v12869_v60 = vpop.f32.mrf.mxu1 }
 0x1db   : > { %16087 = vst [vmem:[#allocation117_spill] sm:$0xff] %v12865_v56  ;;  %v8911_v56 = vor.u32 %v11671_v27, %v8908_v0 }
 0x1dc   : > { %16088 = vst [vmem:[#allocation118_spill] sm:$0xff] %v12867_v28 }
 0x1e1   : > { %v12879_v62 = vpop.f32.mrf.mxu2  ;;  %v12883_v28 = vpop.f32.mrf.mxu0 }
 0x1e2   : > { %16089 = vst [vmem:[#allocation119_spill] sm:$0xff] %v12879_v62  ;;  %v12881_v40 = vpop.f32.mrf.mxu3  ;;  %v12885_v29 = vpop.f32.mrf.mxu1  ;;  %v9846_v62 = vld [vmem:[%s12213_s4 + $0x4d8] sm:$0xf0] }
 0x1e3   : > { %16090 = vst [vmem:[#allocation120_spill] sm:$0xff] %v12881_v40  ;;  %v11576_v40 = vld [vmem:[%s12213_s4 + $0x1fc] sm:$0xf0] }
 0x1e4   : > { %16091 = vst [vmem:[#allocation121_spill] sm:$0xff] %v12883_v28  ;;  %1999 = vmatmul.bf16.gmra.mxu0 %v8515_v41  ;;  %v8522_v28 = vld [vmem:[%s12213_s4 + $0x1f8] sm:$0xf]  ;;  %v11465_v41 = vld [vmem:[%s12213_s4 + $0x4d4] sm:$0xf] }
 0x1e5   : > { %9204 = vmatmul.msk.bf16.gmra.mxu1 %vm1561_vm0, %v8911_v56  ;;  %v9849_v31 = vor.u32 %v11465_v41, %v9846_v62  ;;  %v11925_v62 = vld [vmem:[%s15971_s1 + $0xd0] sm:$0xff]  ;;  %v8924_v41 = vld [vmem:[%s12213_s4 + $0x520] sm:$0xf0] }
 0x1e6   : > { %4245 = vmatmul.bf16.gmra.mxu2 %v9445_v39  ;;  %6578 = vmatpush.bf16.msrb.mxu1 %v11925_v62 }
 0x1e7   : > { %10134 = vmatmul.msk.bf16.gmra.mxu3 %vm1561_vm0, %v9841_v35  ;;  %v8523_v35 = vor.u32 %v11576_v40, %v8522_v28 }
 0x1e9   : > { %v12889_v14 = vpop.f32.mrf.mxu2  ;;  %v12893_v27 = vpop.f32.mrf.mxu0 }
 0x1ea   : > { %16092 = vst [vmem:[#allocation122_spill] sm:$0xff] %v12889_v14  ;;  %v12891_v52 = vpop.f32.mrf.mxu3  ;;  %v12895_v0 = vpop.f32.mrf.mxu1  ;;  %v8919_v14 = vor.u32 %v11673_v47, %v8916_v61 }
 0x1eb   : > { %16093 = vst [vmem:[#allocation123_spill] sm:$0xff] %v12891_v52 }
 0x1ec   : > { %16094 = vst [vmem:[#allocation124_spill] sm:$0xff] %v12893_v27 }
 0x1f1   : > { %v12905_v56 = vpop.f32.mrf.mxu2  ;;  %v12909_v52 = vpop.f32.mrf.mxu0 }
 0x1f2   : > { %16095 = vst [vmem:[#allocation125_spill] sm:$0xff] %v12905_v56  ;;  %v12907_v39 = vpop.f32.mrf.mxu3  ;;  %v12911_v27 = vpop.f32.mrf.mxu1 }
 0x1f3   : > { %16096 = vst [vmem:[#allocation126_spill] sm:$0xff] %v12907_v39 }
 0x1f4   : > { %16097 = vst [vmem:[#allocation127_spill] sm:$0xff] %v12909_v52  ;;  %2004 = vmatmul.bf16.gmra.mxu0 %v8523_v35  ;;  %v11370_v35 = vld [vmem:[%s12213_s4 + $0x1d4] sm:$0xf0]  ;;  %v9854_v52 = vld [vmem:[%s12213_s4 + $0x4e8] sm:$0xf0] }
 0x1f5   : > { %9205 = vmatmul.msk.bf16.gmra.mxu1 %vm1561_vm0, %v8919_v14  ;;  %v11675_v14 = vld [vmem:[%s12213_s4 + $0x51c] sm:$0xf] }
 0x1f6   : > { %4250 = vmatmul.bf16.gmra.mxu2 %v9453_v32  ;;  %v9460_v32 = vld [vmem:[%s12213_s4 + $0x1d0] sm:$0xf]  ;;  %v8927_v39 = vor.u32 %v11675_v14, %v8924_v41 }
 0x1f7   : > { %10135 = vmatmul.msk.bf16.gmra.mxu3 %vm1561_vm0, %v9849_v31  ;;  %v11467_v31 = vld [vmem:[%s12213_s4 + $0x4e4] sm:$0xf]  ;;  %v9461_v21 = vor.u32 %v11370_v35, %v9460_v32  ;;  %v11677_v32 = vld [vmem:[%s12213_s4 + $0x52c] sm:$0xf]  ;;  %v8932_v35 = vld [vmem:[%s12213_s4 + $0x530] sm:$0xf0] }
 0x1f8   : > { %v9857_v20 = vor.u32 %v11467_v31, %v9854_v52  ;;  %v9468_v52 = vld [vmem:[%s12213_s4 + $0x1e0] sm:$0xf]  ;;  %v11372_v31 = vld [vmem:[%s12213_s4 + $0x1e4] sm:$0xf0] }
 0x1f9   : > { %v12915_v28 = vpop.f32.mrf.mxu2  ;;  %v12919_v47 = vpop.f32.mrf.mxu0  ;;  %v9469_v19 = vor.u32 %v11372_v31, %v9468_v52  ;;  %v11679_v52 = vld [vmem:[%s12213_s4 + $0x53c] sm:$0xf]  ;;  %v8940_v31 = vld [vmem:[%s12213_s4 + $0x540] sm:$0xf0] }
 0x1fa   : > { %16098 = vst [vmem:[#allocation128_spill] sm:$0xff] %v12915_v28  ;;  %v12917_v40 = vpop.f32.mrf.mxu3  ;;  %v12921_v61 = vpop.f32.mrf.mxu1 }
 0x1fb   : > { %16099 = vst [vmem:[#allocation129_spill] sm:$0xff] %v12917_v40 }
 0x1fc   : > { %16100 = vst [vmem:[#allocation130_spill] sm:$0xff] %v12919_v47  ;;  %v8531_v47 = vor.u32 %v11578_v53, %v8530_v33 }
 0x201   : > { %v12934_v28 = vpop.f32.mrf.mxu2  ;;  %v12938_v56 = vpop.f32.mrf.mxu0 }
 0x202   : > { %16101 = vst [vmem:[#allocation131_spill] sm:$0xff] %v12934_v28  ;;  %v12936_v40 = vpop.f32.mrf.mxu3  ;;  %v12940_v62 = vpop.f32.mrf.mxu1  ;;  %v9862_v28 = vld [vmem:[%s12213_s4 + $0x4f8] sm:$0xf0] }
 0x203   : > { %16102 = vst [vmem:[#allocation132_spill] sm:$0xff] %v12936_v40  ;;  %v11580_v40 = vld [vmem:[%s12213_s4 + $0x21c] sm:$0xf0] }
 0x204   : > { %16103 = vst [vmem:[#allocation133_spill] sm:$0xff] %v12938_v56  ;;  %2009 = vmatmul.bf16.gmra.mxu0 %v8531_v47  ;;  %v8538_v56 = vld [vmem:[%s12213_s4 + $0x218] sm:$0xf]  ;;  %v11469_v47 = vld [vmem:[%s12213_s4 + $0x4f4] sm:$0xf] }
 0x205   : > { %9206 = vmatmul.msk.bf16.gmra.mxu1 %vm1561_vm0, %v8927_v39  ;;  %v9865_v15 = vor.u32 %v11469_v47, %v9862_v28  ;;  %v9476_v28 = vld [vmem:[%s12213_s4 + $0x1f0] sm:$0xf]  ;;  %v11374_v47 = vld [vmem:[%s12213_s4 + $0x1f4] sm:$0xf0] }
 0x206   : > { %4255 = vmatmul.bf16.gmra.mxu2 %v9461_v21  ;;  %v8539_v21 = vor.u32 %v11580_v40, %v8538_v56  ;;  %v9477_v12 = vor.u32 %v11374_v47, %v9476_v28  ;;  %v11681_v28 = vld [vmem:[%s12213_s4 + $0x54c] sm:$0xf]  ;;  %v8948_v47 = vld [vmem:[%s12213_s4 + $0x550] sm:$0xf0] }
 0x207   : > { %10136 = vmatmul.msk.bf16.gmra.mxu3 %vm1561_vm0, %v9857_v20 }
 0x209   : > { %v12944_v33 = vpop.f32.mrf.mxu2  ;;  %v12948_v14 = vpop.f32.mrf.mxu0 }
 0x20a   : > { %16104 = vst [vmem:[#allocation134_spill] sm:$0xff] %v12944_v33  ;;  %v12946_v53 = vpop.f32.mrf.mxu3  ;;  %v12950_v41 = vpop.f32.mrf.mxu1 }
 0x20b   : > { %16105 = vst [vmem:[#allocation135_spill] sm:$0xff] %v12946_v53  ;;  %v8935_v53 = vor.u32 %v11677_v32, %v8932_v35 }
 0x20c   : > { %16106 = vst [vmem:[#allocation136_spill] sm:$0xff] %v12948_v14 }
 0x211   : > { %v12960_v39 = vpop.f32.mrf.mxu2  ;;  %v12964_v14 = vpop.f32.mrf.mxu0 }
 0x212   : > { %16107 = vst [vmem:[#allocation137_spill] sm:$0xff] %v12960_v39  ;;  %v12962_v20 = vpop.f32.mrf.mxu3  ;;  %v12966_v33 = vpop.f32.mrf.mxu1  ;;  %v9870_v39 = vld [vmem:[%s12213_s4 + $0x508] sm:$0xf0] }
 0x213   : > { %16108 = vst [vmem:[#allocation138_spill] sm:$0xff] %v12962_v20  ;;  %v11582_v20 = vld [vmem:[%s12213_s4 + $0x22c] sm:$0xf0] }
 0x214   : > { %16109 = vst [vmem:[#allocation139_spill] sm:$0xff] %v12964_v14  ;;  %2014 = vmatmul.bf16.gmra.mxu0 %v8539_v21  ;;  %v8546_v14 = vld [vmem:[%s12213_s4 + $0x228] sm:$0xf]  ;;  %v11471_v21 = vld [vmem:[%s12213_s4 + $0x504] sm:$0xf] }
 0x215   : > { %16110 = vst [vmem:[#allocation140_spill] sm:$0xff] %v12966_v33  ;;  %9207 = vmatmul.msk.bf16.gmra.mxu1 %vm1561_vm0, %v8935_v53  ;;  %v9873_v2 = vor.u32 %v11471_v21, %v9870_v39  ;;  %v9484_v39 = vld [vmem:[%s12213_s4 + $0x200] sm:$0xf]  ;;  %v11376_v21 = vld [vmem:[%s12213_s4 + $0x204] sm:$0xf0] }
 0x216   : > { %4260 = vmatmul.bf16.gmra.mxu2 %v9469_v19  ;;  %v8547_v19 = vor.u32 %v11582_v20, %v8546_v14 }
 0x217   : > { %10137 = vmatmul.msk.bf16.gmra.mxu3 %vm1561_vm0, %v9865_v15 }
 0x219   : > { %v12970_v56 = vpop.f32.mrf.mxu2  ;;  %v12974_v32 = vpop.f32.mrf.mxu0 }
 0x21a   : > { %16111 = vst [vmem:[#allocation141_spill] sm:$0xff] %v12970_v56  ;;  %v12972_v40 = vpop.f32.mrf.mxu3  ;;  %v12976_v35 = vpop.f32.mrf.mxu1 }
 0x21b   : > { %16112 = vst [vmem:[#allocation142_spill] sm:$0xff] %v12972_v40  ;;  %v8943_v40 = vor.u32 %v11679_v52, %v8940_v31 }
 0x21c   : > { %16113 = vst [vmem:[#allocation143_spill] sm:$0xff] %v12974_v32 }
 0x21d   : > { %16114 = vst [vmem:[#allocation144_spill] sm:$0xff] %v12976_v35 }
 0x221   : > { %v12986_v53 = vpop.f32.mrf.mxu2  ;;  %v12990_v32 = vpop.f32.mrf.mxu0 }
 0x222   : > { %16115 = vst [vmem:[#allocation145_spill] sm:$0xff] %v12986_v53  ;;  %v12988_v15 = vpop.f32.mrf.mxu3  ;;  %v12992_v56 = vpop.f32.mrf.mxu1  ;;  %v9878_v53 = vld [vmem:[%s12213_s4 + $0x518] sm:$0xf0] }
 0x223   : > { %16116 = vst [vmem:[#allocation146_spill] sm:$0xff] %v12988_v15  ;;  %v11584_v15 = vld [vmem:[%s12213_s4 + $0x23c] sm:$0xf0] }
 0x224   : > { %16117 = vst [vmem:[#allocation147_spill] sm:$0xff] %v12990_v32  ;;  %2019 = vmatmul.bf16.gmra.mxu0 %v8547_v19  ;;  %v8554_v32 = vld [vmem:[%s12213_s4 + $0x238] sm:$0xf]  ;;  %v11473_v19 = vld [vmem:[%s12213_s4 + $0x514] sm:$0xf] }
 0x225   : > { %16118 = vst [vmem:[#allocation148_spill] sm:$0xff] %v12992_v56  ;;  %9208 = vmatmul.msk.bf16.gmra.mxu1 %vm1561_vm0, %v8943_v40  ;;  %v9881_v56 = vor.u32 %v11473_v19, %v9878_v53  ;;  %v9492_v53 = vld [vmem:[%s12213_s4 + $0x210] sm:$0xf]  ;;  %v11378_v19 = vld [vmem:[%s12213_s4 + $0x214] sm:$0xf0] }
 0x226   : > { %4265 = vmatmul.bf16.gmra.mxu2 %v9477_v12  ;;  %v8555_v12 = vor.u32 %v11584_v15, %v8554_v32 }
 0x227   : > { %10138 = vmatmul.msk.bf16.gmra.mxu3 %vm1561_vm0, %v9873_v2 }
 0x229   : > { %v12996_v14 = vpop.f32.mrf.mxu2  ;;  %v13000_v52 = vpop.f32.mrf.mxu0 }
 0x22a   : > { %16119 = vst [vmem:[#allocation149_spill] sm:$0xff] %v12996_v14  ;;  %v12998_v20 = vpop.f32.mrf.mxu3  ;;  %v13002_v31 = vpop.f32.mrf.mxu1 }
 0x22b   : > { %16120 = vst [vmem:[#allocation150_spill] sm:$0xff] %v12998_v20  ;;  %v8951_v20 = vor.u32 %v11681_v28, %v8948_v47 }
 0x22c   : > { %16121 = vst [vmem:[#allocation151_spill] sm:$0xff] %v13000_v52 }
 0x22d   : > { %16122 = vst [vmem:[#allocation152_spill] sm:$0xff] %v13002_v31  ;;  %v9485_v31 = vor.u32 %v11376_v21, %v9484_v39  ;;  %v11683_v39 = vld [vmem:[%s12213_s4 + $0x55c] sm:$0xf]  ;;  %v8956_v21 = vld [vmem:[%s12213_s4 + $0x560] sm:$0xf0] }
 0x231   : > { %v13012_v40 = vpop.f32.mrf.mxu2  ;;  %v13016_v52 = vpop.f32.mrf.mxu0 }
 0x232   : > { %16123 = vst [vmem:[#allocation153_spill] sm:$0xff] %v13012_v40  ;;  %v13014_v2 = vpop.f32.mrf.mxu3  ;;  %v13018_v14 = vpop.f32.mrf.mxu1  ;;  %v9886_v40 = vld [vmem:[%s12213_s4 + $0x528] sm:$0xf0] }
 0x233   : > { %16124 = vst [vmem:[#allocation154_spill] sm:$0xff] %v13014_v2  ;;  %v11586_v2 = vld [vmem:[%s12213_s4 + $0x24c] sm:$0xf0] }
 0x234   : > { %16125 = vst [vmem:[#allocation155_spill] sm:$0xff] %v13016_v52  ;;  %2024 = vmatmul.bf16.gmra.mxu0 %v8555_v12  ;;  %v8562_v52 = vld [vmem:[%s12213_s4 + $0x248] sm:$0xf]  ;;  %v11475_v12 = vld [vmem:[%s12213_s4 + $0x524] sm:$0xf] }
 0x235   : > { %16126 = vst [vmem:[#allocation156_spill] sm:$0xff] %v13018_v14  ;;  %9209 = vmatmul.msk.bf16.gmra.mxu1 %vm1561_vm0, %v8951_v20  ;;  %v9889_v14 = vor.u32 %v11475_v12, %v9886_v40  ;;  %v9500_v40 = vld [vmem:[%s12213_s4 + $0x220] sm:$0xf]  ;;  %v11380_v12 = vld [vmem:[%s12213_s4 + $0x224] sm:$0xf0] }
 0x236   : > { %4270 = vmatmul.bf16.gmra.mxu2 %v9485_v31  ;;  %v8563_v31 = vor.u32 %v11586_v2, %v8562_v52 }
 0x237   : > { %10139 = vmatmul.msk.bf16.gmra.mxu3 %vm1561_vm0, %v9881_v56 }
 0x239   : > { %v13022_v32 = vpop.f32.mrf.mxu2  ;;  %v13026_v28 = vpop.f32.mrf.mxu0 }
 0x23a   : > { %16127 = vst [vmem:[#allocation157_spill] sm:$0xff] %v13022_v32  ;;  %v13024_v15 = vpop.f32.mrf.mxu3  ;;  %v13028_v47 = vpop.f32.mrf.mxu1 }
 0x23b   : > { %16128 = vst [vmem:[#allocation158_spill] sm:$0xff] %v13024_v15  ;;  %v8959_v15 = vor.u32 %v11683_v39, %v8956_v21 }
 0x23c   : > { %16129 = vst [vmem:[#allocation159_spill] sm:$0xff] %v13026_v28 }
 0x23d   : > { %16130 = vst [vmem:[#allocation160_spill] sm:$0xff] %v13028_v47  ;;  %v9493_v47 = vor.u32 %v11378_v19, %v9492_v53  ;;  %v11685_v53 = vld [vmem:[%s12213_s4 + $0x56c] sm:$0xf]  ;;  %v8964_v19 = vld [vmem:[%s12213_s4 + $0x570] sm:$0xf0] }
 0x241   : > { %v13038_v20 = vpop.f32.mrf.mxu2  ;;  %v13042_v28 = vpop.f32.mrf.mxu0 }
 0x242   : > { %16131 = vst [vmem:[#allocation161_spill] sm:$0xff] %v13038_v20  ;;  %v13040_v56 = vpop.f32.mrf.mxu3  ;;  %v13044_v32 = vpop.f32.mrf.mxu1  ;;  %v9894_v20 = vld [vmem:[%s12213_s4 + $0x538] sm:$0xf0] }
 0x243   : > { %16132 = vst [vmem:[#allocation162_spill] sm:$0xff] %v13040_v56  ;;  %v11588_v56 = vld [vmem:[%s12213_s4 + $0x25c] sm:$0xf0] }
 0x244   : > { %16133 = vst [vmem:[#allocation163_spill] sm:$0xff] %v13042_v28  ;;  %2029 = vmatmul.bf16.gmra.mxu0 %v8563_v31  ;;  %v8570_v28 = vld [vmem:[%s12213_s4 + $0x258] sm:$0xf]  ;;  %v11477_v31 = vld [vmem:[%s12213_s4 + $0x534] sm:$0xf] }
 0x245   : > { %16134 = vst [vmem:[#allocation164_spill] sm:$0xff] %v13044_v32  ;;  %9210 = vmatmul.msk.bf16.gmra.mxu1 %vm1561_vm0, %v8959_v15  ;;  %v9897_v32 = vor.u32 %v11477_v31, %v9894_v20  ;;  %v11931_v20 = vld [vmem:[%s15971_s1 + $0x100] sm:$0xff] }
 0x246   : > { %4275 = vmatmul.bf16.gmra.mxu2 %v9493_v47  ;;  %7079 = vmatpush.bf16.msrb.mxu3 %v11931_v20  ;;  %v8972_v31 = vld [vmem:[%s12213_s4 + $0x580] sm:$0xf0] }
 0x247   : > { %10140 = vmatmul.msk.bf16.gmra.mxu3 %vm1561_vm0, %v9889_v14  ;;  %v8571_v14 = vor.u32 %v11588_v56, %v8570_v28 }
 0x249   : > { %v13048_v52 = vpop.f32.mrf.mxu2  ;;  %v13052_v39 = vpop.f32.mrf.mxu0 }
 0x24a   : > { %16135 = vst [vmem:[#allocation165_spill] sm:$0xff] %v13048_v52  ;;  %v13050_v2 = vpop.f32.mrf.mxu3  ;;  %v13054_v21 = vpop.f32.mrf.mxu1  ;;  %v8967_v52 = vor.u32 %v11685_v53, %v8964_v19 }
 0x24b   : > { %16136 = vst [vmem:[#allocation166_spill] sm:$0xff] %v13050_v2 }
 0x24c   : > { %16137 = vst [vmem:[#allocation167_spill] sm:$0xff] %v13052_v39 }
 0x24d   : > { %16138 = vst [vmem:[#allocation168_spill] sm:$0xff] %v13054_v21  ;;  %v9501_v21 = vor.u32 %v11380_v12, %v9500_v40  ;;  %v8578_v40 = vld [vmem:[%s12213_s4 + $0x268] sm:$0xf]  ;;  %v11590_v12 = vld [vmem:[%s12213_s4 + $0x26c] sm:$0xf0] }
 0x251   : > { %v13064_v15 = vpop.f32.mrf.mxu2  ;;  %v13068_v2 = vpop.f32.mrf.mxu0 }
 0x252   : > { %16139 = vst [vmem:[#allocation169_spill] sm:$0xff] %v13064_v15  ;;  %v13066_v47 = vpop.f32.mrf.mxu3  ;;  %v13070_v39 = vpop.f32.mrf.mxu1 }
 0x253   : > { %16140 = vst [vmem:[#allocation170_spill] sm:$0xff] %v13066_v47 }
 0x254   : > { %16141 = vst [vmem:[#allocation171_spill] sm:$0xff] %v13068_v2  ;;  %2034 = vmatmul.bf16.gmra.mxu0 %v8571_v14  ;;  %v11382_v14 = vld [vmem:[%s12213_s4 + $0x234] sm:$0xf0]  ;;  %v9902_v2 = vld [vmem:[%s12213_s4 + $0x548] sm:$0xf0] }
 0x255   : > { %16142 = vst [vmem:[#allocation172_spill] sm:$0xff] %v13070_v39  ;;  %9211 = vmatmul.msk.bf16.gmra.mxu1 %vm1561_vm0, %v8967_v52  ;;  %v11687_v52 = vld [vmem:[%s12213_s4 + $0x57c] sm:$0xf] }
 0x256   : > { %4280 = vmatmul.bf16.gmra.mxu2 %v9501_v21  ;;  %v9508_v21 = vld [vmem:[%s12213_s4 + $0x230] sm:$0xf]  ;;  %v8975_v47 = vor.u32 %v11687_v52, %v8972_v31  ;;  %v8586_v31 = vld [vmem:[%s12213_s4 + $0x278] sm:$0xf] }
 0x257   : > { %10141 = vmatmul.msk.bf16.gmra.mxu3 %vm1561_vm0, %v9897_v32  ;;  %v11479_v32 = vld [vmem:[%s12213_s4 + $0x544] sm:$0xf] }
 0x258   : > { %v9905_v39 = vor.u32 %v11479_v32, %v9902_v2  ;;  %v8980_v32 = vld [vmem:[%s12213_s4 + $0x590] sm:$0xf0] }
 0x259   : > { %v13074_v28 = vpop.f32.mrf.mxu2  ;;  %v13078_v53 = vpop.f32.mrf.mxu0 }
 0x25a   : > { %16143 = vst [vmem:[#allocation173_spill] sm:$0xff] %v13074_v28  ;;  %v13076_v56 = vpop.f32.mrf.mxu3  ;;  %v13080_v19 = vpop.f32.mrf.mxu1 }
 0x25b   : > { %16144 = vst [vmem:[#allocation174_spill] sm:$0xff] %v13076_v56 }
 0x25c   : > { %16145 = vst [vmem:[#allocation175_spill] sm:$0xff] %v13078_v53  ;;  %v8579_v53 = vor.u32 %v11590_v12, %v8578_v40 }
 0x25d   : > { %16146 = vst [vmem:[#allocation176_spill] sm:$0xff] %v13080_v19  ;;  %v9509_v19 = vor.u32 %v11382_v14, %v9508_v21  ;;  %v11592_v21 = vld [vmem:[%s12213_s4 + $0x27c] sm:$0xf0]  ;;  %v11689_v14 = vld [vmem:[%s12213_s4 + $0x58c] sm:$0xf] }
 0x261   : > { %v13093_v28 = vpop.f32.mrf.mxu2  ;;  %v13097_v15 = vpop.f32.mrf.mxu0 }
 0x262   : > { %16147 = vst [vmem:[#allocation177_spill] sm:$0xff] %v13093_v28  ;;  %v13095_v56 = vpop.f32.mrf.mxu3  ;;  %v13099_v20 = vpop.f32.mrf.mxu1  ;;  %v11924_v28 = vld [vmem:[%s15971_s1 + $0xc8] sm:$0xff] }
 0x263   : > { %16148 = vst [vmem:[#allocation178_spill] sm:$0xff] %v13095_v56  ;;  %6579 = vmatpush.bf16.msrb.mxu1 %v11924_v28  ;;  %v9516_v28 = vld [vmem:[%s12213_s4 + $0x240] sm:$0xf]  ;;  %v9910_v56 = vld [vmem:[%s12213_s4 + $0x558] sm:$0xf0] }
 0x264   : > { %16149 = vst [vmem:[#allocation179_spill] sm:$0xff] %v13097_v15  ;;  %2039 = vmatmul.bf16.gmra.mxu0 %v8579_v53  ;;  %v11384_v15 = vld [vmem:[%s12213_s4 + $0x244] sm:$0xf0]  ;;  %v11481_v53 = vld [vmem:[%s12213_s4 + $0x554] sm:$0xf] }
 0x265   : > { %16150 = vst [vmem:[#allocation180_spill] sm:$0xff] %v13099_v20  ;;  %9212 = vmatmul.msk.bf16.gmra.mxu1 %vm1561_vm0, %v8975_v47  ;;  %v9913_v20 = vor.u32 %v11481_v53, %v9910_v56  ;;  %v9524_v56 = vld [vmem:[%s12213_s4 + $0x250] sm:$0xf]  ;;  %v11386_v53 = vld [vmem:[%s12213_s4 + $0x254] sm:$0xf0] }
 0x266   : > { %4285 = vmatmul.bf16.gmra.mxu2 %v9509_v19  ;;  %v8587_v19 = vor.u32 %v11592_v21, %v8586_v31 }
 0x267   : > { %10142 = vmatmul.msk.bf16.gmra.mxu3 %vm1561_vm0, %v9905_v39 }
 0x269   : > { %v13106_v40 = vpop.f32.mrf.mxu2  ;;  %v13110_v52 = vpop.f32.mrf.mxu0 }
 0x26a   : > { %16151 = vst [vmem:[#allocation181_spill] sm:$0xff] %v13106_v40  ;;  %v13108_v12 = vpop.f32.mrf.mxu3  ;;  %v13112_v2 = vpop.f32.mrf.mxu1 }
 0x26b   : > { %16152 = vst [vmem:[#allocation182_spill] sm:$0xff] %v13108_v12  ;;  %v8983_v12 = vor.u32 %v11689_v14, %v8980_v32 }
 0x26c   : > { %16153 = vst [vmem:[#allocation183_spill] sm:$0xff] %v13110_v52 }
 0x26d   : > { %16154 = vst [vmem:[#allocation184_spill] sm:$0xff] %v13112_v2  ;;  %v9517_v2 = vor.u32 %v11384_v15, %v9516_v28  ;;  %v11691_v15 = vld [vmem:[%s12213_s4 + $0x59c] sm:$0xf]  ;;  %v8988_v28 = vld [vmem:[%s12213_s4 + $0x5a0] sm:$0xf0] }
 0x271   : > { %v13122_v47 = vpop.f32.mrf.mxu2  ;;  %v13126_v52 = vpop.f32.mrf.mxu0 }
 0x272   : > { %16155 = vst [vmem:[#allocation185_spill] sm:$0xff] %v13122_v47  ;;  %v13124_v39 = vpop.f32.mrf.mxu3  ;;  %v13128_v40 = vpop.f32.mrf.mxu1  ;;  %v9918_v47 = vld [vmem:[%s12213_s4 + $0x568] sm:$0xf0] }
 0x273   : > { %16156 = vst [vmem:[#allocation186_spill] sm:$0xff] %v13124_v39  ;;  %v11594_v39 = vld [vmem:[%s12213_s4 + $0x28c] sm:$0xf0] }
 0x274   : > { %16157 = vst [vmem:[#allocation187_spill] sm:$0xff] %v13126_v52  ;;  %2044 = vmatmul.bf16.gmra.mxu0 %v8587_v19  ;;  %v8594_v52 = vld [vmem:[%s12213_s4 + $0x288] sm:$0xf]  ;;  %v11483_v19 = vld [vmem:[%s12213_s4 + $0x564] sm:$0xf] }
 0x275   : > { %16158 = vst [vmem:[#allocation188_spill] sm:$0xff] %v13128_v40  ;;  %9213 = vmatmul.msk.bf16.gmra.mxu1 %vm1561_vm0, %v8983_v12  ;;  %v9921_v40 = vor.u32 %v11483_v19, %v9918_v47  ;;  %v9532_v47 = vld [vmem:[%s12213_s4 + $0x260] sm:$0xf]  ;;  %v11388_v19 = vld [vmem:[%s12213_s4 + $0x264] sm:$0xf0] }
 0x276   : > { %4290 = vmatmul.bf16.gmra.mxu2 %v9517_v2  ;;  %v8595_v2 = vor.u32 %v11594_v39, %v8594_v52 }
 0x277   : > { %10143 = vmatmul.msk.bf16.gmra.mxu3 %vm1561_vm0, %v9913_v20 }
 0x279   : > { %v13132_v31 = vpop.f32.mrf.mxu2  ;;  %v13136_v14 = vpop.f32.mrf.mxu0 }
 0x27a   : > { %16159 = vst [vmem:[#allocation189_spill] sm:$0xff] %v13132_v31  ;;  %v13134_v21 = vpop.f32.mrf.mxu3  ;;  %v13138_v32 = vpop.f32.mrf.mxu1 }
 0x27b   : > { %16160 = vst [vmem:[#allocation190_spill] sm:$0xff] %v13134_v21  ;;  %v8991_v21 = vor.u32 %v11691_v15, %v8988_v28 }
 0x27c   : > { %16161 = vst [vmem:[#allocation191_spill] sm:$0xff] %v13136_v14 }
 0x27d   : > { %16162 = vst [vmem:[#allocation192_spill] sm:$0xff] %v13138_v32  ;;  %v9525_v32 = vor.u32 %v11386_v53, %v9524_v56  ;;  %v11693_v56 = vld [vmem:[%s12213_s4 + $0x5ac] sm:$0xf]  ;;  %v8996_v53 = vld [vmem:[%s12213_s4 + $0x5b0] sm:$0xf0] }
 0x281   : > { %v13148_v12 = vpop.f32.mrf.mxu2  ;;  %v13152_v14 = vpop.f32.mrf.mxu0 }
 0x282   : > { %16163 = vst [vmem:[#allocation193_spill] sm:$0xff] %v13148_v12  ;;  %v13150_v20 = vpop.f32.mrf.mxu3  ;;  %v13154_v31 = vpop.f32.mrf.mxu1  ;;  %v9926_v12 = vld [vmem:[%s12213_s4 + $0x578] sm:$0xf0] }
 0x283   : > { %16164 = vst [vmem:[#allocation194_spill] sm:$0xff] %v13150_v20  ;;  %v11596_v20 = vld [vmem:[%s12213_s4 + $0x29c] sm:$0xf0] }
 0x284   : > { %16165 = vst [vmem:[#allocation195_spill] sm:$0xff] %v13152_v14  ;;  %2049 = vmatmul.bf16.gmra.mxu0 %v8595_v2  ;;  %v8602_v14 = vld [vmem:[%s12213_s4 + $0x298] sm:$0xf]  ;;  %v11485_v2 = vld [vmem:[%s12213_s4 + $0x574] sm:$0xf] }
 0x285   : > { %16166 = vst [vmem:[#allocation196_spill] sm:$0xff] %v13154_v31  ;;  %9214 = vmatmul.msk.bf16.gmra.mxu1 %vm1561_vm0, %v8991_v21  ;;  %v9929_v31 = vor.u32 %v11485_v2, %v9926_v12  ;;  %v9540_v12 = vld [vmem:[%s12213_s4 + $0x270] sm:$0xf]  ;;  %v11390_v2 = vld [vmem:[%s12213_s4 + $0x274] sm:$0xf0] }
 0x286   : > { %4295 = vmatmul.bf16.gmra.mxu2 %v9525_v32  ;;  %v8603_v32 = vor.u32 %v11596_v20, %v8602_v14 }
 0x287   : > { %10144 = vmatmul.msk.bf16.gmra.mxu3 %vm1561_vm0, %v9921_v40 }
 0x289   : > { %v13158_v52 = vpop.f32.mrf.mxu2  ;;  %v13162_v15 = vpop.f32.mrf.mxu0 }
 0x28a   : > { %16167 = vst [vmem:[#allocation197_spill] sm:$0xff] %v13158_v52  ;;  %v13160_v39 = vpop.f32.mrf.mxu3  ;;  %v13164_v28 = vpop.f32.mrf.mxu1 }
 0x28b   : > { %16168 = vst [vmem:[#allocation198_spill] sm:$0xff] %v13160_v39  ;;  %v8999_v39 = vor.u32 %v11693_v56, %v8996_v53 }
 0x28c   : > { %16169 = vst [vmem:[#allocation199_spill] sm:$0xff] %v13162_v15 }
 0x28d   : > { %16170 = vst [vmem:[#allocation200_spill] sm:$0xff] %v13164_v28  ;;  %v9533_v28 = vor.u32 %v11388_v19, %v9532_v47  ;;  %v11695_v47 = vld [vmem:[%s12213_s4 + $0x5bc] sm:$0xf]  ;;  %v9004_v19 = vld [vmem:[%s12213_s4 + $0x5c0] sm:$0xf0] }
 0x291   : > { %v13174_v21 = vpop.f32.mrf.mxu2  ;;  %v13178_v15 = vpop.f32.mrf.mxu0 }
 0x292   : > { %16171 = vst [vmem:[#allocation201_spill] sm:$0xff] %v13174_v21  ;;  %v13176_v40 = vpop.f32.mrf.mxu3  ;;  %v13180_v52 = vpop.f32.mrf.mxu1  ;;  %v9934_v21 = vld [vmem:[%s12213_s4 + $0x588] sm:$0xf0] }
 0x293   : > { %16172 = vst [vmem:[#allocation202_spill] sm:$0xff] %v13176_v40  ;;  %v11598_v40 = vld [vmem:[%s12213_s4 + $0x2ac] sm:$0xf0] }
 0x294   : > { %16173 = vst [vmem:[#allocation203_spill] sm:$0xff] %v13178_v15  ;;  %2054 = vmatmul.bf16.gmra.mxu0 %v8603_v32  ;;  %v8610_v15 = vld [vmem:[%s12213_s4 + $0x2a8] sm:$0xf]  ;;  %v11487_v32 = vld [vmem:[%s12213_s4 + $0x584] sm:$0xf] }
 0x295   : > { %16174 = vst [vmem:[#allocation204_spill] sm:$0xff] %v13180_v52  ;;  %9215 = vmatmul.msk.bf16.gmra.mxu1 %vm1561_vm0, %v8999_v39  ;;  %v9937_v52 = vor.u32 %v11487_v32, %v9934_v21  ;;  %v9548_v21 = vld [vmem:[%s12213_s4 + $0x280] sm:$0xf]  ;;  %v11392_v32 = vld [vmem:[%s12213_s4 + $0x284] sm:$0xf0] }
 0x296   : > { %4300 = vmatmul.bf16.gmra.mxu2 %v9533_v28  ;;  %v8611_v28 = vor.u32 %v11598_v40, %v8610_v15 }
 0x297   : > { %10145 = vmatmul.msk.bf16.gmra.mxu3 %vm1561_vm0, %v9929_v31 }
 0x299   : > { %v13184_v14 = vpop.f32.mrf.mxu2  ;;  %v13188_v56 = vpop.f32.mrf.mxu0 }
 0x29a   : > { %16175 = vst [vmem:[#allocation205_spill] sm:$0xff] %v13184_v14  ;;  %v13186_v20 = vpop.f32.mrf.mxu3  ;;  %v13190_v53 = vpop.f32.mrf.mxu1 }
 0x29b   : > { %16176 = vst [vmem:[#allocation206_spill] sm:$0xff] %v13186_v20  ;;  %v9007_v20 = vor.u32 %v11695_v47, %v9004_v19 }
 0x29c   : > { %16177 = vst [vmem:[#allocation207_spill] sm:$0xff] %v13188_v56 }
 0x29d   : > { %16178 = vst [vmem:[#allocation208_spill] sm:$0xff] %v13190_v53  ;;  %v9541_v53 = vor.u32 %v11390_v2, %v9540_v12  ;;  %v11697_v12 = vld [vmem:[%s12213_s4 + $0x5cc] sm:$0xf]  ;;  %v9012_v2 = vld [vmem:[%s12213_s4 + $0x5d0] sm:$0xf0] }
 0x2a1   : > { %v13200_v39 = vpop.f32.mrf.mxu2  ;;  %v13204_v56 = vpop.f32.mrf.mxu0 }
 0x2a2   : > { %16179 = vst [vmem:[#allocation209_spill] sm:$0xff] %v13200_v39  ;;  %v13202_v31 = vpop.f32.mrf.mxu3  ;;  %v13206_v14 = vpop.f32.mrf.mxu1  ;;  %v9942_v39 = vld [vmem:[%s12213_s4 + $0x598] sm:$0xf0] }
 0x2a3   : > { %16180 = vst [vmem:[#allocation210_spill] sm:$0xff] %v13202_v31  ;;  %v11600_v31 = vld [vmem:[%s12213_s4 + $0x2bc] sm:$0xf0] }
 0x2a4   : > { %16181 = vst [vmem:[#allocation211_spill] sm:$0xff] %v13204_v56  ;;  %2059 = vmatmul.bf16.gmra.mxu0 %v8611_v28  ;;  %v8618_v56 = vld [vmem:[%s12213_s4 + $0x2b8] sm:$0xf]  ;;  %v11489_v28 = vld [vmem:[%s12213_s4 + $0x594] sm:$0xf] }
 0x2a5   : > { %16182 = vst [vmem:[#allocation212_spill] sm:$0xff] %v13206_v14  ;;  %9216 = vmatmul.msk.bf16.gmra.mxu1 %vm1561_vm0, %v9007_v20  ;;  %v9945_v14 = vor.u32 %v11489_v28, %v9942_v39  ;;  %v9556_v39 = vld [vmem:[%s12213_s4 + $0x290] sm:$0xf]  ;;  %v11394_v28 = vld [vmem:[%s12213_s4 + $0x294] sm:$0xf0] }
 0x2a6   : > { %4305 = vmatmul.bf16.gmra.mxu2 %v9541_v53  ;;  %v8619_v53 = vor.u32 %v11600_v31, %v8618_v56 }
 0x2a7   : > { %10146 = vmatmul.msk.bf16.gmra.mxu3 %vm1561_vm0, %v9937_v52 }
 0x2a9   : > { %v13210_v15 = vpop.f32.mrf.mxu2  ;;  %v13214_v47 = vpop.f32.mrf.mxu0 }
 0x2aa   : > { %16183 = vst [vmem:[#allocation213_spill] sm:$0xff] %v13210_v15  ;;  %v13212_v40 = vpop.f32.mrf.mxu3  ;;  %v13216_v19 = vpop.f32.mrf.mxu1 }
 0x2ab   : > { %16184 = vst [vmem:[#allocation214_spill] sm:$0xff] %v13212_v40  ;;  %v9015_v40 = vor.u32 %v11697_v12, %v9012_v2 }
 0x2ac   : > { %16185 = vst [vmem:[#allocation215_spill] sm:$0xff] %v13214_v47 }
 0x2ad   : > { %16186 = vst [vmem:[#allocation216_spill] sm:$0xff] %v13216_v19  ;;  %v9549_v19 = vor.u32 %v11392_v32, %v9548_v21  ;;  %v11699_v21 = vld [vmem:[%s12213_s4 + $0x5dc] sm:$0xf]  ;;  %v9020_v32 = vld [vmem:[%s12213_s4 + $0x5e0] sm:$0xf0] }
 0x2b1   : > { %v13226_v20 = vpop.f32.mrf.mxu2  ;;  %v13230_v47 = vpop.f32.mrf.mxu0 }
 0x2b2   : > { %16187 = vst [vmem:[#allocation217_spill] sm:$0xff] %v13226_v20  ;;  %v13228_v52 = vpop.f32.mrf.mxu3  ;;  %v13232_v15 = vpop.f32.mrf.mxu1  ;;  %v9950_v20 = vld [vmem:[%s12213_s4 + $0x5a8] sm:$0xf0] }
 0x2b3   : > { %16188 = vst [vmem:[#allocation218_spill] sm:$0xff] %v13228_v52  ;;  %v11602_v52 = vld [vmem:[%s12213_s4 + $0x2cc] sm:$0xf0] }
 0x2b4   : > { %16189 = vst [vmem:[#allocation219_spill] sm:$0xff] %v13230_v47  ;;  %2064 = vmatmul.bf16.gmra.mxu0 %v8619_v53  ;;  %v8626_v47 = vld [vmem:[%s12213_s4 + $0x2c8] sm:$0xf]  ;;  %v11491_v53 = vld [vmem:[%s12213_s4 + $0x5a4] sm:$0xf] }
 0x2b5   : > { %16190 = vst [vmem:[#allocation220_spill] sm:$0xff] %v13232_v15  ;;  %9217 = vmatmul.msk.bf16.gmra.mxu1 %vm1561_vm0, %v9015_v40  ;;  %v9953_v15 = vor.u32 %v11491_v53, %v9950_v20  ;;  %v9028_v53 = vld [vmem:[%s12213_s4 + $0x5f0] sm:$0xf0] }
 0x2b6   : > { %4310 = vmatmul.bf16.gmra.mxu2 %v9549_v19 }
 0x2b7   : > { %10147 = vmatmul.msk.bf16.gmra.mxu3 %vm1561_vm0, %v9945_v14  ;;  %v8627_v14 = vor.u32 %v11602_v52, %v8626_v47  ;;  %v11923_v47 = vld [vmem:[%s15971_s1 + $0xc0] sm:$0xff] }
 0x2b8   : > { %6580 = vmatpush.bf16.msrb.mxu1 %v11923_v47 }
 0x2b9   : > { %v13236_v56 = vpop.f32.mrf.mxu2  ;;  %v13240_v12 = vpop.f32.mrf.mxu0 }
 0x2ba   : > { %16191 = vst [vmem:[#allocation221_spill] sm:$0xff] %v13236_v56  ;;  %v13238_v31 = vpop.f32.mrf.mxu3  ;;  %v13242_v2 = vpop.f32.mrf.mxu1  ;;  %v9023_v56 = vor.u32 %v11699_v21, %v9020_v32 }
 0x2bb   : > { %16192 = vst [vmem:[#allocation222_spill] sm:$0xff] %v13238_v31 }
 0x2bc   : > { %16193 = vst [vmem:[#allocation223_spill] sm:$0xff] %v13240_v12 }
 0x2bd   : > { %16194 = vst [vmem:[#allocation224_spill] sm:$0xff] %v13242_v2  ;;  %v9557_v2 = vor.u32 %v11394_v28, %v9556_v39  ;;  %v8634_v39 = vld [vmem:[%s12213_s4 + $0x2d8] sm:$0xf]  ;;  %v11604_v28 = vld [vmem:[%s12213_s4 + $0x2dc] sm:$0xf0] }
 0x2c1   : > { %v13252_v40 = vpop.f32.mrf.mxu2  ;;  %v13256_v31 = vpop.f32.mrf.mxu0 }
 0x2c2   : > { %16195 = vst [vmem:[#allocation225_spill] sm:$0xff] %v13252_v40  ;;  %v13254_v19 = vpop.f32.mrf.mxu3  ;;  %v13258_v12 = vpop.f32.mrf.mxu1 }
 0x2c3   : > { %16196 = vst [vmem:[#allocation226_spill] sm:$0xff] %v13254_v19 }
 0x2c4   : > { %16197 = vst [vmem:[#allocation227_spill] sm:$0xff] %v13256_v31  ;;  %2069 = vmatmul.bf16.gmra.mxu0 %v8627_v14  ;;  %v11396_v14 = vld [vmem:[%s12213_s4 + $0x2a4] sm:$0xf0]  ;;  %v9958_v31 = vld [vmem:[%s12213_s4 + $0x5b8] sm:$0xf0] }
 0x2c5   : > { %16198 = vst [vmem:[#allocation228_spill] sm:$0xff] %v13258_v12  ;;  %9218 = vmatmul.msk.bf16.gmra.mxu1 %vm1561_vm0, %v9023_v56  ;;  %v11701_v56 = vld [vmem:[%s12213_s4 + $0x5ec] sm:$0xf] }
 0x2c6   : > { %4315 = vmatmul.bf16.gmra.mxu2 %v9557_v2  ;;  %v9564_v2 = vld [vmem:[%s12213_s4 + $0x2a0] sm:$0xf] }
 0x2c7   : > { %10148 = vmatmul.msk.bf16.gmra.mxu3 %vm1561_vm0, %v9953_v15  ;;  %v11493_v15 = vld [vmem:[%s12213_s4 + $0x5b4] sm:$0xf] }
 0x2c8   : > { %v9961_v12 = vor.u32 %v11493_v15, %v9958_v31  ;;  %v9572_v31 = vld [vmem:[%s12213_s4 + $0x2b0] sm:$0xf]  ;;  %v11398_v15 = vld [vmem:[%s12213_s4 + $0x2b4] sm:$0xf0] }
 0x2c9   : > { %v13265_v52 = vpop.f32.mrf.mxu2  ;;  %v13269_v32 = vpop.f32.mrf.mxu0 }
 0x2ca   : > { %16199 = vst [vmem:[#allocation229_spill] sm:$0xff] %v13265_v52  ;;  %v13267_v21 = vpop.f32.mrf.mxu3  ;;  %v13271_v20 = vpop.f32.mrf.mxu1  ;;  %v8635_v52 = vor.u32 %v11604_v28, %v8634_v39 }
 0x2cb   : > { %16200 = vst [vmem:[#allocation230_spill] sm:$0xff] %v13267_v21  ;;  %v9031_v21 = vor.u32 %v11701_v56, %v9028_v53 }
 0x2cc   : > { %16201 = vst [vmem:[#allocation231_spill] sm:$0xff] %v13269_v32 }
 0x2cd   : > { %16202 = vst [vmem:[#allocation232_spill] sm:$0xff] %v13271_v20  ;;  %v9565_v20 = vor.u32 %v11396_v14, %v9564_v2  ;;  %v11703_v2 = vld [vmem:[%s12213_s4 + $0x5fc] sm:$0xf]  ;;  %v9036_v14 = vld [vmem:[%s12213_s4 + $0x600] sm:$0xf0] }
 0x2d1   : > { %v13281_v19 = vpop.f32.mrf.mxu2  ;;  %v13285_v32 = vpop.f32.mrf.mxu0 }
 0x2d2   : > { %16203 = vst [vmem:[#allocation233_spill] sm:$0xff] %v13281_v19  ;;  %v13283_v47 = vpop.f32.mrf.mxu3  ;;  %v13287_v40 = vpop.f32.mrf.mxu1  ;;  %v9966_v19 = vld [vmem:[%s12213_s4 + $0x5c8] sm:$0xf0] }
 0x2d3   : > { %16204 = vst [vmem:[#allocation234_spill] sm:$0xff] %v13283_v47  ;;  %v11606_v47 = vld [vmem:[%s12213_s4 + $0x2ec] sm:$0xf0] }
 0x2d4   : > { %16205 = vst [vmem:[#allocation235_spill] sm:$0xff] %v13285_v32  ;;  %2074 = vmatmul.bf16.gmra.mxu0 %v8635_v52  ;;  %v8642_v32 = vld [vmem:[%s12213_s4 + $0x2e8] sm:$0xf]  ;;  %v11495_v52 = vld [vmem:[%s12213_s4 + $0x5c4] sm:$0xf] }
 0x2d5   : > { %16206 = vst [vmem:[#allocation236_spill] sm:$0xff] %v13287_v40  ;;  %9219 = vmatmul.msk.bf16.gmra.mxu1 %vm1561_vm0, %v9031_v21  ;;  %v9969_v40 = vor.u32 %v11495_v52, %v9966_v19  ;;  %v9580_v19 = vld [vmem:[%s12213_s4 + $0x2c0] sm:$0xf]  ;;  %v11400_v52 = vld [vmem:[%s12213_s4 + $0x2c4] sm:$0xf0] }
 0x2d6   : > { %4320 = vmatmul.bf16.gmra.mxu2 %v9565_v20  ;;  %v8643_v20 = vor.u32 %v11606_v47, %v8642_v32 }
 0x2d7   : > { %10149 = vmatmul.msk.bf16.gmra.mxu3 %vm1561_vm0, %v9961_v12 }
 0x2d9   : > { %v13291_v39 = vpop.f32.mrf.mxu2  ;;  %v13295_v56 = vpop.f32.mrf.mxu0 }
 0x2da   : > { %16207 = vst [vmem:[#allocation237_spill] sm:$0xff] %v13291_v39  ;;  %v13293_v28 = vpop.f32.mrf.mxu3  ;;  %v13297_v53 = vpop.f32.mrf.mxu1 }
 0x2db   : > { %16208 = vst [vmem:[#allocation238_spill] sm:$0xff] %v13293_v28  ;;  %v9039_v28 = vor.u32 %v11703_v2, %v9036_v14 }
 0x2dc   : > { %16209 = vst [vmem:[#allocation239_spill] sm:$0xff] %v13295_v56 }
 0x2dd   : > { %16210 = vst [vmem:[#allocation240_spill] sm:$0xff] %v13297_v53  ;;  %v9573_v53 = vor.u32 %v11398_v15, %v9572_v31  ;;  %v11705_v31 = vld [vmem:[%s12213_s4 + $0x60c] sm:$0xf]  ;;  %v9044_v15 = vld [vmem:[%s12213_s4 + $0x610] sm:$0xf0] }
 0x2e1   : > { %v13307_v21 = vpop.f32.mrf.mxu2  ;;  %v13311_v56 = vpop.f32.mrf.mxu0 }
 0x2e2   : > { %16211 = vst [vmem:[#allocation241_spill] sm:$0xff] %v13307_v21  ;;  %v13309_v12 = vpop.f32.mrf.mxu3  ;;  %v13313_v39 = vpop.f32.mrf.mxu1  ;;  %v9974_v21 = vld [vmem:[%s12213_s4 + $0x5d8] sm:$0xf0] }
 0x2e3   : > { %16212 = vst [vmem:[#allocation242_spill] sm:$0xff] %v13309_v12  ;;  %v11608_v12 = vld [vmem:[%s12213_s4 + $0x2fc] sm:$0xf0] }
 0x2e4   : > { %16213 = vst [vmem:[#allocation243_spill] sm:$0xff] %v13311_v56  ;;  %2079 = vmatmul.bf16.gmra.mxu0 %v8643_v20  ;;  %v8650_v56 = vld [vmem:[%s12213_s4 + $0x2f8] sm:$0xf]  ;;  %v11497_v20 = vld [vmem:[%s12213_s4 + $0x5d4] sm:$0xf] }
 0x2e5   : > { %16214 = vst [vmem:[#allocation244_spill] sm:$0xff] %v13313_v39  ;;  %9220 = vmatmul.msk.bf16.gmra.mxu1 %vm1561_vm0, %v9039_v28  ;;  %v9977_v39 = vor.u32 %v11497_v20, %v9974_v21  ;;  %v9588_v21 = vld [vmem:[%s12213_s4 + $0x2d0] sm:$0xf]  ;;  %v11402_v20 = vld [vmem:[%s12213_s4 + $0x2d4] sm:$0xf0] }
 0x2e6   : > { %4325 = vmatmul.bf16.gmra.mxu2 %v9573_v53  ;;  %v8651_v53 = vor.u32 %v11608_v12, %v8650_v56 }
 0x2e7   : > { %10150 = vmatmul.msk.bf16.gmra.mxu3 %vm1561_vm0, %v9969_v40 }
 0x2e9   : > { %v13317_v32 = vpop.f32.mrf.mxu2  ;;  %v13321_v2 = vpop.f32.mrf.mxu0 }
 0x2ea   : > { %16215 = vst [vmem:[#allocation245_spill] sm:$0xff] %v13317_v32  ;;  %v13319_v47 = vpop.f32.mrf.mxu3  ;;  %v13323_v14 = vpop.f32.mrf.mxu1 }
 0x2eb   : > { %16216 = vst [vmem:[#allocation246_spill] sm:$0xff] %v13319_v47  ;;  %v9047_v47 = vor.u32 %v11705_v31, %v9044_v15 }
 0x2ec   : > { %16217 = vst [vmem:[#allocation247_spill] sm:$0xff] %v13321_v2 }
 0x2ed   : > { %16218 = vst [vmem:[#allocation248_spill] sm:$0xff] %v13323_v14  ;;  %v9581_v14 = vor.u32 %v11400_v52, %v9580_v19  ;;  %v11707_v19 = vld [vmem:[%s12213_s4 + $0x61c] sm:$0xf]  ;;  %v9052_v52 = vld [vmem:[%s12213_s4 + $0x620] sm:$0xf0] }
 0x2f1   : > { %v13333_v28 = vpop.f32.mrf.mxu2  ;;  %v13337_v2 = vpop.f32.mrf.mxu0 }
 0x2f2   : > { %16219 = vst [vmem:[#allocation249_spill] sm:$0xff] %v13333_v28  ;;  %v13335_v40 = vpop.f32.mrf.mxu3  ;;  %v13339_v32 = vpop.f32.mrf.mxu1  ;;  %v9982_v28 = vld [vmem:[%s12213_s4 + $0x5e8] sm:$0xf0] }
 0x2f3   : > { %16220 = vst [vmem:[#allocation250_spill] sm:$0xff] %v13335_v40  ;;  %v11610_v40 = vld [vmem:[%s12213_s4 + $0x30c] sm:$0xf0] }
 0x2f4   : > { %16221 = vst [vmem:[#allocation251_spill] sm:$0xff] %v13337_v2  ;;  %2084 = vmatmul.bf16.gmra.mxu0 %v8651_v53  ;;  %v8658_v2 = vld [vmem:[%s12213_s4 + $0x308] sm:$0xf]  ;;  %v11499_v53 = vld [vmem:[%s12213_s4 + $0x5e4] sm:$0xf] }
 0x2f5   : > { %16222 = vst [vmem:[#allocation252_spill] sm:$0xff] %v13339_v32  ;;  %9221 = vmatmul.msk.bf16.gmra.mxu1 %vm1561_vm0, %v9047_v47  ;;  %v9985_v32 = vor.u32 %v11499_v53, %v9982_v28  ;;  %v9596_v28 = vld [vmem:[%s12213_s4 + $0x2e0] sm:$0xf]  ;;  %v11404_v53 = vld [vmem:[%s12213_s4 + $0x2e4] sm:$0xf0] }
 0x2f6   : > { %4330 = vmatmul.bf16.gmra.mxu2 %v9581_v14  ;;  %v8659_v14 = vor.u32 %v11610_v40, %v8658_v2 }
 0x2f7   : > { %10151 = vmatmul.msk.bf16.gmra.mxu3 %vm1561_vm0, %v9977_v39 }
 0x2f9   : > { %v13343_v56 = vpop.f32.mrf.mxu2  ;;  %v13347_v31 = vpop.f32.mrf.mxu0 }
 0x2fa   : > { %16223 = vst [vmem:[#allocation253_spill] sm:$0xff] %v13343_v56  ;;  %v13345_v12 = vpop.f32.mrf.mxu3  ;;  %v13349_v15 = vpop.f32.mrf.mxu1 }
 0x2fb   : > { %16224 = vst [vmem:[#allocation254_spill] sm:$0xff] %v13345_v12  ;;  %v9055_v12 = vor.u32 %v11707_v19, %v9052_v52 }
 0x2fc   : > { %16225 = vst [vmem:[#allocation255_spill] sm:$0xff] %v13347_v31 }
 0x2fd   : > { %16226 = vst [vmem:[#allocation256_spill] sm:$0xff] %v13349_v15  ;;  %v9589_v15 = vor.u32 %v11402_v20, %v9588_v21  ;;  %v11709_v21 = vld [vmem:[%s12213_s4 + $0x62c] sm:$0xf]  ;;  %v9060_v20 = vld [vmem:[%s12213_s4 + $0x630] sm:$0xf0] }
 0x301   : > { %v13359_v47 = vpop.f32.mrf.mxu2  ;;  %v13363_v31 = vpop.f32.mrf.mxu0 }
 0x302   : > { %16227 = vst [vmem:[#allocation257_spill] sm:$0xff] %v13359_v47  ;;  %v13361_v39 = vpop.f32.mrf.mxu3  ;;  %v13365_v56 = vpop.f32.mrf.mxu1  ;;  %v9990_v47 = vld [vmem:[%s12213_s4 + $0x5f8] sm:$0xf0] }
 0x303   : > { %16228 = vst [vmem:[#allocation258_spill] sm:$0xff] %v13361_v39  ;;  %v11612_v39 = vld [vmem:[%s12213_s4 + $0x31c] sm:$0xf0] }
 0x304   : > { %16229 = vst [vmem:[#allocation259_spill] sm:$0xff] %v13363_v31  ;;  %2089 = vmatmul.bf16.gmra.mxu0 %v8659_v14  ;;  %v8666_v31 = vld [vmem:[%s12213_s4 + $0x318] sm:$0xf]  ;;  %v11501_v14 = vld [vmem:[%s12213_s4 + $0x5f4] sm:$0xf] }
 0x305   : > { %16230 = vst [vmem:[#allocation260_spill] sm:$0xff] %v13365_v56  ;;  %9222 = vmatmul.msk.bf16.gmra.mxu1 %vm1561_vm0, %v9055_v12  ;;  %v9993_v56 = vor.u32 %v11501_v14, %v9990_v47  ;;  %v9604_v47 = vld [vmem:[%s12213_s4 + $0x2f0] sm:$0xf]  ;;  %v11406_v14 = vld [vmem:[%s12213_s4 + $0x2f4] sm:$0xf0] }
 0x306   : > { %4335 = vmatmul.bf16.gmra.mxu2 %v9589_v15  ;;  %v8667_v15 = vor.u32 %v11612_v39, %v8666_v31 }
 0x307   : > { %10152 = vmatmul.msk.bf16.gmra.mxu3 %vm1561_vm0, %v9985_v32 }
 0x309   : > { %v13369_v2 = vpop.f32.mrf.mxu2  ;;  %v13373_v19 = vpop.f32.mrf.mxu0 }
 0x30a   : > { %16231 = vst [vmem:[#allocation261_spill] sm:$0xff] %v13369_v2  ;;  %v13371_v40 = vpop.f32.mrf.mxu3  ;;  %v13375_v52 = vpop.f32.mrf.mxu1 }
 0x30b   : > { %16232 = vst [vmem:[#allocation262_spill] sm:$0xff] %v13371_v40  ;;  %v9063_v40 = vor.u32 %v11709_v21, %v9060_v20 }
 0x30c   : > { %16233 = vst [vmem:[#allocation263_spill] sm:$0xff] %v13373_v19 }
 0x30d   : > { %16234 = vst [vmem:[#allocation264_spill] sm:$0xff] %v13375_v52  ;;  %v9597_v52 = vor.u32 %v11404_v53, %v9596_v28  ;;  %v11711_v28 = vld [vmem:[%s12213_s4 + $0x63c] sm:$0xf]  ;;  %v9068_v53 = vld [vmem:[%s12213_s4 + $0x640] sm:$0xf0] }
 0x311   : > { %v13385_v12 = vpop.f32.mrf.mxu2  ;;  %v13389_v19 = vpop.f32.mrf.mxu0 }
 0x312   : > { %16235 = vst [vmem:[#allocation265_spill] sm:$0xff] %v13385_v12  ;;  %v13387_v32 = vpop.f32.mrf.mxu3  ;;  %v13391_v2 = vpop.f32.mrf.mxu1  ;;  %v9998_v12 = vld [vmem:[%s12213_s4 + $0x608] sm:$0xf0] }
 0x313   : > { %16236 = vst [vmem:[#allocation266_spill] sm:$0xff] %v13387_v32  ;;  %v11614_v32 = vld [vmem:[%s12213_s4 + $0x32c] sm:$0xf0] }
 0x314   : > { %16237 = vst [vmem:[#allocation267_spill] sm:$0xff] %v13389_v19  ;;  %2094 = vmatmul.bf16.gmra.mxu0 %v8667_v15  ;;  %v8674_v19 = vld [vmem:[%s12213_s4 + $0x328] sm:$0xf]  ;;  %v11503_v15 = vld [vmem:[%s12213_s4 + $0x604] sm:$0xf] }
 0x315   : > { %16238 = vst [vmem:[#allocation268_spill] sm:$0xff] %v13391_v2  ;;  %9223 = vmatmul.msk.bf16.gmra.mxu1 %vm1561_vm0, %v9063_v40  ;;  %v10001_v2 = vor.u32 %v11503_v15, %v9998_v12  ;;  %v9612_v12 = vld [vmem:[%s12213_s4 + $0x300] sm:$0xf]  ;;  %v11408_v15 = vld [vmem:[%s12213_s4 + $0x304] sm:$0xf0] }
 0x316   : > { %4340 = vmatmul.bf16.gmra.mxu2 %v9597_v52  ;;  %v8675_v52 = vor.u32 %v11614_v32, %v8674_v19 }
 0x317   : > { %10153 = vmatmul.msk.bf16.gmra.mxu3 %vm1561_vm0, %v9993_v56 }
 0x319   : > { %v13395_v31 = vpop.f32.mrf.mxu2  ;;  %v13399_v21 = vpop.f32.mrf.mxu0 }
 0x31a   : > { %16239 = vst [vmem:[#allocation269_spill] sm:$0xff] %v13395_v31  ;;  %v13397_v39 = vpop.f32.mrf.mxu3  ;;  %v13401_v20 = vpop.f32.mrf.mxu1 }
 0x31b   : > { %16240 = vst [vmem:[#allocation270_spill] sm:$0xff] %v13397_v39  ;;  %v9071_v39 = vor.u32 %v11711_v28, %v9068_v53 }
 0x31c   : > { %16241 = vst [vmem:[#allocation271_spill] sm:$0xff] %v13399_v21 }
 0x31d   : > { %16242 = vst [vmem:[#allocation272_spill] sm:$0xff] %v13401_v20  ;;  %v9605_v20 = vor.u32 %v11406_v14, %v9604_v47  ;;  %v11713_v47 = vld [vmem:[%s12213_s4 + $0x64c] sm:$0xf]  ;;  %v9076_v14 = vld [vmem:[%s12213_s4 + $0x650] sm:$0xf0] }
 0x321   : > { %v13411_v40 = vpop.f32.mrf.mxu2  ;;  %v13415_v21 = vpop.f32.mrf.mxu0 }
 0x322   : > { %16243 = vst [vmem:[#allocation273_spill] sm:$0xff] %v13411_v40  ;;  %v13413_v56 = vpop.f32.mrf.mxu3  ;;  %v13417_v31 = vpop.f32.mrf.mxu1  ;;  %v10006_v40 = vld [vmem:[%s12213_s4 + $0x618] sm:$0xf0] }
 0x323   : > { %16244 = vst [vmem:[#allocation274_spill] sm:$0xff] %v13413_v56  ;;  %v11616_v56 = vld [vmem:[%s12213_s4 + $0x33c] sm:$0xf0] }
 0x324   : > { %16245 = vst [vmem:[#allocation275_spill] sm:$0xff] %v13415_v21  ;;  %2099 = vmatmul.bf16.gmra.mxu0 %v8675_v52  ;;  %v8682_v21 = vld [vmem:[%s12213_s4 + $0x338] sm:$0xf]  ;;  %v11505_v52 = vld [vmem:[%s12213_s4 + $0x614] sm:$0xf] }
 0x325   : > { %16246 = vst [vmem:[#allocation276_spill] sm:$0xff] %v13417_v31  ;;  %9224 = vmatmul.msk.bf16.gmra.mxu1 %vm1561_vm0, %v9071_v39  ;;  %v10009_v31 = vor.u32 %v11505_v52, %v10006_v40  ;;  %v11728_v40 = vld [vmem:[%s12213_s4 + $0x74] sm:$0xf0] }
 0x326   : > { %4345 = vmatmul.bf16.gmra.mxu2 %v9605_v20  ;;  %v8683_v20 = vor.u32 %v11616_v56, %v8682_v21  ;;  %v11410_v52 = vld [vmem:[%s12213_s4 + $0x314] sm:$0xf0] }
 0x327   : > { %10154 = vmatmul.msk.bf16.gmra.mxu3 %vm1561_vm0, %v10001_v2 }
 0x329   : > { %v13421_v19 = vpop.f32.mrf.mxu2  ;;  %v13425_v28 = vpop.f32.mrf.mxu0 }
 0x32a   : > { %16247 = vst [vmem:[#allocation277_spill] sm:$0xff] %v13421_v19  ;;  %v13423_v32 = vpop.f32.mrf.mxu3  ;;  %v13427_v53 = vpop.f32.mrf.mxu1 }
 0x32b   : > { %16248 = vst [vmem:[#allocation278_spill] sm:$0xff] %v13423_v32  ;;  %v9079_v32 = vor.u32 %v11713_v47, %v9076_v14 }
 0x32c   : > { %16249 = vst [vmem:[#allocation279_spill] sm:$0xff] %v13425_v28 }
 0x32d   : > { %16250 = vst [vmem:[#allocation280_spill] sm:$0xff] %v13427_v53  ;;  %v9613_v53 = vor.u32 %v11408_v15, %v9612_v12  ;;  %v9620_v12 = vld [vmem:[%s12213_s4 + $0x310] sm:$0xf] }
 0x32e   : > { %v10379_v15 = vld [vmem:[%s12213_s4 + $0x70] sm:$0xf] }
 0x331   : > { %v13437_v39 = vpop.f32.mrf.mxu2  ;;  %v13441_v28 = vpop.f32.mrf.mxu0 }
 0x332   : > { %16251 = vst [vmem:[#allocation281_spill] sm:$0xff] %v13437_v39  ;;  %v13439_v2 = vpop.f32.mrf.mxu3  ;;  %v13443_v19 = vpop.f32.mrf.mxu1  ;;  %v10381_v39 = vld [vmem:[%s12213_s4 + $0x78] sm:$0xf0] }
 0x333   : > { %16252 = vst [vmem:[#allocation282_spill] sm:$0xff] %v13439_v2  ;;  %v11618_v2 = vld [vmem:[%s12213_s4 + $0x34c] sm:$0xf0] }
 0x334   : > { %16253 = vst [vmem:[#allocation283_spill] sm:$0xff] %v13441_v28  ;;  %2104 = vmatmul.bf16.gmra.mxu0 %v8683_v20  ;;  %v8690_v28 = vld [vmem:[%s12213_s4 + $0x348] sm:$0xf]  ;;  %v11727_v20 = vld [vmem:[%s12213_s4 + $0x74] sm:$0xf] }
 0x335   : > { %16254 = vst [vmem:[#allocation284_spill] sm:$0xff] %v13443_v19  ;;  %9225 = vmatmul.msk.bf16.gmra.mxu1 %vm1561_vm0, %v9079_v32  ;;  %v10384_v19 = vor.u32 %v11727_v20, %v10381_v39  ;;  %v11412_v39 = vld [vmem:[%s12213_s4 + $0x324] sm:$0xf0]  ;;  %v11729_v20 = vld [vmem:[%s12213_s4 + $0x84] sm:$0xf] }
 0x336   : > { %4350 = vmatmul.bf16.gmra.mxu2 %v9613_v53  ;;  %v8691_v53 = vor.u32 %v11618_v2, %v8690_v28 }
 0x337   : > { %10155 = vmatmul.msk.bf16.gmra.mxu3 %vm1561_vm0, %v10009_v31 }
 0x339   : > { %v13447_v21 = vpop.f32.mrf.mxu2  ;;  %v13451_v47 = vpop.f32.mrf.mxu0 }
 0x33a   : > { %16255 = vst [vmem:[#allocation285_spill] sm:$0xff] %v13447_v21  ;;  %v13449_v56 = vpop.f32.mrf.mxu3  ;;  %v13453_v14 = vpop.f32.mrf.mxu1 }
 0x33b   : > { %16256 = vst [vmem:[#allocation286_spill] sm:$0xff] %v13449_v56  ;;  %v10380_v56 = vor.u32 %v11728_v40, %v10379_v15  ;;  %v8698_v40 = vld [vmem:[%s12213_s4 + $0x358] sm:$0xf] }
 0x33c   : > { %16257 = vst [vmem:[#allocation287_spill] sm:$0xff] %v13451_v47 }
 0x33d   : > { %16258 = vst [vmem:[#allocation288_spill] sm:$0xff] %v13453_v14  ;;  %v9621_v14 = vor.u32 %v11410_v52, %v9620_v12  ;;  %v10387_v12 = vld [vmem:[%s12213_s4 + $0x80] sm:$0xf]  ;;  %v11730_v52 = vld [vmem:[%s12213_s4 + $0x84] sm:$0xf0] }
 0x341   : > { %v13463_v32 = vpop.f32.mrf.mxu2  ;;  %v13467_v47 = vpop.f32.mrf.mxu0 }
 0x342   : > { %16259 = vst [vmem:[#allocation289_spill] sm:$0xff] %v13463_v32  ;;  %v13465_v31 = vpop.f32.mrf.mxu3  ;;  %v13469_v21 = vpop.f32.mrf.mxu1  ;;  %v9628_v32 = vld [vmem:[%s12213_s4 + $0x320] sm:$0xf] }
 0x343   : > { %16260 = vst [vmem:[#allocation290_spill] sm:$0xff] %v13465_v31 }
 0x344   : > { %16261 = vst [vmem:[#allocation291_spill] sm:$0xff] %v13467_v47  ;;  %2109 = vmatmul.bf16.gmra.mxu0 %v8691_v53  ;;  %v11620_v47 = vld [vmem:[%s12213_s4 + $0x35c] sm:$0xf0]  ;;  %v10389_v53 = vld [vmem:[%s12213_s4 + $0x88] sm:$0xf0] }
 0x345   : > { %16262 = vst [vmem:[#allocation292_spill] sm:$0xff] %v13469_v21  ;;  %6581 = vmatmul.bf16.vlgmr.msrb.gmra.mxu1 %v10380_v56  ;;  %v10392_v21 = vor.u32 %v11729_v20, %v10389_v53  ;;  %v11414_v20 = vld [vmem:[%s12213_s4 + $0x334] sm:$0xf0]  ;;  %v11731_v53 = vld [vmem:[%s12213_s4 + $0x94] sm:$0xf] }
 0x346   : > { %4355 = vmatmul.bf16.gmra.mxu2 %v9621_v14  ;;  %v8699_v14 = vor.u32 %v11620_v47, %v8698_v40 }
 0x347   : > { %11209 = vmatmul.msk.bf16.vlgmr.msrb.gmra.mxu3 %vm1561_vm0, %v10384_v19 }
 0x349   : > { %v13472_v31 = vpop.f32.mrf.mxu2  ;;  %v13476_v2 = vpop.f32.mrf.mxu0 }
 0x34a   : > { %16263 = vst [vmem:[#allocation293_spill] sm:$0xff] %v13472_v31  ;;  %v13474_v28 = vpop.f32.mrf.mxu3  ;;  %v13478_v15 = vpop.f32.mrf.mxu1 }
 0x34b   : > { %16264 = vst [vmem:[#allocation294_spill] sm:$0xff] %v13474_v28  ;;  %v10388_v28 = vor.u32 %v11730_v52, %v10387_v12  ;;  %v8706_v52 = vld [vmem:[%s12213_s4 + $0x368] sm:$0xf] }
 0x34c   : > { %16265 = vst [vmem:[#allocation295_spill] sm:$0xff] %v13476_v2 }
 0x34d   : > { %16266 = vst [vmem:[#allocation296_spill] sm:$0xff] %v13478_v15  ;;  %v9629_v15 = vor.u32 %v11412_v39, %v9628_v32  ;;  %v10395_v32 = vld [vmem:[%s12213_s4 + $0x90] sm:$0xf]  ;;  %v11732_v39 = vld [vmem:[%s12213_s4 + $0x94] sm:$0xf0] }
 0x351   : > { %v13488_v56 = vpop.f32.mrf.mxu2  ;;  %v13492_v2 = vpop.f32.mrf.mxu0 }
 0x352   : > { %16267 = vst [vmem:[#allocation297_spill] sm:$0xff] %v13488_v56  ;;  %v13490_v19 = vpop.f32.mrf.mxu3  ;;  %v13494_v31 = vpop.f32.mrf.mxu1  ;;  %v9636_v56 = vld [vmem:[%s12213_s4 + $0x330] sm:$0xf] }
 0x353   : > { %16268 = vst [vmem:[#allocation298_spill] sm:$0xff] %v13490_v19 }
 0x354   : > { %16269 = vst [vmem:[#allocation299_spill] sm:$0xff] %v13492_v2  ;;  %2114 = vmatmul.bf16.gmra.mxu0 %v8699_v14  ;;  %v11622_v2 = vld [vmem:[%s12213_s4 + $0x36c] sm:$0xf0]  ;;  %v10397_v14 = vld [vmem:[%s12213_s4 + $0x98] sm:$0xf0] }
 0x355   : > { %16270 = vst [vmem:[#allocation300_spill] sm:$0xff] %v13494_v31  ;;  %6586 = vmatmul.bf16.gmra.mxu1 %v10388_v28  ;;  %v10400_v31 = vor.u32 %v11731_v53, %v10397_v14  ;;  %v11416_v53 = vld [vmem:[%s12213_s4 + $0x344] sm:$0xf0]  ;;  %v11733_v14 = vld [vmem:[%s12213_s4 + $0xa4] sm:$0xf] }
 0x356   : > { %4360 = vmatmul.bf16.gmra.mxu2 %v9629_v15  ;;  %v8707_v15 = vor.u32 %v11622_v2, %v8706_v52 }
 0x357   : > { %11210 = vmatmul.msk.bf16.gmra.mxu3 %vm1561_vm0, %v10392_v21 }
 0x359   : > { %v13497_v19 = vpop.f32.mrf.mxu2  ;;  %v13501_v40 = vpop.f32.mrf.mxu0 }
 0x35a   : > { %16271 = vst [vmem:[#allocation301_spill] sm:$0xff] %v13497_v19  ;;  %v13499_v47 = vpop.f32.mrf.mxu3  ;;  %v13503_v12 = vpop.f32.mrf.mxu1 }
 0x35b   : > { %16272 = vst [vmem:[#allocation302_spill] sm:$0xff] %v13499_v47  ;;  %v10396_v47 = vor.u32 %v11732_v39, %v10395_v32  ;;  %v8714_v39 = vld [vmem:[%s12213_s4 + $0x378] sm:$0xf] }
 0x35c   : > { %16273 = vst [vmem:[#allocation303_spill] sm:$0xff] %v13501_v40 }
 0x35d   : > { %16274 = vst [vmem:[#allocation304_spill] sm:$0xff] %v13503_v12  ;;  %v9637_v12 = vor.u32 %v11414_v20, %v9636_v56  ;;  %v10403_v56 = vld [vmem:[%s12213_s4 + $0xa0] sm:$0xf]  ;;  %v11734_v20 = vld [vmem:[%s12213_s4 + $0xa4] sm:$0xf0] }
 0x361   : > { %v13513_v28 = vpop.f32.mrf.mxu2  ;;  %v13517_v40 = vpop.f32.mrf.mxu0 }
 0x362   : > { %16275 = vst [vmem:[#allocation305_spill] sm:$0xff] %v13513_v28  ;;  %v13515_v21 = vpop.f32.mrf.mxu3  ;;  %v13519_v19 = vpop.f32.mrf.mxu1  ;;  %v9644_v28 = vld [vmem:[%s12213_s4 + $0x340] sm:$0xf] }
 0x363   : > { %16276 = vst [vmem:[#allocation306_spill] sm:$0xff] %v13515_v21 }
 0x364   : > { %16277 = vst [vmem:[#allocation307_spill] sm:$0xff] %v13517_v40  ;;  %2119 = vmatmul.bf16.gmra.mxu0 %v8707_v15  ;;  %v11624_v40 = vld [vmem:[%s12213_s4 + $0x37c] sm:$0xf0]  ;;  %v10405_v15 = vld [vmem:[%s12213_s4 + $0xa8] sm:$0xf0] }
 0x365   : > { %16278 = vst [vmem:[#allocation308_spill] sm:$0xff] %v13519_v19  ;;  %6591 = vmatmul.bf16.gmra.mxu1 %v10396_v47  ;;  %v10408_v19 = vor.u32 %v11733_v14, %v10405_v15  ;;  %v11418_v14 = vld [vmem:[%s12213_s4 + $0x354] sm:$0xf0]  ;;  %v11735_v15 = vld [vmem:[%s12213_s4 + $0xb4] sm:$0xf] }
 0x366   : > { %4365 = vmatmul.bf16.gmra.mxu2 %v9637_v12  ;;  %v8715_v12 = vor.u32 %v11624_v40, %v8714_v39 }
 0x367   : > { %11211 = vmatmul.msk.bf16.gmra.mxu3 %vm1561_vm0, %v10400_v31 }
 0x369   : > { %v13522_v21 = vpop.f32.mrf.mxu2  ;;  %v13526_v52 = vpop.f32.mrf.mxu0 }
 0x36a   : > { %16279 = vst [vmem:[#allocation309_spill] sm:$0xff] %v13522_v21  ;;  %v13524_v2 = vpop.f32.mrf.mxu3  ;;  %v13528_v32 = vpop.f32.mrf.mxu1 }
 0x36b   : > { %16280 = vst [vmem:[#allocation310_spill] sm:$0xff] %v13524_v2  ;;  %v10404_v2 = vor.u32 %v11734_v20, %v10403_v56  ;;  %v8722_v20 = vld [vmem:[%s12213_s4 + $0x388] sm:$0xf] }
 0x36c   : > { %16281 = vst [vmem:[#allocation311_spill] sm:$0xff] %v13526_v52 }
 0x36d   : > { %16282 = vst [vmem:[#allocation312_spill] sm:$0xff] %v13528_v32  ;;  %v9645_v32 = vor.u32 %v11416_v53, %v9644_v28  ;;  %v10411_v28 = vld [vmem:[%s12213_s4 + $0xb0] sm:$0xf]  ;;  %v11736_v53 = vld [vmem:[%s12213_s4 + $0xb4] sm:$0xf0] }
 0x371   : > { %v13538_v47 = vpop.f32.mrf.mxu2  ;;  %v13542_v52 = vpop.f32.mrf.mxu0 }
 0x372   : > { %16283 = vst [vmem:[#allocation313_spill] sm:$0xff] %v13538_v47  ;;  %v13540_v31 = vpop.f32.mrf.mxu3  ;;  %v13544_v21 = vpop.f32.mrf.mxu1  ;;  %v9652_v47 = vld [vmem:[%s12213_s4 + $0x350] sm:$0xf] }
 0x373   : > { %16284 = vst [vmem:[#allocation314_spill] sm:$0xff] %v13540_v31 }
 0x374   : > { %16285 = vst [vmem:[#allocation315_spill] sm:$0xff] %v13542_v52  ;;  %2124 = vmatmul.bf16.gmra.mxu0 %v8715_v12  ;;  %v11626_v52 = vld [vmem:[%s12213_s4 + $0x38c] sm:$0xf0]  ;;  %v10413_v12 = vld [vmem:[%s12213_s4 + $0xb8] sm:$0xf0] }
 0x375   : > { %16286 = vst [vmem:[#allocation316_spill] sm:$0xff] %v13544_v21  ;;  %6596 = vmatmul.bf16.gmra.mxu1 %v10404_v2  ;;  %v10416_v21 = vor.u32 %v11735_v15, %v10413_v12  ;;  %v11420_v15 = vld [vmem:[%s12213_s4 + $0x364] sm:$0xf0]  ;;  %v11737_v12 = vld [vmem:[%s12213_s4 + $0xc4] sm:$0xf] }
 0x376   : > { %4370 = vmatmul.bf16.gmra.mxu2 %v9645_v32  ;;  %v8723_v32 = vor.u32 %v11626_v52, %v8722_v20 }
 0x377   : > { %11212 = vmatmul.msk.bf16.gmra.mxu3 %vm1561_vm0, %v10408_v19 }
 0x379   : > { %v13547_v31 = vpop.f32.mrf.mxu2  ;;  %v13551_v39 = vpop.f32.mrf.mxu0 }
 0x37a   : > { %16287 = vst [vmem:[#allocation317_spill] sm:$0xff] %v13547_v31  ;;  %v13549_v40 = vpop.f32.mrf.mxu3  ;;  %v13553_v56 = vpop.f32.mrf.mxu1 }
 0x37b   : > { %16288 = vst [vmem:[#allocation318_spill] sm:$0xff] %v13549_v40  ;;  %v10412_v40 = vor.u32 %v11736_v53, %v10411_v28  ;;  %v8730_v53 = vld [vmem:[%s12213_s4 + $0x398] sm:$0xf] }
 0x37c   : > { %16289 = vst [vmem:[#allocation319_spill] sm:$0xff] %v13551_v39 }
 0x37d   : > { %16290 = vst [vmem:[#allocation320_spill] sm:$0xff] %v13553_v56  ;;  %v9653_v56 = vor.u32 %v11418_v14, %v9652_v47  ;;  %v10419_v47 = vld [vmem:[%s12213_s4 + $0xc0] sm:$0xf]  ;;  %v11738_v14 = vld [vmem:[%s12213_s4 + $0xc4] sm:$0xf0] }
 0x381   : > { %v13563_v2 = vpop.f32.mrf.mxu2  ;;  %v13567_v39 = vpop.f32.mrf.mxu0 }
 0x382   : > { %16291 = vst [vmem:[#allocation321_spill] sm:$0xff] %v13563_v2  ;;  %v13565_v19 = vpop.f32.mrf.mxu3  ;;  %v13569_v31 = vpop.f32.mrf.mxu1  ;;  %v9660_v2 = vld [vmem:[%s12213_s4 + $0x360] sm:$0xf] }
 0x383   : > { %16292 = vst [vmem:[#allocation322_spill] sm:$0xff] %v13565_v19 }
 0x384   : > { %16293 = vst [vmem:[#allocation323_spill] sm:$0xff] %v13567_v39  ;;  %2129 = vmatmul.bf16.gmra.mxu0 %v8723_v32  ;;  %v11628_v39 = vld [vmem:[%s12213_s4 + $0x39c] sm:$0xf0]  ;;  %v10421_v32 = vld [vmem:[%s12213_s4 + $0xc8] sm:$0xf0] }
 0x385   : > { %16294 = vst [vmem:[#allocation324_spill] sm:$0xff] %v13569_v31  ;;  %6601 = vmatmul.bf16.gmra.mxu1 %v10412_v40  ;;  %v10424_v31 = vor.u32 %v11737_v12, %v10421_v32  ;;  %v11422_v12 = vld [vmem:[%s12213_s4 + $0x374] sm:$0xf0]  ;;  %v11739_v32 = vld [vmem:[%s12213_s4 + $0xd4] sm:$0xf] }
 0x386   : > { %4375 = vmatmul.bf16.gmra.mxu2 %v9653_v56  ;;  %v8731_v56 = vor.u32 %v11628_v39, %v8730_v53 }
 0x387   : > { %11213 = vmatmul.msk.bf16.gmra.mxu3 %vm1561_vm0, %v10416_v21 }
 0x389   : > { %v13572_v19 = vpop.f32.mrf.mxu2  ;;  %v13576_v20 = vpop.f32.mrf.mxu0 }
 0x38a   : > { %16295 = vst [vmem:[#allocation325_spill] sm:$0xff] %v13572_v19  ;;  %v13574_v52 = vpop.f32.mrf.mxu3  ;;  %v13578_v28 = vpop.f32.mrf.mxu1 }
 0x38b   : > { %16296 = vst [vmem:[#allocation326_spill] sm:$0xff] %v13574_v52  ;;  %v10420_v52 = vor.u32 %v11738_v14, %v10419_v47  ;;  %v8738_v14 = vld [vmem:[%s12213_s4 + $0x3a8] sm:$0xf] }
 0x38c   : > { %16297 = vst [vmem:[#allocation327_spill] sm:$0xff] %v13576_v20 }
 0x38d   : > { %16298 = vst [vmem:[#allocation328_spill] sm:$0xff] %v13578_v28  ;;  %v9661_v28 = vor.u32 %v11420_v15, %v9660_v2  ;;  %v10427_v2 = vld [vmem:[%s12213_s4 + $0xd0] sm:$0xf]  ;;  %v11740_v15 = vld [vmem:[%s12213_s4 + $0xd4] sm:$0xf0] }
 0x391   : > { %v13588_v40 = vpop.f32.mrf.mxu2  ;;  %v13592_v20 = vpop.f32.mrf.mxu0 }
 0x392   : > { %16299 = vst [vmem:[#allocation329_spill] sm:$0xff] %v13588_v40  ;;  %v13590_v21 = vpop.f32.mrf.mxu3  ;;  %v13594_v19 = vpop.f32.mrf.mxu1  ;;  %v9668_v40 = vld [vmem:[%s12213_s4 + $0x370] sm:$0xf] }
 0x393   : > { %16300 = vst [vmem:[#allocation330_spill] sm:$0xff] %v13590_v21 }
 0x394   : > { %16301 = vst [vmem:[#allocation331_spill] sm:$0xff] %v13592_v20  ;;  %2134 = vmatmul.bf16.gmra.mxu0 %v8731_v56  ;;  %v11630_v20 = vld [vmem:[%s12213_s4 + $0x3ac] sm:$0xf0]  ;;  %v10429_v56 = vld [vmem:[%s12213_s4 + $0xd8] sm:$0xf0] }
 0x395   : > { %16302 = vst [vmem:[#allocation332_spill] sm:$0xff] %v13594_v19  ;;  %6606 = vmatmul.bf16.gmra.mxu1 %v10420_v52  ;;  %v10432_v19 = vor.u32 %v11739_v32, %v10429_v56  ;;  %v11424_v32 = vld [vmem:[%s12213_s4 + $0x384] sm:$0xf0]  ;;  %v11741_v56 = vld [vmem:[%s12213_s4 + $0xe4] sm:$0xf] }
 0x396   : > { %4380 = vmatmul.bf16.gmra.mxu2 %v9661_v28  ;;  %v8739_v28 = vor.u32 %v11630_v20, %v8738_v14 }
 0x397   : > { %11214 = vmatmul.msk.bf16.gmra.mxu3 %vm1561_vm0, %v10424_v31 }
 0x399   : > { %v13597_v21 = vpop.f32.mrf.mxu2  ;;  %v13601_v53 = vpop.f32.mrf.mxu0 }
 0x39a   : > { %16303 = vst [vmem:[#allocation333_spill] sm:$0xff] %v13597_v21  ;;  %v13599_v39 = vpop.f32.mrf.mxu3  ;;  %v13603_v47 = vpop.f32.mrf.mxu1 }
 0x39b   : > { %16304 = vst [vmem:[#allocation334_spill] sm:$0xff] %v13599_v39  ;;  %v10428_v39 = vor.u32 %v11740_v15, %v10427_v2  ;;  %v8746_v15 = vld [vmem:[%s12213_s4 + $0x3b8] sm:$0xf] }
 0x39c   : > { %16305 = vst [vmem:[#allocation335_spill] sm:$0xff] %v13601_v53 }
 0x39d   : > { %16306 = vst [vmem:[#allocation336_spill] sm:$0xff] %v13603_v47  ;;  %v9669_v47 = vor.u32 %v11422_v12, %v9668_v40  ;;  %v10435_v40 = vld [vmem:[%s12213_s4 + $0xe0] sm:$0xf]  ;;  %v11742_v12 = vld [vmem:[%s12213_s4 + $0xe4] sm:$0xf0] }
 0x3a1   : > { %v13613_v52 = vpop.f32.mrf.mxu2  ;;  %v13617_v53 = vpop.f32.mrf.mxu0 }
 0x3a2   : > { %16307 = vst [vmem:[#allocation337_spill] sm:$0xff] %v13613_v52  ;;  %v13615_v31 = vpop.f32.mrf.mxu3  ;;  %v13619_v21 = vpop.f32.mrf.mxu1  ;;  %v9676_v52 = vld [vmem:[%s12213_s4 + $0x380] sm:$0xf] }
 0x3a3   : > { %16308 = vst [vmem:[#allocation338_spill] sm:$0xff] %v13615_v31 }
 0x3a4   : > { %16309 = vst [vmem:[#allocation339_spill] sm:$0xff] %v13617_v53  ;;  %2139 = vmatmul.bf16.gmra.mxu0 %v8739_v28  ;;  %v11632_v53 = vld [vmem:[%s12213_s4 + $0x3bc] sm:$0xf0]  ;;  %v10437_v28 = vld [vmem:[%s12213_s4 + $0xe8] sm:$0xf0] }
 0x3a5   : > { %16310 = vst [vmem:[#allocation340_spill] sm:$0xff] %v13619_v21  ;;  %6611 = vmatmul.bf16.gmra.mxu1 %v10428_v39  ;;  %v10440_v21 = vor.u32 %v11741_v56, %v10437_v28  ;;  %v9684_v56 = vld [vmem:[%s12213_s4 + $0x390] sm:$0xf] }
 0x3a6   : > { %4385 = vmatmul.bf16.gmra.mxu2 %v9669_v47  ;;  %v10443_v28 = vld [vmem:[%s12213_s4 + $0xf0] sm:$0xf] }
 0x3a7   : > { %11215 = vmatmul.msk.bf16.gmra.mxu3 %vm1561_vm0, %v10432_v19  ;;  %v8747_v19 = vor.u32 %v11632_v53, %v8746_v15 }
 0x3a9   : > { %v13622_v31 = vpop.f32.mrf.mxu2  ;;  %v13626_v14 = vpop.f32.mrf.mxu0 }
 0x3aa   : > { %16311 = vst [vmem:[#allocation341_spill] sm:$0xff] %v13622_v31  ;;  %v13624_v20 = vpop.f32.mrf.mxu3  ;;  %v13628_v2 = vpop.f32.mrf.mxu1  ;;  %v10436_v31 = vor.u32 %v11742_v12, %v10435_v40 }
 0x3ab   : > { %16312 = vst [vmem:[#allocation342_spill] sm:$0xff] %v13624_v20 }
 0x3ac   : > { %16313 = vst [vmem:[#allocation343_spill] sm:$0xff] %v13626_v14 }
 0x3ad   : > { %16314 = vst [vmem:[#allocation344_spill] sm:$0xff] %v13628_v2  ;;  %v9677_v2 = vor.u32 %v11424_v32, %v9676_v52  ;;  %v8754_v52 = vld [vmem:[%s12213_s4 + $0x3c8] sm:$0xf]  ;;  %v11634_v32 = vld [vmem:[%s12213_s4 + $0x3cc] sm:$0xf0] }
 0x3b1   : > { %v13638_v39 = vpop.f32.mrf.mxu2  ;;  %v2105_v20 = vpop.f32.mrf.mxu0 }
 0x3b2   : > { %16315 = vst [vmem:[#allocation345_spill] sm:$0xff] %v13638_v39  ;;  %v13640_v47 = vpop.f32.mrf.mxu3  ;;  %v13642_v14 = vpop.f32.mrf.mxu1  ;;  %v2605_v53 = vadd.f32 %v12356_v63, %v2105_v20  ;;  %v8755_v20 = vor.u32 %v11634_v32, %v8754_v52 }
 0x3b3   : > { %16316 = vst [vmem:[#allocation346_spill] sm:$0xff] %v13640_v47 }
 0x3b4   : > { %16317 = vst [vmem:[#allocation347_spill] sm:$0xff] %v13642_v14  ;;  %2144 = vmatmul.bf16.gmra.mxu0 %v8747_v19  ;;  %v11744_v19 = vld [vmem:[%s12213_s4 + $0xf4] sm:$0xf0]  ;;  %v11743_v14 = vld [vmem:[%s12213_s4 + $0xf4] sm:$0xf] }
 0x3b5   : > { %6616 = vmatmul.bf16.gmra.mxu1 %v10436_v31  ;;  %v11426_v31 = vld [vmem:[%s12213_s4 + $0x394] sm:$0xf0] }
 0x3b6   : > { %4390 = vmatmul.bf16.gmra.mxu2 %v9677_v2  ;;  %v10445_v2 = vld [vmem:[%s12213_s4 + $0xf8] sm:$0xf0] }
 0x3b7   : > { %11216 = vmatmul.msk.bf16.gmra.mxu3 %vm1561_vm0, %v10440_v21  ;;  %v10448_v33 = vor.u32 %v11743_v14, %v10445_v2  ;;  %v8762_v14 = vld [vmem:[%s12213_s4 + $0x3d8] sm:$0xf]  ;;  %v10451_v2 = vld [vmem:[%s12213_s4 + $0x100] sm:$0xf] }
 0x3b9   : > { %v4351_v15 = vpop.f32.mrf.mxu2  ;;  %v2107_v47 = vpop.f32.mrf.mxu0 }
 0x3ba   : > { %v13646_v40 = vpop.f32.mrf.mxu3  ;;  %v13648_v12 = vadd.f32 %v4351_v15, %v2605_v53  ;;  %v13650_v39 = vpop.f32.mrf.mxu1  ;;  %v2607_v21 = vadd.f32 %v12362_v3, %v2107_v47 }
 0x3bb   : > { %16318 = vst [vmem:[#allocation348_spill] sm:$0xff] %v13646_v40  ;;  %v10444_v40 = vor.u32 %v11744_v19, %v10443_v28  ;;  %v11636_v19 = vld [vmem:[%s12213_s4 + $0x3dc] sm:$0xf0] }
 0x3bc   : > { %16319 = vst [vmem:[#allocation349_spill] sm:$0xff] %v13648_v12  ;;  %v9685_v12 = vor.u32 %v11426_v31, %v9684_v56  ;;  %v9692_v31 = vld [vmem:[%s12213_s4 + $0x3a0] sm:$0xf] }
 0x3bd   : > { %16320 = vst [vmem:[#allocation350_spill] sm:$0xff] %v13650_v39 }
 0x3c1   : > { %v4353_v35 = vpop.f32.mrf.mxu2  ;;  %v2110_v15 = vpop.f32.mrf.mxu0 }
 0x3c2   : > { %v13661_v63 = vpop.f32.mrf.mxu3  ;;  %v13663_v53 = vadd.f32 %v4353_v35, %v2607_v21  ;;  %v6582_v39 = vpop.f32.mrf.mxu1  ;;  %v2610_v3 = vadd.f32 %v12376_v16, %v2110_v15  ;;  %v11428_v21 = vld [vmem:[%s12213_s4 + $0x3a4] sm:$0xf0]  ;;  %v8763_v15 = vor.u32 %v11636_v19, %v8762_v14 }
 0x3c3   : > { %16321 = vst [vmem:[#allocation351_spill] sm:$0xff] %v13661_v63 }
 0x3c4   : > { %16322 = vst [vmem:[#allocation352_spill] sm:$0xff] %v13663_v53  ;;  %2149 = vmatmul.bf16.gmra.mxu0 %v8755_v20  ;;  %v10453_v20 = vld [vmem:[%s12213_s4 + $0x108] sm:$0xf0] }
 0x3c5   : > { %6621 = vmatmul.bf16.gmra.mxu1 %v10444_v40  ;;  %v11746_v40 = vld [vmem:[%s12213_s4 + $0x104] sm:$0xf0] }
 0x3c6   : > { %4395 = vmatmul.bf16.gmra.mxu2 %v9685_v12  ;;  %v11745_v12 = vld [vmem:[%s12213_s4 + $0x104] sm:$0xf]  ;;  %v10452_v53 = vor.u32 %v11746_v40, %v10451_v2  ;;  %v8770_v2 = vld [vmem:[%s12213_s4 + $0x3e8] sm:$0xf]  ;;  %v11638_v40 = vld [vmem:[%s12213_s4 + $0x3ec] sm:$0xf0] }
 0x3c7   : > { %11217 = vmatmul.msk.bf16.gmra.mxu3 %vm1561_vm0, %v10448_v33 }
 0x3c9   : > { %v4356_v35 = vpop.f32.mrf.mxu2  ;;  %v2112_v56 = vpop.f32.mrf.mxu0 }
 0x3ca   : > { %v7081_v47 = vpop.f32.mrf.mxu3  ;;  %v13667_v52 = vadd.f32 %v4356_v35, %v2610_v3  ;;  %v6584_v28 = vpop.f32.mrf.mxu1  ;;  %v2612_v33 = vadd.f32 %v12386_v22, %v2112_v56 }
 0x3cb   : > { %v13669_v32 = vadd.f32 %v7081_v47, %v6582_v39 }
 0x3cc   : > { %16323 = vst [vmem:[#allocation353_spill] sm:$0xff] %v13667_v52  ;;  %v10456_v52 = vor.u32 %v11745_v12, %v10453_v20  ;;  %v10459_v12 = vld [vmem:[%s12213_s4 + $0x110] sm:$0xf]  ;;  %v11430_v20 = vld [vmem:[%s12213_s4 + $0x3b4] sm:$0xf0] }
 0x3cd   : > { %16324 = vst [vmem:[#allocation354_spill] sm:$0xff] %v13669_v32  ;;  %v9693_v32 = vor.u32 %v11428_v21, %v9692_v31  ;;  %v9700_v21 = vld [vmem:[%s12213_s4 + $0x3b0] sm:$0xf] }
 0x3d1   : > { %v4358_v63 = vpop.f32.mrf.mxu2  ;;  %v2115_v35 = vpop.f32.mrf.mxu0 }
 0x3d2   : > { %v7083_v16 = vpop.f32.mrf.mxu3  ;;  %v13680_v3 = vadd.f32 %v4358_v63, %v2612_v33  ;;  %v6587_v47 = vpop.f32.mrf.mxu1  ;;  %v2615_v22 = vadd.f32 %v12402_v36, %v2115_v35  ;;  %v10461_v33 = vld [vmem:[%s12213_s4 + $0x118] sm:$0xf0] }
 0x3d3   : > { %v13682_v39 = vadd.f32 %v7083_v16, %v6584_v28 }
 0x3d4   : > { %2154 = vmatmul.bf16.gmra.mxu0 %v8763_v15  ;;  %v8771_v15 = vor.u32 %v11638_v40, %v8770_v2 }
 0x3d5   : > { %6626 = vmatmul.bf16.gmra.mxu1 %v10452_v53  ;;  %v11748_v53 = vld [vmem:[%s12213_s4 + $0x114] sm:$0xf0] }
 0x3d6   : > { %4400 = vmatmul.bf16.gmra.mxu2 %v9693_v32  ;;  %v11747_v32 = vld [vmem:[%s12213_s4 + $0x114] sm:$0xf]  ;;  %v10460_v35 = vor.u32 %v11748_v53, %v10459_v12  ;;  %v8778_v53 = vld [vmem:[%s12213_s4 + $0x3f8] sm:$0xf] }
 0x3d7   : > { %11218 = vmatmul.msk.bf16.gmra.mxu3 %vm1561_vm0, %v10456_v52 }
 0x3d9   : > { %v4361_v63 = vpop.f32.mrf.mxu2  ;;  %v2117_v19 = vpop.f32.mrf.mxu0 }
 0x3da   : > { %v7086_v56 = vpop.f32.mrf.mxu3  ;;  %v13686_v28 = vadd.f32 %v4361_v63, %v2615_v22  ;;  %v6589_v31 = vpop.f32.mrf.mxu1  ;;  %v2617_v52 = vadd.f32 %v12412_v42, %v2117_v19 }
 0x3db   : > { %v13688_v14 = vadd.f32 %v7086_v56, %v6587_v47 }
 0x3dc   : > { %16325 = vst [vmem:[#allocation355_spill] sm:$0xff] %v13686_v28  ;;  %v10464_v28 = vor.u32 %v11747_v32, %v10461_v33  ;;  %v9708_v32 = vld [vmem:[%s12213_s4 + $0x3c0] sm:$0xf] }
 0x3dd   : > { %16326 = vst [vmem:[#allocation356_spill] sm:$0xff] %v13688_v14  ;;  %v9701_v14 = vor.u32 %v11430_v20, %v9700_v21  ;;  %v11640_v20 = vld [vmem:[%s12213_s4 + $0x3fc] sm:$0xf0] }
 0x3de   : > { %v10467_v33 = vld [vmem:[%s12213_s4 + $0x120] sm:$0xf] }
 0x3e1   : > { %v4363_v16 = vpop.f32.mrf.mxu2  ;;  %v2120_v63 = vpop.f32.mrf.mxu0 }
 0x3e2   : > { %v7088_v36 = vpop.f32.mrf.mxu3  ;;  %v13699_v22 = vadd.f32 %v4363_v16, %v2617_v52  ;;  %v6592_v56 = vpop.f32.mrf.mxu1  ;;  %v2620_v42 = vadd.f32 %v12431_v57, %v2120_v63  ;;  %v11750_v52 = vld [vmem:[%s12213_s4 + $0x124] sm:$0xf0] }
 0x3e3   : > { %v13701_v47 = vadd.f32 %v7088_v36, %v6589_v31  ;;  %v11432_v16 = vld [vmem:[%s12213_s4 + $0x3c4] sm:$0xf0]  ;;  %v10469_v36 = vld [vmem:[%s12213_s4 + $0x128] sm:$0xf0]  ;;  %v10468_v63 = vor.u32 %v11750_v52, %v10467_v33 }
 0x3e4   : > { %2159 = vmatmul.bf16.gmra.mxu0 %v8771_v15  ;;  %v8786_v52 = vld [vmem:[%s12213_s4 + $0x408] sm:$0xf] }
 0x3e5   : > { %6631 = vmatmul.bf16.gmra.mxu1 %v10460_v35  ;;  %v8779_v35 = vor.u32 %v11640_v20, %v8778_v53 }
 0x3e6   : > { %4405 = vmatmul.bf16.gmra.mxu2 %v9701_v14  ;;  %v11749_v14 = vld [vmem:[%s12213_s4 + $0x124] sm:$0xf] }
 0x3e7   : > { %11219 = vmatmul.msk.bf16.gmra.mxu3 %vm1561_vm0, %v10464_v28 }
 0x3e9   : > { %v4366_v19 = vpop.f32.mrf.mxu2  ;;  %v2122_v21 = vpop.f32.mrf.mxu0 }
 0x3ea   : > { %v7091_v31 = vpop.f32.mrf.mxu3  ;;  %v13705_v2 = vadd.f32 %v4366_v19, %v2620_v42  ;;  %v6594_v12 = vpop.f32.mrf.mxu1  ;;  %v2622_v28 = vadd.f32 %v12444_v1, %v2122_v21 }
 0x3eb   : > { %v13707_v40 = vadd.f32 %v7091_v31, %v6592_v56 }
 0x3ec   : > { %16327 = vst [vmem:[#allocation357_spill] sm:$0xff] %v13705_v2  ;;  %v10472_v2 = vor.u32 %v11749_v14, %v10469_v36  ;;  %v9716_v14 = vld [vmem:[%s12213_s4 + $0x3d0] sm:$0xf] }
 0x3ed   : > { %16328 = vst [vmem:[#allocation358_spill] sm:$0xff] %v13707_v40  ;;  %v9709_v40 = vor.u32 %v11432_v16, %v9708_v32  ;;  %v11642_v16 = vld [vmem:[%s12213_s4 + $0x40c] sm:$0xf0] }
 0x3ee   : > { %v10475_v36 = vld [vmem:[%s12213_s4 + $0x130] sm:$0xf] }
 0x3f1   : > { %v4368_v15 = vpop.f32.mrf.mxu2  ;;  %v2125_v19 = vpop.f32.mrf.mxu0 }
 0x3f2   : > { %v7093_v57 = vpop.f32.mrf.mxu3  ;;  %v13718_v42 = vadd.f32 %v4368_v15, %v2622_v28  ;;  %v6597_v31 = vpop.f32.mrf.mxu1  ;;  %v2625_v1 = vadd.f32 %v12460_v24, %v2125_v19  ;;  %v11752_v28 = vld [vmem:[%s12213_s4 + $0x134] sm:$0xf0] }
 0x3f3   : > { %v13720_v56 = vadd.f32 %v7093_v57, %v6594_v12  ;;  %v11434_v15 = vld [vmem:[%s12213_s4 + $0x3d4] sm:$0xf0]  ;;  %v10477_v57 = vld [vmem:[%s12213_s4 + $0x138] sm:$0xf0]  ;;  %v10476_v19 = vor.u32 %v11752_v28, %v10475_v36 }
 0x3f4   : > { %2164 = vmatmul.bf16.gmra.mxu0 %v8779_v35  ;;  %v8794_v28 = vld [vmem:[%s12213_s4 + $0x418] sm:$0xf] }
 0x3f5   : > { %6636 = vmatmul.bf16.gmra.mxu1 %v10468_v63  ;;  %v8787_v63 = vor.u32 %v11642_v16, %v8786_v52 }
 0x3f6   : > { %4410 = vmatmul.bf16.gmra.mxu2 %v9709_v40  ;;  %v11751_v40 = vld [vmem:[%s12213_s4 + $0x134] sm:$0xf] }
 0x3f7   : > { %11220 = vmatmul.msk.bf16.gmra.mxu3 %vm1561_vm0, %v10472_v2 }
 0x3f9   : > { %v4371_v21 = vpop.f32.mrf.mxu2  ;;  %v2127_v32 = vpop.f32.mrf.mxu0 }
 0x3fa   : > { %v7096_v12 = vpop.f32.mrf.mxu3  ;;  %v13724_v53 = vadd.f32 %v4371_v21, %v2625_v1  ;;  %v6599_v33 = vpop.f32.mrf.mxu1  ;;  %v2627_v2 = vadd.f32 %v12470_v30, %v2127_v32 }
 0x3fb   : > { %v13726_v20 = vadd.f32 %v7096_v12, %v6597_v31 }
 0x3fc   : > { %16329 = vst [vmem:[#allocation359_spill] sm:$0xff] %v13724_v53  ;;  %v10480_v53 = vor.u32 %v11751_v40, %v10477_v57  ;;  %v9724_v40 = vld [vmem:[%s12213_s4 + $0x3e0] sm:$0xf] }
 0x3fd   : > { %16330 = vst [vmem:[#allocation360_spill] sm:$0xff] %v13726_v20  ;;  %v9717_v20 = vor.u32 %v11434_v15, %v9716_v14  ;;  %v11644_v15 = vld [vmem:[%s12213_s4 + $0x41c] sm:$0xf0] }
 0x3fe   : > { %v10483_v57 = vld [vmem:[%s12213_s4 + $0x140] sm:$0xf] }
 0x401   : > { %v4373_v35 = vpop.f32.mrf.mxu2  ;;  %v2130_v21 = vpop.f32.mrf.mxu0 }
 0x402   : > { %v7098_v24 = vpop.f32.mrf.mxu3  ;;  %v13737_v1 = vadd.f32 %v4373_v35, %v2627_v2  ;;  %v6602_v12 = vpop.f32.mrf.mxu1  ;;  %v2630_v30 = vadd.f32 %v12486_v54, %v2130_v21  ;;  %v11754_v2 = vld [vmem:[%s12213_s4 + $0x144] sm:$0xf0] }
 0x403   : > { %v13739_v31 = vadd.f32 %v7098_v24, %v6599_v33  ;;  %v11436_v35 = vld [vmem:[%s12213_s4 + $0x3e4] sm:$0xf0]  ;;  %v10485_v24 = vld [vmem:[%s12213_s4 + $0x148] sm:$0xf0]  ;;  %v10484_v21 = vor.u32 %v11754_v2, %v10483_v57 }
 0x404   : > { %2169 = vmatmul.bf16.gmra.mxu0 %v8787_v63  ;;  %v8802_v2 = vld [vmem:[%s12213_s4 + $0x428] sm:$0xf] }
 0x405   : > { %6641 = vmatmul.bf16.gmra.mxu1 %v10476_v19  ;;  %v8795_v19 = vor.u32 %v11644_v15, %v8794_v28 }
 0x406   : > { %4415 = vmatmul.bf16.gmra.mxu2 %v9717_v20  ;;  %v11753_v20 = vld [vmem:[%s12213_s4 + $0x144] sm:$0xf] }
 0x407   : > { %11221 = vmatmul.msk.bf16.gmra.mxu3 %vm1561_vm0, %v10480_v53 }
 0x409   : > { %v4376_v32 = vpop.f32.mrf.mxu2  ;;  %v2132_v14 = vpop.f32.mrf.mxu0 }
 0x40a   : > { %v7101_v33 = vpop.f32.mrf.mxu3  ;;  %v13743_v52 = vadd.f32 %v4376_v32, %v2630_v30  ;;  %v6604_v36 = vpop.f32.mrf.mxu1  ;;  %v2632_v53 = vadd.f32 %v12496_v5, %v2132_v14 }
 0x40b   : > { %v13745_v16 = vadd.f32 %v7101_v33, %v6602_v12 }
 0x40c   : > { %16331 = vst [vmem:[#allocation361_spill] sm:$0xff] %v13743_v52  ;;  %v10488_v52 = vor.u32 %v11753_v20, %v10485_v24  ;;  %v9732_v20 = vld [vmem:[%s12213_s4 + $0x3f0] sm:$0xf] }
 0x40d   : > { %16332 = vst [vmem:[#allocation362_spill] sm:$0xff] %v13745_v16  ;;  %v9725_v16 = vor.u32 %v11436_v35, %v9724_v40  ;;  %v11646_v35 = vld [vmem:[%s12213_s4 + $0x42c] sm:$0xf0] }
 0x40e   : > { %v10491_v24 = vld [vmem:[%s12213_s4 + $0x150] sm:$0xf] }
 0x411   : > { %v4378_v63 = vpop.f32.mrf.mxu2  ;;  %v2135_v32 = vpop.f32.mrf.mxu0 }
 0x412   : > { %v7103_v54 = vpop.f32.mrf.mxu3  ;;  %v13756_v30 = vadd.f32 %v4378_v63, %v2632_v53  ;;  %v6607_v33 = vpop.f32.mrf.mxu1  ;;  %v2635_v5 = vadd.f32 %v12512_v38, %v2135_v32  ;;  %v11756_v53 = vld [vmem:[%s12213_s4 + $0x154] sm:$0xf0] }
 0x413   : > { %v13758_v12 = vadd.f32 %v7103_v54, %v6604_v36  ;;  %v11438_v63 = vld [vmem:[%s12213_s4 + $0x3f4] sm:$0xf0]  ;;  %v10493_v54 = vld [vmem:[%s12213_s4 + $0x158] sm:$0xf0]  ;;  %v10492_v32 = vor.u32 %v11756_v53, %v10491_v24 }
 0x414   : > { %2174 = vmatmul.bf16.gmra.mxu0 %v8795_v19  ;;  %v8810_v53 = vld [vmem:[%s12213_s4 + $0x438] sm:$0xf] }
 0x415   : > { %6646 = vmatmul.bf16.gmra.mxu1 %v10484_v21  ;;  %v8803_v21 = vor.u32 %v11646_v35, %v8802_v2 }
 0x416   : > { %4420 = vmatmul.bf16.gmra.mxu2 %v9725_v16  ;;  %v11755_v16 = vld [vmem:[%s12213_s4 + $0x154] sm:$0xf] }
 0x417   : > { %11222 = vmatmul.msk.bf16.gmra.mxu3 %vm1561_vm0, %v10488_v52 }
 0x419   : > { %v4381_v14 = vpop.f32.mrf.mxu2  ;;  %v2137_v40 = vpop.f32.mrf.mxu0 }
 0x41a   : > { %v7106_v36 = vpop.f32.mrf.mxu3  ;;  %v13762_v28 = vadd.f32 %v4381_v14, %v2635_v5  ;;  %v6609_v57 = vpop.f32.mrf.mxu1  ;;  %v2637_v52 = vadd.f32 %v12522_v50, %v2137_v40 }
 0x41b   : > { %v13764_v15 = vadd.f32 %v7106_v36, %v6607_v33 }
 0x41c   : > { %16333 = vst [vmem:[#allocation363_spill] sm:$0xff] %v13762_v28  ;;  %v10496_v28 = vor.u32 %v11755_v16, %v10493_v54  ;;  %v9740_v16 = vld [vmem:[%s12213_s4 + $0x400] sm:$0xf] }
 0x41d   : > { %16334 = vst [vmem:[#allocation364_spill] sm:$0xff] %v13764_v15  ;;  %v9733_v15 = vor.u32 %v11438_v63, %v9732_v20  ;;  %v11648_v63 = vld [vmem:[%s12213_s4 + $0x43c] sm:$0xf0] }
 0x41e   : > { %v10499_v54 = vld [vmem:[%s12213_s4 + $0x160] sm:$0xf] }
 0x421   : > { %v4383_v19 = vpop.f32.mrf.mxu2  ;;  %v2140_v14 = vpop.f32.mrf.mxu0 }
 0x422   : > { %v7108_v38 = vpop.f32.mrf.mxu3  ;;  %v13775_v5 = vadd.f32 %v4383_v19, %v2637_v52  ;;  %v6612_v36 = vpop.f32.mrf.mxu1  ;;  %v2640_v50 = vadd.f32 %v12538_v44, %v2140_v14  ;;  %v11758_v52 = vld [vmem:[%s12213_s4 + $0x164] sm:$0xf0] }
 0x423   : > { %v13777_v33 = vadd.f32 %v7108_v38, %v6609_v57  ;;  %v11440_v19 = vld [vmem:[%s12213_s4 + $0x404] sm:$0xf0]  ;;  %v10501_v38 = vld [vmem:[%s12213_s4 + $0x168] sm:$0xf0]  ;;  %v10500_v14 = vor.u32 %v11758_v52, %v10499_v54 }
 0x424   : > { %2179 = vmatmul.bf16.gmra.mxu0 %v8803_v21  ;;  %v8818_v52 = vld [vmem:[%s12213_s4 + $0x448] sm:$0xf] }
 0x425   : > { %6651 = vmatmul.bf16.gmra.mxu1 %v10492_v32  ;;  %v8811_v32 = vor.u32 %v11648_v63, %v8810_v53 }
 0x426   : > { %4425 = vmatmul.bf16.gmra.mxu2 %v9733_v15  ;;  %v11757_v15 = vld [vmem:[%s12213_s4 + $0x164] sm:$0xf] }
 0x427   : > { %11223 = vmatmul.msk.bf16.gmra.mxu3 %vm1561_vm0, %v10496_v28 }
 0x429   : > { %v4386_v40 = vpop.f32.mrf.mxu2  ;;  %v2142_v20 = vpop.f32.mrf.mxu0 }
 0x42a   : > { %v7111_v57 = vpop.f32.mrf.mxu3  ;;  %v13781_v2 = vadd.f32 %v4386_v40, %v2640_v50  ;;  %v6614_v24 = vpop.f32.mrf.mxu1  ;;  %v2642_v28 = vadd.f32 %v12548_v7, %v2142_v20 }
 0x42b   : > { %v13783_v35 = vadd.f32 %v7111_v57, %v6612_v36 }
 0x42c   : > { %16335 = vst [vmem:[#allocation365_spill] sm:$0xff] %v13781_v2  ;;  %v10504_v2 = vor.u32 %v11757_v15, %v10501_v38  ;;  %v9748_v15 = vld [vmem:[%s12213_s4 + $0x410] sm:$0xf] }
 0x42d   : > { %16336 = vst [vmem:[#allocation366_spill] sm:$0xff] %v13783_v35  ;;  %v9741_v35 = vor.u32 %v11440_v19, %v9740_v16  ;;  %v11650_v19 = vld [vmem:[%s12213_s4 + $0x44c] sm:$0xf0] }
 0x42e   : > { %v10507_v38 = vld [vmem:[%s12213_s4 + $0x170] sm:$0xf] }
 0x431   : > { %v4388_v21 = vpop.f32.mrf.mxu2  ;;  %v2145_v40 = vpop.f32.mrf.mxu0 }
 0x432   : > { %v7113_v44 = vpop.f32.mrf.mxu3  ;;  %v13794_v50 = vadd.f32 %v4388_v21, %v2642_v28  ;;  %v6617_v57 = vpop.f32.mrf.mxu1  ;;  %v2645_v7 = vadd.f32 %v12564_v55, %v2145_v40  ;;  %v11760_v28 = vld [vmem:[%s12213_s4 + $0x174] sm:$0xf0] }
 0x433   : > { %v13796_v36 = vadd.f32 %v7113_v44, %v6614_v24  ;;  %v11442_v21 = vld [vmem:[%s12213_s4 + $0x414] sm:$0xf0]  ;;  %v10509_v44 = vld [vmem:[%s12213_s4 + $0x178] sm:$0xf0]  ;;  %v10508_v40 = vor.u32 %v11760_v28, %v10507_v38 }
 0x434   : > { %2184 = vmatmul.bf16.gmra.mxu0 %v8811_v32  ;;  %v8826_v28 = vld [vmem:[%s12213_s4 + $0x458] sm:$0xf] }
 0x435   : > { %6656 = vmatmul.bf16.gmra.mxu1 %v10500_v14  ;;  %v8819_v14 = vor.u32 %v11650_v19, %v8818_v52 }
 0x436   : > { %4430 = vmatmul.bf16.gmra.mxu2 %v9741_v35  ;;  %v11759_v35 = vld [vmem:[%s12213_s4 + $0x174] sm:$0xf] }
 0x437   : > { %11224 = vmatmul.msk.bf16.gmra.mxu3 %vm1561_vm0, %v10504_v2 }
 0x439   : > { %v4391_v20 = vpop.f32.mrf.mxu2  ;;  %v2147_v16 = vpop.f32.mrf.mxu0 }
 0x43a   : > { %v7116_v24 = vpop.f32.mrf.mxu3  ;;  %v13800_v53 = vadd.f32 %v4391_v20, %v2645_v7  ;;  %v6619_v54 = vpop.f32.mrf.mxu1  ;;  %v2647_v2 = vadd.f32 %v12574_v9, %v2147_v16 }
 0x43b   : > { %v13802_v63 = vadd.f32 %v7116_v24, %v6617_v57 }
 0x43c   : > { %16337 = vst [vmem:[#allocation367_spill] sm:$0xff] %v13800_v53  ;;  %v10512_v53 = vor.u32 %v11759_v35, %v10509_v44  ;;  %v9756_v35 = vld [vmem:[%s12213_s4 + $0x420] sm:$0xf] }
 0x43d   : > { %16338 = vst [vmem:[#allocation368_spill] sm:$0xff] %v13802_v63  ;;  %v9749_v63 = vor.u32 %v11442_v21, %v9748_v15  ;;  %v11652_v21 = vld [vmem:[%s12213_s4 + $0x45c] sm:$0xf0] }
 0x43e   : > { %v10515_v44 = vld [vmem:[%s12213_s4 + $0x180] sm:$0xf] }
 0x441   : > { %v4393_v32 = vpop.f32.mrf.mxu2  ;;  %v2150_v20 = vpop.f32.mrf.mxu0 }
 0x442   : > { %v7118_v55 = vpop.f32.mrf.mxu3  ;;  %v13813_v7 = vadd.f32 %v4393_v32, %v2647_v2  ;;  %v6622_v24 = vpop.f32.mrf.mxu1  ;;  %v2650_v9 = vadd.f32 %v12590_v8, %v2150_v20  ;;  %v11762_v2 = vld [vmem:[%s12213_s4 + $0x184] sm:$0xf0] }
 0x443   : > { %v13815_v57 = vadd.f32 %v7118_v55, %v6619_v54  ;;  %v11444_v32 = vld [vmem:[%s12213_s4 + $0x424] sm:$0xf0]  ;;  %v10517_v55 = vld [vmem:[%s12213_s4 + $0x188] sm:$0xf0]  ;;  %v10516_v20 = vor.u32 %v11762_v2, %v10515_v44 }
 0x444   : > { %2189 = vmatmul.bf16.gmra.mxu0 %v8819_v14  ;;  %v8834_v2 = vld [vmem:[%s12213_s4 + $0x468] sm:$0xf] }
 0x445   : > { %6661 = vmatmul.bf16.gmra.mxu1 %v10508_v40  ;;  %v8827_v40 = vor.u32 %v11652_v21, %v8826_v28 }
 0x446   : > { %4435 = vmatmul.bf16.gmra.mxu2 %v9749_v63  ;;  %v11761_v63 = vld [vmem:[%s12213_s4 + $0x184] sm:$0xf] }
 0x447   : > { %11225 = vmatmul.msk.bf16.gmra.mxu3 %vm1561_vm0, %v10512_v53 }
 0x449   : > { %v4396_v16 = vpop.f32.mrf.mxu2  ;;  %v2152_v15 = vpop.f32.mrf.mxu0 }
 0x44a   : > { %v7121_v54 = vpop.f32.mrf.mxu3  ;;  %v13819_v52 = vadd.f32 %v4396_v16, %v2650_v9  ;;  %v6624_v38 = vpop.f32.mrf.mxu1  ;;  %v2652_v53 = vadd.f32 %v12603_v34, %v2152_v15 }
 0x44b   : > { %v13821_v19 = vadd.f32 %v7121_v54, %v6622_v24 }
 0x44c   : > { %16339 = vst [vmem:[#allocation369_spill] sm:$0xff] %v13819_v52  ;;  %v10520_v52 = vor.u32 %v11761_v63, %v10517_v55  ;;  %v9764_v63 = vld [vmem:[%s12213_s4 + $0x430] sm:$0xf] }
 0x44d   : > { %16340 = vst [vmem:[#allocation370_spill] sm:$0xff] %v13821_v19  ;;  %v9757_v19 = vor.u32 %v11444_v32, %v9756_v35  ;;  %v11654_v32 = vld [vmem:[%s12213_s4 + $0x46c] sm:$0xf0] }
 0x44e   : > { %v10523_v55 = vld [vmem:[%s12213_s4 + $0x190] sm:$0xf] }
 0x451   : > { %v4398_v14 = vpop.f32.mrf.mxu2  ;;  %v2155_v16 = vpop.f32.mrf.mxu0 }
 0x452   : > { %v7123_v8 = vpop.f32.mrf.mxu3  ;;  %v13832_v9 = vadd.f32 %v4398_v14, %v2652_v53  ;;  %v6627_v54 = vpop.f32.mrf.mxu1  ;;  %v2655_v34 = vadd.f32 %v12619_v58, %v2155_v16  ;;  %v11764_v53 = vld [vmem:[%s12213_s4 + $0x194] sm:$0xf0] }
 0x453   : > { %v13834_v24 = vadd.f32 %v7123_v8, %v6624_v38  ;;  %v11446_v14 = vld [vmem:[%s12213_s4 + $0x434] sm:$0xf0]  ;;  %v10525_v8 = vld [vmem:[%s12213_s4 + $0x198] sm:$0xf0]  ;;  %v10524_v16 = vor.u32 %v11764_v53, %v10523_v55 }
 0x454   : > { %2194 = vmatmul.bf16.gmra.mxu0 %v8827_v40  ;;  %v8842_v53 = vld [vmem:[%s12213_s4 + $0x478] sm:$0xf] }
 0x455   : > { %6666 = vmatmul.bf16.gmra.mxu1 %v10516_v20  ;;  %v8835_v20 = vor.u32 %v11654_v32, %v8834_v2 }
 0x456   : > { %4440 = vmatmul.bf16.gmra.mxu2 %v9757_v19  ;;  %v11763_v19 = vld [vmem:[%s12213_s4 + $0x194] sm:$0xf] }
 0x457   : > { %11226 = vmatmul.msk.bf16.gmra.mxu3 %vm1561_vm0, %v10520_v52 }
 0x459   : > { %v4401_v15 = vpop.f32.mrf.mxu2  ;;  %v2157_v35 = vpop.f32.mrf.mxu0 }
 0x45a   : > { %v7126_v38 = vpop.f32.mrf.mxu3  ;;  %v13838_v28 = vadd.f32 %v4401_v15, %v2655_v34  ;;  %v6629_v44 = vpop.f32.mrf.mxu1  ;;  %v2657_v52 = vadd.f32 %v12629_v49, %v2157_v35 }
 0x45b   : > { %v13840_v21 = vadd.f32 %v7126_v38, %v6627_v54 }
 0x45c   : > { %16341 = vst [vmem:[#allocation371_spill] sm:$0xff] %v13838_v28  ;;  %v10528_v28 = vor.u32 %v11763_v19, %v10525_v8  ;;  %v9772_v19 = vld [vmem:[%s12213_s4 + $0x440] sm:$0xf] }
 0x45d   : > { %16342 = vst [vmem:[#allocation372_spill] sm:$0xff] %v13840_v21  ;;  %v9765_v21 = vor.u32 %v11446_v14, %v9764_v63  ;;  %v11656_v14 = vld [vmem:[%s12213_s4 + $0x47c] sm:$0xf0] }
 0x45e   : > { %v10531_v8 = vld [vmem:[%s12213_s4 + $0x1a0] sm:$0xf] }
 0x461   : > { %v4403_v40 = vpop.f32.mrf.mxu2  ;;  %v2160_v15 = vpop.f32.mrf.mxu0 }
 0x462   : > { %v7128_v58 = vpop.f32.mrf.mxu3  ;;  %v13851_v34 = vadd.f32 %v4403_v40, %v2657_v52  ;;  %v6632_v38 = vpop.f32.mrf.mxu1  ;;  %v2660_v49 = vadd.f32 %v12645_v17, %v2160_v15  ;;  %v11766_v52 = vld [vmem:[%s12213_s4 + $0x1a4] sm:$0xf0] }
 0x463   : > { %v13853_v54 = vadd.f32 %v7128_v58, %v6629_v44  ;;  %v11448_v40 = vld [vmem:[%s12213_s4 + $0x444] sm:$0xf0]  ;;  %v10533_v58 = vld [vmem:[%s12213_s4 + $0x1a8] sm:$0xf0]  ;;  %v10532_v15 = vor.u32 %v11766_v52, %v10531_v8 }
 0x464   : > { %2199 = vmatmul.bf16.gmra.mxu0 %v8835_v20  ;;  %v8850_v52 = vld [vmem:[%s12213_s4 + $0x488] sm:$0xf] }
 0x465   : > { %6671 = vmatmul.bf16.gmra.mxu1 %v10524_v16  ;;  %v8843_v16 = vor.u32 %v11656_v14, %v8842_v53 }
 0x466   : > { %4445 = vmatmul.bf16.gmra.mxu2 %v9765_v21  ;;  %v11765_v21 = vld [vmem:[%s12213_s4 + $0x1a4] sm:$0xf] }
 0x467   : > { %11227 = vmatmul.msk.bf16.gmra.mxu3 %vm1561_vm0, %v10528_v28 }
 0x469   : > { %v4406_v35 = vpop.f32.mrf.mxu2  ;;  %v2162_v63 = vpop.f32.mrf.mxu0 }
 0x46a   : > { %v7131_v44 = vpop.f32.mrf.mxu3  ;;  %v13857_v2 = vadd.f32 %v4406_v35, %v2660_v49  ;;  %v6634_v55 = vpop.f32.mrf.mxu1  ;;  %v2662_v28 = vadd.f32 %v12655_v37, %v2162_v63 }
 0x46b   : > { %v13859_v32 = vadd.f32 %v7131_v44, %v6632_v38 }
 0x46c   : > { %16343 = vst [vmem:[#allocation373_spill] sm:$0xff] %v13857_v2  ;;  %v10536_v2 = vor.u32 %v11765_v21, %v10533_v58  ;;  %v9780_v21 = vld [vmem:[%s12213_s4 + $0x450] sm:$0xf] }
 0x46d   : > { %16344 = vst [vmem:[#allocation374_spill] sm:$0xff] %v13859_v32  ;;  %v9773_v32 = vor.u32 %v11448_v40, %v9772_v19  ;;  %v11658_v40 = vld [vmem:[%s12213_s4 + $0x48c] sm:$0xf0] }
 0x46e   : > { %v10539_v58 = vld [vmem:[%s12213_s4 + $0x1b0] sm:$0xf] }
 0x471   : > { %v4408_v20 = vpop.f32.mrf.mxu2  ;;  %v2165_v35 = vpop.f32.mrf.mxu0 }
 0x472   : > { %v7133_v17 = vpop.f32.mrf.mxu3  ;;  %v13870_v49 = vadd.f32 %v4408_v20, %v2662_v28  ;;  %v6637_v44 = vpop.f32.mrf.mxu1  ;;  %v2665_v37 = vadd.f32 %v12671_v11, %v2165_v35  ;;  %v11768_v28 = vld [vmem:[%s12213_s4 + $0x1b4] sm:$0xf0] }
 0x473   : > { %v13872_v38 = vadd.f32 %v7133_v17, %v6634_v55  ;;  %v11450_v20 = vld [vmem:[%s12213_s4 + $0x454] sm:$0xf0]  ;;  %v10541_v17 = vld [vmem:[%s12213_s4 + $0x1b8] sm:$0xf0]  ;;  %v10540_v35 = vor.u32 %v11768_v28, %v10539_v58 }
 0x474   : > { %2204 = vmatmul.bf16.gmra.mxu0 %v8843_v16  ;;  %v8858_v28 = vld [vmem:[%s12213_s4 + $0x498] sm:$0xf] }
 0x475   : > { %6676 = vmatmul.bf16.gmra.mxu1 %v10532_v15  ;;  %v8851_v15 = vor.u32 %v11658_v40, %v8850_v52 }
 0x476   : > { %4450 = vmatmul.bf16.gmra.mxu2 %v9773_v32  ;;  %v11767_v32 = vld [vmem:[%s12213_s4 + $0x1b4] sm:$0xf] }
 0x477   : > { %11228 = vmatmul.msk.bf16.gmra.mxu3 %vm1561_vm0, %v10536_v2 }
 0x479   : > { %v4411_v63 = vpop.f32.mrf.mxu2  ;;  %v2167_v19 = vpop.f32.mrf.mxu0 }
 0x47a   : > { %v7136_v55 = vpop.f32.mrf.mxu3  ;;  %v13876_v53 = vadd.f32 %v4411_v63, %v2665_v37  ;;  %v6639_v8 = vpop.f32.mrf.mxu1  ;;  %v2667_v2 = vadd.f32 %v12681_v25, %v2167_v19 }
 0x47b   : > { %v13878_v14 = vadd.f32 %v7136_v55, %v6637_v44 }
 0x47c   : > { %16345 = vst [vmem:[#allocation375_spill] sm:$0xff] %v13876_v53  ;;  %v10544_v53 = vor.u32 %v11767_v32, %v10541_v17  ;;  %v9788_v32 = vld [vmem:[%s12213_s4 + $0x460] sm:$0xf] }
 0x47d   : > { %16346 = vst [vmem:[#allocation376_spill] sm:$0xff] %v13878_v14  ;;  %v9781_v14 = vor.u32 %v11450_v20, %v9780_v21  ;;  %v11660_v20 = vld [vmem:[%s12213_s4 + $0x49c] sm:$0xf0] }
 0x47e   : > { %v10547_v17 = vld [vmem:[%s12213_s4 + $0x1c0] sm:$0xf] }
 0x481   : > { %v4413_v16 = vpop.f32.mrf.mxu2  ;;  %v2170_v63 = vpop.f32.mrf.mxu0 }
 0x482   : > { %v7138_v11 = vpop.f32.mrf.mxu3  ;;  %v13889_v37 = vadd.f32 %v4413_v16, %v2667_v2  ;;  %v6642_v55 = vpop.f32.mrf.mxu1  ;;  %v2670_v25 = vadd.f32 %v12697_v18, %v2170_v63  ;;  %v11770_v2 = vld [vmem:[%s12213_s4 + $0x1c4] sm:$0xf0] }
 0x483   : > { %v13891_v44 = vadd.f32 %v7138_v11, %v6639_v8  ;;  %v11452_v16 = vld [vmem:[%s12213_s4 + $0x464] sm:$0xf0]  ;;  %v10549_v11 = vld [vmem:[%s12213_s4 + $0x1c8] sm:$0xf0]  ;;  %v10548_v63 = vor.u32 %v11770_v2, %v10547_v17 }
 0x484   : > { %2209 = vmatmul.bf16.gmra.mxu0 %v8851_v15  ;;  %v8866_v2 = vld [vmem:[%s12213_s4 + $0x4a8] sm:$0xf] }
 0x485   : > { %6681 = vmatmul.bf16.gmra.mxu1 %v10540_v35  ;;  %v8859_v35 = vor.u32 %v11660_v20, %v8858_v28 }
 0x486   : > { %4455 = vmatmul.bf16.gmra.mxu2 %v9781_v14  ;;  %v11769_v14 = vld [vmem:[%s12213_s4 + $0x1c4] sm:$0xf] }
 0x487   : > { %11229 = vmatmul.msk.bf16.gmra.mxu3 %vm1561_vm0, %v10544_v53 }
 0x489   : > { %v4416_v19 = vpop.f32.mrf.mxu2  ;;  %v2172_v21 = vpop.f32.mrf.mxu0 }
 0x48a   : > { %v7141_v8 = vpop.f32.mrf.mxu3  ;;  %v13895_v52 = vadd.f32 %v4416_v19, %v2670_v25  ;;  %v6644_v58 = vpop.f32.mrf.mxu1  ;;  %v2672_v53 = vadd.f32 %v12707_v46, %v2172_v21 }
 0x48b   : > { %v13897_v40 = vadd.f32 %v7141_v8, %v6642_v55 }
 0x48c   : > { %16347 = vst [vmem:[#allocation377_spill] sm:$0xff] %v13895_v52  ;;  %v10552_v52 = vor.u32 %v11769_v14, %v10549_v11  ;;  %v9796_v14 = vld [vmem:[%s12213_s4 + $0x470] sm:$0xf] }
 0x48d   : > { %16348 = vst [vmem:[#allocation378_spill] sm:$0xff] %v13897_v40  ;;  %v9789_v40 = vor.u32 %v11452_v16, %v9788_v32  ;;  %v11662_v16 = vld [vmem:[%s12213_s4 + $0x4ac] sm:$0xf0] }
 0x48e   : > { %v10555_v11 = vld [vmem:[%s12213_s4 + $0x1d0] sm:$0xf] }
 0x491   : > { %v4418_v15 = vpop.f32.mrf.mxu2  ;;  %v2175_v19 = vpop.f32.mrf.mxu0 }
 0x492   : > { %v7143_v18 = vpop.f32.mrf.mxu3  ;;  %v13908_v25 = vadd.f32 %v4418_v15, %v2672_v53  ;;  %v6647_v8 = vpop.f32.mrf.mxu1  ;;  %v2675_v46 = vadd.f32 %v12723_v26, %v2175_v19  ;;  %v11772_v53 = vld [vmem:[%s12213_s4 + $0x1d4] sm:$0xf0] }
 0x493   : > { %v13910_v55 = vadd.f32 %v7143_v18, %v6644_v58  ;;  %v11454_v15 = vld [vmem:[%s12213_s4 + $0x474] sm:$0xf0]  ;;  %v10557_v18 = vld [vmem:[%s12213_s4 + $0x1d8] sm:$0xf0]  ;;  %v10556_v19 = vor.u32 %v11772_v53, %v10555_v11 }
 0x494   : > { %2214 = vmatmul.bf16.gmra.mxu0 %v8859_v35  ;;  %v8874_v53 = vld [vmem:[%s12213_s4 + $0x4b8] sm:$0xf] }
 0x495   : > { %6686 = vmatmul.bf16.gmra.mxu1 %v10548_v63  ;;  %v8867_v63 = vor.u32 %v11662_v16, %v8866_v2 }
 0x496   : > { %4460 = vmatmul.bf16.gmra.mxu2 %v9789_v40  ;;  %v11771_v40 = vld [vmem:[%s12213_s4 + $0x1d4] sm:$0xf] }
 0x497   : > { %11230 = vmatmul.msk.bf16.gmra.mxu3 %vm1561_vm0, %v10552_v52 }
 0x499   : > { %v4421_v21 = vpop.f32.mrf.mxu2  ;;  %v2177_v32 = vpop.f32.mrf.mxu0 }
 0x49a   : > { %v7146_v58 = vpop.f32.mrf.mxu3  ;;  %v13914_v28 = vadd.f32 %v4421_v21, %v2675_v46  ;;  %v6649_v17 = vpop.f32.mrf.mxu1  ;;  %v2677_v52 = vadd.f32 %v12733_v4, %v2177_v32 }
 0x49b   : > { %v13916_v20 = vadd.f32 %v7146_v58, %v6647_v8 }
 0x49c   : > { %16349 = vst [vmem:[#allocation379_spill] sm:$0xff] %v13914_v28  ;;  %v10560_v28 = vor.u32 %v11771_v40, %v10557_v18  ;;  %v9804_v40 = vld [vmem:[%s12213_s4 + $0x480] sm:$0xf] }
 0x49d   : > { %16350 = vst [vmem:[#allocation380_spill] sm:$0xff] %v13916_v20  ;;  %v9797_v20 = vor.u32 %v11454_v15, %v9796_v14  ;;  %v11664_v15 = vld [vmem:[%s12213_s4 + $0x4bc] sm:$0xf0] }
 0x49e   : > { %v10563_v18 = vld [vmem:[%s12213_s4 + $0x1e0] sm:$0xf] }
 0x4a1   : > { %v4423_v35 = vpop.f32.mrf.mxu2  ;;  %v2180_v21 = vpop.f32.mrf.mxu0 }
 0x4a2   : > { %v7148_v26 = vpop.f32.mrf.mxu3  ;;  %v13927_v46 = vadd.f32 %v4423_v35, %v2677_v52  ;;  %v6652_v58 = vpop.f32.mrf.mxu1  ;;  %v2680_v4 = vadd.f32 %v12749_v10, %v2180_v21  ;;  %v11774_v52 = vld [vmem:[%s12213_s4 + $0x1e4] sm:$0xf0] }
 0x4a3   : > { %v13929_v8 = vadd.f32 %v7148_v26, %v6649_v17  ;;  %v11456_v35 = vld [vmem:[%s12213_s4 + $0x484] sm:$0xf0]  ;;  %v10565_v26 = vld [vmem:[%s12213_s4 + $0x1e8] sm:$0xf0]  ;;  %v10564_v21 = vor.u32 %v11774_v52, %v10563_v18 }
 0x4a4   : > { %2219 = vmatmul.bf16.gmra.mxu0 %v8867_v63  ;;  %v8882_v52 = vld [vmem:[%s12213_s4 + $0x4c8] sm:$0xf] }
 0x4a5   : > { %6691 = vmatmul.bf16.gmra.mxu1 %v10556_v19  ;;  %v8875_v19 = vor.u32 %v11664_v15, %v8874_v53 }
 0x4a6   : > { %4465 = vmatmul.bf16.gmra.mxu2 %v9797_v20  ;;  %v11773_v20 = vld [vmem:[%s12213_s4 + $0x1e4] sm:$0xf] }
 0x4a7   : > { %11231 = vmatmul.msk.bf16.gmra.mxu3 %vm1561_vm0, %v10560_v28 }
 0x4a9   : > { %v4426_v32 = vpop.f32.mrf.mxu2  ;;  %v2182_v14 = vpop.f32.mrf.mxu0 }
 0x4aa   : > { %v7151_v17 = vpop.f32.mrf.mxu3  ;;  %v13933_v2 = vadd.f32 %v4426_v32, %v2680_v4  ;;  %v6654_v11 = vpop.f32.mrf.mxu1  ;;  %v2682_v28 = vadd.f32 %v12762_v59, %v2182_v14 }
 0x4ab   : > { %v13935_v16 = vadd.f32 %v7151_v17, %v6652_v58 }
 0x4ac   : > { %16351 = vst [vmem:[#allocation381_spill] sm:$0xff] %v13933_v2  ;;  %v10568_v2 = vor.u32 %v11773_v20, %v10565_v26  ;;  %v9812_v20 = vld [vmem:[%s12213_s4 + $0x490] sm:$0xf] }
 0x4ad   : > { %16352 = vst [vmem:[#allocation382_spill] sm:$0xff] %v13935_v16  ;;  %v9805_v16 = vor.u32 %v11456_v35, %v9804_v40  ;;  %v11666_v35 = vld [vmem:[%s12213_s4 + $0x4cc] sm:$0xf0] }
 0x4ae   : > { %v10571_v26 = vld [vmem:[%s12213_s4 + $0x1f0] sm:$0xf] }
 0x4b1   : > { %v4428_v63 = vpop.f32.mrf.mxu2  ;;  %v2185_v32 = vpop.f32.mrf.mxu0 }
 0x4b2   : > { %v7153_v10 = vpop.f32.mrf.mxu3  ;;  %v13946_v4 = vadd.f32 %v4428_v63, %v2682_v28  ;;  %v6657_v17 = vpop.f32.mrf.mxu1  ;;  %v2685_v59 = vadd.f32 %v12781_v43, %v2185_v32  ;;  %v11776_v28 = vld [vmem:[%s12213_s4 + $0x1f4] sm:$0xf0] }
 0x4b3   : > { %v13948_v58 = vadd.f32 %v7153_v10, %v6654_v11  ;;  %v11458_v63 = vld [vmem:[%s12213_s4 + $0x494] sm:$0xf0]  ;;  %v10573_v10 = vld [vmem:[%s12213_s4 + $0x1f8] sm:$0xf0]  ;;  %v10572_v32 = vor.u32 %v11776_v28, %v10571_v26 }
 0x4b4   : > { %2224 = vmatmul.bf16.gmra.mxu0 %v8875_v19  ;;  %v8890_v28 = vld [vmem:[%s12213_s4 + $0x4d8] sm:$0xf] }
 0x4b5   : > { %6696 = vmatmul.bf16.gmra.mxu1 %v10564_v21  ;;  %v8883_v21 = vor.u32 %v11666_v35, %v8882_v52 }
 0x4b6   : > { %4470 = vmatmul.bf16.gmra.mxu2 %v9805_v16  ;;  %v11775_v16 = vld [vmem:[%s12213_s4 + $0x1f4] sm:$0xf] }
 0x4b7   : > { %11232 = vmatmul.msk.bf16.gmra.mxu3 %vm1561_vm0, %v10568_v2 }
 0x4b9   : > { %v4431_v14 = vpop.f32.mrf.mxu2  ;;  %v2187_v40 = vpop.f32.mrf.mxu0 }
 0x4ba   : > { %v7156_v11 = vpop.f32.mrf.mxu3  ;;  %v13952_v53 = vadd.f32 %v4431_v14, %v2685_v59  ;;  %v6659_v18 = vpop.f32.mrf.mxu1  ;;  %v2687_v2 = vadd.f32 %v12791_v48, %v2187_v40 }
 0x4bb   : > { %v13954_v15 = vadd.f32 %v7156_v11, %v6657_v17 }
 0x4bc   : > { %16353 = vst [vmem:[#allocation383_spill] sm:$0xff] %v13952_v53  ;;  %v10576_v53 = vor.u32 %v11775_v16, %v10573_v10  ;;  %v9820_v16 = vld [vmem:[%s12213_s4 + $0x4a0] sm:$0xf] }
 0x4bd   : > { %16354 = vst [vmem:[#allocation384_spill] sm:$0xff] %v13954_v15  ;;  %v9813_v15 = vor.u32 %v11458_v63, %v9812_v20  ;;  %v11668_v63 = vld [vmem:[%s12213_s4 + $0x4dc] sm:$0xf0] }
 0x4be   : > { %v10579_v10 = vld [vmem:[%s12213_s4 + $0x200] sm:$0xf] }
 0x4c1   : > { %v4433_v19 = vpop.f32.mrf.mxu2  ;;  %v2190_v14 = vpop.f32.mrf.mxu0 }
 0x4c2   : > { %v7158_v43 = vpop.f32.mrf.mxu3  ;;  %v13965_v59 = vadd.f32 %v4433_v19, %v2687_v2  ;;  %v6662_v11 = vpop.f32.mrf.mxu1  ;;  %v2690_v48 = vadd.f32 %v12807_v13, %v2190_v14  ;;  %v11778_v2 = vld [vmem:[%s12213_s4 + $0x204] sm:$0xf0] }
 0x4c3   : > { %v13967_v17 = vadd.f32 %v7158_v43, %v6659_v18  ;;  %v11460_v19 = vld [vmem:[%s12213_s4 + $0x4a4] sm:$0xf0]  ;;  %v10581_v43 = vld [vmem:[%s12213_s4 + $0x208] sm:$0xf0]  ;;  %v10580_v14 = vor.u32 %v11778_v2, %v10579_v10 }
 0x4c4   : > { %2229 = vmatmul.bf16.gmra.mxu0 %v8883_v21  ;;  %v8898_v2 = vld [vmem:[%s12213_s4 + $0x4e8] sm:$0xf] }
 0x4c5   : > { %6701 = vmatmul.bf16.gmra.mxu1 %v10572_v32  ;;  %v8891_v32 = vor.u32 %v11668_v63, %v8890_v28 }
 0x4c6   : > { %4475 = vmatmul.bf16.gmra.mxu2 %v9813_v15  ;;  %v11777_v15 = vld [vmem:[%s12213_s4 + $0x204] sm:$0xf] }
 0x4c7   : > { %11233 = vmatmul.msk.bf16.gmra.mxu3 %vm1561_vm0, %v10576_v53 }
 0x4c9   : > { %v4436_v40 = vpop.f32.mrf.mxu2  ;;  %v2192_v20 = vpop.f32.mrf.mxu0 }
 0x4ca   : > { %v7161_v18 = vpop.f32.mrf.mxu3  ;;  %v13971_v52 = vadd.f32 %v4436_v40, %v2690_v48  ;;  %v6664_v26 = vpop.f32.mrf.mxu1  ;;  %v2692_v53 = vadd.f32 %v12817_v23, %v2192_v20 }
 0x4cb   : > { %v13973_v35 = vadd.f32 %v7161_v18, %v6662_v11 }
 0x4cc   : > { %16355 = vst [vmem:[#allocation385_spill] sm:$0xff] %v13971_v52  ;;  %v10584_v52 = vor.u32 %v11777_v15, %v10581_v43  ;;  %v9828_v15 = vld [vmem:[%s12213_s4 + $0x4b0] sm:$0xf] }
 0x4cd   : > { %16356 = vst [vmem:[#allocation386_spill] sm:$0xff] %v13973_v35  ;;  %v9821_v35 = vor.u32 %v11460_v19, %v9820_v16  ;;  %v11670_v19 = vld [vmem:[%s12213_s4 + $0x4ec] sm:$0xf0] }
 0x4ce   : > { %v10587_v43 = vld [vmem:[%s12213_s4 + $0x210] sm:$0xf] }
 0x4d1   : > { %v4438_v21 = vpop.f32.mrf.mxu2  ;;  %v2195_v40 = vpop.f32.mrf.mxu0 }
 0x4d2   : > { %v7163_v13 = vpop.f32.mrf.mxu3  ;;  %v13984_v48 = vadd.f32 %v4438_v21, %v2692_v53  ;;  %v6667_v18 = vpop.f32.mrf.mxu1  ;;  %v2695_v23 = vadd.f32 %v12833_v51, %v2195_v40  ;;  %v11780_v53 = vld [vmem:[%s12213_s4 + $0x214] sm:$0xf0] }
 0x4d3   : > { %v13986_v11 = vadd.f32 %v7163_v13, %v6664_v26  ;;  %v11462_v21 = vld [vmem:[%s12213_s4 + $0x4b4] sm:$0xf0]  ;;  %v10589_v13 = vld [vmem:[%s12213_s4 + $0x218] sm:$0xf0]  ;;  %v10588_v40 = vor.u32 %v11780_v53, %v10587_v43 }
 0x4d4   : > { %2234 = vmatmul.bf16.gmra.mxu0 %v8891_v32  ;;  %v8906_v53 = vld [vmem:[%s12213_s4 + $0x4f8] sm:$0xf] }
 0x4d5   : > { %6706 = vmatmul.bf16.gmra.mxu1 %v10580_v14  ;;  %v8899_v14 = vor.u32 %v11670_v19, %v8898_v2 }
 0x4d6   : > { %4480 = vmatmul.bf16.gmra.mxu2 %v9821_v35  ;;  %v11779_v35 = vld [vmem:[%s12213_s4 + $0x214] sm:$0xf] }
 0x4d7   : > { %11234 = vmatmul.msk.bf16.gmra.mxu3 %vm1561_vm0, %v10584_v52 }
 0x4d9   : > { %v4441_v20 = vpop.f32.mrf.mxu2  ;;  %v2197_v16 = vpop.f32.mrf.mxu0 }
 0x4da   : > { %v7166_v26 = vpop.f32.mrf.mxu3  ;;  %v13990_v28 = vadd.f32 %v4441_v20, %v2695_v23  ;;  %v6669_v10 = vpop.f32.mrf.mxu1  ;;  %v2697_v52 = vadd.f32 %v12843_v45, %v2197_v16 }
 0x4db   : > { %v13992_v63 = vadd.f32 %v7166_v26, %v6667_v18 }
 0x4dc   : > { %16357 = vst [vmem:[#allocation387_spill] sm:$0xff] %v13990_v28  ;;  %v10592_v28 = vor.u32 %v11779_v35, %v10589_v13  ;;  %v9836_v35 = vld [vmem:[%s12213_s4 + $0x4c0] sm:$0xf] }
 0x4dd   : > { %16358 = vst [vmem:[#allocation388_spill] sm:$0xff] %v13992_v63  ;;  %v9829_v63 = vor.u32 %v11462_v21, %v9828_v15  ;;  %v11672_v21 = vld [vmem:[%s12213_s4 + $0x4fc] sm:$0xf0] }
 0x4de   : > { %v10595_v13 = vld [vmem:[%s12213_s4 + $0x220] sm:$0xf] }
 0x4e1   : > { %v4443_v32 = vpop.f32.mrf.mxu2  ;;  %v2200_v20 = vpop.f32.mrf.mxu0 }
 0x4e2   : > { %v7168_v51 = vpop.f32.mrf.mxu3  ;;  %v14003_v23 = vadd.f32 %v4443_v32, %v2697_v52  ;;  %v6672_v26 = vpop.f32.mrf.mxu1  ;;  %v2700_v45 = vadd.f32 %v12859_v6, %v2200_v20  ;;  %v11782_v52 = vld [vmem:[%s12213_s4 + $0x224] sm:$0xf0] }
 0x4e3   : > { %v14005_v18 = vadd.f32 %v7168_v51, %v6669_v10  ;;  %v11464_v32 = vld [vmem:[%s12213_s4 + $0x4c4] sm:$0xf0]  ;;  %v10597_v51 = vld [vmem:[%s12213_s4 + $0x228] sm:$0xf0]  ;;  %v10596_v20 = vor.u32 %v11782_v52, %v10595_v13 }
 0x4e4   : > { %2239 = vmatmul.bf16.gmra.mxu0 %v8899_v14  ;;  %v8914_v52 = vld [vmem:[%s12213_s4 + $0x508] sm:$0xf] }
 0x4e5   : > { %6711 = vmatmul.bf16.gmra.mxu1 %v10588_v40  ;;  %v8907_v40 = vor.u32 %v11672_v21, %v8906_v53 }
 0x4e6   : > { %4485 = vmatmul.bf16.gmra.mxu2 %v9829_v63  ;;  %v11781_v63 = vld [vmem:[%s12213_s4 + $0x224] sm:$0xf] }
 0x4e7   : > { %11235 = vmatmul.msk.bf16.gmra.mxu3 %vm1561_vm0, %v10592_v28 }
 0x4e9   : > { %v4446_v16 = vpop.f32.mrf.mxu2  ;;  %v2202_v15 = vpop.f32.mrf.mxu0 }
 0x4ea   : > { %v7171_v10 = vpop.f32.mrf.mxu3  ;;  %v14009_v2 = vadd.f32 %v4446_v16, %v2700_v45  ;;  %v6674_v43 = vpop.f32.mrf.mxu1  ;;  %v2702_v28 = vadd.f32 %v12869_v60, %v2202_v15 }
 0x4eb   : > { %v14011_v19 = vadd.f32 %v7171_v10, %v6672_v26 }
 0x4ec   : > { %16359 = vst [vmem:[#allocation389_spill] sm:$0xff] %v14009_v2  ;;  %v10600_v2 = vor.u32 %v11781_v63, %v10597_v51  ;;  %v9844_v63 = vld [vmem:[%s12213_s4 + $0x4d0] sm:$0xf] }
 0x4ed   : > { %16360 = vst [vmem:[#allocation390_spill] sm:$0xff] %v14011_v19  ;;  %v9837_v19 = vor.u32 %v11464_v32, %v9836_v35  ;;  %v11674_v32 = vld [vmem:[%s12213_s4 + $0x50c] sm:$0xf0] }
 0x4ee   : > { %v10603_v51 = vld [vmem:[%s12213_s4 + $0x230] sm:$0xf] }
 0x4f1   : > { %v4448_v14 = vpop.f32.mrf.mxu2  ;;  %v2205_v16 = vpop.f32.mrf.mxu0 }
 0x4f2   : > { %v7173_v6 = vpop.f32.mrf.mxu3  ;;  %v14022_v45 = vadd.f32 %v4448_v14, %v2702_v28  ;;  %v6677_v10 = vpop.f32.mrf.mxu1  ;;  %v2705_v60 = vadd.f32 %v12885_v29, %v2205_v16  ;;  %v11784_v28 = vld [vmem:[%s12213_s4 + $0x234] sm:$0xf0] }
 0x4f3   : > { %v14024_v26 = vadd.f32 %v7173_v6, %v6674_v43  ;;  %v11466_v14 = vld [vmem:[%s12213_s4 + $0x4d4] sm:$0xf0]  ;;  %v10605_v6 = vld [vmem:[%s12213_s4 + $0x238] sm:$0xf0]  ;;  %v10604_v16 = vor.u32 %v11784_v28, %v10603_v51 }
 0x4f4   : > { %16361 = vst [vmem:[#allocation391_spill] sm:$0xff] %v14022_v45  ;;  %2244 = vmatmul.bf16.gmra.mxu0 %v8907_v40  ;;  %v8922_v28 = vld [vmem:[%s12213_s4 + $0x518] sm:$0xf] }
 0x4f5   : > { %16362 = vst [vmem:[#allocation392_spill] sm:$0xff] %v14024_v26  ;;  %6716 = vmatmul.bf16.gmra.mxu1 %v10596_v20  ;;  %v8915_v20 = vor.u32 %v11674_v32, %v8914_v52  ;;  %v16538_v26 = vld [vmem:[#allocation7_spill] sm:$0xff] }
 0x4f6   : > { %4490 = vmatmul.bf16.gmra.mxu2 %v9837_v19  ;;  %v11783_v19 = vld [vmem:[%s12213_s4 + $0x234] sm:$0xf] }
 0x4f7   : > { %11236 = vmatmul.msk.bf16.gmra.mxu3 %vm1561_vm0, %v10600_v2 }
 0x4f9   : > { %v4451_v15 = vpop.f32.mrf.mxu2  ;;  %v2207_v35 = vpop.f32.mrf.mxu0 }
 0x4fa   : > { %v7176_v43 = vpop.f32.mrf.mxu3  ;;  %v14028_v53 = vadd.f32 %v4451_v15, %v2705_v60  ;;  %v6679_v13 = vpop.f32.mrf.mxu1  ;;  %v2707_v2 = vadd.f32 %v12895_v0, %v2207_v35 }
 0x4fb   : > { %v14030_v21 = vadd.f32 %v7176_v43, %v6677_v10 }
 0x4fc   : > { %16363 = vst [vmem:[#allocation393_spill] sm:$0xff] %v14028_v53  ;;  %v10608_v53 = vor.u32 %v11783_v19, %v10605_v6  ;;  %v9852_v19 = vld [vmem:[%s12213_s4 + $0x4e0] sm:$0xf] }
 0x4fd   : > { %16364 = vst [vmem:[#allocation394_spill] sm:$0xff] %v14030_v21  ;;  %v9845_v21 = vor.u32 %v11466_v14, %v9844_v63  ;;  %v11676_v14 = vld [vmem:[%s12213_s4 + $0x51c] sm:$0xf0] }
 0x4fe   : > { %v10611_v6 = vld [vmem:[%s12213_s4 + $0x240] sm:$0xf] }
 0x501   : > { %v4453_v40 = vpop.f32.mrf.mxu2  ;;  %v2210_v15 = vpop.f32.mrf.mxu0 }
 0x502   : > { %v7178_v29 = vpop.f32.mrf.mxu3  ;;  %v14041_v60 = vadd.f32 %v4453_v40, %v2707_v2  ;;  %v6682_v43 = vpop.f32.mrf.mxu1  ;;  %v2710_v0 = vadd.f32 %v12911_v27, %v2210_v15  ;;  %v11786_v2 = vld [vmem:[%s12213_s4 + $0x244] sm:$0xf0] }
 0x503   : > { %v14043_v10 = vadd.f32 %v7178_v29, %v6679_v13  ;;  %v11468_v40 = vld [vmem:[%s12213_s4 + $0x4e4] sm:$0xf0]  ;;  %v10613_v29 = vld [vmem:[%s12213_s4 + $0x248] sm:$0xf0]  ;;  %v10612_v15 = vor.u32 %v11786_v2, %v10611_v6 }
 0x504   : > { %16365 = vst [vmem:[#allocation395_spill] sm:$0xff] %v14041_v60  ;;  %2249 = vmatmul.bf16.gmra.mxu0 %v8915_v20  ;;  %v8930_v2 = vld [vmem:[%s12213_s4 + $0x528] sm:$0xf] }
 0x505   : > { %16366 = vst [vmem:[#allocation396_spill] sm:$0xff] %v14043_v10  ;;  %6721 = vmatmul.bf16.gmra.mxu1 %v10604_v16  ;;  %v8923_v16 = vor.u32 %v11676_v14, %v8922_v28 }
 0x506   : > { %4495 = vmatmul.bf16.gmra.mxu2 %v9845_v21  ;;  %v11785_v21 = vld [vmem:[%s12213_s4 + $0x244] sm:$0xf] }
 0x507   : > { %11237 = vmatmul.msk.bf16.gmra.mxu3 %vm1561_vm0, %v10608_v53 }
 0x509   : > { %v4456_v35 = vpop.f32.mrf.mxu2  ;;  %v2212_v63 = vpop.f32.mrf.mxu0 }
 0x50a   : > { %v7181_v13 = vpop.f32.mrf.mxu3  ;;  %v14047_v52 = vadd.f32 %v4456_v35, %v2710_v0  ;;  %v6684_v51 = vpop.f32.mrf.mxu1  ;;  %v2712_v53 = vadd.f32 %v12921_v61, %v2212_v63 }
 0x50b   : > { %v14049_v32 = vadd.f32 %v7181_v13, %v6682_v43 }
 0x50c   : > { %16367 = vst [vmem:[#allocation397_spill] sm:$0xff] %v14047_v52  ;;  %v10616_v52 = vor.u32 %v11785_v21, %v10613_v29  ;;  %v9860_v21 = vld [vmem:[%s12213_s4 + $0x4f0] sm:$0xf] }
 0x50d   : > { %16368 = vst [vmem:[#allocation398_spill] sm:$0xff] %v14049_v32  ;;  %v9853_v32 = vor.u32 %v11468_v40, %v9852_v19  ;;  %v11678_v40 = vld [vmem:[%s12213_s4 + $0x52c] sm:$0xf0] }
 0x50e   : > { %v10619_v29 = vld [vmem:[%s12213_s4 + $0x250] sm:$0xf] }
 0x511   : > { %v4458_v20 = vpop.f32.mrf.mxu2  ;;  %v2215_v35 = vpop.f32.mrf.mxu0 }
 0x512   : > { %v7183_v27 = vpop.f32.mrf.mxu3  ;;  %v14060_v0 = vadd.f32 %v4458_v20, %v2712_v53  ;;  %v6687_v13 = vpop.f32.mrf.mxu1  ;;  %v2715_v61 = vadd.f32 %v12940_v62, %v2215_v35  ;;  %v11788_v53 = vld [vmem:[%s12213_s4 + $0x254] sm:$0xf0] }
 0x513   : > { %v14062_v43 = vadd.f32 %v7183_v27, %v6684_v51  ;;  %v11470_v20 = vld [vmem:[%s12213_s4 + $0x4f4] sm:$0xf0]  ;;  %v10621_v27 = vld [vmem:[%s12213_s4 + $0x258] sm:$0xf0]  ;;  %v10620_v35 = vor.u32 %v11788_v53, %v10619_v29 }
 0x514   : > { %16369 = vst [vmem:[#allocation399_spill] sm:$0xff] %v14060_v0  ;;  %2254 = vmatmul.bf16.gmra.mxu0 %v8923_v16 }
 0x515   : > { %16370 = vst [vmem:[#allocation400_spill] sm:$0xff] %v14062_v43  ;;  %6726 = vmatmul.bf16.gmra.mxu1 %v10612_v15  ;;  %v8931_v15 = vor.u32 %v11678_v40, %v8930_v2 }
 0x516   : > { %4500 = vmatmul.bf16.gmra.mxu2 %v9853_v32  ;;  %v11787_v32 = vld [vmem:[%s12213_s4 + $0x254] sm:$0xf] }
 0x517   : > { %11238 = vmatmul.msk.bf16.gmra.mxu3 %vm1561_vm0, %v10616_v52 }
 0x519   : > { %v4461_v63 = vpop.f32.mrf.mxu2  ;;  %v2217_v19 = vpop.f32.mrf.mxu0 }
 0x51a   : > { %v7186_v51 = vpop.f32.mrf.mxu3  ;;  %v14066_v28 = vadd.f32 %v4461_v63, %v2715_v61  ;;  %v6689_v6 = vpop.f32.mrf.mxu1  ;;  %v2717_v52 = vadd.f32 %v12950_v41, %v2217_v19  ;;  %v16375_v41 = vld [vmem:[#allocation140_spill] sm:$0xff] }
 0x51b   : > { %v14068_v14 = vadd.f32 %v7186_v51, %v6687_v13 }
 0x51c   : > { %16371 = vst [vmem:[#allocation401_spill] sm:$0xff] %v14066_v28  ;;  %v10624_v28 = vor.u32 %v11787_v32, %v10621_v27  ;;  %v11680_v32 = vld [vmem:[%s12213_s4 + $0x53c] sm:$0xf0] }
 0x51d   : > { %16372 = vst [vmem:[#allocation402_spill] sm:$0xff] %v14068_v14  ;;  %v9861_v14 = vor.u32 %v11470_v20, %v9860_v21  ;;  %v8938_v20 = vld [vmem:[%s12213_s4 + $0x538] sm:$0xf]  ;;  %v9868_v27 = vld [vmem:[%s12213_s4 + $0x500] sm:$0xf] }
 0x521   : > { %v4463_v16 = vpop.f32.mrf.mxu2  ;;  %v2220_v63 = vpop.f32.mrf.mxu0 }
 0x522   : > { %v7188_v62 = vpop.f32.mrf.mxu3  ;;  %v14079_v61 = vadd.f32 %v4463_v16, %v2717_v52  ;;  %v6692_v51 = vpop.f32.mrf.mxu1  ;;  %v2720_v19 = vadd.f32 %v16375_v41, %v2220_v63  ;;  %v10627_v52 = vld [vmem:[%s12213_s4 + $0x260] sm:$0xf]  ;;  %v11790_v16 = vld [vmem:[%s12213_s4 + $0x264] sm:$0xf0]  ;;  %v8939_v41 = vor.u32 %v11680_v32, %v8938_v20 }
 0x523   : > { %v14081_v13 = vadd.f32 %v7188_v62, %v6689_v6  ;;  %v11472_v62 = vld [vmem:[%s12213_s4 + $0x504] sm:$0xf0] }
 0x524   : > { %16373 = vst [vmem:[#allocation403_spill] sm:$0xff] %v14079_v61  ;;  %2259 = vmatmul.bf16.gmra.mxu0 %v8931_v15  ;;  %v10629_v15 = vld [vmem:[%s12213_s4 + $0x268] sm:$0xf0]  ;;  %v10628_v61 = vor.u32 %v11790_v16, %v10627_v52 }
 0x525   : > { %16374 = vst [vmem:[#allocation404_spill] sm:$0xff] %v14081_v13  ;;  %6731 = vmatmul.bf16.gmra.mxu1 %v10620_v35  ;;  %v16378_v35 = vld [vmem:[#allocation144_spill] sm:$0xff] }
 0x526   : > { %4505 = vmatmul.bf16.gmra.mxu2 %v9861_v14  ;;  %v11789_v14 = vld [vmem:[%s12213_s4 + $0x264] sm:$0xf] }
 0x527   : > { %11239 = vmatmul.msk.bf16.gmra.mxu3 %vm1561_vm0, %v10624_v28 }
 0x529   : > { %v4466_v6 = vpop.f32.mrf.mxu2  ;;  %v2222_v21 = vpop.f32.mrf.mxu0 }
 0x52a   : > { %v7191_v2 = vpop.f32.mrf.mxu3  ;;  %v14085_v40 = vadd.f32 %v4466_v6, %v2720_v19  ;;  %v6694_v53 = vpop.f32.mrf.mxu1  ;;  %v2722_v28 = vadd.f32 %v16378_v35, %v2222_v21  ;;  %v10635_v35 = vld [vmem:[%s12213_s4 + $0x270] sm:$0xf] }
 0x52b   : > { %v14087_v29 = vadd.f32 %v7191_v2, %v6692_v51 }
 0x52c   : > { %16376 = vst [vmem:[#allocation140_spill] sm:$0xff] %v14085_v40  ;;  %v10632_v40 = vor.u32 %v11789_v14, %v10629_v15  ;;  %v11682_v14 = vld [vmem:[%s12213_s4 + $0x54c] sm:$0xf0] }
 0x52d   : > { %16377 = vst [vmem:[#allocation405_spill] sm:$0xff] %v14087_v29  ;;  %v9869_v29 = vor.u32 %v11472_v62, %v9868_v27  ;;  %v8946_v62 = vld [vmem:[%s12213_s4 + $0x548] sm:$0xf]  ;;  %v9876_v15 = vld [vmem:[%s12213_s4 + $0x510] sm:$0xf] }
 0x531   : > { %v4468_v13 = vpop.f32.mrf.mxu2  ;;  %v2225_v6 = vpop.f32.mrf.mxu0 }
 0x532   : > { %v7193_v63 = vpop.f32.mrf.mxu3  ;;  %v14098_v19 = vadd.f32 %v4468_v13, %v2722_v28  ;;  %v6697_v2 = vpop.f32.mrf.mxu1  ;;  %v16381_v13 = vld [vmem:[#allocation148_spill] sm:$0xff] }
 0x533   : > { %v14100_v51 = vadd.f32 %v7193_v63, %v6694_v53  ;;  %v2725_v21 = vadd.f32 %v16381_v13, %v2225_v6  ;;  %v11474_v28 = vld [vmem:[%s12213_s4 + $0x514] sm:$0xf0]  ;;  %v10637_v63 = vld [vmem:[%s12213_s4 + $0x278] sm:$0xf0]  ;;  %v8947_v13 = vor.u32 %v11682_v14, %v8946_v62 }
 0x534   : > { %16379 = vst [vmem:[#allocation144_spill] sm:$0xff] %v14098_v19  ;;  %2264 = vmatmul.bf16.gmra.mxu0 %v8939_v41  ;;  %v16384_v41 = vld [vmem:[#allocation152_spill] sm:$0xff] }
 0x535   : > { %16380 = vst [vmem:[#allocation406_spill] sm:$0xff] %v14100_v51  ;;  %6736 = vmatmul.bf16.gmra.mxu1 %v10628_v61  ;;  %v11792_v61 = vld [vmem:[%s12213_s4 + $0x274] sm:$0xf0] }
 0x536   : > { %4510 = vmatmul.bf16.gmra.mxu2 %v9869_v29  ;;  %v11791_v29 = vld [vmem:[%s12213_s4 + $0x274] sm:$0xf]  ;;  %v10636_v19 = vor.u32 %v11792_v61, %v10635_v35 }
 0x537   : > { %11240 = vmatmul.msk.bf16.gmra.mxu3 %vm1561_vm0, %v10632_v40 }
 0x539   : > { %v4471_v53 = vpop.f32.mrf.mxu2  ;;  %v2227_v27 = vpop.f32.mrf.mxu0 }
 0x53a   : > { %v7196_v20 = vpop.f32.mrf.mxu3  ;;  %v14104_v32 = vadd.f32 %v4471_v53, %v2725_v21  ;;  %v6699_v16 = vpop.f32.mrf.mxu1  ;;  %v2727_v40 = vadd.f32 %v16384_v41, %v2227_v27  ;;  %v10643_v41 = vld [vmem:[%s12213_s4 + $0x280] sm:$0xf] }
 0x53b   : > { %v14106_v52 = vadd.f32 %v7196_v20, %v6697_v2 }
 0x53c   : > { %16382 = vst [vmem:[#allocation148_spill] sm:$0xff] %v14104_v32  ;;  %v10640_v32 = vor.u32 %v11791_v29, %v10637_v63  ;;  %v11684_v29 = vld [vmem:[%s12213_s4 + $0x55c] sm:$0xf0] }
 0x53d   : > { %16383 = vst [vmem:[#allocation407_spill] sm:$0xff] %v14106_v52  ;;  %v9877_v52 = vor.u32 %v11474_v28, %v9876_v15  ;;  %v8954_v28 = vld [vmem:[%s12213_s4 + $0x558] sm:$0xf]  ;;  %v9884_v63 = vld [vmem:[%s12213_s4 + $0x520] sm:$0xf] }
 0x541   : > { %v4473_v51 = vpop.f32.mrf.mxu2  ;;  %v2230_v53 = vpop.f32.mrf.mxu0 }
 0x542   : > { %v7198_v6 = vpop.f32.mrf.mxu3  ;;  %v14117_v21 = vadd.f32 %v4473_v51, %v2727_v40  ;;  %v6702_v20 = vpop.f32.mrf.mxu1  ;;  %v16387_v51 = vld [vmem:[#allocation156_spill] sm:$0xff]  ;;  %v11476_v40 = vld [vmem:[%s12213_s4 + $0x524] sm:$0xf0] }
 0x543   : > { %v14119_v2 = vadd.f32 %v7198_v6, %v6699_v16  ;;  %v2730_v27 = vadd.f32 %v16387_v51, %v2230_v53  ;;  %v10645_v6 = vld [vmem:[%s12213_s4 + $0x288] sm:$0xf0]  ;;  %v8955_v51 = vor.u32 %v11684_v29, %v8954_v28 }
 0x544   : > { %16385 = vst [vmem:[#allocation152_spill] sm:$0xff] %v14117_v21  ;;  %2269 = vmatmul.bf16.gmra.mxu0 %v8947_v13  ;;  %v16390_v13 = vld [vmem:[#allocation160_spill] sm:$0xff] }
 0x545   : > { %16386 = vst [vmem:[#allocation408_spill] sm:$0xff] %v14119_v2  ;;  %6741 = vmatmul.bf16.gmra.mxu1 %v10636_v19  ;;  %v11794_v19 = vld [vmem:[%s12213_s4 + $0x284] sm:$0xf0] }
 0x546   : > { %4515 = vmatmul.bf16.gmra.mxu2 %v9877_v52  ;;  %v11793_v52 = vld [vmem:[%s12213_s4 + $0x284] sm:$0xf]  ;;  %v10644_v21 = vor.u32 %v11794_v19, %v10643_v41 }
 0x547   : > { %11241 = vmatmul.msk.bf16.gmra.mxu3 %vm1561_vm0, %v10640_v32 }
 0x549   : > { %v4476_v16 = vpop.f32.mrf.mxu2  ;;  %v2232_v15 = vpop.f32.mrf.mxu0 }
 0x54a   : > { %v7201_v62 = vpop.f32.mrf.mxu3  ;;  %v14123_v14 = vadd.f32 %v4476_v16, %v2730_v27  ;;  %v6704_v61 = vpop.f32.mrf.mxu1  ;;  %v2732_v32 = vadd.f32 %v16390_v13, %v2232_v15  ;;  %v10651_v13 = vld [vmem:[%s12213_s4 + $0x290] sm:$0xf] }
 0x54b   : > { %v14125_v35 = vadd.f32 %v7201_v62, %v6702_v20 }
 0x54c   : > { %16388 = vst [vmem:[#allocation156_spill] sm:$0xff] %v14123_v14  ;;  %v10648_v14 = vor.u32 %v11793_v52, %v10645_v6  ;;  %v11686_v52 = vld [vmem:[%s12213_s4 + $0x56c] sm:$0xf0] }
 0x54d   : > { %16389 = vst [vmem:[#allocation409_spill] sm:$0xff] %v14125_v35  ;;  %v9885_v35 = vor.u32 %v11476_v40, %v9884_v63  ;;  %v8962_v40 = vld [vmem:[%s12213_s4 + $0x568] sm:$0xf]  ;;  %v9892_v6 = vld [vmem:[%s12213_s4 + $0x530] sm:$0xf] }
 0x551   : > { %v4478_v2 = vpop.f32.mrf.mxu2  ;;  %v2235_v16 = vpop.f32.mrf.mxu0 }
 0x552   : > { %v7203_v53 = vpop.f32.mrf.mxu3  ;;  %v14136_v27 = vadd.f32 %v4478_v2, %v2732_v32  ;;  %v6707_v62 = vpop.f32.mrf.mxu1  ;;  %v16393_v2 = vld [vmem:[#allocation164_spill] sm:$0xff] }
 0x553   : > { %v14138_v20 = vadd.f32 %v7203_v53, %v6704_v61  ;;  %v2735_v15 = vadd.f32 %v16393_v2, %v2235_v16  ;;  %v11478_v32 = vld [vmem:[%s12213_s4 + $0x534] sm:$0xf0]  ;;  %v10653_v53 = vld [vmem:[%s12213_s4 + $0x298] sm:$0xf0]  ;;  %v8963_v2 = vor.u32 %v11686_v52, %v8962_v40 }
 0x554   : > { %16391 = vst [vmem:[#allocation160_spill] sm:$0xff] %v14136_v27  ;;  %2274 = vmatmul.bf16.gmra.mxu0 %v8955_v51  ;;  %v16396_v51 = vld [vmem:[#allocation168_spill] sm:$0xff] }
 0x555   : > { %16392 = vst [vmem:[#allocation410_spill] sm:$0xff] %v14138_v20  ;;  %6746 = vmatmul.bf16.gmra.mxu1 %v10644_v21  ;;  %v11796_v21 = vld [vmem:[%s12213_s4 + $0x294] sm:$0xf0] }
 0x556   : > { %4520 = vmatmul.bf16.gmra.mxu2 %v9885_v35  ;;  %v11795_v35 = vld [vmem:[%s12213_s4 + $0x294] sm:$0xf]  ;;  %v10652_v27 = vor.u32 %v11796_v21, %v10651_v13 }
 0x557   : > { %11242 = vmatmul.msk.bf16.gmra.mxu3 %vm1561_vm0, %v10648_v14 }
 0x559   : > { %v4481_v61 = vpop.f32.mrf.mxu2  ;;  %v2237_v63 = vpop.f32.mrf.mxu0 }
 0x55a   : > { %v7206_v28 = vpop.f32.mrf.mxu3  ;;  %v14142_v29 = vadd.f32 %v4481_v61, %v2735_v15  ;;  %v6709_v19 = vpop.f32.mrf.mxu1  ;;  %v2737_v14 = vadd.f32 %v16396_v51, %v2237_v63  ;;  %v10659_v51 = vld [vmem:[%s12213_s4 + $0x2a0] sm:$0xf] }
 0x55b   : > { %v14144_v41 = vadd.f32 %v7206_v28, %v6707_v62 }
 0x55c   : > { %16394 = vst [vmem:[#allocation164_spill] sm:$0xff] %v14142_v29  ;;  %v10656_v29 = vor.u32 %v11795_v35, %v10653_v53  ;;  %v11688_v35 = vld [vmem:[%s12213_s4 + $0x57c] sm:$0xf0] }
 0x55d   : > { %16395 = vst [vmem:[#allocation411_spill] sm:$0xff] %v14144_v41  ;;  %v9893_v41 = vor.u32 %v11478_v32, %v9892_v6  ;;  %v8970_v32 = vld [vmem:[%s12213_s4 + $0x578] sm:$0xf]  ;;  %v9900_v53 = vld [vmem:[%s12213_s4 + $0x540] sm:$0xf] }
 0x561   : > { %v4483_v20 = vpop.f32.mrf.mxu2  ;;  %v2240_v61 = vpop.f32.mrf.mxu0 }
 0x562   : > { %v7208_v16 = vpop.f32.mrf.mxu3  ;;  %v14155_v15 = vadd.f32 %v4483_v20, %v2737_v14  ;;  %v6712_v28 = vpop.f32.mrf.mxu1  ;;  %v16399_v20 = vld [vmem:[#allocation172_spill] sm:$0xff]  ;;  %v11480_v14 = vld [vmem:[%s12213_s4 + $0x544] sm:$0xf0] }
 0x563   : > { %v14157_v62 = vadd.f32 %v7208_v16, %v6709_v19  ;;  %v2740_v63 = vadd.f32 %v16399_v20, %v2240_v61  ;;  %v10661_v16 = vld [vmem:[%s12213_s4 + $0x2a8] sm:$0xf0]  ;;  %v8971_v20 = vor.u32 %v11688_v35, %v8970_v32 }
 0x564   : > { %16397 = vst [vmem:[#allocation168_spill] sm:$0xff] %v14155_v15  ;;  %2279 = vmatmul.bf16.gmra.mxu0 %v8963_v2  ;;  %v16402_v2 = vld [vmem:[#allocation176_spill] sm:$0xff] }
 0x565   : > { %16398 = vst [vmem:[#allocation412_spill] sm:$0xff] %v14157_v62  ;;  %6751 = vmatmul.bf16.gmra.mxu1 %v10652_v27  ;;  %v11798_v27 = vld [vmem:[%s12213_s4 + $0x2a4] sm:$0xf0] }
 0x566   : > { %4525 = vmatmul.bf16.gmra.mxu2 %v9893_v41  ;;  %v11797_v41 = vld [vmem:[%s12213_s4 + $0x2a4] sm:$0xf]  ;;  %v10660_v15 = vor.u32 %v11798_v27, %v10659_v51 }
 0x567   : > { %11243 = vmatmul.msk.bf16.gmra.mxu3 %vm1561_vm0, %v10656_v29 }
 0x569   : > { %v4486_v19 = vpop.f32.mrf.mxu2  ;;  %v2242_v6 = vpop.f32.mrf.mxu0 }
 0x56a   : > { %v7211_v40 = vpop.f32.mrf.mxu3  ;;  %v14161_v52 = vadd.f32 %v4486_v19, %v2740_v63  ;;  %v6714_v21 = vpop.f32.mrf.mxu1  ;;  %v2742_v29 = vadd.f32 %v16402_v2, %v2242_v6  ;;  %v10667_v2 = vld [vmem:[%s12213_s4 + $0x2b0] sm:$0xf] }
 0x56b   : > { %v14163_v13 = vadd.f32 %v7211_v40, %v6712_v28 }
 0x56c   : > { %16400 = vst [vmem:[#allocation172_spill] sm:$0xff] %v14161_v52  ;;  %v10664_v52 = vor.u32 %v11797_v41, %v10661_v16  ;;  %v11690_v41 = vld [vmem:[%s12213_s4 + $0x58c] sm:$0xf0] }
 0x56d   : > { %16401 = vst [vmem:[#allocation413_spill] sm:$0xff] %v14163_v13  ;;  %v9901_v13 = vor.u32 %v11480_v14, %v9900_v53  ;;  %v8978_v14 = vld [vmem:[%s12213_s4 + $0x588] sm:$0xf]  ;;  %v9908_v16 = vld [vmem:[%s12213_s4 + $0x550] sm:$0xf] }
 0x571   : > { %v4488_v62 = vpop.f32.mrf.mxu2  ;;  %v2245_v19 = vpop.f32.mrf.mxu0 }
 0x572   : > { %v7213_v61 = vpop.f32.mrf.mxu3  ;;  %v14174_v63 = vadd.f32 %v4488_v62, %v2742_v29  ;;  %v6717_v40 = vpop.f32.mrf.mxu1  ;;  %v16405_v62 = vld [vmem:[#allocation180_spill] sm:$0xff] }
 0x573   : > { %v14176_v28 = vadd.f32 %v7213_v61, %v6714_v21  ;;  %v2745_v6 = vadd.f32 %v16405_v62, %v2245_v19  ;;  %v11482_v29 = vld [vmem:[%s12213_s4 + $0x554] sm:$0xf0]  ;;  %v10669_v61 = vld [vmem:[%s12213_s4 + $0x2b8] sm:$0xf0]  ;;  %v8979_v62 = vor.u32 %v11690_v41, %v8978_v14 }
 0x574   : > { %16403 = vst [vmem:[#allocation176_spill] sm:$0xff] %v14174_v63  ;;  %2284 = vmatmul.bf16.gmra.mxu0 %v8971_v20  ;;  %v16408_v20 = vld [vmem:[#allocation184_spill] sm:$0xff] }
 0x575   : > { %16404 = vst [vmem:[#allocation414_spill] sm:$0xff] %v14176_v28  ;;  %6756 = vmatmul.bf16.gmra.mxu1 %v10660_v15  ;;  %v11800_v15 = vld [vmem:[%s12213_s4 + $0x2b4] sm:$0xf0] }
 0x576   : > { %4530 = vmatmul.bf16.gmra.mxu2 %v9901_v13  ;;  %v11799_v13 = vld [vmem:[%s12213_s4 + $0x2b4] sm:$0xf]  ;;  %v10668_v63 = vor.u32 %v11800_v15, %v10667_v2 }
 0x577   : > { %11244 = vmatmul.msk.bf16.gmra.mxu3 %vm1561_vm0, %v10664_v52 }
 0x579   : > { %v4491_v21 = vpop.f32.mrf.mxu2  ;;  %v2247_v53 = vpop.f32.mrf.mxu0 }
 0x57a   : > { %v7216_v32 = vpop.f32.mrf.mxu3  ;;  %v14180_v35 = vadd.f32 %v4491_v21, %v2745_v6  ;;  %v6719_v27 = vpop.f32.mrf.mxu1  ;;  %v2747_v52 = vadd.f32 %v16408_v20, %v2247_v53  ;;  %v10675_v20 = vld [vmem:[%s12213_s4 + $0x2c0] sm:$0xf] }
 0x57b   : > { %v14182_v51 = vadd.f32 %v7216_v32, %v6717_v40 }
 0x57c   : > { %16406 = vst [vmem:[#allocation180_spill] sm:$0xff] %v14180_v35  ;;  %v10672_v35 = vor.u32 %v11799_v13, %v10669_v61  ;;  %v11692_v13 = vld [vmem:[%s12213_s4 + $0x59c] sm:$0xf0] }
 0x57d   : > { %16407 = vst [vmem:[#allocation415_spill] sm:$0xff] %v14182_v51  ;;  %v9909_v51 = vor.u32 %v11482_v29, %v9908_v16  ;;  %v8986_v29 = vld [vmem:[%s12213_s4 + $0x598] sm:$0xf]  ;;  %v9916_v61 = vld [vmem:[%s12213_s4 + $0x560] sm:$0xf] }
 0x581   : > { %v4493_v28 = vpop.f32.mrf.mxu2  ;;  %v2250_v21 = vpop.f32.mrf.mxu0 }
 0x582   : > { %v7218_v19 = vpop.f32.mrf.mxu3  ;;  %v14193_v6 = vadd.f32 %v4493_v28, %v2747_v52  ;;  %v6722_v32 = vpop.f32.mrf.mxu1  ;;  %v16411_v28 = vld [vmem:[#allocation188_spill] sm:$0xff]  ;;  %v11484_v52 = vld [vmem:[%s12213_s4 + $0x564] sm:$0xf0] }
 0x583   : > { %v14195_v40 = vadd.f32 %v7218_v19, %v6719_v27  ;;  %v2750_v53 = vadd.f32 %v16411_v28, %v2250_v21  ;;  %v10677_v19 = vld [vmem:[%s12213_s4 + $0x2c8] sm:$0xf0]  ;;  %v8987_v28 = vor.u32 %v11692_v13, %v8986_v29 }
 0x584   : > { %16409 = vst [vmem:[#allocation184_spill] sm:$0xff] %v14193_v6  ;;  %2289 = vmatmul.bf16.gmra.mxu0 %v8979_v62  ;;  %v16414_v62 = vld [vmem:[#allocation192_spill] sm:$0xff] }
 0x585   : > { %16410 = vst [vmem:[#allocation416_spill] sm:$0xff] %v14195_v40  ;;  %6761 = vmatmul.bf16.gmra.mxu1 %v10668_v63  ;;  %v11802_v63 = vld [vmem:[%s12213_s4 + $0x2c4] sm:$0xf0] }
 0x586   : > { %4535 = vmatmul.bf16.gmra.mxu2 %v9909_v51  ;;  %v11801_v51 = vld [vmem:[%s12213_s4 + $0x2c4] sm:$0xf]  ;;  %v10676_v6 = vor.u32 %v11802_v63, %v10675_v20 }
 0x587   : > { %11245 = vmatmul.msk.bf16.gmra.mxu3 %vm1561_vm0, %v10672_v35 }
 0x589   : > { %v4496_v27 = vpop.f32.mrf.mxu2  ;;  %v2252_v16 = vpop.f32.mrf.mxu0 }
 0x58a   : > { %v7221_v14 = vpop.f32.mrf.mxu3  ;;  %v14199_v41 = vadd.f32 %v4496_v27, %v2750_v53  ;;  %v6724_v15 = vpop.f32.mrf.mxu1  ;;  %v2752_v35 = vadd.f32 %v16414_v62, %v2252_v16  ;;  %v10683_v62 = vld [vmem:[%s12213_s4 + $0x2d0] sm:$0xf] }
 0x58b   : > { %v14201_v2 = vadd.f32 %v7221_v14, %v6722_v32 }
 0x58c   : > { %16412 = vst [vmem:[#allocation188_spill] sm:$0xff] %v14199_v41  ;;  %v10680_v41 = vor.u32 %v11801_v51, %v10677_v19  ;;  %v11694_v51 = vld [vmem:[%s12213_s4 + $0x5ac] sm:$0xf0] }
 0x58d   : > { %16413 = vst [vmem:[#allocation417_spill] sm:$0xff] %v14201_v2  ;;  %v9917_v2 = vor.u32 %v11484_v52, %v9916_v61  ;;  %v8994_v52 = vld [vmem:[%s12213_s4 + $0x5a8] sm:$0xf]  ;;  %v9924_v19 = vld [vmem:[%s12213_s4 + $0x570] sm:$0xf] }
 0x591   : > { %v4498_v40 = vpop.f32.mrf.mxu2  ;;  %v2255_v27 = vpop.f32.mrf.mxu0 }
 0x592   : > { %v7223_v21 = vpop.f32.mrf.mxu3  ;;  %v14212_v53 = vadd.f32 %v4498_v40, %v2752_v35  ;;  %v6727_v14 = vpop.f32.mrf.mxu1  ;;  %v16417_v40 = vld [vmem:[#allocation196_spill] sm:$0xff] }
 0x593   : > { %v14214_v32 = vadd.f32 %v7223_v21, %v6724_v15  ;;  %v2755_v16 = vadd.f32 %v16417_v40, %v2255_v27  ;;  %v11486_v35 = vld [vmem:[%s12213_s4 + $0x574] sm:$0xf0]  ;;  %v10685_v21 = vld [vmem:[%s12213_s4 + $0x2d8] sm:$0xf0]  ;;  %v8995_v40 = vor.u32 %v11694_v51, %v8994_v52 }
 0x594   : > { %16415 = vst [vmem:[#allocation192_spill] sm:$0xff] %v14212_v53  ;;  %2294 = vmatmul.bf16.gmra.mxu0 %v8987_v28  ;;  %v16420_v28 = vld [vmem:[#allocation200_spill] sm:$0xff] }
 0x595   : > { %16416 = vst [vmem:[#allocation418_spill] sm:$0xff] %v14214_v32  ;;  %6766 = vmatmul.bf16.gmra.mxu1 %v10676_v6  ;;  %v11804_v6 = vld [vmem:[%s12213_s4 + $0x2d4] sm:$0xf0] }
 0x596   : > { %4540 = vmatmul.bf16.gmra.mxu2 %v9917_v2  ;;  %v11803_v2 = vld [vmem:[%s12213_s4 + $0x2d4] sm:$0xf]  ;;  %v10684_v53 = vor.u32 %v11804_v6, %v10683_v62 }
 0x597   : > { %11246 = vmatmul.msk.bf16.gmra.mxu3 %vm1561_vm0, %v10680_v41 }
 0x599   : > { %v4501_v15 = vpop.f32.mrf.mxu2  ;;  %v2257_v61 = vpop.f32.mrf.mxu0 }
 0x59a   : > { %v7226_v29 = vpop.f32.mrf.mxu3  ;;  %v14218_v13 = vadd.f32 %v4501_v15, %v2755_v16  ;;  %v6729_v63 = vpop.f32.mrf.mxu1  ;;  %v2757_v41 = vadd.f32 %v16420_v28, %v2257_v61  ;;  %v10691_v28 = vld [vmem:[%s12213_s4 + $0x2e0] sm:$0xf] }
 0x59b   : > { %v14220_v20 = vadd.f32 %v7226_v29, %v6727_v14 }
 0x59c   : > { %16418 = vst [vmem:[#allocation196_spill] sm:$0xff] %v14218_v13  ;;  %v10688_v13 = vor.u32 %v11803_v2, %v10685_v21  ;;  %v11696_v2 = vld [vmem:[%s12213_s4 + $0x5bc] sm:$0xf0] }
 0x59d   : > { %16419 = vst [vmem:[#allocation419_spill] sm:$0xff] %v14220_v20  ;;  %v9925_v20 = vor.u32 %v11486_v35, %v9924_v19  ;;  %v9002_v35 = vld [vmem:[%s12213_s4 + $0x5b8] sm:$0xf]  ;;  %v9932_v21 = vld [vmem:[%s12213_s4 + $0x580] sm:$0xf] }
 0x5a1   : > { %v4503_v32 = vpop.f32.mrf.mxu2  ;;  %v2260_v15 = vpop.f32.mrf.mxu0 }
 0x5a2   : > { %v7228_v27 = vpop.f32.mrf.mxu3  ;;  %v14231_v16 = vadd.f32 %v4503_v32, %v2757_v41  ;;  %v6732_v29 = vpop.f32.mrf.mxu1  ;;  %v16423_v32 = vld [vmem:[#allocation204_spill] sm:$0xff]  ;;  %v11488_v41 = vld [vmem:[%s12213_s4 + $0x584] sm:$0xf0] }
 0x5a3   : > { %v14233_v14 = vadd.f32 %v7228_v27, %v6729_v63  ;;  %v2760_v61 = vadd.f32 %v16423_v32, %v2260_v15  ;;  %v10693_v27 = vld [vmem:[%s12213_s4 + $0x2e8] sm:$0xf0]  ;;  %v9003_v32 = vor.u32 %v11696_v2, %v9002_v35 }
 0x5a4   : > { %16421 = vst [vmem:[#allocation200_spill] sm:$0xff] %v14231_v16  ;;  %2299 = vmatmul.bf16.gmra.mxu0 %v8995_v40  ;;  %v16426_v40 = vld [vmem:[#allocation208_spill] sm:$0xff] }
 0x5a5   : > { %16422 = vst [vmem:[#allocation420_spill] sm:$0xff] %v14233_v14  ;;  %6771 = vmatmul.bf16.gmra.mxu1 %v10684_v53  ;;  %v11806_v53 = vld [vmem:[%s12213_s4 + $0x2e4] sm:$0xf0] }
 0x5a6   : > { %4545 = vmatmul.bf16.gmra.mxu2 %v9925_v20  ;;  %v11805_v20 = vld [vmem:[%s12213_s4 + $0x2e4] sm:$0xf]  ;;  %v10692_v16 = vor.u32 %v11806_v53, %v10691_v28 }
 0x5a7   : > { %11247 = vmatmul.msk.bf16.gmra.mxu3 %vm1561_vm0, %v10688_v13 }
 0x5a9   : > { %v4506_v63 = vpop.f32.mrf.mxu2  ;;  %v2262_v19 = vpop.f32.mrf.mxu0 }
 0x5aa   : > { %v7231_v52 = vpop.f32.mrf.mxu3  ;;  %v14237_v51 = vadd.f32 %v4506_v63, %v2760_v61  ;;  %v6734_v6 = vpop.f32.mrf.mxu1  ;;  %v2762_v13 = vadd.f32 %v16426_v40, %v2262_v19  ;;  %v10699_v40 = vld [vmem:[%s12213_s4 + $0x2f0] sm:$0xf] }
 0x5ab   : > { %v14239_v62 = vadd.f32 %v7231_v52, %v6732_v29 }
 0x5ac   : > { %16424 = vst [vmem:[#allocation204_spill] sm:$0xff] %v14237_v51  ;;  %v10696_v51 = vor.u32 %v11805_v20, %v10693_v27  ;;  %v11698_v20 = vld [vmem:[%s12213_s4 + $0x5cc] sm:$0xf0] }
 0x5ad   : > { %16425 = vst [vmem:[#allocation421_spill] sm:$0xff] %v14239_v62  ;;  %v9933_v62 = vor.u32 %v11488_v41, %v9932_v21  ;;  %v9010_v41 = vld [vmem:[%s12213_s4 + $0x5c8] sm:$0xf]  ;;  %v9940_v27 = vld [vmem:[%s12213_s4 + $0x590] sm:$0xf] }
 0x5b1   : > { %v4508_v14 = vpop.f32.mrf.mxu2  ;;  %v2265_v63 = vpop.f32.mrf.mxu0 }
 0x5b2   : > { %v7233_v15 = vpop.f32.mrf.mxu3  ;;  %v14250_v61 = vadd.f32 %v4508_v14, %v2762_v13  ;;  %v6737_v52 = vpop.f32.mrf.mxu1  ;;  %v16429_v14 = vld [vmem:[#allocation212_spill] sm:$0xff] }
 0x5b3   : > { %v14252_v29 = vadd.f32 %v7233_v15, %v6734_v6  ;;  %v2765_v19 = vadd.f32 %v16429_v14, %v2265_v63  ;;  %v11490_v13 = vld [vmem:[%s12213_s4 + $0x594] sm:$0xf0]  ;;  %v10701_v15 = vld [vmem:[%s12213_s4 + $0x2f8] sm:$0xf0]  ;;  %v9011_v14 = vor.u32 %v11698_v20, %v9010_v41 }
 0x5b4   : > { %16427 = vst [vmem:[#allocation208_spill] sm:$0xff] %v14250_v61  ;;  %2304 = vmatmul.bf16.gmra.mxu0 %v9003_v32  ;;  %v16432_v32 = vld [vmem:[#allocation216_spill] sm:$0xff] }
 0x5b5   : > { %16428 = vst [vmem:[#allocation422_spill] sm:$0xff] %v14252_v29  ;;  %6776 = vmatmul.bf16.gmra.mxu1 %v10692_v16  ;;  %v11808_v16 = vld [vmem:[%s12213_s4 + $0x2f4] sm:$0xf0] }
 0x5b6   : > { %4550 = vmatmul.bf16.gmra.mxu2 %v9933_v62  ;;  %v11807_v62 = vld [vmem:[%s12213_s4 + $0x2f4] sm:$0xf]  ;;  %v10700_v61 = vor.u32 %v11808_v16, %v10699_v40 }
 0x5b7   : > { %11248 = vmatmul.msk.bf16.gmra.mxu3 %vm1561_vm0, %v10696_v51 }
 0x5b9   : > { %v4511_v6 = vpop.f32.mrf.mxu2  ;;  %v2267_v21 = vpop.f32.mrf.mxu0 }
 0x5ba   : > { %v7236_v35 = vpop.f32.mrf.mxu3  ;;  %v14256_v2 = vadd.f32 %v4511_v6, %v2765_v19  ;;  %v6739_v53 = vpop.f32.mrf.mxu1  ;;  %v2767_v51 = vadd.f32 %v16432_v32, %v2267_v21  ;;  %v10707_v32 = vld [vmem:[%s12213_s4 + $0x300] sm:$0xf] }
 0x5bb   : > { %v14258_v28 = vadd.f32 %v7236_v35, %v6737_v52 }
 0x5bc   : > { %16430 = vst [vmem:[#allocation212_spill] sm:$0xff] %v14256_v2  ;;  %v10704_v2 = vor.u32 %v11807_v62, %v10701_v15  ;;  %v11700_v62 = vld [vmem:[%s12213_s4 + $0x5dc] sm:$0xf0] }
 0x5bd   : > { %16431 = vst [vmem:[#allocation423_spill] sm:$0xff] %v14258_v28  ;;  %v9941_v28 = vor.u32 %v11490_v13, %v9940_v27  ;;  %v9018_v13 = vld [vmem:[%s12213_s4 + $0x5d8] sm:$0xf]  ;;  %v9948_v15 = vld [vmem:[%s12213_s4 + $0x5a0] sm:$0xf] }
 0x5c1   : > { %v4513_v29 = vpop.f32.mrf.mxu2  ;;  %v2270_v6 = vpop.f32.mrf.mxu0 }
 0x5c2   : > { %v7238_v63 = vpop.f32.mrf.mxu3  ;;  %v14269_v19 = vadd.f32 %v4513_v29, %v2767_v51  ;;  %v6742_v35 = vpop.f32.mrf.mxu1  ;;  %v16435_v29 = vld [vmem:[#allocation220_spill] sm:$0xff]  ;;  %v11492_v51 = vld [vmem:[%s12213_s4 + $0x5a4] sm:$0xf0] }
 0x5c3   : > { %v14271_v52 = vadd.f32 %v7238_v63, %v6739_v53  ;;  %v2770_v21 = vadd.f32 %v16435_v29, %v2270_v6  ;;  %v10709_v63 = vld [vmem:[%s12213_s4 + $0x308] sm:$0xf0]  ;;  %v9019_v29 = vor.u32 %v11700_v62, %v9018_v13 }
 0x5c4   : > { %16433 = vst [vmem:[#allocation216_spill] sm:$0xff] %v14269_v19  ;;  %2309 = vmatmul.bf16.gmra.mxu0 %v9011_v14  ;;  %v16438_v14 = vld [vmem:[#allocation224_spill] sm:$0xff] }
 0x5c5   : > { %16434 = vst [vmem:[#allocation424_spill] sm:$0xff] %v14271_v52  ;;  %6781 = vmatmul.bf16.gmra.mxu1 %v10700_v61  ;;  %v11810_v61 = vld [vmem:[%s12213_s4 + $0x304] sm:$0xf0] }
 0x5c6   : > { %4555 = vmatmul.bf16.gmra.mxu2 %v9941_v28  ;;  %v11809_v28 = vld [vmem:[%s12213_s4 + $0x304] sm:$0xf]  ;;  %v10708_v19 = vor.u32 %v11810_v61, %v10707_v32 }
 0x5c7   : > { %11249 = vmatmul.msk.bf16.gmra.mxu3 %vm1561_vm0, %v10704_v2 }
 0x5c9   : > { %v4516_v53 = vpop.f32.mrf.mxu2  ;;  %v2272_v27 = vpop.f32.mrf.mxu0 }
 0x5ca   : > { %v7241_v41 = vpop.f32.mrf.mxu3  ;;  %v14275_v20 = vadd.f32 %v4516_v53, %v2770_v21  ;;  %v6744_v16 = vpop.f32.mrf.mxu1  ;;  %v2772_v2 = vadd.f32 %v16438_v14, %v2272_v27  ;;  %v10715_v14 = vld [vmem:[%s12213_s4 + $0x310] sm:$0xf] }
 0x5cb   : > { %v14277_v40 = vadd.f32 %v7241_v41, %v6742_v35 }
 0x5cc   : > { %16436 = vst [vmem:[#allocation220_spill] sm:$0xff] %v14275_v20  ;;  %v10712_v20 = vor.u32 %v11809_v28, %v10709_v63  ;;  %v11702_v28 = vld [vmem:[%s12213_s4 + $0x5ec] sm:$0xf0] }
 0x5cd   : > { %16437 = vst [vmem:[#allocation425_spill] sm:$0xff] %v14277_v40  ;;  %v9949_v40 = vor.u32 %v11492_v51, %v9948_v15  ;;  %v9026_v51 = vld [vmem:[%s12213_s4 + $0x5e8] sm:$0xf]  ;;  %v9956_v63 = vld [vmem:[%s12213_s4 + $0x5b0] sm:$0xf] }
 0x5d1   : > { %v4518_v52 = vpop.f32.mrf.mxu2  ;;  %v2275_v53 = vpop.f32.mrf.mxu0 }
 0x5d2   : > { %v7243_v6 = vpop.f32.mrf.mxu3  ;;  %v14288_v21 = vadd.f32 %v4518_v52, %v2772_v2  ;;  %v6747_v41 = vpop.f32.mrf.mxu1  ;;  %v16441_v52 = vld [vmem:[#allocation228_spill] sm:$0xff] }
 0x5d3   : > { %v14290_v35 = vadd.f32 %v7243_v6, %v6744_v16  ;;  %v2775_v27 = vadd.f32 %v16441_v52, %v2275_v53  ;;  %v11494_v2 = vld [vmem:[%s12213_s4 + $0x5b4] sm:$0xf0]  ;;  %v10717_v6 = vld [vmem:[%s12213_s4 + $0x318] sm:$0xf0]  ;;  %v9027_v52 = vor.u32 %v11702_v28, %v9026_v51 }
 0x5d4   : > { %16439 = vst [vmem:[#allocation224_spill] sm:$0xff] %v14288_v21  ;;  %2314 = vmatmul.bf16.gmra.mxu0 %v9019_v29  ;;  %v16444_v29 = vld [vmem:[#allocation232_spill] sm:$0xff] }
 0x5d5   : > { %16440 = vst [vmem:[#allocation426_spill] sm:$0xff] %v14290_v35  ;;  %6786 = vmatmul.bf16.gmra.mxu1 %v10708_v19  ;;  %v11812_v19 = vld [vmem:[%s12213_s4 + $0x314] sm:$0xf0] }
 0x5d6   : > { %4560 = vmatmul.bf16.gmra.mxu2 %v9949_v40  ;;  %v11811_v40 = vld [vmem:[%s12213_s4 + $0x314] sm:$0xf]  ;;  %v10716_v21 = vor.u32 %v11812_v19, %v10715_v14 }
 0x5d7   : > { %11250 = vmatmul.msk.bf16.gmra.mxu3 %vm1561_vm0, %v10712_v20 }
 0x5d9   : > { %v4521_v16 = vpop.f32.mrf.mxu2  ;;  %v2277_v15 = vpop.f32.mrf.mxu0 }
 0x5da   : > { %v7246_v13 = vpop.f32.mrf.mxu3  ;;  %v14294_v62 = vadd.f32 %v4521_v16, %v2775_v27  ;;  %v6749_v61 = vpop.f32.mrf.mxu1  ;;  %v2777_v20 = vadd.f32 %v16444_v29, %v2277_v15  ;;  %v10723_v29 = vld [vmem:[%s12213_s4 + $0x320] sm:$0xf] }
 0x5db   : > { %v14296_v32 = vadd.f32 %v7246_v13, %v6747_v41 }
 0x5dc   : > { %16442 = vst [vmem:[#allocation228_spill] sm:$0xff] %v14294_v62  ;;  %v10720_v62 = vor.u32 %v11811_v40, %v10717_v6  ;;  %v11704_v40 = vld [vmem:[%s12213_s4 + $0x5fc] sm:$0xf0] }
 0x5dd   : > { %16443 = vst [vmem:[#allocation427_spill] sm:$0xff] %v14296_v32  ;;  %v9957_v32 = vor.u32 %v11494_v2, %v9956_v63  ;;  %v9034_v2 = vld [vmem:[%s12213_s4 + $0x5f8] sm:$0xf]  ;;  %v9964_v6 = vld [vmem:[%s12213_s4 + $0x5c0] sm:$0xf] }
 0x5e1   : > { %v4523_v35 = vpop.f32.mrf.mxu2  ;;  %v2280_v16 = vpop.f32.mrf.mxu0 }
 0x5e2   : > { %v7248_v53 = vpop.f32.mrf.mxu3  ;;  %v14307_v27 = vadd.f32 %v4523_v35, %v2777_v20  ;;  %v6752_v13 = vpop.f32.mrf.mxu1  ;;  %v16447_v35 = vld [vmem:[#allocation236_spill] sm:$0xff]  ;;  %v11496_v20 = vld [vmem:[%s12213_s4 + $0x5c4] sm:$0xf0] }
 0x5e3   : > { %v14309_v41 = vadd.f32 %v7248_v53, %v6749_v61  ;;  %v2780_v15 = vadd.f32 %v16447_v35, %v2280_v16  ;;  %v10725_v53 = vld [vmem:[%s12213_s4 + $0x328] sm:$0xf0]  ;;  %v9035_v35 = vor.u32 %v11704_v40, %v9034_v2 }
 0x5e4   : > { %16445 = vst [vmem:[#allocation232_spill] sm:$0xff] %v14307_v27  ;;  %2319 = vmatmul.bf16.gmra.mxu0 %v9027_v52  ;;  %v16450_v52 = vld [vmem:[#allocation240_spill] sm:$0xff] }
 0x5e5   : > { %16446 = vst [vmem:[#allocation428_spill] sm:$0xff] %v14309_v41  ;;  %6791 = vmatmul.bf16.gmra.mxu1 %v10716_v21  ;;  %v11814_v21 = vld [vmem:[%s12213_s4 + $0x324] sm:$0xf0] }
 0x5e6   : > { %4565 = vmatmul.bf16.gmra.mxu2 %v9957_v32  ;;  %v11813_v32 = vld [vmem:[%s12213_s4 + $0x324] sm:$0xf]  ;;  %v10724_v27 = vor.u32 %v11814_v21, %v10723_v29 }
 0x5e7   : > { %11251 = vmatmul.msk.bf16.gmra.mxu3 %vm1561_vm0, %v10720_v62 }
 0x5e9   : > { %v4526_v61 = vpop.f32.mrf.mxu2  ;;  %v2282_v63 = vpop.f32.mrf.mxu0 }
 0x5ea   : > { %v7251_v51 = vpop.f32.mrf.mxu3  ;;  %v14313_v28 = vadd.f32 %v4526_v61, %v2780_v15  ;;  %v6754_v19 = vpop.f32.mrf.mxu1  ;;  %v2782_v62 = vadd.f32 %v16450_v52, %v2282_v63  ;;  %v10731_v52 = vld [vmem:[%s12213_s4 + $0x330] sm:$0xf] }
 0x5eb   : > { %v14315_v14 = vadd.f32 %v7251_v51, %v6752_v13 }
 0x5ec   : > { %16448 = vst [vmem:[#allocation236_spill] sm:$0xff] %v14313_v28  ;;  %v10728_v28 = vor.u32 %v11813_v32, %v10725_v53  ;;  %v11706_v32 = vld [vmem:[%s12213_s4 + $0x60c] sm:$0xf0] }
 0x5ed   : > { %16449 = vst [vmem:[#allocation429_spill] sm:$0xff] %v14315_v14  ;;  %v9965_v14 = vor.u32 %v11496_v20, %v9964_v6  ;;  %v9042_v20 = vld [vmem:[%s12213_s4 + $0x608] sm:$0xf]  ;;  %v9972_v53 = vld [vmem:[%s12213_s4 + $0x5d0] sm:$0xf] }
 0x5f1   : > { %v4528_v41 = vpop.f32.mrf.mxu2  ;;  %v2285_v61 = vpop.f32.mrf.mxu0 }
 0x5f2   : > { %v7253_v16 = vpop.f32.mrf.mxu3  ;;  %v14326_v15 = vadd.f32 %v4528_v41, %v2782_v62  ;;  %v6757_v51 = vpop.f32.mrf.mxu1  ;;  %v16453_v41 = vld [vmem:[#allocation244_spill] sm:$0xff] }
 0x5f3   : > { %v14328_v13 = vadd.f32 %v7253_v16, %v6754_v19  ;;  %v2785_v63 = vadd.f32 %v16453_v41, %v2285_v61  ;;  %v11498_v62 = vld [vmem:[%s12213_s4 + $0x5d4] sm:$0xf0]  ;;  %v10733_v16 = vld [vmem:[%s12213_s4 + $0x338] sm:$0xf0]  ;;  %v9043_v41 = vor.u32 %v11706_v32, %v9042_v20 }
 0x5f4   : > { %16451 = vst [vmem:[#allocation240_spill] sm:$0xff] %v14326_v15  ;;  %2324 = vmatmul.bf16.gmra.mxu0 %v9035_v35  ;;  %v16456_v35 = vld [vmem:[#allocation248_spill] sm:$0xff] }
 0x5f5   : > { %16452 = vst [vmem:[#allocation430_spill] sm:$0xff] %v14328_v13  ;;  %6796 = vmatmul.bf16.gmra.mxu1 %v10724_v27  ;;  %v11816_v27 = vld [vmem:[%s12213_s4 + $0x334] sm:$0xf0] }
 0x5f6   : > { %4570 = vmatmul.bf16.gmra.mxu2 %v9965_v14  ;;  %v11815_v14 = vld [vmem:[%s12213_s4 + $0x334] sm:$0xf]  ;;  %v10732_v15 = vor.u32 %v11816_v27, %v10731_v52 }
 0x5f7   : > { %11252 = vmatmul.msk.bf16.gmra.mxu3 %vm1561_vm0, %v10728_v28 }
 0x5f9   : > { %v4531_v19 = vpop.f32.mrf.mxu2  ;;  %v2287_v6 = vpop.f32.mrf.mxu0 }
 0x5fa   : > { %v7256_v2 = vpop.f32.mrf.mxu3  ;;  %v14332_v40 = vadd.f32 %v4531_v19, %v2785_v63  ;;  %v6759_v21 = vpop.f32.mrf.mxu1  ;;  %v2787_v28 = vadd.f32 %v16456_v35, %v2287_v6  ;;  %v10739_v35 = vld [vmem:[%s12213_s4 + $0x340] sm:$0xf] }
 0x5fb   : > { %v14334_v29 = vadd.f32 %v7256_v2, %v6757_v51 }
 0x5fc   : > { %16454 = vst [vmem:[#allocation244_spill] sm:$0xff] %v14332_v40  ;;  %v10736_v40 = vor.u32 %v11815_v14, %v10733_v16  ;;  %v11708_v14 = vld [vmem:[%s12213_s4 + $0x61c] sm:$0xf0] }
 0x5fd   : > { %16455 = vst [vmem:[#allocation431_spill] sm:$0xff] %v14334_v29  ;;  %v9973_v29 = vor.u32 %v11498_v62, %v9972_v53  ;;  %v9050_v62 = vld [vmem:[%s12213_s4 + $0x618] sm:$0xf]  ;;  %v9980_v16 = vld [vmem:[%s12213_s4 + $0x5e0] sm:$0xf] }
 0x601   : > { %v4533_v13 = vpop.f32.mrf.mxu2  ;;  %v2290_v19 = vpop.f32.mrf.mxu0 }
 0x602   : > { %v7258_v61 = vpop.f32.mrf.mxu3  ;;  %v14345_v63 = vadd.f32 %v4533_v13, %v2787_v28  ;;  %v6762_v2 = vpop.f32.mrf.mxu1  ;;  %v16459_v13 = vld [vmem:[#allocation252_spill] sm:$0xff]  ;;  %v11500_v28 = vld [vmem:[%s12213_s4 + $0x5e4] sm:$0xf0] }
 0x603   : > { %v14347_v51 = vadd.f32 %v7258_v61, %v6759_v21  ;;  %v2790_v6 = vadd.f32 %v16459_v13, %v2290_v19  ;;  %v10741_v61 = vld [vmem:[%s12213_s4 + $0x348] sm:$0xf0]  ;;  %v9051_v13 = vor.u32 %v11708_v14, %v9050_v62 }
 0x604   : > { %16457 = vst [vmem:[#allocation248_spill] sm:$0xff] %v14345_v63  ;;  %2329 = vmatmul.bf16.gmra.mxu0 %v9043_v41  ;;  %v16462_v41 = vld [vmem:[#allocation256_spill] sm:$0xff] }
 0x605   : > { %16458 = vst [vmem:[#allocation432_spill] sm:$0xff] %v14347_v51  ;;  %6801 = vmatmul.bf16.gmra.mxu1 %v10732_v15  ;;  %v11818_v15 = vld [vmem:[%s12213_s4 + $0x344] sm:$0xf0] }
 0x606   : > { %4575 = vmatmul.bf16.gmra.mxu2 %v9973_v29  ;;  %v11817_v29 = vld [vmem:[%s12213_s4 + $0x344] sm:$0xf]  ;;  %v10740_v63 = vor.u32 %v11818_v15, %v10739_v35 }
 0x607   : > { %11253 = vmatmul.msk.bf16.gmra.mxu3 %vm1561_vm0, %v10736_v40 }
 0x609   : > { %v4536_v21 = vpop.f32.mrf.mxu2  ;;  %v2292_v53 = vpop.f32.mrf.mxu0 }
 0x60a   : > { %v7261_v20 = vpop.f32.mrf.mxu3  ;;  %v14351_v32 = vadd.f32 %v4536_v21, %v2790_v6  ;;  %v6764_v27 = vpop.f32.mrf.mxu1  ;;  %v2792_v40 = vadd.f32 %v16462_v41, %v2292_v53  ;;  %v10747_v41 = vld [vmem:[%s12213_s4 + $0x350] sm:$0xf] }
 0x60b   : > { %v14353_v52 = vadd.f32 %v7261_v20, %v6762_v2 }
 0x60c   : > { %16460 = vst [vmem:[#allocation252_spill] sm:$0xff] %v14351_v32  ;;  %v10744_v32 = vor.u32 %v11817_v29, %v10741_v61  ;;  %v11710_v29 = vld [vmem:[%s12213_s4 + $0x62c] sm:$0xf0] }
 0x60d   : > { %16461 = vst [vmem:[#allocation433_spill] sm:$0xff] %v14353_v52  ;;  %v9981_v52 = vor.u32 %v11500_v28, %v9980_v16  ;;  %v9058_v28 = vld [vmem:[%s12213_s4 + $0x628] sm:$0xf]  ;;  %v9988_v61 = vld [vmem:[%s12213_s4 + $0x5f0] sm:$0xf] }
 0x611   : > { %v4538_v51 = vpop.f32.mrf.mxu2  ;;  %v2295_v21 = vpop.f32.mrf.mxu0 }
 0x612   : > { %v7263_v19 = vpop.f32.mrf.mxu3  ;;  %v14364_v6 = vadd.f32 %v4538_v51, %v2792_v40  ;;  %v6767_v20 = vpop.f32.mrf.mxu1  ;;  %v16465_v51 = vld [vmem:[#allocation260_spill] sm:$0xff] }
 0x613   : > { %v14366_v2 = vadd.f32 %v7263_v19, %v6764_v27  ;;  %v2795_v53 = vadd.f32 %v16465_v51, %v2295_v21  ;;  %v11502_v40 = vld [vmem:[%s12213_s4 + $0x5f4] sm:$0xf0]  ;;  %v10749_v19 = vld [vmem:[%s12213_s4 + $0x358] sm:$0xf0]  ;;  %v9059_v51 = vor.u32 %v11710_v29, %v9058_v28 }
 0x614   : > { %16463 = vst [vmem:[#allocation256_spill] sm:$0xff] %v14364_v6  ;;  %2334 = vmatmul.bf16.gmra.mxu0 %v9051_v13  ;;  %v16468_v13 = vld [vmem:[#allocation264_spill] sm:$0xff] }
 0x615   : > { %16464 = vst [vmem:[#allocation434_spill] sm:$0xff] %v14366_v2  ;;  %6806 = vmatmul.bf16.gmra.mxu1 %v10740_v63  ;;  %v11820_v63 = vld [vmem:[%s12213_s4 + $0x354] sm:$0xf0] }
 0x616   : > { %4580 = vmatmul.bf16.gmra.mxu2 %v9981_v52  ;;  %v11819_v52 = vld [vmem:[%s12213_s4 + $0x354] sm:$0xf]  ;;  %v10748_v6 = vor.u32 %v11820_v63, %v10747_v41 }
 0x617   : > { %11254 = vmatmul.msk.bf16.gmra.mxu3 %vm1561_vm0, %v10744_v32 }
 0x619   : > { %v4541_v27 = vpop.f32.mrf.mxu2  ;;  %v2297_v16 = vpop.f32.mrf.mxu0 }
 0x61a   : > { %v7266_v62 = vpop.f32.mrf.mxu3  ;;  %v14370_v14 = vadd.f32 %v4541_v27, %v2795_v53  ;;  %v6769_v15 = vpop.f32.mrf.mxu1  ;;  %v2797_v32 = vadd.f32 %v16468_v13, %v2297_v16  ;;  %v10755_v13 = vld [vmem:[%s12213_s4 + $0x360] sm:$0xf] }
 0x61b   : > { %v14372_v35 = vadd.f32 %v7266_v62, %v6767_v20 }
 0x61c   : > { %16466 = vst [vmem:[#allocation260_spill] sm:$0xff] %v14370_v14  ;;  %v10752_v14 = vor.u32 %v11819_v52, %v10749_v19  ;;  %v11712_v52 = vld [vmem:[%s12213_s4 + $0x63c] sm:$0xf0] }
 0x61d   : > { %16467 = vst [vmem:[#allocation435_spill] sm:$0xff] %v14372_v35  ;;  %v9989_v35 = vor.u32 %v11502_v40, %v9988_v61  ;;  %v9066_v40 = vld [vmem:[%s12213_s4 + $0x638] sm:$0xf]  ;;  %v9996_v19 = vld [vmem:[%s12213_s4 + $0x600] sm:$0xf] }
 0x621   : > { %v4543_v2 = vpop.f32.mrf.mxu2  ;;  %v2300_v27 = vpop.f32.mrf.mxu0 }
 0x622   : > { %v7268_v21 = vpop.f32.mrf.mxu3  ;;  %v14383_v53 = vadd.f32 %v4543_v2, %v2797_v32  ;;  %v6772_v62 = vpop.f32.mrf.mxu1  ;;  %v16471_v2 = vld [vmem:[#allocation268_spill] sm:$0xff]  ;;  %v11504_v32 = vld [vmem:[%s12213_s4 + $0x604] sm:$0xf0] }
 0x623   : > { %v14385_v20 = vadd.f32 %v7268_v21, %v6769_v15  ;;  %v2800_v16 = vadd.f32 %v16471_v2, %v2300_v27  ;;  %v10757_v21 = vld [vmem:[%s12213_s4 + $0x368] sm:$0xf0]  ;;  %v9067_v2 = vor.u32 %v11712_v52, %v9066_v40 }
 0x624   : > { %16469 = vst [vmem:[#allocation264_spill] sm:$0xff] %v14383_v53  ;;  %2339 = vmatmul.bf16.gmra.mxu0 %v9059_v51  ;;  %v16474_v51 = vld [vmem:[#allocation272_spill] sm:$0xff] }
 0x625   : > { %16470 = vst [vmem:[#allocation436_spill] sm:$0xff] %v14385_v20  ;;  %6811 = vmatmul.bf16.gmra.mxu1 %v10748_v6  ;;  %v11822_v6 = vld [vmem:[%s12213_s4 + $0x364] sm:$0xf0] }
 0x626   : > { %4585 = vmatmul.bf16.gmra.mxu2 %v9989_v35  ;;  %v11821_v35 = vld [vmem:[%s12213_s4 + $0x364] sm:$0xf]  ;;  %v10756_v53 = vor.u32 %v11822_v6, %v10755_v13 }
 0x627   : > { %11255 = vmatmul.msk.bf16.gmra.mxu3 %vm1561_vm0, %v10752_v14 }
 0x629   : > { %v4546_v15 = vpop.f32.mrf.mxu2  ;;  %v2302_v61 = vpop.f32.mrf.mxu0 }
 0x62a   : > { %v7271_v28 = vpop.f32.mrf.mxu3  ;;  %v14389_v29 = vadd.f32 %v4546_v15, %v2800_v16  ;;  %v6774_v63 = vpop.f32.mrf.mxu1  ;;  %v2802_v14 = vadd.f32 %v16474_v51, %v2302_v61  ;;  %v10763_v51 = vld [vmem:[%s12213_s4 + $0x370] sm:$0xf] }
 0x62b   : > { %v14391_v41 = vadd.f32 %v7271_v28, %v6772_v62 }
 0x62c   : > { %16472 = vst [vmem:[#allocation268_spill] sm:$0xff] %v14389_v29  ;;  %v10760_v29 = vor.u32 %v11821_v35, %v10757_v21  ;;  %v11714_v35 = vld [vmem:[%s12213_s4 + $0x64c] sm:$0xf0] }
 0x62d   : > { %16473 = vst [vmem:[#allocation437_spill] sm:$0xff] %v14391_v41  ;;  %v9997_v41 = vor.u32 %v11504_v32, %v9996_v19  ;;  %v9074_v32 = vld [vmem:[%s12213_s4 + $0x648] sm:$0xf]  ;;  %v10004_v21 = vld [vmem:[%s12213_s4 + $0x610] sm:$0xf] }
 0x631   : > { %v4548_v20 = vpop.f32.mrf.mxu2  ;;  %v2305_v15 = vpop.f32.mrf.mxu0 }
 0x632   : > { %v7273_v27 = vpop.f32.mrf.mxu3  ;;  %v14402_v16 = vadd.f32 %v4548_v20, %v2802_v14  ;;  %v6777_v28 = vpop.f32.mrf.mxu1  ;;  %v16477_v20 = vld [vmem:[#allocation276_spill] sm:$0xff] }
 0x633   : > { %v14404_v62 = vadd.f32 %v7273_v27, %v6774_v63  ;;  %v2805_v61 = vadd.f32 %v16477_v20, %v2305_v15  ;;  %v11506_v14 = vld [vmem:[%s12213_s4 + $0x614] sm:$0xf0]  ;;  %v10765_v27 = vld [vmem:[%s12213_s4 + $0x378] sm:$0xf0]  ;;  %v9075_v20 = vor.u32 %v11714_v35, %v9074_v32 }
 0x634   : > { %16475 = vst [vmem:[#allocation272_spill] sm:$0xff] %v14402_v16  ;;  %2344 = vmatmul.bf16.gmra.mxu0 %v9067_v2  ;;  %v16480_v2 = vld [vmem:[#allocation280_spill] sm:$0xff] }
 0x635   : > { %16476 = vst [vmem:[#allocation438_spill] sm:$0xff] %v14404_v62  ;;  %6816 = vmatmul.bf16.gmra.mxu1 %v10756_v53  ;;  %v11824_v53 = vld [vmem:[%s12213_s4 + $0x374] sm:$0xf0] }
 0x636   : > { %4590 = vmatmul.bf16.gmra.mxu2 %v9997_v41  ;;  %v11823_v41 = vld [vmem:[%s12213_s4 + $0x374] sm:$0xf]  ;;  %v10764_v16 = vor.u32 %v11824_v53, %v10763_v51 }
 0x637   : > { %11256 = vmatmul.msk.bf16.gmra.mxu3 %vm1561_vm0, %v10760_v29 }
 0x639   : > { %v4551_v63 = vpop.f32.mrf.mxu2  ;;  %v2307_v19 = vpop.f32.mrf.mxu0 }
 0x63a   : > { %v7276_v40 = vpop.f32.mrf.mxu3  ;;  %v14408_v52 = vadd.f32 %v4551_v63, %v2805_v61  ;;  %v6779_v6 = vpop.f32.mrf.mxu1  ;;  %v2807_v29 = vadd.f32 %v16480_v2, %v2307_v19  ;;  %v10771_v2 = vld [vmem:[%s12213_s4 + $0x380] sm:$0xf] }
 0x63b   : > { %v14410_v13 = vadd.f32 %v7276_v40, %v6777_v28 }
 0x63c   : > { %16478 = vst [vmem:[#allocation276_spill] sm:$0xff] %v14408_v52  ;;  %v10768_v52 = vor.u32 %v11823_v41, %v10765_v27  ;;  %v8300_v41 = vld [vmem:[%s12213_s4 + $0x40] sm:$0xf0] }
 0x63d   : > { %16479 = vst [vmem:[#allocation439_spill] sm:$0xff] %v14410_v13  ;;  %v10005_v13 = vor.u32 %v11506_v14, %v10004_v21  ;;  %v11519_v14 = vld [vmem:[%s12213_s4 + $0x3c] sm:$0xf]  ;;  %v11311_v27 = vld [vmem:[%s12213_s4 + $0x4] sm:$0xf] }
 0x641   : > { %v4553_v62 = vpop.f32.mrf.mxu2  ;;  %v2310_v63 = vpop.f32.mrf.mxu0 }
 0x642   : > { %v7278_v15 = vpop.f32.mrf.mxu3  ;;  %v14421_v61 = vadd.f32 %v4553_v62, %v2807_v29  ;;  %v6782_v40 = vpop.f32.mrf.mxu1  ;;  %v16483_v62 = vld [vmem:[#allocation284_spill] sm:$0xff]  ;;  %v9230_v29 = vld [vmem:[%s12213_s4 + $0x8] sm:$0xf0] }
 0x643   : > { %v14423_v28 = vadd.f32 %v7278_v15, %v6779_v6  ;;  %v2810_v19 = vadd.f32 %v16483_v62, %v2310_v63  ;;  %v10773_v15 = vld [vmem:[%s12213_s4 + $0x388] sm:$0xf0]  ;;  %v8303_v62 = vor.u32 %v11519_v14, %v8300_v41 }
 0x644   : > { %16481 = vst [vmem:[#allocation280_spill] sm:$0xff] %v14421_v61  ;;  %2349 = vmatmul.bf16.gmra.mxu0 %v9075_v20  ;;  %v16486_v20 = vld [vmem:[#allocation288_spill] sm:$0xff] }
 0x645   : > { %16482 = vst [vmem:[#allocation440_spill] sm:$0xff] %v14423_v28  ;;  %6821 = vmatmul.bf16.gmra.mxu1 %v10764_v16  ;;  %v11826_v16 = vld [vmem:[%s12213_s4 + $0x384] sm:$0xf0] }
 0x646   : > { %4595 = vmatmul.bf16.gmra.mxu2 %v10005_v13  ;;  %v11825_v13 = vld [vmem:[%s12213_s4 + $0x384] sm:$0xf]  ;;  %v10772_v61 = vor.u32 %v11826_v16, %v10771_v2 }
 0x647   : > { %11257 = vmatmul.msk.bf16.gmra.mxu3 %vm1561_vm0, %v10768_v52 }
 0x649   : > { %v4556_v6 = vpop.f32.mrf.mxu2  ;;  %v2312_v21 = vpop.f32.mrf.mxu0 }
 0x64a   : > { %v7281_v32 = vpop.f32.mrf.mxu3  ;;  %v14427_v35 = vadd.f32 %v4556_v6, %v2810_v19  ;;  %v6784_v53 = vpop.f32.mrf.mxu1  ;;  %v2812_v52 = vadd.f32 %v16486_v20, %v2312_v21  ;;  %v11828_v20 = vld [vmem:[%s12213_s4 + $0x394] sm:$0xf0] }
 0x64b   : > { %v14429_v51 = vadd.f32 %v7281_v32, %v6782_v40 }
 0x64c   : > { %16484 = vst [vmem:[#allocation284_spill] sm:$0xff] %v14427_v35  ;;  %v10776_v35 = vor.u32 %v11825_v13, %v10773_v15  ;;  %v8308_v13 = vld [vmem:[%s12213_s4 + $0x50] sm:$0xf0] }
 0x64d   : > { %16485 = vst [vmem:[#allocation441_spill] sm:$0xff] %v14429_v51  ;;  %v9233_v51 = vor.u32 %v11311_v27, %v9230_v29  ;;  %v11521_v29 = vld [vmem:[%s12213_s4 + $0x4c] sm:$0xf]  ;;  %v11313_v15 = vld [vmem:[%s12213_s4 + $0x14] sm:$0xf] }
 0x651   : > { %v4558_v28 = vpop.f32.mrf.mxu2  ;;  %v2315_v6 = vpop.f32.mrf.mxu0 }
 0x652   : > { %v7283_v63 = vpop.f32.mrf.mxu3  ;;  %v14440_v19 = vadd.f32 %v4558_v28, %v2812_v52  ;;  %v6787_v32 = vpop.f32.mrf.mxu1  ;;  %v16489_v28 = vld [vmem:[#allocation292_spill] sm:$0xff] }
 0x653   : > { %v14442_v40 = vadd.f32 %v7283_v63, %v6784_v53  ;;  %v2815_v21 = vadd.f32 %v16489_v28, %v2315_v6  ;;  %v9238_v52 = vld [vmem:[%s12213_s4 + $0x18] sm:$0xf0]  ;;  %v8311_v28 = vor.u32 %v11521_v29, %v8308_v13 }
 0x654   : > { %16487 = vst [vmem:[#allocation288_spill] sm:$0xff] %v14440_v19  ;;  %9128 = vmatmul.msk.bf16.vlgmr.msrb.gmra.mxu0 %vm1561_vm0, %v8303_v62  ;;  %v10781_v63 = vld [vmem:[%s12213_s4 + $0x398] sm:$0xf0] }
 0x655   : > { %16488 = vst [vmem:[#allocation442_spill] sm:$0xff] %v14442_v40  ;;  %6826 = vmatmul.bf16.gmra.mxu1 %v10772_v61  ;;  %v10779_v61 = vld [vmem:[%s12213_s4 + $0x390] sm:$0xf]  ;;  %v16492_v62 = vld [vmem:[#allocation296_spill] sm:$0xff] }
 0x656   : > { %10058 = vmatmul.msk.bf16.vlgmr.msrb.gmra.mxu2 %vm1561_vm0, %v9233_v51  ;;  %v11827_v51 = vld [vmem:[%s12213_s4 + $0x394] sm:$0xf]  ;;  %v10780_v19 = vor.u32 %v11828_v20, %v10779_v61 }
 0x657   : > { %11258 = vmatmul.msk.bf16.gmra.mxu3 %vm1561_vm0, %v10776_v35 }
 0x659   : > { %v4561_v53 = vpop.f32.mrf.mxu2  ;;  %v2317_v2 = vpop.f32.mrf.mxu0 }
 0x65a   : > { %v7286_v14 = vpop.f32.mrf.mxu3  ;;  %v14448_v41 = vadd.f32 %v4561_v53, %v2815_v21  ;;  %v6789_v16 = vpop.f32.mrf.mxu1  ;;  %v2817_v35 = vadd.f32 %v16492_v62, %v2317_v2  ;;  %v11830_v62 = vld [vmem:[%s12213_s4 + $0x3a4] sm:$0xf0] }
 0x65b   : > { %v14450_v27 = vadd.f32 %v7286_v14, %v6787_v32 }
 0x65c   : > { %16490 = vst [vmem:[#allocation292_spill] sm:$0xff] %v14448_v41  ;;  %v10784_v41 = vor.u32 %v11827_v51, %v10781_v63  ;;  %v8316_v51 = vld [vmem:[%s12213_s4 + $0x60] sm:$0xf0] }
 0x65d   : > { %16491 = vst [vmem:[#allocation443_spill] sm:$0xff] %v14450_v27  ;;  %v9241_v27 = vor.u32 %v11313_v15, %v9238_v52  ;;  %v11523_v52 = vld [vmem:[%s12213_s4 + $0x5c] sm:$0xf]  ;;  %v11315_v63 = vld [vmem:[%s12213_s4 + $0x24] sm:$0xf] }
 0x661   : > { %v4563_v40 = vpop.f32.mrf.mxu2  ;;  %v2320_v53 = vpop.f32.mrf.mxu0 }
 0x662   : > { %v7288_v6 = vpop.f32.mrf.mxu3  ;;  %v14461_v21 = vadd.f32 %v4563_v40, %v2817_v35  ;;  %v6792_v14 = vpop.f32.mrf.mxu1  ;;  %v16495_v40 = vld [vmem:[#allocation300_spill] sm:$0xff]  ;;  %v9246_v35 = vld [vmem:[%s12213_s4 + $0x28] sm:$0xf0] }
 0x663   : > { %v14463_v32 = vadd.f32 %v7288_v6, %v6789_v16  ;;  %v2820_v2 = vadd.f32 %v16495_v40, %v2320_v53  ;;  %v10789_v6 = vld [vmem:[%s12213_s4 + $0x3a8] sm:$0xf0]  ;;  %v8319_v40 = vor.u32 %v11523_v52, %v8316_v51 }
 0x664   : > { %16493 = vst [vmem:[#allocation296_spill] sm:$0xff] %v14461_v21  ;;  %9129 = vmatmul.msk.bf16.gmra.mxu0 %vm1561_vm0, %v8311_v28  ;;  %v16498_v28 = vld [vmem:[#allocation304_spill] sm:$0xff] }
 0x665   : > { %16494 = vst [vmem:[#allocation444_spill] sm:$0xff] %v14463_v32  ;;  %6831 = vmatmul.bf16.gmra.mxu1 %v10780_v19  ;;  %v10787_v19 = vld [vmem:[%s12213_s4 + $0x3a0] sm:$0xf] }
 0x666   : > { %10059 = vmatmul.msk.bf16.gmra.mxu2 %vm1561_vm0, %v9241_v27  ;;  %v11829_v27 = vld [vmem:[%s12213_s4 + $0x3a4] sm:$0xf]  ;;  %v10788_v21 = vor.u32 %v11830_v62, %v10787_v19 }
 0x667   : > { %11259 = vmatmul.msk.bf16.gmra.mxu3 %vm1561_vm0, %v10784_v41 }
 0x669   : > { %v4566_v16 = vpop.f32.mrf.mxu2  ;;  %v2322_v61 = vpop.f32.mrf.mxu0 }
 0x66a   : > { %v7291_v29 = vpop.f32.mrf.mxu3  ;;  %v14469_v13 = vadd.f32 %v4566_v16, %v2820_v2  ;;  %v6794_v20 = vpop.f32.mrf.mxu1  ;;  %v2822_v41 = vadd.f32 %v16498_v28, %v2322_v61  ;;  %v11832_v28 = vld [vmem:[%s12213_s4 + $0x3b4] sm:$0xf0] }
 0x66b   : > { %v14471_v15 = vadd.f32 %v7291_v29, %v6792_v14 }
 0x66c   : > { %16496 = vst [vmem:[#allocation300_spill] sm:$0xff] %v14469_v13  ;;  %v10792_v13 = vor.u32 %v11829_v27, %v10789_v6  ;;  %v8324_v27 = vld [vmem:[%s12213_s4 + $0x70] sm:$0xf0] }
 0x66d   : > { %16497 = vst [vmem:[#allocation445_spill] sm:$0xff] %v14471_v15  ;;  %v9249_v15 = vor.u32 %v11315_v63, %v9246_v35  ;;  %v11525_v35 = vld [vmem:[%s12213_s4 + $0x6c] sm:$0xf]  ;;  %v11317_v6 = vld [vmem:[%s12213_s4 + $0x34] sm:$0xf] }
 0x671   : > { %v4568_v32 = vpop.f32.mrf.mxu2  ;;  %v2325_v16 = vpop.f32.mrf.mxu0 }
 0x672   : > { %v7293_v53 = vpop.f32.mrf.mxu3  ;;  %v14482_v2 = vadd.f32 %v4568_v32, %v2822_v41  ;;  %v6797_v29 = vpop.f32.mrf.mxu1  ;;  %v16501_v32 = vld [vmem:[#allocation308_spill] sm:$0xff] }
 0x673   : > { %v14484_v14 = vadd.f32 %v7293_v53, %v6794_v20  ;;  %v2825_v61 = vadd.f32 %v16501_v32, %v2325_v16  ;;  %v9254_v41 = vld [vmem:[%s12213_s4 + $0x38] sm:$0xf0]  ;;  %v8327_v32 = vor.u32 %v11525_v35, %v8324_v27 }
 0x674   : > { %16499 = vst [vmem:[#allocation304_spill] sm:$0xff] %v14482_v2  ;;  %9130 = vmatmul.msk.bf16.gmra.mxu0 %vm1561_vm0, %v8319_v40  ;;  %v10797_v53 = vld [vmem:[%s12213_s4 + $0x3b8] sm:$0xf0] }
 0x675   : > { %16500 = vst [vmem:[#allocation446_spill] sm:$0xff] %v14484_v14  ;;  %6836 = vmatmul.bf16.gmra.mxu1 %v10788_v21  ;;  %v10795_v21 = vld [vmem:[%s12213_s4 + $0x3b0] sm:$0xf]  ;;  %v16504_v40 = vld [vmem:[#allocation312_spill] sm:$0xff] }
 0x676   : > { %10060 = vmatmul.msk.bf16.gmra.mxu2 %vm1561_vm0, %v9249_v15  ;;  %v11831_v15 = vld [vmem:[%s12213_s4 + $0x3b4] sm:$0xf]  ;;  %v10796_v2 = vor.u32 %v11832_v28, %v10795_v21 }
 0x677   : > { %11260 = vmatmul.msk.bf16.gmra.mxu3 %vm1561_vm0, %v10792_v13 }
 0x679   : > { %v4571_v20 = vpop.f32.mrf.mxu2  ;;  %v2327_v19 = vpop.f32.mrf.mxu0 }
 0x67a   : > { %v7296_v52 = vpop.f32.mrf.mxu3  ;;  %v14490_v51 = vadd.f32 %v4571_v20, %v2825_v61  ;;  %v6799_v62 = vpop.f32.mrf.mxu1  ;;  %v2827_v13 = vadd.f32 %v16504_v40, %v2327_v19  ;;  %v11834_v40 = vld [vmem:[%s12213_s4 + $0x3c4] sm:$0xf0] }
 0x67b   : > { %v14492_v63 = vadd.f32 %v7296_v52, %v6797_v29 }
 0x67c   : > { %16502 = vst [vmem:[#allocation308_spill] sm:$0xff] %v14490_v51  ;;  %v10800_v51 = vor.u32 %v11831_v15, %v10797_v53  ;;  %v8332_v15 = vld [vmem:[%s12213_s4 + $0x80] sm:$0xf0] }
 0x67d   : > { %16503 = vst [vmem:[#allocation447_spill] sm:$0xff] %v14492_v63  ;;  %v9257_v63 = vor.u32 %v11317_v6, %v9254_v41  ;;  %v11527_v41 = vld [vmem:[%s12213_s4 + $0x7c] sm:$0xf]  ;;  %v11319_v53 = vld [vmem:[%s12213_s4 + $0x44] sm:$0xf] }
 0x681   : > { %v4573_v14 = vpop.f32.mrf.mxu2  ;;  %v2330_v20 = vpop.f32.mrf.mxu0 }
 0x682   : > { %v7298_v16 = vpop.f32.mrf.mxu3  ;;  %v14503_v61 = vadd.f32 %v4573_v14, %v2827_v13  ;;  %v6802_v52 = vpop.f32.mrf.mxu1  ;;  %v16507_v14 = vld [vmem:[#allocation316_spill] sm:$0xff]  ;;  %v9262_v13 = vld [vmem:[%s12213_s4 + $0x48] sm:$0xf0] }
 0x683   : > { %v14505_v29 = vadd.f32 %v7298_v16, %v6799_v62  ;;  %v2830_v19 = vadd.f32 %v16507_v14, %v2330_v20  ;;  %v10805_v16 = vld [vmem:[%s12213_s4 + $0x3c8] sm:$0xf0]  ;;  %v8335_v14 = vor.u32 %v11527_v41, %v8332_v15 }
 0x684   : > { %16505 = vst [vmem:[#allocation312_spill] sm:$0xff] %v14503_v61  ;;  %9131 = vmatmul.msk.bf16.gmra.mxu0 %vm1561_vm0, %v8327_v32  ;;  %v16510_v32 = vld [vmem:[#allocation320_spill] sm:$0xff] }
 0x685   : > { %16506 = vst [vmem:[#allocation448_spill] sm:$0xff] %v14505_v29  ;;  %6841 = vmatmul.bf16.gmra.mxu1 %v10796_v2  ;;  %v10803_v2 = vld [vmem:[%s12213_s4 + $0x3c0] sm:$0xf] }
 0x686   : > { %10061 = vmatmul.msk.bf16.gmra.mxu2 %vm1561_vm0, %v9257_v63  ;;  %v11833_v63 = vld [vmem:[%s12213_s4 + $0x3c4] sm:$0xf]  ;;  %v10804_v61 = vor.u32 %v11834_v40, %v10803_v2 }
 0x687   : > { %11261 = vmatmul.msk.bf16.gmra.mxu3 %vm1561_vm0, %v10800_v51 }
 0x689   : > { %v4576_v62 = vpop.f32.mrf.mxu2  ;;  %v2332_v21 = vpop.f32.mrf.mxu0 }
 0x68a   : > { %v7301_v35 = vpop.f32.mrf.mxu3  ;;  %v14511_v27 = vadd.f32 %v4576_v62, %v2830_v19  ;;  %v6804_v28 = vpop.f32.mrf.mxu1  ;;  %v2832_v51 = vadd.f32 %v16510_v32, %v2332_v21  ;;  %v11836_v32 = vld [vmem:[%s12213_s4 + $0x3d4] sm:$0xf0] }
 0x68b   : > { %v14513_v6 = vadd.f32 %v7301_v35, %v6802_v52 }
 0x68c   : > { %16508 = vst [vmem:[#allocation316_spill] sm:$0xff] %v14511_v27  ;;  %v10808_v27 = vor.u32 %v11833_v63, %v10805_v16  ;;  %v8340_v63 = vld [vmem:[%s12213_s4 + $0x90] sm:$0xf0] }
 0x68d   : > { %16509 = vst [vmem:[#allocation449_spill] sm:$0xff] %v14513_v6  ;;  %v9265_v6 = vor.u32 %v11319_v53, %v9262_v13  ;;  %v11529_v13 = vld [vmem:[%s12213_s4 + $0x8c] sm:$0xf]  ;;  %v11321_v16 = vld [vmem:[%s12213_s4 + $0x54] sm:$0xf] }
 0x691   : > { %v4578_v29 = vpop.f32.mrf.mxu2  ;;  %v2335_v62 = vpop.f32.mrf.mxu0 }
 0x692   : > { %v7303_v20 = vpop.f32.mrf.mxu3  ;;  %v14524_v19 = vadd.f32 %v4578_v29, %v2832_v51  ;;  %v6807_v35 = vpop.f32.mrf.mxu1  ;;  %v16513_v29 = vld [vmem:[#allocation324_spill] sm:$0xff] }
 0x693   : > { %v14526_v52 = vadd.f32 %v7303_v20, %v6804_v28  ;;  %v2835_v21 = vadd.f32 %v16513_v29, %v2335_v62  ;;  %v9270_v51 = vld [vmem:[%s12213_s4 + $0x58] sm:$0xf0]  ;;  %v8343_v29 = vor.u32 %v11529_v13, %v8340_v63 }
 0x694   : > { %16511 = vst [vmem:[#allocation320_spill] sm:$0xff] %v14524_v19  ;;  %9132 = vmatmul.msk.bf16.gmra.mxu0 %vm1561_vm0, %v8335_v14  ;;  %v10813_v20 = vld [vmem:[%s12213_s4 + $0x3d8] sm:$0xf0] }
 0x695   : > { %16512 = vst [vmem:[#allocation450_spill] sm:$0xff] %v14526_v52  ;;  %6846 = vmatmul.bf16.gmra.mxu1 %v10804_v61  ;;  %v10811_v61 = vld [vmem:[%s12213_s4 + $0x3d0] sm:$0xf]  ;;  %v16516_v14 = vld [vmem:[#allocation328_spill] sm:$0xff] }
 0x696   : > { %10062 = vmatmul.msk.bf16.gmra.mxu2 %vm1561_vm0, %v9265_v6  ;;  %v11835_v6 = vld [vmem:[%s12213_s4 + $0x3d4] sm:$0xf]  ;;  %v10812_v19 = vor.u32 %v11836_v32, %v10811_v61 }
 0x697   : > { %11262 = vmatmul.msk.bf16.gmra.mxu3 %vm1561_vm0, %v10808_v27 }
 0x699   : > { %v4581_v28 = vpop.f32.mrf.mxu2  ;;  %v2337_v2 = vpop.f32.mrf.mxu0 }
 0x69a   : > { %v7306_v41 = vpop.f32.mrf.mxu3  ;;  %v14532_v15 = vadd.f32 %v4581_v28, %v2835_v21  ;;  %v6809_v40 = vpop.f32.mrf.mxu1  ;;  %v2837_v27 = vadd.f32 %v16516_v14, %v2337_v2  ;;  %v11838_v14 = vld [vmem:[%s12213_s4 + $0x3e4] sm:$0xf0] }
 0x69b   : > { %v14534_v53 = vadd.f32 %v7306_v41, %v6807_v35 }
 0x69c   : > { %16514 = vst [vmem:[#allocation324_spill] sm:$0xff] %v14532_v15  ;;  %v10816_v15 = vor.u32 %v11835_v6, %v10813_v20  ;;  %v8348_v6 = vld [vmem:[%s12213_s4 + $0xa0] sm:$0xf0] }
 0x69d   : > { %16515 = vst [vmem:[#allocation451_spill] sm:$0xff] %v14534_v53  ;;  %v9273_v53 = vor.u32 %v11321_v16, %v9270_v51  ;;  %v11531_v51 = vld [vmem:[%s12213_s4 + $0x9c] sm:$0xf]  ;;  %v11323_v20 = vld [vmem:[%s12213_s4 + $0x64] sm:$0xf] }
 0x6a1   : > { %v4583_v52 = vpop.f32.mrf.mxu2  ;;  %v2340_v28 = vpop.f32.mrf.mxu0 }
 0x6a2   : > { %v7308_v62 = vpop.f32.mrf.mxu3  ;;  %v14545_v21 = vadd.f32 %v4583_v52, %v2837_v27  ;;  %v6812_v41 = vpop.f32.mrf.mxu1  ;;  %v16519_v52 = vld [vmem:[#allocation332_spill] sm:$0xff]  ;;  %v9278_v27 = vld [vmem:[%s12213_s4 + $0x68] sm:$0xf0] }
 0x6a3   : > { %v14547_v35 = vadd.f32 %v7308_v62, %v6809_v40  ;;  %v2840_v2 = vadd.f32 %v16519_v52, %v2340_v28  ;;  %v10821_v62 = vld [vmem:[%s12213_s4 + $0x3e8] sm:$0xf0]  ;;  %v8351_v52 = vor.u32 %v11531_v51, %v8348_v6 }
 0x6a4   : > { %16517 = vst [vmem:[#allocation328_spill] sm:$0xff] %v14545_v21  ;;  %9133 = vmatmul.msk.bf16.gmra.mxu0 %vm1561_vm0, %v8343_v29  ;;  %v16522_v29 = vld [vmem:[#allocation336_spill] sm:$0xff] }
 0x6a5   : > { %16518 = vst [vmem:[#allocation452_spill] sm:$0xff] %v14547_v35  ;;  %6851 = vmatmul.bf16.gmra.mxu1 %v10812_v19  ;;  %v10819_v19 = vld [vmem:[%s12213_s4 + $0x3e0] sm:$0xf] }
 0x6a6   : > { %10063 = vmatmul.msk.bf16.gmra.mxu2 %vm1561_vm0, %v9273_v53  ;;  %v11837_v53 = vld [vmem:[%s12213_s4 + $0x3e4] sm:$0xf]  ;;  %v10820_v21 = vor.u32 %v11838_v14, %v10819_v19 }
 0x6a7   : > { %11263 = vmatmul.msk.bf16.gmra.mxu3 %vm1561_vm0, %v10816_v15 }
 0x6a9   : > { %v4586_v40 = vpop.f32.mrf.mxu2  ;;  %v2342_v61 = vpop.f32.mrf.mxu0 }
 0x6aa   : > { %v7311_v13 = vpop.f32.mrf.mxu3  ;;  %v14553_v63 = vadd.f32 %v4586_v40, %v2840_v2  ;;  %v6814_v32 = vpop.f32.mrf.mxu1  ;;  %v2842_v15 = vadd.f32 %v16522_v29, %v2342_v61  ;;  %v11840_v29 = vld [vmem:[%s12213_s4 + $0x3f4] sm:$0xf0] }
 0x6ab   : > { %v14555_v16 = vadd.f32 %v7311_v13, %v6812_v41 }
 0x6ac   : > { %16520 = vst [vmem:[#allocation332_spill] sm:$0xff] %v14553_v63  ;;  %v10824_v63 = vor.u32 %v11837_v53, %v10821_v62  ;;  %v8356_v53 = vld [vmem:[%s12213_s4 + $0xb0] sm:$0xf0] }
 0x6ad   : > { %16521 = vst [vmem:[#allocation453_spill] sm:$0xff] %v14555_v16  ;;  %v9281_v16 = vor.u32 %v11323_v20, %v9278_v27  ;;  %v11533_v27 = vld [vmem:[%s12213_s4 + $0xac] sm:$0xf]  ;;  %v11325_v62 = vld [vmem:[%s12213_s4 + $0x74] sm:$0xf] }
 0x6b1   : > { %v4588_v35 = vpop.f32.mrf.mxu2  ;;  %v2345_v40 = vpop.f32.mrf.mxu0 }
 0x6b2   : > { %v7313_v28 = vpop.f32.mrf.mxu3  ;;  %v14566_v2 = vadd.f32 %v4588_v35, %v2842_v15  ;;  %v6817_v13 = vpop.f32.mrf.mxu1  ;;  %v16525_v35 = vld [vmem:[#allocation340_spill] sm:$0xff]  ;;  %v11839_v15 = vld [vmem:[%s12213_s4 + $0x3f4] sm:$0xf] }
 0x6b3   : > { %v14568_v41 = vadd.f32 %v7313_v28, %v6814_v32  ;;  %v2845_v61 = vadd.f32 %v16525_v35, %v2345_v40  ;;  %v10829_v28 = vld [vmem:[%s12213_s4 + $0x3f8] sm:$0xf0] }
 0x6b4   : > { %16523 = vst [vmem:[#allocation336_spill] sm:$0xff] %v14566_v2  ;;  %9134 = vmatmul.msk.bf16.gmra.mxu0 %vm1561_vm0, %v8351_v52  ;;  %v10832_v2 = vor.u32 %v11839_v15, %v10829_v28 }
 0x6b5   : > { %16524 = vst [vmem:[#allocation454_spill] sm:$0xff] %v14568_v41  ;;  %6856 = vmatmul.bf16.gmra.mxu1 %v10820_v21  ;;  %v10827_v21 = vld [vmem:[%s12213_s4 + $0x3f0] sm:$0xf] }
 0x6b6   : > { %10064 = vmatmul.msk.bf16.gmra.mxu2 %vm1561_vm0, %v9281_v16  ;;  %v9286_v16 = vld [vmem:[%s12213_s4 + $0x78] sm:$0xf0] }
 0x6b7   : > { %11264 = vmatmul.msk.bf16.gmra.mxu3 %vm1561_vm0, %v10824_v63  ;;  %v16528_v63 = vld [vmem:[#allocation344_spill] sm:$0xff]  ;;  %v9289_v41 = vor.u32 %v11325_v62, %v9286_v16  ;;  %v16532_v62 = vld [vmem:[#allocation349_spill] sm:$0xff] }
 0x6b9   : > { %v4591_v32 = vpop.f32.mrf.mxu2  ;;  %v2347_v19 = vpop.f32.mrf.mxu0 }
 0x6ba   : > { %v7316_v51 = vpop.f32.mrf.mxu3  ;;  %v14574_v6 = vadd.f32 %v4591_v32, %v2845_v61  ;;  %v6819_v14 = vpop.f32.mrf.mxu1  ;;  %v2847_v52 = vadd.f32 %v16528_v63, %v2347_v19  ;;  %v8359_v61 = vor.u32 %v11533_v27, %v8356_v53  ;;  %v10828_v32 = vor.u32 %v11840_v29, %v10827_v21  ;;  %v16531_v19 = vld [vmem:[#allocation347_spill] sm:$0xff]  ;;  %v16533_v21 = vld [vmem:[#allocation5_spill] sm:$0xff]  ;;  %v11535_v63 = vld [vmem:[%s12213_s4 + $0xbc] sm:$0xf] }
 0x6bb   : > { %v14576_v20 = vadd.f32 %v7316_v51, %v6817_v13  ;;  %v4851_v29 = vadd.f32 %v16533_v21, %v16532_v62  ;;  %v16535_v62 = vld [vmem:[#allocation350_spill] sm:$0xff] }
 0x6bc   : > { %16526 = vst [vmem:[#allocation340_spill] sm:$0xff] %v14574_v6 }
 0x6bd   : > { %16527 = vst [vmem:[#allocation455_spill] sm:$0xff] %v14576_v20 }
 0x6c1   : > { %v4593_v40 = vpop.f32.mrf.mxu2  ;;  %v2350_v20 = vpop.f32.mrf.mxu0 }
 0x6c2   : > { %v7318_v35 = vpop.f32.mrf.mxu3  ;;  %v14587_v13 = vadd.f32 %v4593_v40, %v2847_v52  ;;  %v6822_v6 = vpop.f32.mrf.mxu1  ;;  %v8364_v52 = vld [vmem:[%s12213_s4 + $0xc0] sm:$0xf0] }
 0x6c3   : > { %v14589_v51 = vadd.f32 %v7318_v35, %v6819_v14  ;;  %v2850_v14 = vadd.f32 %v16531_v19, %v2350_v20  ;;  %v11327_v40 = vld [vmem:[%s12213_s4 + $0x84] sm:$0xf]  ;;  %v10835_v20 = vld [vmem:[%s12213_s4 + $0x400] sm:$0xf]  ;;  %v11842_v35 = vld [vmem:[%s12213_s4 + $0x404] sm:$0xf0] }
 0x6c4   : > { %16529 = vst [vmem:[#allocation344_spill] sm:$0xff] %v14587_v13  ;;  %9135 = vmatmul.msk.bf16.gmra.mxu0 %vm1561_vm0, %v8359_v61  ;;  %v9294_v61 = vld [vmem:[%s12213_s4 + $0x88] sm:$0xf0] }
 0x6c5   : > { %16530 = vst [vmem:[#allocation456_spill] sm:$0xff] %v14589_v51  ;;  %6861 = vmatmul.bf16.gmra.mxu1 %v10828_v32  ;;  %v11841_v32 = vld [vmem:[%s12213_s4 + $0x404] sm:$0xf]  ;;  %v10837_v19 = vld [vmem:[%s12213_s4 + $0x408] sm:$0xf0]  ;;  %v9297_v0 = vor.u32 %v11327_v40, %v9294_v61 }
 0x6c6   : > { %10065 = vmatmul.msk.bf16.gmra.mxu2 %vm1561_vm0, %v9289_v41  ;;  %v10840_v10 = vor.u32 %v11841_v32, %v10837_v19  ;;  %v16543_v61 = vld [vmem:[#allocation10_spill] sm:$0xff]  ;;  %v8372_v19 = vld [vmem:[%s12213_s4 + $0xd0] sm:$0xf0] }
 0x6c7   : > { %11265 = vmatmul.msk.bf16.gmra.mxu3 %vm1561_vm0, %v10832_v2 }
 0x6c9   : > { %v4596_v27 = vpop.f32.mrf.mxu2  ;;  %v2352_v41 = vpop.f32.mrf.mxu0 }
 0x6ca   : > { %v7321_v53 = vpop.f32.mrf.mxu3  ;;  %v14600_v16 = vadd.f32 %v4596_v27, %v2850_v14  ;;  %v6824_v28 = vpop.f32.mrf.mxu1  ;;  %v2852_v14 = vadd.f32 %v16535_v62, %v2352_v41  ;;  %v16536_v27 = vld [vmem:[#allocation352_spill] sm:$0xff]  ;;  %v11329_v62 = vld [vmem:[%s12213_s4 + $0x94] sm:$0xf] }
 0x6cb   : > { %v7322_v15 = vadd.f32 %v7321_v53, %v6822_v6  ;;  %v16537_v6 = vld [vmem:[#allocation6_spill] sm:$0xff]  ;;  %v16539_v41 = vld [vmem:[#allocation8_spill] sm:$0xff] }
 0x6cc   : > { %16534 = vst [vmem:[#allocation347_spill] sm:$0xff] %v14600_v16  ;;  %v4853_v53 = vadd.f32 %v16537_v6, %v16536_v27  ;;  %v10836_v16 = vor.u32 %v11842_v35, %v10835_v20  ;;  %v16542_v20 = vld [vmem:[#allocation354_spill] sm:$0xff]  ;;  %v10843_v27 = vld [vmem:[%s12213_s4 + $0x410] sm:$0xf]  ;;  %v11844_v6 = vld [vmem:[%s12213_s4 + $0x414] sm:$0xf0] }
 0x6cd   : > { %v7667_v2 = vadd.f32 %v7322_v15, %v4851_v29  ;;  %v8367_v15 = vor.u32 %v11535_v63, %v8364_v52  ;;  %v16541_v63 = vld [vmem:[#allocation9_spill] sm:$0xff] }
 0x6cf   : > { %7863 = vst.msk [vmem:[%s14605_s7 + $0x300] sm:$0xff] %vm1561_vm0, %v7667_v2 }
 0x6d1   : > { %v4598_v21 = vpop.f32.mrf.mxu2  ;;  %v2364_v43 = vpop.f32.mrf.mxu0 }
 0x6d2   : > { %v7323_v29 = vpop.f32.mrf.mxu3  ;;  %v14617_v51 = vadd.f32 %v4598_v21, %v2852_v14  ;;  %v6827_v2 = vpop.f32.mrf.mxu1  ;;  %v2365_v45 = vadd.f32 %v2364_v43, %v16538_v26  ;;  %v16540_v43 = vld [vmem:[#allocation353_spill] sm:$0xff]  ;;  %v9302_v14 = vld [vmem:[%s12213_s4 + $0x98] sm:$0xf0] }
 0x6d3   : > { %v7324_v13 = vadd.f32 %v7323_v29, %v6824_v28  ;;  %v10845_v21 = vld [vmem:[%s12213_s4 + $0x418] sm:$0xf0]  ;;  %v16544_v29 = vld [vmem:[#allocation11_spill] sm:$0xff] }
 0x6d4   : > { %9136 = vmatmul.msk.bf16.gmra.mxu0 %vm1561_vm0, %v8367_v15  ;;  %v4112_v28 = vadd.f32 %v16539_v41, %v2365_v45  ;;  %v11537_v45 = vld [vmem:[%s12213_s4 + $0xcc] sm:$0xf] }
 0x6d5   : > { %v7668_v60 = vadd.f32 %v7324_v13, %v4853_v53  ;;  %6866 = vmatmul.bf16.gmra.mxu1 %v10836_v16  ;;  %v4856_v16 = vadd.f32 %v16541_v63, %v16540_v43  ;;  %v11843_v53 = vld [vmem:[%s12213_s4 + $0x414] sm:$0xf]  ;;  %v10844_v43 = vor.u32 %v11844_v6, %v10843_v27 }
 0x6d6   : > { %10066 = vmatmul.msk.bf16.gmra.mxu2 %vm1561_vm0, %v9297_v0 }
 0x6d7   : > { %7864 = vst.msk [vmem:[%s14605_s7 + $0x308] sm:$0xff] %vm1561_vm0, %v7668_v60  ;;  %11266 = vmatmul.msk.bf16.gmra.mxu3 %vm1561_vm0, %v10840_v10 }
 0x6d9   : > { %v4610_v13 = vpop.f32.mrf.mxu2  ;;  %v2366_v40 = vpop.f32.mrf.mxu0 }
 0x6da   : > { %v7326_v26 = vpop.f32.mrf.mxu3  ;;  %v4611_v52 = vadd.f32 %v4610_v13, %v4112_v28  ;;  %v6829_v0 = vpop.f32.mrf.mxu1  ;;  %v2367_v32 = vadd.f32 %v2366_v40, %v16543_v61  ;;  %v9305_v40 = vor.u32 %v11329_v62, %v9302_v14  ;;  %v16546_v61 = vld [vmem:[#allocation13_spill] sm:$0xff]  ;;  %v16549_v62 = vld [vmem:[#allocation15_spill] sm:$0xff] }
 0x6db   : > { %v7327_v60 = vadd.f32 %v7326_v26, %v6827_v2  ;;  %v16545_v2 = vld [vmem:[#allocation12_spill] sm:$0xff]  ;;  %v8375_v26 = vor.u32 %v11537_v45, %v8372_v19  ;;  %v16548_v19 = vld [vmem:[#allocation355_spill] sm:$0xff] }
 0x6dc   : > { %v7571_v35 = vadd.f32 %v16542_v20, %v4611_v52  ;;  %v4114_v15 = vadd.f32 %v16544_v29, %v2367_v32  ;;  %v4858_v41 = vadd.f32 %v16545_v2, %v13680_v3  ;;  %v10848_v20 = vor.u32 %v11843_v53, %v10845_v21  ;;  %v16547_v3 = vld [vmem:[#allocation14_spill] sm:$0xff]  ;;  %v16550_v29 = vld [vmem:[#allocation356_spill] sm:$0xff] }
 0x6dd   : > { %v7669_v10 = vadd.f32 %v7327_v60, %v4856_v16  ;;  %v4861_v14 = vadd.f32 %v16549_v62, %v16548_v19 }
 0x6de   : > { %7767 = vst.msk [vmem:[%s14605_s7] sm:$0xff] %vm1561_vm0, %v7571_v35 }
 0x6df   : > { %7865 = vst.msk [vmem:[%s14605_s7 + $0x310] sm:$0xff] %vm1561_vm0, %v7669_v10 }
 0x6e1   : > { %v4612_v28 = vpop.f32.mrf.mxu2  ;;  %v2369_v52 = vpop.f32.mrf.mxu0 }
 0x6e2   : > { %v7328_v13 = vpop.f32.mrf.mxu3  ;;  %v4613_v63 = vadd.f32 %v4612_v28, %v4114_v15  ;;  %v6832_v60 = vpop.f32.mrf.mxu1  ;;  %v2370_v32 = vadd.f32 %v2369_v52, %v16546_v61  ;;  %v11846_v52 = vld [vmem:[%s12213_s4 + $0x424] sm:$0xf0] }
 0x6e3   : > { %v7329_v16 = vadd.f32 %v7328_v13, %v6829_v0  ;;  %v11539_v13 = vld [vmem:[%s12213_s4 + $0xdc] sm:$0xf] }
 0x6e4   : > { %v7572_v35 = vadd.f32 %v13682_v39, %v4613_v63  ;;  %9137 = vmatmul.msk.bf16.gmra.mxu0 %vm1561_vm0, %v8375_v26  ;;  %v4117_v39 = vadd.f32 %v16547_v3, %v2370_v32  ;;  %v8380_v26 = vld [vmem:[%s12213_s4 + $0xe0] sm:$0xf0]  ;;  %v9310_v63 = vld [vmem:[%s12213_s4 + $0xa8] sm:$0xf0] }
 0x6e5   : > { %v7670_v10 = vadd.f32 %v7329_v16, %v4858_v41  ;;  %6871 = vmatmul.bf16.gmra.mxu1 %v10844_v43  ;;  %v16551_v41 = vld [vmem:[#allocation16_spill] sm:$0xff]  ;;  %v11331_v43 = vld [vmem:[%s12213_s4 + $0xa4] sm:$0xf]  ;;  %v10851_v16 = vld [vmem:[%s12213_s4 + $0x420] sm:$0xf] }
 0x6e6   : > { %7768 = vst.msk [vmem:[%s14605_s7 + $0x8] sm:$0xff] %vm1561_vm0, %v7572_v35  ;;  %10067 = vmatmul.msk.bf16.gmra.mxu2 %vm1561_vm0, %v9305_v40  ;;  %v11845_v40 = vld [vmem:[%s12213_s4 + $0x424] sm:$0xf] }
 0x6e7   : > { %11267 = vmatmul.msk.bf16.gmra.mxu3 %vm1561_vm0, %v10848_v20  ;;  %7866 = vst.msk [vmem:[%s14605_s7 + $0x318] sm:$0xff] %vm1561_vm0, %v7670_v10  ;;  %v10853_v20 = vld [vmem:[%s12213_s4 + $0x428] sm:$0xf0] }
 0x6e8   : > { %v16553_v10 = vld [vmem:[#allocation18_spill] sm:$0xff] }
 0x6e9   : > { %v4615_v0 = vpop.f32.mrf.mxu2  ;;  %v2371_v53 = vpop.f32.mrf.mxu0  ;;  %v4863_v61 = vadd.f32 %v16553_v10, %v13699_v22  ;;  %v16555_v22 = vld [vmem:[#allocation20_spill] sm:$0xff] }
 0x6ea   : > { %v7331_v45 = vpop.f32.mrf.mxu3  ;;  %v4616_v27 = vadd.f32 %v4615_v0, %v4117_v39  ;;  %v6834_v21 = vpop.f32.mrf.mxu1  ;;  %v2372_v28 = vadd.f32 %v2371_v53, %v16551_v41  ;;  %v8383_v39 = vor.u32 %v11539_v13, %v8380_v26  ;;  %v10852_v0 = vor.u32 %v11846_v52, %v10851_v16  ;;  %v16557_v13 = vld [vmem:[#allocation21_spill] sm:$0xff] }
 0x6eb   : > { %v7332_v6 = vadd.f32 %v7331_v45, %v6832_v60  ;;  %v16552_v60 = vld [vmem:[#allocation17_spill] sm:$0xff] }
 0x6ec   : > { %v7573_v15 = vadd.f32 %v16550_v29, %v4616_v27  ;;  %v4119_v35 = vadd.f32 %v16552_v60, %v2372_v28  ;;  %v9313_v27 = vor.u32 %v11331_v43, %v9310_v63  ;;  %v16556_v28 = vld [vmem:[#allocation357_spill] sm:$0xff] }
 0x6ed   : > { %v7671_v2 = vadd.f32 %v7332_v6, %v4861_v14  ;;  %v10856_v6 = vor.u32 %v11845_v40, %v10853_v20  ;;  %v4866_v26 = vadd.f32 %v16557_v13, %v16556_v28  ;;  %v16558_v40 = vld [vmem:[#allocation358_spill] sm:$0xff] }
 0x6ee   : > { %7769 = vst.msk [vmem:[%s14605_s7 + $0x10] sm:$0xff] %vm1561_vm0, %v7573_v15  ;;  %v16554_v15 = vld [vmem:[#allocation19_spill] sm:$0xff] }
 0x6ef   : > { %7867 = vst.msk [vmem:[%s14605_s7 + $0x320] sm:$0xff] %vm1561_vm0, %v7671_v2 }
 0x6f1   : > { %v4617_v32 = vpop.f32.mrf.mxu2  ;;  %v2374_v62 = vpop.f32.mrf.mxu0 }
 0x6f2   : > { %v7333_v3 = vpop.f32.mrf.mxu3  ;;  %v4618_v45 = vadd.f32 %v4617_v32, %v4119_v35  ;;  %v6837_v14 = vpop.f32.mrf.mxu1  ;;  %v2375_v2 = vadd.f32 %v2374_v62, %v16554_v15  ;;  %v16559_v35 = vld [vmem:[#allocation22_spill] sm:$0xff]  ;;  %v8388_v32 = vld [vmem:[%s12213_s4 + $0xf0] sm:$0xf0]  ;;  %v10861_v62 = vld [vmem:[%s12213_s4 + $0x438] sm:$0xf0] }
 0x6f3   : > { %v7334_v19 = vadd.f32 %v7333_v3, %v6834_v21  ;;  %v11333_v3 = vld [vmem:[%s12213_s4 + $0xb4] sm:$0xf] }
 0x6f4   : > { %v7574_v53 = vadd.f32 %v13701_v47, %v4618_v45  ;;  %9138 = vmatmul.msk.bf16.gmra.mxu0 %vm1561_vm0, %v8383_v39  ;;  %v4122_v47 = vadd.f32 %v16555_v22, %v2375_v2  ;;  %v9318_v39 = vld [vmem:[%s12213_s4 + $0xb8] sm:$0xf0]  ;;  %v11848_v45 = vld [vmem:[%s12213_s4 + $0x434] sm:$0xf0] }
 0x6f5   : > { %v7672_v29 = vadd.f32 %v7334_v19, %v4863_v61  ;;  %6876 = vmatmul.bf16.gmra.mxu1 %v10852_v0  ;;  %v11541_v61 = vld [vmem:[%s12213_s4 + $0xec] sm:$0xf]  ;;  %v10859_v0 = vld [vmem:[%s12213_s4 + $0x430] sm:$0xf]  ;;  %v11847_v19 = vld [vmem:[%s12213_s4 + $0x434] sm:$0xf]  ;;  %v9321_v13 = vor.u32 %v11333_v3, %v9318_v39 }
 0x6f6   : > { %7770 = vst.msk [vmem:[%s14605_s7 + $0x18] sm:$0xff] %vm1561_vm0, %v7574_v53  ;;  %10068 = vmatmul.msk.bf16.gmra.mxu2 %vm1561_vm0, %v9313_v27  ;;  %v8391_v2 = vor.u32 %v11541_v61, %v8388_v32  ;;  %v10860_v22 = vor.u32 %v11848_v45, %v10859_v0  ;;  %v16566_v0 = vld [vmem:[#allocation360_spill] sm:$0xff] }
 0x6f7   : > { %11268 = vmatmul.msk.bf16.gmra.mxu3 %vm1561_vm0, %v10856_v6  ;;  %7868 = vst.msk [vmem:[%s14605_s7 + $0x328] sm:$0xff] %vm1561_vm0, %v7672_v29  ;;  %v16561_v6 = vld [vmem:[#allocation24_spill] sm:$0xff] }
 0x6f8   : > { %v4868_v53 = vadd.f32 %v16561_v6, %v13718_v42  ;;  %v16563_v42 = vld [vmem:[#allocation26_spill] sm:$0xff]  ;;  %v8396_v6 = vld [vmem:[%s12213_s4 + $0x100] sm:$0xf0] }
 0x6f9   : > { %v4620_v21 = vpop.f32.mrf.mxu2  ;;  %v2376_v16 = vpop.f32.mrf.mxu0 }
 0x6fa   : > { %v7336_v41 = vpop.f32.mrf.mxu3  ;;  %v4621_v43 = vadd.f32 %v4620_v21, %v4122_v47  ;;  %v6839_v52 = vpop.f32.mrf.mxu1  ;;  %v2377_v10 = vadd.f32 %v2376_v16, %v16559_v35  ;;  %v16562_v16 = vld [vmem:[#allocation25_spill] sm:$0xff]  ;;  %v16565_v35 = vld [vmem:[#allocation27_spill] sm:$0xff] }
 0x6fb   : > { %v7337_v63 = vadd.f32 %v7336_v41, %v6837_v14  ;;  %v16560_v14 = vld [vmem:[#allocation23_spill] sm:$0xff] }
 0x6fc   : > { %v7575_v20 = vadd.f32 %v16558_v40, %v4621_v43  ;;  %v4124_v27 = vadd.f32 %v16560_v14, %v2377_v10 }
 0x6fd   : > { %v7673_v60 = vadd.f32 %v7337_v63, %v4866_v26  ;;  %v10864_v26 = vor.u32 %v11847_v19, %v10861_v62  ;;  %v16567_v62 = vld [vmem:[#allocation28_spill] sm:$0xff] }
 0x6fe   : > { %7771 = vst.msk [vmem:[%s14605_s7 + $0x20] sm:$0xff] %vm1561_vm0, %v7575_v20 }
 0x6ff   : > { %7869 = vst.msk [vmem:[%s14605_s7 + $0x330] sm:$0xff] %vm1561_vm0, %v7673_v60  ;;  %v16564_v60 = vld [vmem:[#allocation359_spill] sm:$0xff] }
 0x700   : > { %v4871_v10 = vadd.f32 %v16565_v35, %v16564_v60 }
 0x701   : > { %v4622_v29 = vpop.f32.mrf.mxu2  ;;  %v2379_v41 = vpop.f32.mrf.mxu0 }
 0x702   : > { %v7338_v15 = vpop.f32.mrf.mxu3  ;;  %v4623_v47 = vadd.f32 %v4622_v29, %v4124_v27  ;;  %v6842_v28 = vpop.f32.mrf.mxu1  ;;  %v2380_v40 = vadd.f32 %v2379_v41, %v16562_v16  ;;  %v11543_v27 = vld [vmem:[%s12213_s4 + $0xfc] sm:$0xf]  ;;  %v9326_v29 = vld [vmem:[%s12213_s4 + $0xc8] sm:$0xf0] }
 0x703   : > { %v7339_v21 = vadd.f32 %v7338_v15, %v6839_v52  ;;  %v10867_v15 = vld [vmem:[%s12213_s4 + $0x440] sm:$0xf] }
 0x704   : > { %v7576_v43 = vadd.f32 %v13720_v56, %v4623_v47  ;;  %9139 = vmatmul.msk.bf16.gmra.mxu0 %vm1561_vm0, %v8391_v2  ;;  %v4127_v56 = vadd.f32 %v16563_v42, %v2380_v40  ;;  %v11850_v2 = vld [vmem:[%s12213_s4 + $0x444] sm:$0xf0]  ;;  %v10869_v47 = vld [vmem:[%s12213_s4 + $0x448] sm:$0xf0] }
 0x705   : > { %v7674_v63 = vadd.f32 %v7339_v21, %v4868_v53  ;;  %6881 = vmatmul.bf16.gmra.mxu1 %v10860_v22  ;;  %v11335_v53 = vld [vmem:[%s12213_s4 + $0xc4] sm:$0xf]  ;;  %v10868_v16 = vor.u32 %v11850_v2, %v10867_v15  ;;  %v16575_v2 = vld [vmem:[#allocation34_spill] sm:$0xff] }
 0x706   : > { %7772 = vst.msk [vmem:[%s14605_s7 + $0x28] sm:$0xff] %vm1561_vm0, %v7576_v43  ;;  %10069 = vmatmul.msk.bf16.gmra.mxu2 %vm1561_vm0, %v9321_v13  ;;  %v11849_v22 = vld [vmem:[%s12213_s4 + $0x444] sm:$0xf] }
 0x707   : > { %11269 = vmatmul.msk.bf16.gmra.mxu3 %vm1561_vm0, %v10864_v26  ;;  %7870 = vst.msk [vmem:[%s14605_s7 + $0x338] sm:$0xff] %vm1561_vm0, %v7674_v63  ;;  %v16568_v21 = vld [vmem:[#allocation29_spill] sm:$0xff]  ;;  %v8399_v63 = vor.u32 %v11543_v27, %v8396_v6  ;;  %v10872_v60 = vor.u32 %v11849_v22, %v10869_v47  ;;  %v11545_v47 = vld [vmem:[%s12213_s4 + $0x10c] sm:$0xf] }
 0x709   : > { %v4625_v52 = vpop.f32.mrf.mxu2  ;;  %v2381_v3 = vpop.f32.mrf.mxu0 }
 0x70a   : > { %v7341_v20 = vpop.f32.mrf.mxu3  ;;  %v4626_v61 = vadd.f32 %v4625_v52, %v4127_v56  ;;  %v6844_v39 = vpop.f32.mrf.mxu1  ;;  %v2382_v14 = vadd.f32 %v2381_v3, %v16567_v62 }
 0x70b   : > { %v7342_v32 = vadd.f32 %v7341_v20, %v6842_v28  ;;  %v16569_v28 = vld [vmem:[#allocation30_spill] sm:$0xff]  ;;  %v9329_v20 = vor.u32 %v11335_v53, %v9326_v29 }
 0x70c   : > { %v7577_v45 = vadd.f32 %v16566_v0, %v4626_v61  ;;  %v4129_v41 = vadd.f32 %v16568_v21, %v2382_v14  ;;  %v4873_v13 = vadd.f32 %v16569_v28, %v13737_v1  ;;  %v16570_v61 = vld [vmem:[#allocation31_spill] sm:$0xff]  ;;  %v16571_v1 = vld [vmem:[#allocation32_spill] sm:$0xff]  ;;  %v16572_v0 = vld [vmem:[#allocation361_spill] sm:$0xff] }
 0x70d   : > { %v7675_v19 = vadd.f32 %v7342_v32, %v4871_v10  ;;  %v16574_v53 = vld [vmem:[#allocation362_spill] sm:$0xff]  ;;  %v8404_v21 = vld [vmem:[%s12213_s4 + $0x110] sm:$0xf0]  ;;  %v9334_v28 = vld [vmem:[%s12213_s4 + $0xd8] sm:$0xf0] }
 0x70e   : > { %7773 = vst.msk [vmem:[%s14605_s7 + $0x30] sm:$0xff] %vm1561_vm0, %v7577_v45  ;;  %v16573_v45 = vld [vmem:[#allocation33_spill] sm:$0xff] }
 0x70f   : > { %7871 = vst.msk [vmem:[%s14605_s7 + $0x340] sm:$0xff] %vm1561_vm0, %v7675_v19  ;;  %v4876_v19 = vadd.f32 %v16573_v45, %v16572_v0  ;;  %v16578_v45 = vld [vmem:[#allocation37_spill] sm:$0xff] }
 0x711   : > { %v4627_v26 = vpop.f32.mrf.mxu2  ;;  %v2384_v56 = vpop.f32.mrf.mxu0 }
 0x712   : > { %v7343_v43 = vpop.f32.mrf.mxu3  ;;  %v4628_v40 = vadd.f32 %v4627_v26, %v4129_v41  ;;  %v6847_v52 = vpop.f32.mrf.mxu1  ;;  %v2385_v32 = vadd.f32 %v2384_v56, %v16570_v61  ;;  %v11337_v41 = vld [vmem:[%s12213_s4 + $0xd4] sm:$0xf]  ;;  %v11852_v26 = vld [vmem:[%s12213_s4 + $0x454] sm:$0xf0] }
 0x713   : > { %v7344_v42 = vadd.f32 %v7343_v43, %v6844_v39  ;;  %v11851_v43 = vld [vmem:[%s12213_s4 + $0x454] sm:$0xf] }
 0x714   : > { %v7578_v35 = vadd.f32 %v13739_v31, %v4628_v40  ;;  %9140 = vmatmul.msk.bf16.gmra.mxu0 %vm1561_vm0, %v8399_v63  ;;  %v4132_v31 = vadd.f32 %v16571_v1, %v2385_v32  ;;  %v10877_v63 = vld [vmem:[%s12213_s4 + $0x458] sm:$0xf0] }
 0x715   : > { %v7676_v10 = vadd.f32 %v7344_v42, %v4873_v13  ;;  %6886 = vmatmul.bf16.gmra.mxu1 %v10868_v16  ;;  %v10875_v13 = vld [vmem:[%s12213_s4 + $0x450] sm:$0xf]  ;;  %v16577_v42 = vld [vmem:[#allocation36_spill] sm:$0xff] }
 0x716   : > { %7774 = vst.msk [vmem:[%s14605_s7 + $0x38] sm:$0xff] %vm1561_vm0, %v7578_v35  ;;  %10070 = vmatmul.msk.bf16.gmra.mxu2 %vm1561_vm0, %v9329_v20  ;;  %v16576_v16 = vld [vmem:[#allocation35_spill] sm:$0xff]  ;;  %v4878_v56 = vadd.f32 %v16577_v42, %v13756_v30  ;;  %v10876_v35 = vor.u32 %v11852_v26, %v10875_v13  ;;  %v16579_v30 = vld [vmem:[#allocation38_spill] sm:$0xff]  ;;  %v11547_v26 = vld [vmem:[%s12213_s4 + $0x11c] sm:$0xf] }
 0x717   : > { %11270 = vmatmul.msk.bf16.gmra.mxu3 %vm1561_vm0, %v10872_v60  ;;  %7872 = vst.msk [vmem:[%s14605_s7 + $0x348] sm:$0xff] %vm1561_vm0, %v7676_v10  ;;  %v8407_v60 = vor.u32 %v11545_v47, %v8404_v21  ;;  %v16582_v47 = vld [vmem:[#allocation364_spill] sm:$0xff]  ;;  %v11854_v42 = vld [vmem:[%s12213_s4 + $0x464] sm:$0xf0] }
 0x719   : > { %v4630_v3 = vpop.f32.mrf.mxu2  ;;  %v2386_v27 = vpop.f32.mrf.mxu0 }
 0x71a   : > { %v7346_v39 = vpop.f32.mrf.mxu3  ;;  %v4631_v62 = vadd.f32 %v4630_v3, %v4132_v31  ;;  %v6849_v6 = vpop.f32.mrf.mxu1  ;;  %v2387_v22 = vadd.f32 %v2386_v27, %v16575_v2  ;;  %v9337_v31 = vor.u32 %v11337_v41, %v9334_v28  ;;  %v10880_v3 = vor.u32 %v11851_v43, %v10877_v63  ;;  %v16580_v27 = vld [vmem:[#allocation363_spill] sm:$0xff]  ;;  %v16583_v28 = vld [vmem:[#allocation40_spill] sm:$0xff]  ;;  %v8412_v43 = vld [vmem:[%s12213_s4 + $0x120] sm:$0xf0] }
 0x71b   : > { %v7347_v14 = vadd.f32 %v7346_v39, %v6847_v52  ;;  %v11339_v63 = vld [vmem:[%s12213_s4 + $0xe4] sm:$0xf] }
 0x71c   : > { %v7579_v29 = vadd.f32 %v16574_v53, %v4631_v62  ;;  %v4134_v40 = vadd.f32 %v16576_v16, %v2387_v22  ;;  %v9342_v16 = vld [vmem:[%s12213_s4 + $0xe8] sm:$0xf0] }
 0x71d   : > { %v7677_v15 = vadd.f32 %v7347_v14, %v4876_v19 }
 0x71e   : > { %7775 = vst.msk [vmem:[%s14605_s7 + $0x40] sm:$0xff] %vm1561_vm0, %v7579_v29 }
 0x71f   : > { %7873 = vst.msk [vmem:[%s14605_s7 + $0x350] sm:$0xff] %vm1561_vm0, %v7677_v15 }
 0x721   : > { %v4632_v52 = vpop.f32.mrf.mxu2  ;;  %v2389_v32 = vpop.f32.mrf.mxu0 }
 0x722   : > { %v7348_v20 = vpop.f32.mrf.mxu3  ;;  %v4633_v10 = vadd.f32 %v4632_v52, %v4134_v40  ;;  %v6852_v1 = vpop.f32.mrf.mxu1  ;;  %v2390_v19 = vadd.f32 %v2389_v32, %v16578_v45  ;;  %v10883_v40 = vld [vmem:[%s12213_s4 + $0x460] sm:$0xf]  ;;  %v10885_v52 = vld [vmem:[%s12213_s4 + $0x468] sm:$0xf0] }
 0x723   : > { %v7349_v61 = vadd.f32 %v7348_v20, %v6849_v6  ;;  %v16581_v6 = vld [vmem:[#allocation39_spill] sm:$0xff]  ;;  %v16584_v20 = vld [vmem:[#allocation41_spill] sm:$0xff] }
 0x724   : > { %v7580_v39 = vadd.f32 %v13758_v12, %v4633_v10  ;;  %9141 = vmatmul.msk.bf16.gmra.mxu0 %vm1561_vm0, %v8407_v60  ;;  %v4137_v12 = vadd.f32 %v16579_v30, %v2390_v19  ;;  %v4881_v53 = vadd.f32 %v16581_v6, %v16580_v27  ;;  %v9345_v19 = vor.u32 %v11339_v63, %v9342_v16  ;;  %v11549_v16 = vld [vmem:[%s12213_s4 + $0x12c] sm:$0xf] }
 0x725   : > { %v7678_v0 = vadd.f32 %v7349_v61, %v4878_v56  ;;  %6891 = vmatmul.bf16.gmra.mxu1 %v10876_v35  ;;  %v11853_v56 = vld [vmem:[%s12213_s4 + $0x464] sm:$0xf]  ;;  %v16585_v35 = vld [vmem:[#allocation42_spill] sm:$0xff] }
 0x726   : > { %7776 = vst.msk [vmem:[%s14605_s7 + $0x48] sm:$0xff] %vm1561_vm0, %v7580_v39  ;;  %10071 = vmatmul.msk.bf16.gmra.mxu2 %vm1561_vm0, %v9337_v31  ;;  %v4883_v10 = vadd.f32 %v16585_v35, %v13775_v5  ;;  %v10884_v31 = vor.u32 %v11854_v42, %v10883_v40  ;;  %v10888_v30 = vor.u32 %v11853_v56, %v10885_v52  ;;  %v16587_v5 = vld [vmem:[#allocation44_spill] sm:$0xff]  ;;  %v8420_v40 = vld [vmem:[%s12213_s4 + $0x130] sm:$0xf0]  ;;  %v10891_v52 = vld [vmem:[%s12213_s4 + $0x470] sm:$0xf] }
 0x727   : > { %11271 = vmatmul.msk.bf16.gmra.mxu3 %vm1561_vm0, %v10880_v3  ;;  %7874 = vst.msk [vmem:[%s14605_s7 + $0x358] sm:$0xff] %vm1561_vm0, %v7678_v0  ;;  %v11341_v42 = vld [vmem:[%s12213_s4 + $0xf4] sm:$0xf]  ;;  %v9350_v56 = vld [vmem:[%s12213_s4 + $0xf8] sm:$0xf0] }
 0x728   : > { %v10893_v35 = vld [vmem:[%s12213_s4 + $0x478] sm:$0xf0] }
 0x729   : > { %v4635_v62 = vpop.f32.mrf.mxu2  ;;  %v2391_v2 = vpop.f32.mrf.mxu0 }
 0x72a   : > { %v7351_v14 = vpop.f32.mrf.mxu3  ;;  %v4636_v29 = vadd.f32 %v4635_v62, %v4137_v12  ;;  %v6854_v22 = vpop.f32.mrf.mxu1  ;;  %v2392_v13 = vadd.f32 %v2391_v2, %v16583_v28  ;;  %v16590_v28 = vld [vmem:[#allocation366_spill] sm:$0xff] }
 0x72b   : > { %v7352_v15 = vadd.f32 %v7351_v14, %v6852_v1  ;;  %v8415_v1 = vor.u32 %v11547_v26, %v8412_v43  ;;  %v16586_v14 = vld [vmem:[#allocation43_spill] sm:$0xff]  ;;  %v16591_v43 = vld [vmem:[#allocation46_spill] sm:$0xff] }
 0x72c   : > { %v7581_v21 = vadd.f32 %v16582_v47, %v4636_v29  ;;  %v4139_v60 = vadd.f32 %v16584_v20, %v2392_v13  ;;  %v16588_v29 = vld [vmem:[#allocation365_spill] sm:$0xff]  ;;  %v11856_v20 = vld [vmem:[%s12213_s4 + $0x474] sm:$0xf0] }
 0x72d   : > { %v7679_v41 = vadd.f32 %v7352_v15, %v4881_v53  ;;  %v16589_v15 = vld [vmem:[#allocation45_spill] sm:$0xff] }
 0x72e   : > { %7777 = vst.msk [vmem:[%s14605_s7 + $0x50] sm:$0xff] %vm1561_vm0, %v7581_v21  ;;  %v4886_v2 = vadd.f32 %v16589_v15, %v16588_v29  ;;  %v16596_v15 = vld [vmem:[#allocation367_spill] sm:$0xff] }
 0x72f   : > { %7875 = vst.msk [vmem:[%s14605_s7 + $0x360] sm:$0xff] %vm1561_vm0, %v7679_v41 }
 0x731   : > { %v4637_v61 = vpop.f32.mrf.mxu2  ;;  %v2394_v0 = vpop.f32.mrf.mxu0 }
 0x732   : > { %v7353_v32 = vpop.f32.mrf.mxu3  ;;  %v4638_v3 = vadd.f32 %v4637_v61, %v4139_v60  ;;  %v6857_v45 = vpop.f32.mrf.mxu1  ;;  %v2395_v27 = vadd.f32 %v2394_v0, %v16586_v14  ;;  %v11855_v60 = vld [vmem:[%s12213_s4 + $0x474] sm:$0xf]  ;;  %v10892_v0 = vor.u32 %v11856_v20, %v10891_v52  ;;  %v9358_v52 = vld [vmem:[%s12213_s4 + $0x108] sm:$0xf0]  ;;  %v10899_v20 = vld [vmem:[%s12213_s4 + $0x480] sm:$0xf] }
 0x733   : > { %v7354_v39 = vadd.f32 %v7353_v32, %v6854_v22  ;;  %v16593_v32 = vld [vmem:[#allocation48_spill] sm:$0xff]  ;;  %v10896_v14 = vor.u32 %v11855_v60, %v10893_v35  ;;  %v11858_v60 = vld [vmem:[%s12213_s4 + $0x484] sm:$0xf0]  ;;  %v11857_v35 = vld [vmem:[%s12213_s4 + $0x484] sm:$0xf] }
 0x734   : > { %v7582_v12 = vadd.f32 %v13777_v33, %v4638_v3  ;;  %9142 = vmatmul.msk.bf16.gmra.mxu0 %vm1561_vm0, %v8415_v1  ;;  %v4142_v33 = vadd.f32 %v16587_v5, %v2395_v27  ;;  %v4888_v1 = vadd.f32 %v16593_v32, %v13794_v50  ;;  %v16595_v50 = vld [vmem:[#allocation50_spill] sm:$0xff] }
 0x735   : > { %v7680_v62 = vadd.f32 %v7354_v39, %v4883_v10  ;;  %6896 = vmatmul.bf16.gmra.mxu1 %v10884_v31  ;;  %v16592_v10 = vld [vmem:[#allocation47_spill] sm:$0xff]  ;;  %v8423_v39 = vor.u32 %v11549_v16, %v8420_v40  ;;  %v11551_v40 = vld [vmem:[%s12213_s4 + $0x13c] sm:$0xf] }
 0x736   : > { %7778 = vst.msk [vmem:[%s14605_s7 + $0x58] sm:$0xff] %vm1561_vm0, %v7582_v12  ;;  %10072 = vmatmul.msk.bf16.gmra.mxu2 %vm1561_vm0, %v9345_v19 }
 0x737   : > { %11272 = vmatmul.msk.bf16.gmra.mxu3 %vm1561_vm0, %v10888_v30  ;;  %7876 = vst.msk [vmem:[%s14605_s7 + $0x368] sm:$0xff] %vm1561_vm0, %v7680_v62  ;;  %v9353_v62 = vor.u32 %v11341_v42, %v9350_v56  ;;  %v8428_v42 = vld [vmem:[%s12213_s4 + $0x140] sm:$0xf0] }
 0x738   : > { %v11343_v56 = vld [vmem:[%s12213_s4 + $0x104] sm:$0xf] }
 0x739   : > { %v4640_v6 = vpop.f32.mrf.mxu2  ;;  %v2396_v21 = vpop.f32.mrf.mxu0 }
 0x73a   : > { %v7356_v53 = vpop.f32.mrf.mxu3  ;;  %v4641_v22 = vadd.f32 %v4640_v6, %v4142_v33  ;;  %v6859_v41 = vpop.f32.mrf.mxu1  ;;  %v2397_v63 = vadd.f32 %v2396_v21, %v16591_v43  ;;  %v16594_v33 = vld [vmem:[#allocation49_spill] sm:$0xff] }
 0x73b   : > { %v7357_v47 = vadd.f32 %v7356_v53, %v6857_v45 }
 0x73c   : > { %v7583_v13 = vadd.f32 %v16590_v28, %v4641_v22  ;;  %v4144_v61 = vadd.f32 %v16592_v10, %v2397_v63  ;;  %v16599_v63 = vld [vmem:[#allocation52_spill] sm:$0xff]  ;;  %v10901_v10 = vld [vmem:[%s12213_s4 + $0x488] sm:$0xf0] }
 0x73d   : > { %v7681_v26 = vadd.f32 %v7357_v47, %v4886_v2  ;;  %v16597_v2 = vld [vmem:[#allocation51_spill] sm:$0xff] }
 0x73e   : > { %7779 = vst.msk [vmem:[%s14605_s7 + $0x60] sm:$0xff] %vm1561_vm0, %v7583_v13  ;;  %v4891_v22 = vadd.f32 %v16597_v2, %v16596_v15  ;;  %v16598_v13 = vld [vmem:[#allocation368_spill] sm:$0xff]  ;;  %v16605_v15 = vld [vmem:[#allocation57_spill] sm:$0xff] }
 0x73f   : > { %7877 = vst.msk [vmem:[%s14605_s7 + $0x370] sm:$0xff] %vm1561_vm0, %v7681_v26 }
 0x741   : > { %v4642_v31 = vpop.f32.mrf.mxu2  ;;  %v2399_v30 = vpop.f32.mrf.mxu0 }
 0x742   : > { %v7358_v3 = vpop.f32.mrf.mxu3  ;;  %v4643_v45 = vadd.f32 %v4642_v31, %v4144_v61  ;;  %v6862_v12 = vpop.f32.mrf.mxu1  ;;  %v2400_v6 = vadd.f32 %v2399_v30, %v16594_v33  ;;  %v16600_v61 = vld [vmem:[#allocation53_spill] sm:$0xff] }
 0x743   : > { %v7359_v19 = vadd.f32 %v7358_v3, %v6859_v41 }
 0x744   : > { %v7584_v27 = vadd.f32 %v13796_v36, %v4643_v45  ;;  %9143 = vmatmul.msk.bf16.gmra.mxu0 %vm1561_vm0, %v8423_v39  ;;  %v4147_v36 = vadd.f32 %v16595_v50, %v2400_v6  ;;  %v10900_v45 = vor.u32 %v11858_v60, %v10899_v20  ;;  %v16602_v6 = vld [vmem:[#allocation55_spill] sm:$0xff]  ;;  %v11860_v20 = vld [vmem:[%s12213_s4 + $0x494] sm:$0xf0] }
 0x745   : > { %v7682_v5 = vadd.f32 %v7359_v19, %v4888_v1  ;;  %6901 = vmatmul.bf16.gmra.mxu1 %v10892_v0  ;;  %v16601_v1 = vld [vmem:[#allocation54_spill] sm:$0xff]  ;;  %v8431_v0 = vor.u32 %v11551_v40, %v8428_v42  ;;  %v8436_v40 = vld [vmem:[%s12213_s4 + $0x150] sm:$0xf0] }
 0x746   : > { %7780 = vst.msk [vmem:[%s14605_s7 + $0x68] sm:$0xff] %vm1561_vm0, %v7584_v27  ;;  %10073 = vmatmul.msk.bf16.gmra.mxu2 %vm1561_vm0, %v9353_v62  ;;  %v4893_v31 = vadd.f32 %v16601_v1, %v13813_v7  ;;  %v10904_v27 = vor.u32 %v11857_v35, %v10901_v10  ;;  %v16603_v7 = vld [vmem:[#allocation56_spill] sm:$0xff]  ;;  %v11345_v42 = vld [vmem:[%s12213_s4 + $0x114] sm:$0xf] }
 0x747   : > { %11273 = vmatmul.msk.bf16.gmra.mxu3 %vm1561_vm0, %v10896_v14  ;;  %7878 = vst.msk [vmem:[%s14605_s7 + $0x378] sm:$0xff] %vm1561_vm0, %v7682_v5  ;;  %v9361_v14 = vor.u32 %v11343_v56, %v9358_v52  ;;  %v9366_v56 = vld [vmem:[%s12213_s4 + $0x118] sm:$0xf0]  ;;  %v10907_v52 = vld [vmem:[%s12213_s4 + $0x490] sm:$0xf] }
 0x748   : > { %v11859_v60 = vld [vmem:[%s12213_s4 + $0x494] sm:$0xf]  ;;  %v10909_v35 = vld [vmem:[%s12213_s4 + $0x498] sm:$0xf0] }
 0x749   : > { %v4645_v53 = vpop.f32.mrf.mxu2  ;;  %v2401_v41 = vpop.f32.mrf.mxu0  ;;  %v16608_v10 = vld [vmem:[#allocation59_spill] sm:$0xff] }
 0x74a   : > { %v7361_v29 = vpop.f32.mrf.mxu3  ;;  %v4646_v47 = vadd.f32 %v4645_v53, %v4147_v36  ;;  %v6864_v28 = vpop.f32.mrf.mxu1  ;;  %v2402_v16 = vadd.f32 %v2401_v41, %v16599_v63 }
 0x74b   : > { %v7362_v21 = vadd.f32 %v7361_v29, %v6862_v12  ;;  %v16604_v29 = vld [vmem:[#allocation369_spill] sm:$0xff] }
 0x74c   : > { %v7585_v26 = vadd.f32 %v16598_v13, %v4646_v47  ;;  %v4149_v32 = vadd.f32 %v16600_v61, %v2402_v16  ;;  %v4896_v2 = vadd.f32 %v16605_v15, %v16604_v29  ;;  %v11553_v16 = vld [vmem:[%s12213_s4 + $0x14c] sm:$0xf] }
 0x74d   : > { %v7683_v43 = vadd.f32 %v7362_v21, %v4891_v22 }
 0x74e   : > { %7781 = vst.msk [vmem:[%s14605_s7 + $0x70] sm:$0xff] %vm1561_vm0, %v7585_v26 }
 0x74f   : > { %7879 = vst.msk [vmem:[%s14605_s7 + $0x380] sm:$0xff] %vm1561_vm0, %v7683_v43  ;;  %v16607_v43 = vld [vmem:[#allocation58_spill] sm:$0xff] }
 0x751   : > { %v4647_v3 = vpop.f32.mrf.mxu2  ;;  %v2404_v12 = vpop.f32.mrf.mxu0 }
 0x752   : > { %v7363_v39 = vpop.f32.mrf.mxu3  ;;  %v4648_v19 = vadd.f32 %v4647_v3, %v4149_v32  ;;  %v6867_v62 = vpop.f32.mrf.mxu1  ;;  %v2405_v50 = vadd.f32 %v2404_v12, %v16602_v6  ;;  %v16609_v32 = vld [vmem:[#allocation60_spill] sm:$0xff] }
 0x753   : > { %v7364_v30 = vadd.f32 %v7363_v39, %v6864_v28  ;;  %v16606_v28 = vld [vmem:[#allocation370_spill] sm:$0xff]  ;;  %v4898_v1 = vadd.f32 %v16609_v32, %v13832_v9  ;;  %v8439_v39 = vor.u32 %v11553_v16, %v8436_v40  ;;  %v10915_v40 = vld [vmem:[%s12213_s4 + $0x4a0] sm:$0xf] }
 0x754   : > { %v7586_v5 = vadd.f32 %v13815_v57, %v4648_v19  ;;  %9144 = vmatmul.msk.bf16.gmra.mxu0 %vm1561_vm0, %v8431_v0  ;;  %v4152_v57 = vadd.f32 %v16603_v7, %v2405_v50  ;;  %v10908_v0 = vor.u32 %v11860_v20, %v10907_v52  ;;  %v16611_v9 = vld [vmem:[#allocation62_spill] sm:$0xff]  ;;  %v16616_v20 = vld [vmem:[#allocation65_spill] sm:$0xff] }
 0x755   : > { %v7684_v33 = vadd.f32 %v7364_v30, %v4893_v31  ;;  %6906 = vmatmul.bf16.gmra.mxu1 %v10900_v45  ;;  %v9374_v16 = vld [vmem:[%s12213_s4 + $0x128] sm:$0xf0] }
 0x756   : > { %7782 = vst.msk [vmem:[%s14605_s7 + $0x78] sm:$0xff] %vm1561_vm0, %v7586_v5  ;;  %10074 = vmatmul.msk.bf16.gmra.mxu2 %vm1561_vm0, %v9361_v14  ;;  %v10912_v14 = vor.u32 %v11859_v60, %v10909_v35  ;;  %v10917_v52 = vld [vmem:[%s12213_s4 + $0x4a8] sm:$0xf0] }
 0x757   : > { %11274 = vmatmul.msk.bf16.gmra.mxu3 %vm1561_vm0, %v10904_v27  ;;  %7880 = vst.msk [vmem:[%s14605_s7 + $0x388] sm:$0xff] %vm1561_vm0, %v7684_v33  ;;  %v16610_v33 = vld [vmem:[#allocation61_spill] sm:$0xff]  ;;  %v16617_v35 = vld [vmem:[#allocation66_spill] sm:$0xff] }
 0x759   : > { %v4650_v36 = vpop.f32.mrf.mxu2  ;;  %v2406_v21 = vpop.f32.mrf.mxu0 }
 0x75a   : > { %v7366_v53 = vpop.f32.mrf.mxu3  ;;  %v4651_v22 = vadd.f32 %v4650_v36, %v4152_v57  ;;  %v6869_v41 = vpop.f32.mrf.mxu1  ;;  %v2407_v63 = vadd.f32 %v2406_v21, %v16607_v43  ;;  %v16612_v57 = vld [vmem:[#allocation371_spill] sm:$0xff]  ;;  %v8444_v43 = vld [vmem:[%s12213_s4 + $0x160] sm:$0xf0] }
 0x75b   : > { %v7367_v47 = vadd.f32 %v7366_v53, %v6867_v62  ;;  %v9369_v62 = vor.u32 %v11345_v42, %v9366_v56  ;;  %v16613_v36 = vld [vmem:[#allocation63_spill] sm:$0xff]  ;;  %v11862_v42 = vld [vmem:[%s12213_s4 + $0x4a4] sm:$0xf0]  ;;  %v11861_v56 = vld [vmem:[%s12213_s4 + $0x4a4] sm:$0xf] }
 0x75c   : > { %v7587_v13 = vadd.f32 %v16606_v28, %v4651_v22  ;;  %v4154_v61 = vadd.f32 %v16608_v10, %v2407_v63  ;;  %v4901_v53 = vadd.f32 %v16613_v36, %v16612_v57  ;;  %v16615_v28 = vld [vmem:[#allocation64_spill] sm:$0xff]  ;;  %v11347_v63 = vld [vmem:[%s12213_s4 + $0x124] sm:$0xf]  ;;  %v4903_v10 = vadd.f32 %v16617_v35, %v13851_v34 }
 0x75d   : > { %v7685_v26 = vadd.f32 %v7367_v47, %v4896_v2  ;;  %v16614_v47 = vld [vmem:[#allocation372_spill] sm:$0xff] }
 0x75e   : > { %7783 = vst.msk [vmem:[%s14605_s7 + $0x80] sm:$0xff] %vm1561_vm0, %v7587_v13  ;;  %v16619_v34 = vld [vmem:[#allocation68_spill] sm:$0xff] }
 0x75f   : > { %7881 = vst.msk [vmem:[%s14605_s7 + $0x390] sm:$0xff] %vm1561_vm0, %v7685_v26  ;;  %v11555_v26 = vld [vmem:[%s12213_s4 + $0x15c] sm:$0xf] }
 0x761   : > { %v4652_v31 = vpop.f32.mrf.mxu2  ;;  %v2409_v30 = vpop.f32.mrf.mxu0 }
 0x762   : > { %v7368_v3 = vpop.f32.mrf.mxu3  ;;  %v4653_v45 = vadd.f32 %v4652_v31, %v4154_v61  ;;  %v6872_v12 = vpop.f32.mrf.mxu1  ;;  %v2410_v6 = vadd.f32 %v2409_v30, %v16610_v33  ;;  %v10916_v31 = vor.u32 %v11862_v42, %v10915_v40  ;;  %v10920_v30 = vor.u32 %v11861_v56, %v10917_v52  ;;  %v16625_v42 = vld [vmem:[#allocation72_spill] sm:$0xff] }
 0x763   : > { %v7369_v19 = vadd.f32 %v7368_v3, %v6869_v41  ;;  %v4908_v56 = vadd.f32 %v16625_v42, %v13870_v49  ;;  %v16627_v49 = vld [vmem:[#allocation74_spill] sm:$0xff] }
 0x764   : > { %v7588_v27 = vadd.f32 %v13834_v24, %v4653_v45  ;;  %9145 = vmatmul.msk.bf16.gmra.mxu0 %vm1561_vm0, %v8439_v39  ;;  %v4157_v24 = vadd.f32 %v16611_v9, %v2410_v6  ;;  %v16620_v6 = vld [vmem:[#allocation373_spill] sm:$0xff] }
 0x765   : > { %v7686_v5 = vadd.f32 %v7369_v19, %v4898_v1  ;;  %6911 = vmatmul.bf16.gmra.mxu1 %v10908_v0  ;;  %v8447_v1 = vor.u32 %v11555_v26, %v8444_v43  ;;  %v9377_v19 = vor.u32 %v11347_v63, %v9374_v16  ;;  %v16621_v9 = vld [vmem:[#allocation69_spill] sm:$0xff]  ;;  %v11864_v26 = vld [vmem:[%s12213_s4 + $0x4b4] sm:$0xf0]  ;;  %v11863_v43 = vld [vmem:[%s12213_s4 + $0x4b4] sm:$0xf] }
 0x766   : > { %7784 = vst.msk [vmem:[%s14605_s7 + $0x88] sm:$0xff] %vm1561_vm0, %v7588_v27  ;;  %10075 = vmatmul.msk.bf16.gmra.mxu2 %vm1561_vm0, %v9369_v62  ;;  %v10925_v63 = vld [vmem:[%s12213_s4 + $0x4b8] sm:$0xf0]  ;;  %v16624_v16 = vld [vmem:[#allocation71_spill] sm:$0xff] }
 0x767   : > { %11275 = vmatmul.msk.bf16.gmra.mxu3 %vm1561_vm0, %v10912_v14  ;;  %7882 = vst.msk [vmem:[%s14605_s7 + $0x398] sm:$0xff] %vm1561_vm0, %v7686_v5  ;;  %v16618_v14 = vld [vmem:[#allocation67_spill] sm:$0xff] }
 0x769   : > { %v4655_v50 = vpop.f32.mrf.mxu2  ;;  %v2411_v2 = vpop.f32.mrf.mxu0 }
 0x76a   : > { %v7371_v7 = vpop.f32.mrf.mxu3  ;;  %v4656_v29 = vadd.f32 %v4655_v50, %v4157_v24  ;;  %v6874_v22 = vpop.f32.mrf.mxu1  ;;  %v2412_v13 = vadd.f32 %v2411_v2, %v16615_v28  ;;  %v4906_v24 = vadd.f32 %v16621_v9, %v16620_v6  ;;  %v16623_v2 = vld [vmem:[#allocation70_spill] sm:$0xff]  ;;  %v9382_v28 = vld [vmem:[%s12213_s4 + $0x138] sm:$0xf0] }
 0x76b   : > { %v7372_v15 = vadd.f32 %v7371_v7, %v6872_v12  ;;  %v16630_v6 = vld [vmem:[#allocation376_spill] sm:$0xff] }
 0x76c   : > { %v7589_v21 = vadd.f32 %v16614_v47, %v4656_v29  ;;  %v4159_v60 = vadd.f32 %v16616_v20, %v2412_v13  ;;  %v11557_v47 = vld [vmem:[%s12213_s4 + $0x16c] sm:$0xf]  ;;  %v10923_v13 = vld [vmem:[%s12213_s4 + $0x4b0] sm:$0xf] }
 0x76d   : > { %v7687_v41 = vadd.f32 %v7372_v15, %v4901_v53  ;;  %v16622_v53 = vld [vmem:[#allocation374_spill] sm:$0xff]  ;;  %v10924_v35 = vor.u32 %v11864_v26, %v10923_v13 }
 0x76e   : > { %7785 = vst.msk [vmem:[%s14605_s7 + $0x90] sm:$0xff] %vm1561_vm0, %v7589_v21  ;;  %v8452_v21 = vld [vmem:[%s12213_s4 + $0x170] sm:$0xf0] }
 0x76f   : > { %7883 = vst.msk [vmem:[%s14605_s7 + $0x3a0] sm:$0xff] %vm1561_vm0, %v7687_v41  ;;  %v11349_v41 = vld [vmem:[%s12213_s4 + $0x134] sm:$0xf] }
 0x771   : > { %v4657_v61 = vpop.f32.mrf.mxu2  ;;  %v2414_v0 = vpop.f32.mrf.mxu0 }
 0x772   : > { %v7373_v32 = vpop.f32.mrf.mxu3  ;;  %v4658_v3 = vadd.f32 %v4657_v61, %v4159_v60  ;;  %v6877_v45 = vpop.f32.mrf.mxu1  ;;  %v2415_v27 = vadd.f32 %v2414_v0, %v16618_v14  ;;  %v8455_v60 = vor.u32 %v11557_v47, %v8452_v21  ;;  %v16629_v14 = vld [vmem:[#allocation75_spill] sm:$0xff]  ;;  %v10933_v47 = vld [vmem:[%s12213_s4 + $0x4c8] sm:$0xf0]  ;;  %v16632_v21 = vld [vmem:[#allocation77_spill] sm:$0xff] }
 0x773   : > { %v7374_v39 = vadd.f32 %v7373_v32, %v6874_v22 }
 0x774   : > { %v7590_v12 = vadd.f32 %v13853_v54, %v4658_v3  ;;  %9146 = vmatmul.msk.bf16.gmra.mxu0 %vm1561_vm0, %v8447_v1  ;;  %v4162_v54 = vadd.f32 %v16619_v34, %v2415_v27  ;;  %v10928_v3 = vor.u32 %v11863_v43, %v10925_v63 }
 0x775   : > { %v7688_v62 = vadd.f32 %v7374_v39, %v4903_v10  ;;  %6916 = vmatmul.bf16.gmra.mxu1 %v10916_v31  ;;  %v9385_v31 = vor.u32 %v11349_v41, %v9382_v28  ;;  %v16633_v28 = vld [vmem:[#allocation78_spill] sm:$0xff] }
 0x776   : > { %7786 = vst.msk [vmem:[%s14605_s7 + $0x98] sm:$0xff] %vm1561_vm0, %v7590_v12  ;;  %10076 = vmatmul.msk.bf16.gmra.mxu2 %vm1561_vm0, %v9377_v19  ;;  %v4913_v13 = vadd.f32 %v16633_v28, %v13889_v37  ;;  %v16635_v37 = vld [vmem:[#allocation80_spill] sm:$0xff] }
 0x777   : > { %11276 = vmatmul.msk.bf16.gmra.mxu3 %vm1561_vm0, %v10920_v30  ;;  %7884 = vst.msk [vmem:[%s14605_s7 + $0x3a8] sm:$0xff] %vm1561_vm0, %v7688_v62  ;;  %v16628_v62 = vld [vmem:[#allocation375_spill] sm:$0xff] }
 0x778   : > { %v4911_v27 = vadd.f32 %v16629_v14, %v16628_v62  ;;  %v16639_v14 = vld [vmem:[#allocation82_spill] sm:$0xff] }
 0x779   : > { %v4660_v5 = vpop.f32.mrf.mxu2  ;;  %v2416_v57 = vpop.f32.mrf.mxu0 }
 0x77a   : > { %v7376_v33 = vpop.f32.mrf.mxu3  ;;  %v4661_v50 = vadd.f32 %v4660_v5, %v4162_v54  ;;  %v6879_v36 = vpop.f32.mrf.mxu1  ;;  %v2417_v22 = vadd.f32 %v2416_v57, %v16623_v2  ;;  %v11559_v57 = vld [vmem:[%s12213_s4 + $0x17c] sm:$0xf]  ;;  %v11866_v2 = vld [vmem:[%s12213_s4 + $0x4c4] sm:$0xf0] }
 0x77b   : > { %v7377_v7 = vadd.f32 %v7376_v33, %v6877_v45  ;;  %v16626_v45 = vld [vmem:[#allocation73_spill] sm:$0xff] }
 0x77c   : > { %v7591_v29 = vadd.f32 %v16622_v53, %v4661_v50  ;;  %v4164_v40 = vadd.f32 %v16624_v16, %v2417_v22  ;;  %v16631_v50 = vld [vmem:[#allocation76_spill] sm:$0xff]  ;;  %v11351_v53 = vld [vmem:[%s12213_s4 + $0x144] sm:$0xf] }
 0x77d   : > { %v7689_v15 = vadd.f32 %v7377_v7, %v4906_v24  ;;  %v11865_v22 = vld [vmem:[%s12213_s4 + $0x4c4] sm:$0xf] }
 0x77e   : > { %7787 = vst.msk [vmem:[%s14605_s7 + $0xa0] sm:$0xff] %vm1561_vm0, %v7591_v29  ;;  %v9390_v29 = vld [vmem:[%s12213_s4 + $0x148] sm:$0xf0] }
 0x77f   : > { %7885 = vst.msk [vmem:[%s14605_s7 + $0x3b0] sm:$0xff] %vm1561_vm0, %v7689_v15  ;;  %v10931_v15 = vld [vmem:[%s12213_s4 + $0x4c0] sm:$0xf] }
 0x780   : > { %v10932_v16 = vor.u32 %v11866_v2, %v10931_v15 }
 0x781   : > { %v4662_v52 = vpop.f32.mrf.mxu2  ;;  %v2419_v32 = vpop.f32.mrf.mxu0 }
 0x782   : > { %v7378_v20 = vpop.f32.mrf.mxu3  ;;  %v4663_v10 = vadd.f32 %v4662_v52, %v4164_v40  ;;  %v6882_v1 = vpop.f32.mrf.mxu1  ;;  %v2420_v19 = vadd.f32 %v2419_v32, %v16626_v45 }
 0x783   : > { %v7379_v61 = vadd.f32 %v7378_v20, %v6879_v36  ;;  %v8460_v36 = vld [vmem:[%s12213_s4 + $0x180] sm:$0xf0]  ;;  %v9393_v20 = vor.u32 %v11351_v53, %v9390_v29 }
 0x784   : > { %v7592_v39 = vadd.f32 %v13872_v38, %v4663_v10  ;;  %9147 = vmatmul.msk.bf16.gmra.mxu0 %vm1561_vm0, %v8455_v60  ;;  %v4167_v38 = vadd.f32 %v16627_v49, %v2420_v19  ;;  %v8463_v63 = vor.u32 %v11559_v57, %v8460_v36  ;;  %v10936_v60 = vor.u32 %v11865_v22, %v10933_v47  ;;  %v16641_v36 = vld [vmem:[#allocation84_spill] sm:$0xff] }
 0x785   : > { %v7690_v0 = vadd.f32 %v7379_v61, %v4908_v56  ;;  %6921 = vmatmul.bf16.gmra.mxu1 %v10924_v35  ;;  %v16634_v61 = vld [vmem:[#allocation79_spill] sm:$0xff]  ;;  %v4918_v53 = vadd.f32 %v16641_v36, %v13908_v25  ;;  %v16643_v25 = vld [vmem:[#allocation86_spill] sm:$0xff] }
 0x786   : > { %7788 = vst.msk [vmem:[%s14605_s7 + $0xa8] sm:$0xff] %vm1561_vm0, %v7592_v39  ;;  %10077 = vmatmul.msk.bf16.gmra.mxu2 %vm1561_vm0, %v9385_v31  ;;  %v16637_v39 = vld [vmem:[#allocation81_spill] sm:$0xff] }
 0x787   : > { %11277 = vmatmul.msk.bf16.gmra.mxu3 %vm1561_vm0, %v10928_v3  ;;  %7886 = vst.msk [vmem:[%s14605_s7 + $0x3b8] sm:$0xff] %vm1561_vm0, %v7690_v0  ;;  %v16636_v3 = vld [vmem:[#allocation377_spill] sm:$0xff] }
 0x788   : > { %v4916_v0 = vadd.f32 %v16637_v39, %v16636_v3  ;;  %v11563_v39 = vld [vmem:[%s12213_s4 + $0x19c] sm:$0xf] }
 0x789   : > { %v4665_v30 = vpop.f32.mrf.mxu2  ;;  %v2421_v5 = vpop.f32.mrf.mxu0 }
 0x78a   : > { %v7381_v12 = vpop.f32.mrf.mxu3  ;;  %v4666_v34 = vadd.f32 %v4665_v30, %v4167_v38  ;;  %v6884_v33 = vpop.f32.mrf.mxu1  ;;  %v2422_v7 = vadd.f32 %v2421_v5, %v16631_v50  ;;  %v16638_v30 = vld [vmem:[#allocation378_spill] sm:$0xff]  ;;  %v11353_v5 = vld [vmem:[%s12213_s4 + $0x154] sm:$0xf]  ;;  %v10941_v50 = vld [vmem:[%s12213_s4 + $0x4d8] sm:$0xf0] }
 0x78b   : > { %v7382_v54 = vadd.f32 %v7381_v12, %v6882_v1 }
 0x78c   : > { %v7593_v9 = vadd.f32 %v16630_v6, %v4666_v34  ;;  %v4169_v41 = vadd.f32 %v16632_v21, %v2422_v7  ;;  %v11561_v34 = vld [vmem:[%s12213_s4 + $0x18c] sm:$0xf]  ;;  %v10939_v6 = vld [vmem:[%s12213_s4 + $0x4d0] sm:$0xf] }
 0x78d   : > { %v7691_v24 = vadd.f32 %v7382_v54, %v4911_v27  ;;  %v8468_v54 = vld [vmem:[%s12213_s4 + $0x190] sm:$0xf0] }
 0x78e   : > { %7789 = vst.msk [vmem:[%s14605_s7 + $0xb0] sm:$0xff] %vm1561_vm0, %v7593_v9  ;;  %v11868_v9 = vld [vmem:[%s12213_s4 + $0x4d4] sm:$0xf0]  ;;  %v16640_v7 = vld [vmem:[#allocation83_spill] sm:$0xff]  ;;  %v8471_v2 = vor.u32 %v11561_v34, %v8468_v54 }
 0x78f   : > { %7887 = vst.msk [vmem:[%s14605_s7 + $0x3c0] sm:$0xff] %vm1561_vm0, %v7691_v24  ;;  %v11867_v24 = vld [vmem:[%s12213_s4 + $0x4d4] sm:$0xf]  ;;  %v10940_v22 = vor.u32 %v11868_v9, %v10939_v6 }
 0x791   : > { %v4667_v26 = vpop.f32.mrf.mxu2  ;;  %v2424_v56 = vpop.f32.mrf.mxu0 }
 0x792   : > { %v7383_v43 = vpop.f32.mrf.mxu3  ;;  %v4668_v40 = vadd.f32 %v4667_v26, %v4169_v41  ;;  %v6887_v52 = vpop.f32.mrf.mxu1  ;;  %v2425_v32 = vadd.f32 %v2424_v56, %v16634_v61  ;;  %v10944_v26 = vor.u32 %v11867_v24, %v10941_v50 }
 0x793   : > { %v7384_v42 = vadd.f32 %v7383_v43, %v6884_v33  ;;  %v9398_v33 = vld [vmem:[%s12213_s4 + $0x158] sm:$0xf0] }
 0x794   : > { %v7594_v35 = vadd.f32 %v13891_v44, %v4668_v40  ;;  %9148 = vmatmul.msk.bf16.gmra.mxu0 %vm1561_vm0, %v8463_v63  ;;  %v4172_v44 = vadd.f32 %v16635_v37, %v2425_v32  ;;  %v16646_v37 = vld [vmem:[#allocation380_spill] sm:$0xff] }
 0x795   : > { %v7692_v10 = vadd.f32 %v7384_v42, %v4913_v13  ;;  %6926 = vmatmul.bf16.gmra.mxu1 %v10932_v16  ;;  %v9401_v13 = vor.u32 %v11353_v5, %v9398_v33  ;;  %v16642_v16 = vld [vmem:[#allocation85_spill] sm:$0xff] }
 0x796   : > { %7790 = vst.msk [vmem:[%s14605_s7 + $0xb8] sm:$0xff] %vm1561_vm0, %v7594_v35  ;;  %10078 = vmatmul.msk.bf16.gmra.mxu2 %vm1561_vm0, %v9393_v20  ;;  %v16645_v20 = vld [vmem:[#allocation87_spill] sm:$0xff] }
 0x797   : > { %11278 = vmatmul.msk.bf16.gmra.mxu3 %vm1561_vm0, %v10936_v60  ;;  %7888 = vst.msk [vmem:[%s14605_s7 + $0x3c8] sm:$0xff] %vm1561_vm0, %v7692_v10 }
 0x799   : > { %v4670_v1 = vpop.f32.mrf.mxu2  ;;  %v2426_v49 = vpop.f32.mrf.mxu0 }
 0x79a   : > { %v7386_v31 = vpop.f32.mrf.mxu3  ;;  %v4671_v45 = vadd.f32 %v4670_v1, %v4172_v44  ;;  %v6889_v38 = vpop.f32.mrf.mxu1  ;;  %v2427_v27 = vadd.f32 %v2426_v49, %v16639_v14  ;;  %v10947_v49 = vld [vmem:[%s12213_s4 + $0x4e0] sm:$0xf] }
 0x79b   : > { %v7387_v19 = vadd.f32 %v7386_v31, %v6887_v52  ;;  %v16644_v52 = vld [vmem:[#allocation379_spill] sm:$0xff]  ;;  %v16647_v31 = vld [vmem:[#allocation88_spill] sm:$0xff] }
 0x79c   : > { %v7595_v12 = vadd.f32 %v16638_v30, %v4671_v45  ;;  %v4174_v57 = vadd.f32 %v16640_v7, %v2427_v27  ;;  %v4921_v60 = vadd.f32 %v16645_v20, %v16644_v52  ;;  %v11355_v45 = vld [vmem:[%s12213_s4 + $0x164] sm:$0xf]  ;;  %v16649_v27 = vld [vmem:[#allocation90_spill] sm:$0xff]  ;;  %v8484_v52 = vld [vmem:[%s12213_s4 + $0x1b0] sm:$0xf0] }
 0x79d   : > { %v7693_v62 = vadd.f32 %v7387_v19, %v4916_v0  ;;  %v8476_v0 = vld [vmem:[%s12213_s4 + $0x1a0] sm:$0xf0]  ;;  %v9406_v19 = vld [vmem:[%s12213_s4 + $0x168] sm:$0xf0]  ;;  %v4923_v34 = vadd.f32 %v16649_v27, %v13927_v46  ;;  %v16651_v46 = vld [vmem:[#allocation92_spill] sm:$0xff] }
 0x79e   : > { %7791 = vst.msk [vmem:[%s14605_s7 + $0xc0] sm:$0xff] %vm1561_vm0, %v7595_v12  ;;  %v11869_v30 = vld [vmem:[%s12213_s4 + $0x4e4] sm:$0xf]  ;;  %v10949_v12 = vld [vmem:[%s12213_s4 + $0x4e8] sm:$0xf0]  ;;  %v8479_v33 = vor.u32 %v11563_v39, %v8476_v0 }
 0x79f   : > { %7889 = vst.msk [vmem:[%s14605_s7 + $0x3d0] sm:$0xff] %vm1561_vm0, %v7693_v62  ;;  %v16648_v62 = vld [vmem:[#allocation89_spill] sm:$0xff]  ;;  %v10952_v36 = vor.u32 %v11869_v30, %v10949_v12  ;;  %v11357_v20 = vld [vmem:[%s12213_s4 + $0x174] sm:$0xf] }
 0x7a1   : > { %v4672_v29 = vpop.f32.mrf.mxu2  ;;  %v2429_v41 = vpop.f32.mrf.mxu0 }
 0x7a2   : > { %v7388_v15 = vpop.f32.mrf.mxu3  ;;  %v4673_v47 = vadd.f32 %v4672_v29, %v4174_v57  ;;  %v6892_v28 = vpop.f32.mrf.mxu1  ;;  %v2430_v40 = vadd.f32 %v2429_v41, %v16642_v16  ;;  %v9409_v57 = vor.u32 %v11355_v45, %v9406_v19  ;;  %v16653_v41 = vld [vmem:[#allocation93_spill] sm:$0xff]  ;;  %v16654_v16 = vld [vmem:[#allocation382_spill] sm:$0xff] }
 0x7a3   : > { %v7389_v21 = vadd.f32 %v7388_v15, %v6889_v38  ;;  %v11870_v38 = vld [vmem:[%s12213_s4 + $0x4e4] sm:$0xf0]  ;;  %v16650_v15 = vld [vmem:[#allocation91_spill] sm:$0xff] }
 0x7a4   : > { %v7596_v43 = vadd.f32 %v13910_v55, %v4673_v47  ;;  %9149 = vmatmul.msk.bf16.gmra.mxu0 %vm1561_vm0, %v8471_v2  ;;  %v4177_v55 = vadd.f32 %v16643_v25, %v2430_v40  ;;  %v10948_v6 = vor.u32 %v11870_v38, %v10947_v49 }
 0x7a5   : > { %v7694_v63 = vadd.f32 %v7389_v21, %v4918_v53  ;;  %6931 = vmatmul.bf16.gmra.mxu1 %v10940_v22  ;;  %v16652_v21 = vld [vmem:[#allocation381_spill] sm:$0xff] }
 0x7a6   : > { %7792 = vst.msk [vmem:[%s14605_s7 + $0xc8] sm:$0xff] %vm1561_vm0, %v7596_v43  ;;  %10079 = vmatmul.msk.bf16.gmra.mxu2 %vm1561_vm0, %v9401_v13 }
 0x7a7   : > { %11279 = vmatmul.msk.bf16.gmra.mxu3 %vm1561_vm0, %v10944_v26  ;;  %7890 = vst.msk [vmem:[%s14605_s7 + $0x3d8] sm:$0xff] %vm1561_vm0, %v7694_v63 }
 0x7a9   : > { %v4675_v42 = vpop.f32.mrf.mxu2  ;;  %v2431_v61 = vpop.f32.mrf.mxu0 }
 0x7aa   : > { %v7391_v56 = vpop.f32.mrf.mxu3  ;;  %v4676_v35 = vadd.f32 %v4675_v42, %v4177_v55  ;;  %v6894_v32 = vpop.f32.mrf.mxu1  ;;  %v2432_v3 = vadd.f32 %v2431_v61, %v16647_v31  ;;  %v16655_v55 = vld [vmem:[#allocation94_spill] sm:$0xff]  ;;  %v11871_v61 = vld [vmem:[%s12213_s4 + $0x4f4] sm:$0xf] }
 0x7ab   : > { %v7392_v10 = vadd.f32 %v7391_v56, %v6892_v28  ;;  %v4926_v28 = vadd.f32 %v16653_v41, %v16652_v21  ;;  %v11565_v56 = vld [vmem:[%s12213_s4 + $0x1ac] sm:$0xf]  ;;  %v10963_v41 = vld [vmem:[%s12213_s4 + $0x500] sm:$0xf] }
 0x7ac   : > { %v7597_v44 = vadd.f32 %v16646_v37, %v4676_v35  ;;  %v4179_v14 = vadd.f32 %v16648_v62, %v2432_v3  ;;  %v10955_v35 = vld [vmem:[%s12213_s4 + $0x4f0] sm:$0xf]  ;;  %v8487_v0 = vor.u32 %v11565_v56, %v8484_v52  ;;  %v9422_v21 = vld [vmem:[%s12213_s4 + $0x188] sm:$0xf0] }
 0x7ad   : > { %v7695_v1 = vadd.f32 %v7392_v10, %v4921_v60  ;;  %v9414_v60 = vld [vmem:[%s12213_s4 + $0x178] sm:$0xf0]  ;;  %v11872_v10 = vld [vmem:[%s12213_s4 + $0x4f4] sm:$0xf0]  ;;  %v16656_v37 = vld [vmem:[#allocation95_spill] sm:$0xff] }
 0x7ae   : > { %7793 = vst.msk [vmem:[%s14605_s7 + $0xd0] sm:$0xff] %vm1561_vm0, %v7597_v44  ;;  %v10956_v45 = vor.u32 %v11872_v10, %v10955_v35  ;;  %v9417_v12 = vor.u32 %v11357_v20, %v9414_v60 }
 0x7af   : > { %7891 = vst.msk [vmem:[%s14605_s7 + $0x3e0] sm:$0xff] %vm1561_vm0, %v7695_v1  ;;  %v16657_v1 = vld [vmem:[#allocation96_spill] sm:$0xff] }
 0x7b0   : > { %v4928_v31 = vadd.f32 %v16657_v1, %v13946_v4  ;;  %v16659_v4 = vld [vmem:[#allocation98_spill] sm:$0xff] }
 0x7b1   : > { %v4677_v54 = vpop.f32.mrf.mxu2  ;;  %v2434_v50 = vpop.f32.mrf.mxu0 }
 0x7b2   : > { %v7393_v5 = vpop.f32.mrf.mxu3  ;;  %v4678_v9 = vadd.f32 %v4677_v54, %v4179_v14  ;;  %v6897_v7 = vpop.f32.mrf.mxu1  ;;  %v2435_v2 = vadd.f32 %v2434_v50, %v16650_v15 }
 0x7b3   : > { %v7394_v24 = vadd.f32 %v7393_v5, %v6894_v32  ;;  %v10957_v32 = vld [vmem:[%s12213_s4 + $0x4f8] sm:$0xf0] }
 0x7b4   : > { %v7598_v53 = vadd.f32 %v13929_v8, %v4678_v9  ;;  %9150 = vmatmul.msk.bf16.gmra.mxu0 %vm1561_vm0, %v8479_v33  ;;  %v4182_v8 = vadd.f32 %v16651_v46, %v2435_v2  ;;  %v10960_v62 = vor.u32 %v11871_v61, %v10957_v32  ;;  %v16661_v9 = vld [vmem:[#allocation99_spill] sm:$0xff]  ;;  %v16663_v2 = vld [vmem:[#allocation100_spill] sm:$0xff] }
 0x7b5   : > { %v7696_v29 = vadd.f32 %v7394_v24, %v4923_v34  ;;  %6936 = vmatmul.bf16.gmra.mxu1 %v10948_v6  ;;  %v16658_v34 = vld [vmem:[#allocation97_spill] sm:$0xff]  ;;  %v16660_v6 = vld [vmem:[#allocation383_spill] sm:$0xff] }
 0x7b6   : > { %7794 = vst.msk [vmem:[%s14605_s7 + $0xd8] sm:$0xff] %vm1561_vm0, %v7598_v53  ;;  %10080 = vmatmul.msk.bf16.gmra.mxu2 %vm1561_vm0, %v9409_v57  ;;  %v4931_v24 = vadd.f32 %v16661_v9, %v16660_v6  ;;  %v16662_v53 = vld [vmem:[#allocation384_spill] sm:$0xff]  ;;  %v11875_v9 = vld [vmem:[%s12213_s4 + $0x514] sm:$0xf] }
 0x7b7   : > { %11280 = vmatmul.msk.bf16.gmra.mxu3 %vm1561_vm0, %v10952_v36  ;;  %7892 = vst.msk [vmem:[%s14605_s7 + $0x3e8] sm:$0xff] %vm1561_vm0, %v7696_v29  ;;  %v11876_v6 = vld [vmem:[%s12213_s4 + $0x514] sm:$0xf0] }
 0x7b9   : > { %v4680_v22 = vpop.f32.mrf.mxu2  ;;  %v2436_v43 = vpop.f32.mrf.mxu0 }
 0x7ba   : > { %v7396_v47 = vpop.f32.mrf.mxu3  ;;  %v4681_v13 = vadd.f32 %v4680_v22, %v4182_v8  ;;  %v6899_v63 = vpop.f32.mrf.mxu1  ;;  %v2437_v42 = vadd.f32 %v2436_v43, %v16655_v55  ;;  %v11567_v8 = vld [vmem:[%s12213_s4 + $0x1bc] sm:$0xf]  ;;  %v8492_v22 = vld [vmem:[%s12213_s4 + $0x1c0] sm:$0xf0] }
 0x7bb   : > { %v7397_v26 = vadd.f32 %v7396_v47, %v6897_v7  ;;  %v11359_v47 = vld [vmem:[%s12213_s4 + $0x184] sm:$0xf] }
 0x7bc   : > { %v7599_v40 = vadd.f32 %v16654_v16, %v4681_v13  ;;  %v4184_v44 = vadd.f32 %v16656_v37, %v2437_v42  ;;  %v11873_v13 = vld [vmem:[%s12213_s4 + $0x504] sm:$0xf]  ;;  %v16665_v16 = vld [vmem:[#allocation102_spill] sm:$0xff]  ;;  %v8495_v42 = vor.u32 %v11567_v8, %v8492_v22  ;;  %v9425_v10 = vor.u32 %v11359_v47, %v9422_v21 }
 0x7bd   : > { %v7697_v25 = vadd.f32 %v7397_v26, %v4926_v28  ;;  %v11874_v28 = vld [vmem:[%s12213_s4 + $0x504] sm:$0xf0]  ;;  %v10965_v26 = vld [vmem:[%s12213_s4 + $0x508] sm:$0xf0]  ;;  %v16664_v43 = vld [vmem:[#allocation101_spill] sm:$0xff] }
 0x7be   : > { %7795 = vst.msk [vmem:[%s14605_s7 + $0xe0] sm:$0xff] %vm1561_vm0, %v7599_v40  ;;  %v4933_v40 = vadd.f32 %v16665_v16, %v13965_v59  ;;  %v10964_v56 = vor.u32 %v11874_v28, %v10963_v41  ;;  %v10968_v61 = vor.u32 %v11873_v13, %v10965_v26  ;;  %v16667_v59 = vld [vmem:[#allocation104_spill] sm:$0xff]  ;;  %v16674_v26 = vld [vmem:[#allocation109_spill] sm:$0xff] }
 0x7bf   : > { %7893 = vst.msk [vmem:[%s14605_s7 + $0x3f0] sm:$0xff] %vm1561_vm0, %v7697_v25 }
 0x7c1   : > { %v4682_v3 = vpop.f32.mrf.mxu2  ;;  %v2439_v38 = vpop.f32.mrf.mxu0 }
 0x7c2   : > { %v7398_v39 = vpop.f32.mrf.mxu3  ;;  %v4683_v19 = vadd.f32 %v4682_v3, %v4184_v44  ;;  %v6902_v30 = vpop.f32.mrf.mxu1  ;;  %v2440_v54 = vadd.f32 %v2439_v38, %v16658_v34  ;;  %v16666_v44 = vld [vmem:[#allocation103_spill] sm:$0xff] }
 0x7c3   : > { %v7399_v49 = vadd.f32 %v7398_v39, %v6899_v63  ;;  %v16668_v39 = vld [vmem:[#allocation385_spill] sm:$0xff] }
 0x7c4   : > { %v7600_v14 = vadd.f32 %v13948_v58, %v4683_v19  ;;  %9151 = vmatmul.msk.bf16.gmra.mxu0 %vm1561_vm0, %v8487_v0  ;;  %v4187_v58 = vadd.f32 %v16659_v4, %v2440_v54  ;;  %v16669_v0 = vld [vmem:[#allocation105_spill] sm:$0xff]  ;;  %v11569_v54 = vld [vmem:[%s12213_s4 + $0x1cc] sm:$0xf]  ;;  %v8500_v4 = vld [vmem:[%s12213_s4 + $0x1d0] sm:$0xf0] }
 0x7c5   : > { %v7698_v27 = vadd.f32 %v7399_v49, %v4928_v31  ;;  %6941 = vmatmul.bf16.gmra.mxu1 %v10956_v45  ;;  %v4936_v45 = vadd.f32 %v16669_v0, %v16668_v39  ;;  %v10981_v39 = vld [vmem:[%s12213_s4 + $0x528] sm:$0xf0]  ;;  %v16680_v0 = vld [vmem:[#allocation113_spill] sm:$0xff] }
 0x7c6   : > { %7796 = vst.msk [vmem:[%s14605_s7 + $0xe8] sm:$0xff] %vm1561_vm0, %v7600_v14  ;;  %10081 = vmatmul.msk.bf16.gmra.mxu2 %vm1561_vm0, %v9417_v12  ;;  %v16670_v12 = vld [vmem:[#allocation386_spill] sm:$0xff] }
 0x7c7   : > { %11281 = vmatmul.msk.bf16.gmra.mxu3 %vm1561_vm0, %v10960_v62  ;;  %7894 = vst.msk [vmem:[%s14605_s7 + $0x3f8] sm:$0xff] %vm1561_vm0, %v7698_v27  ;;  %v16671_v27 = vld [vmem:[#allocation106_spill] sm:$0xff] }
 0x7c9   : > { %v4685_v5 = vpop.f32.mrf.mxu2  ;;  %v2441_v57 = vpop.f32.mrf.mxu0 }
 0x7ca   : > { %v7401_v33 = vpop.f32.mrf.mxu3  ;;  %v4686_v50 = vadd.f32 %v4685_v5, %v4187_v58  ;;  %v6904_v36 = vpop.f32.mrf.mxu1  ;;  %v2442_v46 = vadd.f32 %v2441_v57, %v16663_v2  ;;  %v11361_v58 = vld [vmem:[%s12213_s4 + $0x194] sm:$0xf]  ;;  %v9430_v5 = vld [vmem:[%s12213_s4 + $0x198] sm:$0xf0] }
 0x7cb   : > { %v7402_v7 = vadd.f32 %v7401_v33, %v6902_v30  ;;  %v10971_v33 = vld [vmem:[%s12213_s4 + $0x510] sm:$0xf]  ;;  %v16673_v57 = vld [vmem:[#allocation108_spill] sm:$0xff]  ;;  %v9433_v21 = vor.u32 %v11361_v58, %v9430_v5 }
 0x7cc   : > { %v7601_v29 = vadd.f32 %v16662_v53, %v4686_v50  ;;  %v4189_v63 = vadd.f32 %v16664_v43, %v2442_v46  ;;  %v16672_v50 = vld [vmem:[#allocation107_spill] sm:$0xff]  ;;  %v10972_v2 = vor.u32 %v11876_v6, %v10971_v33 }
 0x7cd   : > { %v7699_v15 = vadd.f32 %v7402_v7, %v4931_v24  ;;  %v10973_v24 = vld [vmem:[%s12213_s4 + $0x518] sm:$0xf0]  ;;  %v16682_v6 = vld [vmem:[#allocation115_spill] sm:$0xff] }
 0x7ce   : > { %7797 = vst.msk [vmem:[%s14605_s7 + $0xf0] sm:$0xff] %vm1561_vm0, %v7601_v29  ;;  %v10976_v41 = vor.u32 %v11875_v9, %v10973_v24 }
 0x7cf   : > { %7895 = vst.msk [vmem:[%s14605_s7 + $0x400] sm:$0xff] %vm1561_vm0, %v7699_v15  ;;  %v8503_v15 = vor.u32 %v11569_v54, %v8500_v4 }
 0x7d1   : > { %v4687_v25 = vpop.f32.mrf.mxu2  ;;  %v2444_v60 = vpop.f32.mrf.mxu0 }
 0x7d2   : > { %v7403_v55 = vpop.f32.mrf.mxu3  ;;  %v4688_v52 = vadd.f32 %v4687_v25, %v4189_v63  ;;  %v6907_v35 = vpop.f32.mrf.mxu1  ;;  %v2445_v1 = vadd.f32 %v2444_v60, %v16666_v44  ;;  %v16677_v25 = vld [vmem:[#allocation111_spill] sm:$0xff]  ;;  %v16678_v60 = vld [vmem:[#allocation388_spill] sm:$0xff]  ;;  %v8508_v44 = vld [vmem:[%s12213_s4 + $0x1e0] sm:$0xf0] }
 0x7d3   : > { %v7404_v20 = vadd.f32 %v7403_v55, %v6904_v36  ;;  %v4938_v36 = vadd.f32 %v16673_v57, %v13984_v48  ;;  %v16675_v48 = vld [vmem:[#allocation110_spill] sm:$0xff]  ;;  %v16685_v57 = vld [vmem:[#allocation117_spill] sm:$0xff] }
 0x7d4   : > { %v7602_v32 = vadd.f32 %v13967_v17, %v4688_v52  ;;  %9152 = vmatmul.msk.bf16.gmra.mxu0 %vm1561_vm0, %v8495_v42  ;;  %v4192_v17 = vadd.f32 %v16667_v59, %v2445_v1  ;;  %v11363_v1 = vld [vmem:[%s12213_s4 + $0x1a4] sm:$0xf]  ;;  %v9438_v59 = vld [vmem:[%s12213_s4 + $0x1a8] sm:$0xf0] }
 0x7d5   : > { %v7700_v37 = vadd.f32 %v7404_v20, %v4933_v40  ;;  %6946 = vmatmul.bf16.gmra.mxu1 %v10964_v56  ;;  %v16676_v40 = vld [vmem:[#allocation387_spill] sm:$0xff]  ;;  %v9441_v4 = vor.u32 %v11363_v1, %v9438_v59  ;;  %v16691_v1 = vld [vmem:[#allocation392_spill] sm:$0xff] }
 0x7d6   : > { %7798 = vst.msk [vmem:[%s14605_s7 + $0xf8] sm:$0xff] %vm1561_vm0, %v7602_v32  ;;  %10082 = vmatmul.msk.bf16.gmra.mxu2 %vm1561_vm0, %v9425_v10  ;;  %v4941_v55 = vadd.f32 %v16677_v25, %v16676_v40  ;;  %v16689_v25 = vld [vmem:[#allocation391_spill] sm:$0xff] }
 0x7d7   : > { %11282 = vmatmul.msk.bf16.gmra.mxu3 %vm1561_vm0, %v10968_v61  ;;  %7896 = vst.msk [vmem:[%s14605_s7 + $0x408] sm:$0xff] %vm1561_vm0, %v7700_v37  ;;  %v16679_v61 = vld [vmem:[#allocation112_spill] sm:$0xff] }
 0x7d8   : > { %v11571_v37 = vld [vmem:[%s12213_s4 + $0x1dc] sm:$0xf] }
 0x7d9   : > { %v4690_v31 = vpop.f32.mrf.mxu2  ;;  %v2446_v38 = vpop.f32.mrf.mxu0 }
 0x7da   : > { %v7406_v3 = vpop.f32.mrf.mxu3  ;;  %v4691_v19 = vadd.f32 %v4690_v31, %v4192_v17  ;;  %v6909_v30 = vpop.f32.mrf.mxu1  ;;  %v2447_v34 = vadd.f32 %v2446_v38, %v16671_v27  ;;  %v10979_v17 = vld [vmem:[%s12213_s4 + $0x520] sm:$0xf]  ;;  %v11878_v31 = vld [vmem:[%s12213_s4 + $0x524] sm:$0xf0] }
 0x7db   : > { %v7407_v49 = vadd.f32 %v7406_v3, %v6907_v35  ;;  %v11877_v3 = vld [vmem:[%s12213_s4 + $0x524] sm:$0xf] }
 0x7dc   : > { %v7603_v62 = vadd.f32 %v16670_v12, %v4691_v19  ;;  %v4194_v7 = vadd.f32 %v16672_v50, %v2447_v34  ;;  %v16681_v19 = vld [vmem:[#allocation114_spill] sm:$0xff]  ;;  %v8511_v12 = vor.u32 %v11571_v37, %v8508_v44  ;;  %v10984_v58 = vor.u32 %v11877_v3, %v10981_v39 }
 0x7dd   : > { %v7701_v14 = vadd.f32 %v7407_v49, %v4936_v45  ;;  %v4943_v49 = vadd.f32 %v16681_v19, %v14003_v23  ;;  %v16683_v23 = vld [vmem:[#allocation116_spill] sm:$0xff]  ;;  %v16693_v39 = vld [vmem:[#allocation122_spill] sm:$0xff] }
 0x7de   : > { %7799 = vst.msk [vmem:[%s14605_s7 + $0x100] sm:$0xff] %vm1561_vm0, %v7603_v62  ;;  %v10980_v62 = vor.u32 %v11878_v31, %v10979_v17  ;;  %v16692_v31 = vld [vmem:[#allocation121_spill] sm:$0xff] }
 0x7df   : > { %7897 = vst.msk [vmem:[%s14605_s7 + $0x410] sm:$0xff] %vm1561_vm0, %v7701_v14 }
 0x7e1   : > { %v4692_v53 = vpop.f32.mrf.mxu2  ;;  %v2449_v22 = vpop.f32.mrf.mxu0 }
 0x7e2   : > { %v7408_v29 = vpop.f32.mrf.mxu3  ;;  %v4693_v46 = vadd.f32 %v4692_v53, %v4194_v7  ;;  %v6912_v47 = vpop.f32.mrf.mxu1  ;;  %v2450_v43 = vadd.f32 %v2449_v22, %v16674_v26  ;;  %v16684_v7 = vld [vmem:[#allocation389_spill] sm:$0xff]  ;;  %v9446_v26 = vld [vmem:[%s12213_s4 + $0x1b8] sm:$0xf0] }
 0x7e3   : > { %v7409_v8 = vadd.f32 %v7408_v29, %v6909_v30 }
 0x7e4   : > { %v7604_v28 = vadd.f32 %v13986_v11, %v4693_v46  ;;  %9153 = vmatmul.msk.bf16.gmra.mxu0 %vm1561_vm0, %v8503_v15  ;;  %v4197_v11 = vadd.f32 %v16675_v48, %v2450_v43  ;;  %v16686_v46 = vld [vmem:[#allocation390_spill] sm:$0xff]  ;;  %v10987_v43 = vld [vmem:[%s12213_s4 + $0x530] sm:$0xf]  ;;  %v11880_v48 = vld [vmem:[%s12213_s4 + $0x534] sm:$0xf0] }
 0x7e5   : > { %v7702_v13 = vadd.f32 %v7409_v8, %v4938_v36  ;;  %6951 = vmatmul.bf16.gmra.mxu1 %v10972_v2  ;;  %v4946_v36 = vadd.f32 %v16685_v57, %v16684_v7  ;;  %v10997_v7 = vld [vmem:[%s12213_s4 + $0x548] sm:$0xf0]  ;;  %v16698_v57 = vld [vmem:[#allocation125_spill] sm:$0xff] }
 0x7e6   : > { %7800 = vst.msk [vmem:[%s14605_s7 + $0x108] sm:$0xff] %vm1561_vm0, %v7604_v28  ;;  %10083 = vmatmul.msk.bf16.gmra.mxu2 %vm1561_vm0, %v9433_v21  ;;  %v8516_v28 = vld [vmem:[%s12213_s4 + $0x1f0] sm:$0xf0] }
 0x7e7   : > { %11283 = vmatmul.msk.bf16.gmra.mxu3 %vm1561_vm0, %v10976_v41  ;;  %7898 = vst.msk [vmem:[%s14605_s7 + $0x418] sm:$0xff] %vm1561_vm0, %v7702_v13  ;;  %v11573_v41 = vld [vmem:[%s12213_s4 + $0x1ec] sm:$0xf]  ;;  %v11365_v13 = vld [vmem:[%s12213_s4 + $0x1b4] sm:$0xf] }
 0x7e8   : > { %v9449_v37 = vor.u32 %v11365_v13, %v9446_v26 }
 0x7e9   : > { %v4695_v63 = vpop.f32.mrf.mxu2  ;;  %v2451_v52 = vpop.f32.mrf.mxu0 }
 0x7ea   : > { %v7411_v16 = vpop.f32.mrf.mxu3  ;;  %v4696_v42 = vadd.f32 %v4695_v63, %v4197_v11  ;;  %v6914_v20 = vpop.f32.mrf.mxu1  ;;  %v2452_v32 = vadd.f32 %v2451_v52, %v16679_v61  ;;  %v11879_v11 = vld [vmem:[%s12213_s4 + $0x534] sm:$0xf]  ;;  %v10989_v63 = vld [vmem:[%s12213_s4 + $0x538] sm:$0xf0] }
 0x7eb   : > { %v7412_v56 = vadd.f32 %v7411_v16, %v6912_v47  ;;  %v16687_v47 = vld [vmem:[#allocation118_spill] sm:$0xff]  ;;  %v16688_v16 = vld [vmem:[#allocation119_spill] sm:$0xff]  ;;  %v10992_v44 = vor.u32 %v11879_v11, %v10989_v63 }
 0x7ec   : > { %v7605_v35 = vadd.f32 %v16678_v60, %v4696_v42  ;;  %v4199_v45 = vadd.f32 %v16680_v0, %v2452_v32  ;;  %v10988_v60 = vor.u32 %v11880_v48, %v10987_v43  ;;  %v16701_v43 = vld [vmem:[#allocation396_spill] sm:$0xff]  ;;  %v16702_v63 = vld [vmem:[#allocation127_spill] sm:$0xff] }
 0x7ed   : > { %v7703_v10 = vadd.f32 %v7412_v56, %v4941_v55  ;;  %v16690_v55 = vld [vmem:[#allocation120_spill] sm:$0xff] }
 0x7ee   : > { %7801 = vst.msk [vmem:[%s14605_s7 + $0x110] sm:$0xff] %vm1561_vm0, %v7605_v35  ;;  %v4948_v42 = vadd.f32 %v16690_v55, %v16689_v25 }
 0x7ef   : > { %7899 = vst.msk [vmem:[%s14605_s7 + $0x420] sm:$0xff] %vm1561_vm0, %v7703_v10 }
 0x7f1   : > { %v4697_v38 = vpop.f32.mrf.mxu2  ;;  %v2454_v34 = vpop.f32.mrf.mxu0 }
 0x7f2   : > { %v7413_v30 = vpop.f32.mrf.mxu3  ;;  %v4698_v14 = vadd.f32 %v4697_v38, %v4199_v45  ;;  %v6917_v54 = vpop.f32.mrf.mxu1  ;;  %v2455_v9 = vadd.f32 %v2454_v34, %v16682_v6  ;;  %v16695_v38 = vld [vmem:[#allocation123_spill] sm:$0xff]  ;;  %v16696_v34 = vld [vmem:[#allocation394_spill] sm:$0xff]  ;;  %v8524_v6 = vld [vmem:[%s12213_s4 + $0x200] sm:$0xf0] }
 0x7f3   : > { %v7414_v27 = vadd.f32 %v7413_v30, %v6914_v20  ;;  %v8519_v20 = vor.u32 %v11573_v41, %v8516_v28 }
 0x7f4   : > { %v7606_v5 = vadd.f32 %v14005_v18, %v4698_v14  ;;  %9154 = vmatmul.msk.bf16.gmra.mxu0 %vm1561_vm0, %v8511_v12  ;;  %v4202_v18 = vadd.f32 %v16683_v23, %v2455_v9  ;;  %v11367_v9 = vld [vmem:[%s12213_s4 + $0x1c4] sm:$0xf]  ;;  %v9454_v23 = vld [vmem:[%s12213_s4 + $0x1c8] sm:$0xf0] }
 0x7f5   : > { %v7704_v33 = vadd.f32 %v7414_v27, %v4943_v49  ;;  %6956 = vmatmul.bf16.gmra.mxu1 %v10980_v62  ;;  %v16694_v49 = vld [vmem:[#allocation393_spill] sm:$0xff]  ;;  %v9457_v13 = vor.u32 %v11367_v9, %v9454_v23 }
 0x7f6   : > { %7802 = vst.msk [vmem:[%s14605_s7 + $0x118] sm:$0xff] %vm1561_vm0, %v7606_v5  ;;  %10084 = vmatmul.msk.bf16.gmra.mxu2 %vm1561_vm0, %v9441_v4  ;;  %v4951_v30 = vadd.f32 %v16695_v38, %v16694_v49  ;;  %v11005_v49 = vld [vmem:[%s12213_s4 + $0x558] sm:$0xf0]  ;;  %v16708_v38 = vld [vmem:[#allocation131_spill] sm:$0xff] }
 0x7f7   : > { %11284 = vmatmul.msk.bf16.gmra.mxu3 %vm1561_vm0, %v10984_v58  ;;  %7900 = vst.msk [vmem:[%s14605_s7 + $0x428] sm:$0xff] %vm1561_vm0, %v7704_v33  ;;  %v16697_v58 = vld [vmem:[#allocation124_spill] sm:$0xff] }
 0x7f8   : > { %v11575_v33 = vld [vmem:[%s12213_s4 + $0x1fc] sm:$0xf] }
 0x7f9   : > { %v4700_v24 = vpop.f32.mrf.mxu2  ;;  %v2456_v15 = vpop.f32.mrf.mxu0 }
 0x7fa   : > { %v7416_v50 = vpop.f32.mrf.mxu3  ;;  %v4701_v53 = vadd.f32 %v4700_v24, %v4202_v18  ;;  %v6919_v2 = vpop.f32.mrf.mxu1  ;;  %v2457_v21 = vadd.f32 %v2456_v15, %v16687_v47  ;;  %v10995_v18 = vld [vmem:[%s12213_s4 + $0x540] sm:$0xf]  ;;  %v11882_v24 = vld [vmem:[%s12213_s4 + $0x544] sm:$0xf0] }
 0x7fb   : > { %v7417_v29 = vadd.f32 %v7416_v50, %v6917_v54  ;;  %v11881_v50 = vld [vmem:[%s12213_s4 + $0x544] sm:$0xf] }
 0x7fc   : > { %v7607_v8 = vadd.f32 %v16686_v46, %v4701_v53  ;;  %v4204_v40 = vadd.f32 %v16688_v16, %v2457_v21  ;;  %v16699_v53 = vld [vmem:[#allocation395_spill] sm:$0xff]  ;;  %v11000_v26 = vor.u32 %v11881_v50, %v10997_v7  ;;  %v16712_v7 = vld [vmem:[#allocation133_spill] sm:$0xff] }
 0x7fd   : > { %v7705_v22 = vadd.f32 %v7417_v29, %v4946_v36  ;;  %v16700_v29 = vld [vmem:[#allocation126_spill] sm:$0xff] }
 0x7fe   : > { %7803 = vst.msk [vmem:[%s14605_s7 + $0x120] sm:$0xff] %vm1561_vm0, %v7607_v8  ;;  %v4953_v15 = vadd.f32 %v16700_v29, %v16699_v53  ;;  %v8527_v8 = vor.u32 %v11575_v33, %v8524_v6 }
 0x7ff   : > { %7901 = vst.msk [vmem:[%s14605_s7 + $0x430] sm:$0xff] %vm1561_vm0, %v7705_v22  ;;  %v10996_v22 = vor.u32 %v11882_v24, %v10995_v18  ;;  %v16711_v18 = vld [vmem:[#allocation400_spill] sm:$0xff] }
 0x801   : > { %v4702_v56 = vpop.f32.mrf.mxu2  ;;  %v2459_v61 = vpop.f32.mrf.mxu0 }
 0x802   : > { %v7418_v52 = vpop.f32.mrf.mxu3  ;;  %v4703_v35 = vadd.f32 %v4702_v56, %v4204_v40  ;;  %v6922_v32 = vpop.f32.mrf.mxu1  ;;  %v2460_v3 = vadd.f32 %v2459_v61, %v16692_v31  ;;  %v16703_v40 = vld [vmem:[#allocation128_spill] sm:$0xff]  ;;  %v16704_v56 = vld [vmem:[#allocation397_spill] sm:$0xff]  ;;  %v8532_v31 = vld [vmem:[%s12213_s4 + $0x210] sm:$0xf0] }
 0x803   : > { %v7419_v10 = vadd.f32 %v7418_v52, %v6919_v2  ;;  %v16705_v52 = vld [vmem:[#allocation129_spill] sm:$0xff] }
 0x804   : > { %v7608_v59 = vadd.f32 %v16691_v1, %v4703_v35  ;;  %9155 = vmatmul.msk.bf16.gmra.mxu0 %vm1561_vm0, %v8519_v20  ;;  %v4207_v0 = vadd.f32 %v16693_v39, %v2460_v3  ;;  %v4956_v20 = vadd.f32 %v16705_v52, %v16704_v56  ;;  %v16707_v1 = vld [vmem:[#allocation130_spill] sm:$0xff]  ;;  %v11369_v3 = vld [vmem:[%s12213_s4 + $0x1d4] sm:$0xf]  ;;  %v9462_v39 = vld [vmem:[%s12213_s4 + $0x1d8] sm:$0xf0] }
 0x805   : > { %v7706_v17 = vadd.f32 %v7419_v10, %v4948_v42  ;;  %6961 = vmatmul.bf16.gmra.mxu1 %v10988_v60  ;;  %v9465_v9 = vor.u32 %v11369_v3, %v9462_v39  ;;  %v11013_v56 = vld [vmem:[%s12213_s4 + $0x568] sm:$0xf0]  ;;  %v16718_v52 = vld [vmem:[#allocation137_spill] sm:$0xff] }
 0x806   : > { %7804 = vst.msk [vmem:[%s14605_s7 + $0x128] sm:$0xff] %vm1561_vm0, %v7608_v59  ;;  %10085 = vmatmul.msk.bf16.gmra.mxu2 %vm1561_vm0, %v9449_v37 }
 0x807   : > { %11285 = vmatmul.msk.bf16.gmra.mxu3 %vm1561_vm0, %v10992_v44  ;;  %7902 = vst.msk [vmem:[%s14605_s7 + $0x438] sm:$0xff] %vm1561_vm0, %v7706_v17  ;;  %v11577_v17 = vld [vmem:[%s12213_s4 + $0x20c] sm:$0xf] }
 0x809   : > { %v4705_v45 = vpop.f32.mrf.mxu2  ;;  %v2461_v14 = vpop.f32.mrf.mxu0 }
 0x80a   : > { %v7421_v19 = vpop.f32.mrf.mxu3  ;;  %v4706_v12 = vadd.f32 %v4705_v45, %v4207_v0  ;;  %v6924_v27 = vpop.f32.mrf.mxu1  ;;  %v2462_v5 = vadd.f32 %v2461_v14, %v16697_v58  ;;  %v11003_v0 = vld [vmem:[%s12213_s4 + $0x550] sm:$0xf]  ;;  %v11884_v45 = vld [vmem:[%s12213_s4 + $0x554] sm:$0xf0] }
 0x80b   : > { %v7422_v62 = vadd.f32 %v7421_v19, %v6922_v32  ;;  %v16706_v32 = vld [vmem:[#allocation398_spill] sm:$0xff]  ;;  %v11883_v19 = vld [vmem:[%s12213_s4 + $0x554] sm:$0xf] }
 0x80c   : > { %v7609_v54 = vadd.f32 %v16696_v34, %v4706_v12  ;;  %v4209_v36 = vadd.f32 %v16698_v57, %v2462_v5  ;;  %v16709_v12 = vld [vmem:[#allocation399_spill] sm:$0xff]  ;;  %v11008_v23 = vor.u32 %v11883_v19, %v11005_v49 }
 0x80d   : > { %v7707_v4 = vadd.f32 %v7422_v62, %v4951_v30  ;;  %v16710_v62 = vld [vmem:[#allocation132_spill] sm:$0xff]  ;;  %v16722_v49 = vld [vmem:[#allocation139_spill] sm:$0xff] }
 0x80e   : > { %7805 = vst.msk [vmem:[%s14605_s7 + $0x130] sm:$0xff] %vm1561_vm0, %v7609_v54  ;;  %v4958_v14 = vadd.f32 %v16710_v62, %v16709_v12  ;;  %v8535_v54 = vor.u32 %v11577_v17, %v8532_v31 }
 0x80f   : > { %7903 = vst.msk [vmem:[%s14605_s7 + $0x440] sm:$0xff] %vm1561_vm0, %v7707_v4  ;;  %v11004_v4 = vor.u32 %v11884_v45, %v11003_v0  ;;  %v16721_v0 = vld [vmem:[#allocation404_spill] sm:$0xff] }
 0x811   : > { %v4707_v2 = vpop.f32.mrf.mxu2  ;;  %v2464_v41 = vpop.f32.mrf.mxu0 }
 0x812   : > { %v7423_v46 = vpop.f32.mrf.mxu3  ;;  %v4708_v47 = vadd.f32 %v4707_v2, %v4209_v36  ;;  %v6927_v28 = vpop.f32.mrf.mxu1  ;;  %v2465_v16 = vadd.f32 %v2464_v41, %v16702_v63  ;;  %v16713_v36 = vld [vmem:[#allocation134_spill] sm:$0xff]  ;;  %v16714_v2 = vld [vmem:[#allocation401_spill] sm:$0xff] }
 0x813   : > { %v7424_v21 = vadd.f32 %v7423_v46, %v6924_v27  ;;  %v16715_v46 = vld [vmem:[#allocation135_spill] sm:$0xff]  ;;  %v8540_v63 = vld [vmem:[%s12213_s4 + $0x220] sm:$0xf0] }
 0x814   : > { %v7610_v48 = vadd.f32 %v16701_v43, %v4708_v47  ;;  %9156 = vmatmul.msk.bf16.gmra.mxu0 %vm1561_vm0, %v8527_v8  ;;  %v4212_v25 = vadd.f32 %v16703_v40, %v2465_v16  ;;  %v4961_v8 = vadd.f32 %v16715_v46, %v16714_v2  ;;  %v16717_v43 = vld [vmem:[#allocation136_spill] sm:$0xff]  ;;  %v11371_v16 = vld [vmem:[%s12213_s4 + $0x1e4] sm:$0xf]  ;;  %v9470_v40 = vld [vmem:[%s12213_s4 + $0x1e8] sm:$0xf0] }
 0x815   : > { %v7708_v11 = vadd.f32 %v7424_v21, %v4953_v15  ;;  %6966 = vmatmul.bf16.gmra.mxu1 %v10996_v22  ;;  %v9473_v3 = vor.u32 %v11371_v16, %v9470_v40  ;;  %v11021_v2 = vld [vmem:[%s12213_s4 + $0x578] sm:$0xf0]  ;;  %v16728_v46 = vld [vmem:[#allocation145_spill] sm:$0xff] }
 0x816   : > { %7806 = vst.msk [vmem:[%s14605_s7 + $0x138] sm:$0xff] %vm1561_vm0, %v7610_v48  ;;  %10086 = vmatmul.msk.bf16.gmra.mxu2 %vm1561_vm0, %v9457_v13 }
 0x817   : > { %11286 = vmatmul.msk.bf16.gmra.mxu3 %vm1561_vm0, %v11000_v26  ;;  %7904 = vst.msk [vmem:[%s14605_s7 + $0x448] sm:$0xff] %vm1561_vm0, %v7708_v11  ;;  %v11579_v11 = vld [vmem:[%s12213_s4 + $0x21c] sm:$0xf] }
 0x819   : > { %v4710_v55 = vpop.f32.mrf.mxu2  ;;  %v2466_v10 = vpop.f32.mrf.mxu0 }
 0x81a   : > { %v7426_v42 = vpop.f32.mrf.mxu3  ;;  %v4711_v60 = vadd.f32 %v4710_v55, %v4212_v25  ;;  %v6929_v61 = vpop.f32.mrf.mxu1  ;;  %v2467_v59 = vadd.f32 %v2466_v10, %v16707_v1  ;;  %v11011_v25 = vld [vmem:[%s12213_s4 + $0x560] sm:$0xf]  ;;  %v11886_v55 = vld [vmem:[%s12213_s4 + $0x564] sm:$0xf0] }
 0x81b   : > { %v7427_v35 = vadd.f32 %v7426_v42, %v6927_v28  ;;  %v16716_v28 = vld [vmem:[#allocation402_spill] sm:$0xff]  ;;  %v11885_v42 = vld [vmem:[%s12213_s4 + $0x564] sm:$0xf] }
 0x81c   : > { %v7611_v37 = vadd.f32 %v16706_v32, %v4711_v60  ;;  %v4214_v30 = vadd.f32 %v16708_v38, %v2467_v59  ;;  %v16719_v60 = vld [vmem:[#allocation403_spill] sm:$0xff]  ;;  %v11016_v39 = vor.u32 %v11885_v42, %v11013_v56 }
 0x81d   : > { %v7709_v44 = vadd.f32 %v7427_v35, %v4956_v20  ;;  %v16720_v35 = vld [vmem:[#allocation138_spill] sm:$0xff]  ;;  %v16732_v56 = vld [vmem:[#allocation147_spill] sm:$0xff] }
 0x81e   : > { %7807 = vst.msk [vmem:[%s14605_s7 + $0x140] sm:$0xff] %vm1561_vm0, %v7611_v37  ;;  %v4963_v10 = vadd.f32 %v16720_v35, %v16719_v60  ;;  %v8543_v37 = vor.u32 %v11579_v11, %v8540_v63 }
 0x81f   : > { %7905 = vst.msk [vmem:[%s14605_s7 + $0x450] sm:$0xff] %vm1561_vm0, %v7709_v44  ;;  %v11012_v44 = vor.u32 %v11886_v55, %v11011_v25  ;;  %v16731_v25 = vld [vmem:[#allocation406_spill] sm:$0xff] }
 0x821   : > { %v4712_v27 = vpop.f32.mrf.mxu2  ;;  %v2469_v33 = vpop.f32.mrf.mxu0 }
 0x822   : > { %v7428_v34 = vpop.f32.mrf.mxu3  ;;  %v4713_v58 = vadd.f32 %v4712_v27, %v4214_v30  ;;  %v6932_v6 = vpop.f32.mrf.mxu1  ;;  %v2470_v57 = vadd.f32 %v2469_v33, %v16712_v7  ;;  %v16723_v30 = vld [vmem:[#allocation141_spill] sm:$0xff]  ;;  %v16724_v27 = vld [vmem:[#allocation140_spill] sm:$0xff]  ;;  %v8548_v7 = vld [vmem:[%s12213_s4 + $0x230] sm:$0xf0] }
 0x823   : > { %v7429_v5 = vadd.f32 %v7428_v34, %v6929_v61  ;;  %v16725_v34 = vld [vmem:[#allocation142_spill] sm:$0xff] }
 0x824   : > { %v7612_v24 = vadd.f32 %v16711_v18, %v4713_v58  ;;  %9157 = vmatmul.msk.bf16.gmra.mxu0 %vm1561_vm0, %v8535_v54  ;;  %v4217_v53 = vadd.f32 %v16713_v36, %v2470_v57  ;;  %v4966_v54 = vadd.f32 %v16725_v34, %v16724_v27  ;;  %v16727_v18 = vld [vmem:[#allocation143_spill] sm:$0xff]  ;;  %v9478_v36 = vld [vmem:[%s12213_s4 + $0x1f8] sm:$0xf0]  ;;  %v11029_v27 = vld [vmem:[%s12213_s4 + $0x588] sm:$0xf0] }
 0x825   : > { %v7710_v50 = vadd.f32 %v7429_v5, %v4958_v14  ;;  %6971 = vmatmul.bf16.gmra.mxu1 %v11004_v4  ;;  %v11373_v57 = vld [vmem:[%s12213_s4 + $0x1f4] sm:$0xf]  ;;  %v16738_v34 = vld [vmem:[#allocation153_spill] sm:$0xff] }
 0x826   : > { %7808 = vst.msk [vmem:[%s14605_s7 + $0x148] sm:$0xff] %vm1561_vm0, %v7612_v24  ;;  %10087 = vmatmul.msk.bf16.gmra.mxu2 %vm1561_vm0, %v9465_v9  ;;  %v9481_v16 = vor.u32 %v11373_v57, %v9478_v36 }
 0x827   : > { %11287 = vmatmul.msk.bf16.gmra.mxu3 %vm1561_vm0, %v11008_v23  ;;  %7906 = vst.msk [vmem:[%s14605_s7 + $0x458] sm:$0xff] %vm1561_vm0, %v7710_v50  ;;  %v11581_v50 = vld [vmem:[%s12213_s4 + $0x22c] sm:$0xf] }
 0x829   : > { %v4715_v29 = vpop.f32.mrf.mxu2  ;;  %v2471_v21 = vpop.f32.mrf.mxu0 }
 0x82a   : > { %v7431_v15 = vpop.f32.mrf.mxu3  ;;  %v4716_v22 = vadd.f32 %v4715_v29, %v4217_v53  ;;  %v6934_v41 = vpop.f32.mrf.mxu1  ;;  %v2472_v48 = vadd.f32 %v2471_v21, %v16717_v43  ;;  %v11019_v53 = vld [vmem:[%s12213_s4 + $0x570] sm:$0xf]  ;;  %v11888_v29 = vld [vmem:[%s12213_s4 + $0x574] sm:$0xf0] }
 0x82b   : > { %v7432_v47 = vadd.f32 %v7431_v15, %v6932_v6  ;;  %v16726_v6 = vld [vmem:[#allocation405_spill] sm:$0xff]  ;;  %v11887_v15 = vld [vmem:[%s12213_s4 + $0x574] sm:$0xf] }
 0x82c   : > { %v7613_v13 = vadd.f32 %v16716_v28, %v4716_v22  ;;  %v4219_v20 = vadd.f32 %v16718_v52, %v2472_v48  ;;  %v16729_v22 = vld [vmem:[#allocation144_spill] sm:$0xff]  ;;  %v11024_v40 = vor.u32 %v11887_v15, %v11021_v2  ;;  %v16742_v2 = vld [vmem:[#allocation155_spill] sm:$0xff] }
 0x82d   : > { %v7711_v26 = vadd.f32 %v7432_v47, %v4961_v8  ;;  %v16730_v47 = vld [vmem:[#allocation146_spill] sm:$0xff] }
 0x82e   : > { %7809 = vst.msk [vmem:[%s14605_s7 + $0x150] sm:$0xff] %vm1561_vm0, %v7613_v13  ;;  %v4968_v21 = vadd.f32 %v16730_v47, %v16729_v22  ;;  %v8551_v13 = vor.u32 %v11581_v50, %v8548_v7 }
 0x82f   : > { %7907 = vst.msk [vmem:[%s14605_s7 + $0x460] sm:$0xff] %vm1561_vm0, %v7711_v26  ;;  %v11020_v26 = vor.u32 %v11888_v29, %v11019_v53  ;;  %v16741_v53 = vld [vmem:[#allocation408_spill] sm:$0xff] }
 0x831   : > { %v4717_v61 = vpop.f32.mrf.mxu2  ;;  %v2474_v17 = vpop.f32.mrf.mxu0 }
 0x832   : > { %v7433_v32 = vpop.f32.mrf.mxu3  ;;  %v4718_v1 = vadd.f32 %v4717_v61, %v4219_v20  ;;  %v6937_v31 = vpop.f32.mrf.mxu1  ;;  %v2475_v38 = vadd.f32 %v2474_v17, %v16722_v49  ;;  %v16733_v20 = vld [vmem:[#allocation149_spill] sm:$0xff]  ;;  %v16734_v61 = vld [vmem:[#allocation148_spill] sm:$0xff] }
 0x833   : > { %v7434_v59 = vadd.f32 %v7433_v32, %v6934_v41  ;;  %v16735_v32 = vld [vmem:[#allocation150_spill] sm:$0xff]  ;;  %v8556_v49 = vld [vmem:[%s12213_s4 + $0x240] sm:$0xf0] }
 0x834   : > { %v7614_v45 = vadd.f32 %v16721_v0, %v4718_v1  ;;  %9158 = vmatmul.msk.bf16.gmra.mxu0 %vm1561_vm0, %v8543_v37  ;;  %v4222_v12 = vadd.f32 %v16723_v30, %v2475_v38  ;;  %v4971_v37 = vadd.f32 %v16735_v32, %v16734_v61  ;;  %v16737_v0 = vld [vmem:[#allocation151_spill] sm:$0xff]  ;;  %v11375_v38 = vld [vmem:[%s12213_s4 + $0x204] sm:$0xf]  ;;  %v9486_v30 = vld [vmem:[%s12213_s4 + $0x208] sm:$0xf0] }
 0x835   : > { %v7712_v19 = vadd.f32 %v7434_v59, %v4963_v10  ;;  %6976 = vmatmul.bf16.gmra.mxu1 %v11012_v44  ;;  %v9489_v57 = vor.u32 %v11375_v38, %v9486_v30  ;;  %v11037_v61 = vld [vmem:[%s12213_s4 + $0x598] sm:$0xf0]  ;;  %v16748_v32 = vld [vmem:[#allocation161_spill] sm:$0xff] }
 0x836   : > { %7810 = vst.msk [vmem:[%s14605_s7 + $0x158] sm:$0xff] %vm1561_vm0, %v7614_v45  ;;  %10088 = vmatmul.msk.bf16.gmra.mxu2 %vm1561_vm0, %v9473_v3 }
 0x837   : > { %11288 = vmatmul.msk.bf16.gmra.mxu3 %vm1561_vm0, %v11016_v39  ;;  %7908 = vst.msk [vmem:[%s14605_s7 + $0x468] sm:$0xff] %vm1561_vm0, %v7712_v19  ;;  %v11583_v19 = vld [vmem:[%s12213_s4 + $0x23c] sm:$0xf] }
 0x839   : > { %v4720_v62 = vpop.f32.mrf.mxu2  ;;  %v2476_v5 = vpop.f32.mrf.mxu0 }
 0x83a   : > { %v7436_v14 = vpop.f32.mrf.mxu3  ;;  %v4721_v4 = vadd.f32 %v4720_v62, %v4222_v12  ;;  %v6939_v33 = vpop.f32.mrf.mxu1  ;;  %v2477_v24 = vadd.f32 %v2476_v5, %v16727_v18  ;;  %v11027_v12 = vld [vmem:[%s12213_s4 + $0x580] sm:$0xf]  ;;  %v11890_v62 = vld [vmem:[%s12213_s4 + $0x584] sm:$0xf0] }
 0x83b   : > { %v7437_v58 = vadd.f32 %v7436_v14, %v6937_v31  ;;  %v16736_v31 = vld [vmem:[#allocation407_spill] sm:$0xff]  ;;  %v11889_v14 = vld [vmem:[%s12213_s4 + $0x584] sm:$0xf] }
 0x83c   : > { %v7615_v9 = vadd.f32 %v16726_v6, %v4721_v4  ;;  %v4224_v8 = vadd.f32 %v16728_v46, %v2477_v24  ;;  %v16739_v4 = vld [vmem:[#allocation152_spill] sm:$0xff]  ;;  %v11032_v36 = vor.u32 %v11889_v14, %v11029_v27  ;;  %v16752_v27 = vld [vmem:[#allocation163_spill] sm:$0xff] }
 0x83d   : > { %v7713_v23 = vadd.f32 %v7437_v58, %v4966_v54  ;;  %v16740_v58 = vld [vmem:[#allocation154_spill] sm:$0xff] }
 0x83e   : > { %7811 = vst.msk [vmem:[%s14605_s7 + $0x160] sm:$0xff] %vm1561_vm0, %v7615_v9  ;;  %v4973_v5 = vadd.f32 %v16740_v58, %v16739_v4  ;;  %v8559_v9 = vor.u32 %v11583_v19, %v8556_v49 }
 0x83f   : > { %7909 = vst.msk [vmem:[%s14605_s7 + $0x470] sm:$0xff] %vm1561_vm0, %v7713_v23  ;;  %v11028_v23 = vor.u32 %v11890_v62, %v11027_v12  ;;  %v16751_v12 = vld [vmem:[#allocation410_spill] sm:$0xff] }
 0x841   : > { %v4722_v41 = vpop.f32.mrf.mxu2  ;;  %v2479_v11 = vpop.f32.mrf.mxu0 }
 0x842   : > { %v7438_v28 = vpop.f32.mrf.mxu3  ;;  %v4723_v43 = vadd.f32 %v4722_v41, %v4224_v8  ;;  %v6942_v63 = vpop.f32.mrf.mxu1  ;;  %v2480_v52 = vadd.f32 %v2479_v11, %v16732_v56  ;;  %v16743_v8 = vld [vmem:[#allocation157_spill] sm:$0xff]  ;;  %v16744_v41 = vld [vmem:[#allocation156_spill] sm:$0xff]  ;;  %v8564_v56 = vld [vmem:[%s12213_s4 + $0x250] sm:$0xf0] }
 0x843   : > { %v7439_v48 = vadd.f32 %v7438_v28, %v6939_v33  ;;  %v16745_v28 = vld [vmem:[#allocation158_spill] sm:$0xff] }
 0x844   : > { %v7616_v55 = vadd.f32 %v16731_v25, %v4723_v43  ;;  %9159 = vmatmul.msk.bf16.gmra.mxu0 %vm1561_vm0, %v8551_v13  ;;  %v4227_v60 = vadd.f32 %v16733_v20, %v2480_v52  ;;  %v4976_v13 = vadd.f32 %v16745_v28, %v16744_v41  ;;  %v16747_v25 = vld [vmem:[#allocation159_spill] sm:$0xff]  ;;  %v9494_v20 = vld [vmem:[%s12213_s4 + $0x218] sm:$0xf0]  ;;  %v11045_v41 = vld [vmem:[%s12213_s4 + $0x5a8] sm:$0xf0] }
 0x845   : > { %v7714_v42 = vadd.f32 %v7439_v48, %v4968_v21  ;;  %6981 = vmatmul.bf16.gmra.mxu1 %v11020_v26  ;;  %v11377_v52 = vld [vmem:[%s12213_s4 + $0x214] sm:$0xf]  ;;  %v16758_v28 = vld [vmem:[#allocation169_spill] sm:$0xff] }
 0x846   : > { %7812 = vst.msk [vmem:[%s14605_s7 + $0x168] sm:$0xff] %vm1561_vm0, %v7616_v55  ;;  %10089 = vmatmul.msk.bf16.gmra.mxu2 %vm1561_vm0, %v9481_v16  ;;  %v9497_v38 = vor.u32 %v11377_v52, %v9494_v20 }
 0x847   : > { %11289 = vmatmul.msk.bf16.gmra.mxu3 %vm1561_vm0, %v11024_v40  ;;  %7910 = vst.msk [vmem:[%s14605_s7 + $0x478] sm:$0xff] %vm1561_vm0, %v7714_v42  ;;  %v11585_v42 = vld [vmem:[%s12213_s4 + $0x24c] sm:$0xf] }
 0x849   : > { %v4725_v35 = vpop.f32.mrf.mxu2  ;;  %v2481_v59 = vpop.f32.mrf.mxu0 }
 0x84a   : > { %v7441_v10 = vpop.f32.mrf.mxu3  ;;  %v4726_v44 = vadd.f32 %v4725_v35, %v4227_v60  ;;  %v6944_v17 = vpop.f32.mrf.mxu1  ;;  %v2482_v45 = vadd.f32 %v2481_v59, %v16737_v0  ;;  %v11035_v60 = vld [vmem:[%s12213_s4 + $0x590] sm:$0xf]  ;;  %v11892_v35 = vld [vmem:[%s12213_s4 + $0x594] sm:$0xf0] }
 0x84b   : > { %v7442_v1 = vadd.f32 %v7441_v10, %v6942_v63  ;;  %v16746_v63 = vld [vmem:[#allocation409_spill] sm:$0xff]  ;;  %v11891_v10 = vld [vmem:[%s12213_s4 + $0x594] sm:$0xf] }
 0x84c   : > { %v7617_v3 = vadd.f32 %v16736_v31, %v4726_v44  ;;  %v4229_v54 = vadd.f32 %v16738_v34, %v2482_v45  ;;  %v16749_v44 = vld [vmem:[#allocation160_spill] sm:$0xff]  ;;  %v11040_v30 = vor.u32 %v11891_v10, %v11037_v61  ;;  %v16762_v61 = vld [vmem:[#allocation171_spill] sm:$0xff] }
 0x84d   : > { %v7715_v39 = vadd.f32 %v7442_v1, %v4971_v37  ;;  %v16750_v1 = vld [vmem:[#allocation162_spill] sm:$0xff] }
 0x84e   : > { %7813 = vst.msk [vmem:[%s14605_s7 + $0x170] sm:$0xff] %vm1561_vm0, %v7617_v3  ;;  %v4978_v59 = vadd.f32 %v16750_v1, %v16749_v44  ;;  %v8567_v3 = vor.u32 %v11585_v42, %v8564_v56 }
 0x84f   : > { %7911 = vst.msk [vmem:[%s14605_s7 + $0x480] sm:$0xff] %vm1561_vm0, %v7715_v39  ;;  %v11036_v39 = vor.u32 %v11892_v35, %v11035_v60  ;;  %v16761_v60 = vld [vmem:[#allocation412_spill] sm:$0xff] }
 0x851   : > { %v4727_v33 = vpop.f32.mrf.mxu2  ;;  %v2484_v50 = vpop.f32.mrf.mxu0 }
 0x852   : > { %v7443_v6 = vpop.f32.mrf.mxu3  ;;  %v4728_v18 = vadd.f32 %v4727_v33, %v4229_v54  ;;  %v6947_v7 = vpop.f32.mrf.mxu1  ;;  %v2485_v46 = vadd.f32 %v2484_v50, %v16742_v2  ;;  %v16753_v54 = vld [vmem:[#allocation165_spill] sm:$0xff]  ;;  %v16754_v33 = vld [vmem:[#allocation164_spill] sm:$0xff] }
 0x853   : > { %v7444_v24 = vadd.f32 %v7443_v6, %v6944_v17  ;;  %v16755_v6 = vld [vmem:[#allocation166_spill] sm:$0xff]  ;;  %v8572_v2 = vld [vmem:[%s12213_s4 + $0x260] sm:$0xf0] }
 0x854   : > { %v7618_v29 = vadd.f32 %v16741_v53, %v4728_v18  ;;  %9160 = vmatmul.msk.bf16.gmra.mxu0 %vm1561_vm0, %v8559_v9  ;;  %v4232_v22 = vadd.f32 %v16743_v8, %v2485_v46  ;;  %v4981_v9 = vadd.f32 %v16755_v6, %v16754_v33  ;;  %v16757_v53 = vld [vmem:[#allocation167_spill] sm:$0xff]  ;;  %v11379_v46 = vld [vmem:[%s12213_s4 + $0x224] sm:$0xf]  ;;  %v9502_v8 = vld [vmem:[%s12213_s4 + $0x228] sm:$0xf0] }
 0x855   : > { %v7716_v15 = vadd.f32 %v7444_v24, %v4973_v5  ;;  %6986 = vmatmul.bf16.gmra.mxu1 %v11028_v23  ;;  %v9505_v52 = vor.u32 %v11379_v46, %v9502_v8  ;;  %v11053_v33 = vld [vmem:[%s12213_s4 + $0x5b8] sm:$0xf0]  ;;  %v16768_v6 = vld [vmem:[#allocation177_spill] sm:$0xff] }
 0x856   : > { %7814 = vst.msk [vmem:[%s14605_s7 + $0x178] sm:$0xff] %vm1561_vm0, %v7618_v29  ;;  %10090 = vmatmul.msk.bf16.gmra.mxu2 %vm1561_vm0, %v9489_v57 }
 0x857   : > { %11290 = vmatmul.msk.bf16.gmra.mxu3 %vm1561_vm0, %v11032_v36  ;;  %7912 = vst.msk [vmem:[%s14605_s7 + $0x488] sm:$0xff] %vm1561_vm0, %v7716_v15  ;;  %v11587_v15 = vld [vmem:[%s12213_s4 + $0x25c] sm:$0xf] }
 0x859   : > { %v4730_v47 = vpop.f32.mrf.mxu2  ;;  %v2486_v48 = vpop.f32.mrf.mxu0 }
 0x85a   : > { %v7446_v21 = vpop.f32.mrf.mxu3  ;;  %v4731_v26 = vadd.f32 %v4730_v47, %v4232_v22  ;;  %v6949_v11 = vpop.f32.mrf.mxu1  ;;  %v2487_v55 = vadd.f32 %v2486_v48, %v16747_v25  ;;  %v11043_v22 = vld [vmem:[%s12213_s4 + $0x5a0] sm:$0xf]  ;;  %v11894_v47 = vld [vmem:[%s12213_s4 + $0x5a4] sm:$0xf0] }
 0x85b   : > { %v7447_v43 = vadd.f32 %v7446_v21, %v6947_v7  ;;  %v16756_v7 = vld [vmem:[#allocation411_spill] sm:$0xff]  ;;  %v11893_v21 = vld [vmem:[%s12213_s4 + $0x5a4] sm:$0xf] }
 0x85c   : > { %v7619_v16 = vadd.f32 %v16746_v63, %v4731_v26  ;;  %v4234_v37 = vadd.f32 %v16748_v32, %v2487_v55  ;;  %v16759_v26 = vld [vmem:[#allocation168_spill] sm:$0xff]  ;;  %v11048_v20 = vor.u32 %v11893_v21, %v11045_v41  ;;  %v16772_v41 = vld [vmem:[#allocation179_spill] sm:$0xff] }
 0x85d   : > { %v7717_v40 = vadd.f32 %v7447_v43, %v4976_v13  ;;  %v16760_v43 = vld [vmem:[#allocation170_spill] sm:$0xff] }
 0x85e   : > { %7815 = vst.msk [vmem:[%s14605_s7 + $0x180] sm:$0xff] %vm1561_vm0, %v7619_v16  ;;  %v4983_v48 = vadd.f32 %v16760_v43, %v16759_v26  ;;  %v8575_v16 = vor.u32 %v11587_v15, %v8572_v2 }
 0x85f   : > { %7913 = vst.msk [vmem:[%s14605_s7 + $0x490] sm:$0xff] %vm1561_vm0, %v7717_v40  ;;  %v11044_v40 = vor.u32 %v11894_v47, %v11043_v22  ;;  %v16771_v22 = vld [vmem:[#allocation414_spill] sm:$0xff] }
 0x861   : > { %v4732_v17 = vpop.f32.mrf.mxu2  ;;  %v2489_v19 = vpop.f32.mrf.mxu0 }
 0x862   : > { %v7448_v31 = vpop.f32.mrf.mxu3  ;;  %v4733_v0 = vadd.f32 %v4732_v17, %v4234_v37  ;;  %v6952_v49 = vpop.f32.mrf.mxu1  ;;  %v2490_v34 = vadd.f32 %v2489_v19, %v16752_v27  ;;  %v16763_v37 = vld [vmem:[#allocation173_spill] sm:$0xff]  ;;  %v16764_v17 = vld [vmem:[#allocation172_spill] sm:$0xff]  ;;  %v8580_v27 = vld [vmem:[%s12213_s4 + $0x270] sm:$0xf0] }
 0x863   : > { %v7449_v45 = vadd.f32 %v7448_v31, %v6949_v11  ;;  %v16765_v31 = vld [vmem:[#allocation174_spill] sm:$0xff] }
 0x864   : > { %v7620_v62 = vadd.f32 %v16751_v12, %v4733_v0  ;;  %9161 = vmatmul.msk.bf16.gmra.mxu0 %vm1561_vm0, %v8567_v3  ;;  %v4237_v4 = vadd.f32 %v16753_v54, %v2490_v34  ;;  %v4986_v3 = vadd.f32 %v16765_v31, %v16764_v17  ;;  %v16767_v12 = vld [vmem:[#allocation175_spill] sm:$0xff]  ;;  %v9510_v54 = vld [vmem:[%s12213_s4 + $0x238] sm:$0xf0]  ;;  %v11061_v17 = vld [vmem:[%s12213_s4 + $0x5c8] sm:$0xf0] }
 0x865   : > { %v7718_v14 = vadd.f32 %v7449_v45, %v4978_v59  ;;  %6991 = vmatmul.bf16.gmra.mxu1 %v11036_v39  ;;  %v11381_v34 = vld [vmem:[%s12213_s4 + $0x234] sm:$0xf]  ;;  %v16778_v31 = vld [vmem:[#allocation185_spill] sm:$0xff] }
 0x866   : > { %7816 = vst.msk [vmem:[%s14605_s7 + $0x188] sm:$0xff] %vm1561_vm0, %v7620_v62  ;;  %10091 = vmatmul.msk.bf16.gmra.mxu2 %vm1561_vm0, %v9497_v38  ;;  %v9513_v46 = vor.u32 %v11381_v34, %v9510_v54 }
 0x867   : > { %11291 = vmatmul.msk.bf16.gmra.mxu3 %vm1561_vm0, %v11040_v30  ;;  %7914 = vst.msk [vmem:[%s14605_s7 + $0x498] sm:$0xff] %vm1561_vm0, %v7718_v14  ;;  %v11589_v14 = vld [vmem:[%s12213_s4 + $0x26c] sm:$0xf] }
 0x869   : > { %v4735_v58 = vpop.f32.mrf.mxu2  ;;  %v2491_v24 = vpop.f32.mrf.mxu0 }
 0x86a   : > { %v7451_v5 = vpop.f32.mrf.mxu3  ;;  %v4736_v23 = vadd.f32 %v4735_v58, %v4237_v4  ;;  %v6954_v50 = vpop.f32.mrf.mxu1  ;;  %v2492_v29 = vadd.f32 %v2491_v24, %v16757_v53  ;;  %v11051_v4 = vld [vmem:[%s12213_s4 + $0x5b0] sm:$0xf]  ;;  %v11896_v58 = vld [vmem:[%s12213_s4 + $0x5b4] sm:$0xf0] }
 0x86b   : > { %v7452_v18 = vadd.f32 %v7451_v5, %v6952_v49  ;;  %v16766_v49 = vld [vmem:[#allocation413_spill] sm:$0xff]  ;;  %v11895_v5 = vld [vmem:[%s12213_s4 + $0x5b4] sm:$0xf] }
 0x86c   : > { %v7621_v57 = vadd.f32 %v16756_v7, %v4736_v23  ;;  %v4239_v13 = vadd.f32 %v16758_v28, %v2492_v29  ;;  %v16769_v23 = vld [vmem:[#allocation176_spill] sm:$0xff]  ;;  %v11056_v8 = vor.u32 %v11895_v5, %v11053_v33  ;;  %v16782_v33 = vld [vmem:[#allocation187_spill] sm:$0xff] }
 0x86d   : > { %v7719_v36 = vadd.f32 %v7452_v18, %v4981_v9  ;;  %v16770_v18 = vld [vmem:[#allocation178_spill] sm:$0xff] }
 0x86e   : > { %7817 = vst.msk [vmem:[%s14605_s7 + $0x190] sm:$0xff] %vm1561_vm0, %v7621_v57  ;;  %v4988_v24 = vadd.f32 %v16770_v18, %v16769_v23  ;;  %v8583_v57 = vor.u32 %v11589_v14, %v8580_v27 }
 0x86f   : > { %7915 = vst.msk [vmem:[%s14605_s7 + $0x4a0] sm:$0xff] %vm1561_vm0, %v7719_v36  ;;  %v11052_v36 = vor.u32 %v11896_v58, %v11051_v4  ;;  %v16781_v4 = vld [vmem:[#allocation416_spill] sm:$0xff] }
 0x871   : > { %v4737_v11 = vpop.f32.mrf.mxu2  ;;  %v2494_v42 = vpop.f32.mrf.mxu0 }
 0x872   : > { %v7453_v63 = vpop.f32.mrf.mxu3  ;;  %v4738_v25 = vadd.f32 %v4737_v11, %v4239_v13  ;;  %v6957_v56 = vpop.f32.mrf.mxu1  ;;  %v2495_v32 = vadd.f32 %v2494_v42, %v16762_v61  ;;  %v16773_v13 = vld [vmem:[#allocation181_spill] sm:$0xff]  ;;  %v16774_v11 = vld [vmem:[#allocation180_spill] sm:$0xff] }
 0x873   : > { %v7454_v55 = vadd.f32 %v7453_v63, %v6954_v50  ;;  %v16775_v63 = vld [vmem:[#allocation182_spill] sm:$0xff]  ;;  %v8588_v61 = vld [vmem:[%s12213_s4 + $0x280] sm:$0xf0] }
 0x874   : > { %v7622_v35 = vadd.f32 %v16761_v60, %v4738_v25  ;;  %9162 = vmatmul.msk.bf16.gmra.mxu0 %vm1561_vm0, %v8575_v16  ;;  %v4242_v44 = vadd.f32 %v16763_v37, %v2495_v32  ;;  %v4991_v16 = vadd.f32 %v16775_v63, %v16774_v11  ;;  %v16777_v60 = vld [vmem:[#allocation183_spill] sm:$0xff]  ;;  %v11383_v32 = vld [vmem:[%s12213_s4 + $0x244] sm:$0xf]  ;;  %v9518_v37 = vld [vmem:[%s12213_s4 + $0x248] sm:$0xf0] }
 0x875   : > { %v7720_v10 = vadd.f32 %v7454_v55, %v4983_v48  ;;  %6996 = vmatmul.bf16.gmra.mxu1 %v11044_v40  ;;  %v9521_v34 = vor.u32 %v11383_v32, %v9518_v37  ;;  %v11069_v11 = vld [vmem:[%s12213_s4 + $0x5d8] sm:$0xf0]  ;;  %v16788_v63 = vld [vmem:[#allocation193_spill] sm:$0xff] }
 0x876   : > { %7818 = vst.msk [vmem:[%s14605_s7 + $0x198] sm:$0xff] %vm1561_vm0, %v7622_v35  ;;  %10092 = vmatmul.msk.bf16.gmra.mxu2 %vm1561_vm0, %v9505_v52 }
 0x877   : > { %11292 = vmatmul.msk.bf16.gmra.mxu3 %vm1561_vm0, %v11048_v20  ;;  %7916 = vst.msk [vmem:[%s14605_s7 + $0x4a8] sm:$0xff] %vm1561_vm0, %v7720_v10  ;;  %v11591_v10 = vld [vmem:[%s12213_s4 + $0x27c] sm:$0xf] }
 0x879   : > { %v4740_v1 = vpop.f32.mrf.mxu2  ;;  %v2496_v45 = vpop.f32.mrf.mxu0 }
 0x87a   : > { %v7456_v59 = vpop.f32.mrf.mxu3  ;;  %v4741_v39 = vadd.f32 %v4740_v1, %v4242_v44  ;;  %v6959_v19 = vpop.f32.mrf.mxu1  ;;  %v2497_v62 = vadd.f32 %v2496_v45, %v16767_v12  ;;  %v11059_v44 = vld [vmem:[%s12213_s4 + $0x5c0] sm:$0xf]  ;;  %v11898_v1 = vld [vmem:[%s12213_s4 + $0x5c4] sm:$0xf0] }
 0x87b   : > { %v7457_v0 = vadd.f32 %v7456_v59, %v6957_v56  ;;  %v16776_v56 = vld [vmem:[#allocation415_spill] sm:$0xff]  ;;  %v11897_v59 = vld [vmem:[%s12213_s4 + $0x5c4] sm:$0xf] }
 0x87c   : > { %v7623_v38 = vadd.f32 %v16766_v49, %v4741_v39  ;;  %v4244_v9 = vadd.f32 %v16768_v6, %v2497_v62  ;;  %v16779_v39 = vld [vmem:[#allocation184_spill] sm:$0xff]  ;;  %v11064_v54 = vor.u32 %v11897_v59, %v11061_v17  ;;  %v16792_v17 = vld [vmem:[#allocation195_spill] sm:$0xff] }
 0x87d   : > { %v7721_v30 = vadd.f32 %v7457_v0, %v4986_v3  ;;  %v16780_v0 = vld [vmem:[#allocation186_spill] sm:$0xff] }
 0x87e   : > { %7819 = vst.msk [vmem:[%s14605_s7 + $0x1a0] sm:$0xff] %vm1561_vm0, %v7623_v38  ;;  %v4993_v45 = vadd.f32 %v16780_v0, %v16779_v39  ;;  %v8591_v38 = vor.u32 %v11591_v10, %v8588_v61 }
 0x87f   : > { %7917 = vst.msk [vmem:[%s14605_s7 + $0x4b0] sm:$0xff] %vm1561_vm0, %v7721_v30  ;;  %v11060_v30 = vor.u32 %v11898_v1, %v11059_v44  ;;  %v16791_v44 = vld [vmem:[#allocation418_spill] sm:$0xff] }
 0x881   : > { %v4742_v50 = vpop.f32.mrf.mxu2  ;;  %v2499_v15 = vpop.f32.mrf.mxu0 }
 0x882   : > { %v7458_v7 = vpop.f32.mrf.mxu3  ;;  %v4743_v53 = vadd.f32 %v4742_v50, %v4244_v9  ;;  %v6962_v2 = vpop.f32.mrf.mxu1  ;;  %v2500_v28 = vadd.f32 %v2499_v15, %v16772_v41  ;;  %v16783_v9 = vld [vmem:[#allocation189_spill] sm:$0xff]  ;;  %v16784_v50 = vld [vmem:[#allocation188_spill] sm:$0xff]  ;;  %v8596_v41 = vld [vmem:[%s12213_s4 + $0x290] sm:$0xf0] }
 0x883   : > { %v7459_v29 = vadd.f32 %v7458_v7, %v6959_v19  ;;  %v16785_v7 = vld [vmem:[#allocation190_spill] sm:$0xff] }
 0x884   : > { %v7624_v47 = vadd.f32 %v16771_v22, %v4743_v53  ;;  %9163 = vmatmul.msk.bf16.gmra.mxu0 %vm1561_vm0, %v8583_v57  ;;  %v4247_v26 = vadd.f32 %v16773_v13, %v2500_v28  ;;  %v4996_v57 = vadd.f32 %v16785_v7, %v16784_v50  ;;  %v16787_v22 = vld [vmem:[#allocation191_spill] sm:$0xff]  ;;  %v9526_v13 = vld [vmem:[%s12213_s4 + $0x258] sm:$0xf0]  ;;  %v11077_v50 = vld [vmem:[%s12213_s4 + $0x5e8] sm:$0xf0] }
 0x885   : > { %v7722_v21 = vadd.f32 %v7459_v29, %v4988_v24  ;;  %7001 = vmatmul.bf16.gmra.mxu1 %v11052_v36  ;;  %v11385_v28 = vld [vmem:[%s12213_s4 + $0x254] sm:$0xf]  ;;  %v16798_v7 = vld [vmem:[#allocation201_spill] sm:$0xff] }
 0x886   : > { %7820 = vst.msk [vmem:[%s14605_s7 + $0x1a8] sm:$0xff] %vm1561_vm0, %v7624_v47  ;;  %10093 = vmatmul.msk.bf16.gmra.mxu2 %vm1561_vm0, %v9513_v46  ;;  %v9529_v32 = vor.u32 %v11385_v28, %v9526_v13 }
 0x887   : > { %11293 = vmatmul.msk.bf16.gmra.mxu3 %vm1561_vm0, %v11056_v8  ;;  %7918 = vst.msk [vmem:[%s14605_s7 + $0x4b8] sm:$0xff] %vm1561_vm0, %v7722_v21  ;;  %v11593_v21 = vld [vmem:[%s12213_s4 + $0x28c] sm:$0xf] }
 0x889   : > { %v4745_v43 = vpop.f32.mrf.mxu2  ;;  %v2501_v55 = vpop.f32.mrf.mxu0 }
 0x88a   : > { %v7461_v48 = vpop.f32.mrf.mxu3  ;;  %v4746_v40 = vadd.f32 %v4745_v43, %v4247_v26  ;;  %v6964_v42 = vpop.f32.mrf.mxu1  ;;  %v2502_v35 = vadd.f32 %v2501_v55, %v16777_v60  ;;  %v11067_v26 = vld [vmem:[%s12213_s4 + $0x5d0] sm:$0xf]  ;;  %v11900_v43 = vld [vmem:[%s12213_s4 + $0x5d4] sm:$0xf0] }
 0x88b   : > { %v7462_v25 = vadd.f32 %v7461_v48, %v6962_v2  ;;  %v16786_v2 = vld [vmem:[#allocation417_spill] sm:$0xff]  ;;  %v11899_v48 = vld [vmem:[%s12213_s4 + $0x5d4] sm:$0xf] }
 0x88c   : > { %v7625_v52 = vadd.f32 %v16776_v56, %v4746_v40  ;;  %v4249_v3 = vadd.f32 %v16778_v31, %v2502_v35  ;;  %v16789_v40 = vld [vmem:[#allocation192_spill] sm:$0xff]  ;;  %v11072_v37 = vor.u32 %v11899_v48, %v11069_v11  ;;  %v16802_v11 = vld [vmem:[#allocation203_spill] sm:$0xff] }
 0x88d   : > { %v7723_v20 = vadd.f32 %v7462_v25, %v4991_v16  ;;  %v16790_v25 = vld [vmem:[#allocation194_spill] sm:$0xff] }
 0x88e   : > { %7821 = vst.msk [vmem:[%s14605_s7 + $0x1b0] sm:$0xff] %vm1561_vm0, %v7625_v52  ;;  %v4998_v55 = vadd.f32 %v16790_v25, %v16789_v40  ;;  %v8599_v52 = vor.u32 %v11593_v21, %v8596_v41 }
 0x88f   : > { %7919 = vst.msk [vmem:[%s14605_s7 + $0x4c0] sm:$0xff] %vm1561_vm0, %v7723_v20  ;;  %v11068_v20 = vor.u32 %v11900_v43, %v11067_v26  ;;  %v16801_v26 = vld [vmem:[#allocation420_spill] sm:$0xff] }
 0x891   : > { %v4747_v19 = vpop.f32.mrf.mxu2  ;;  %v2504_v14 = vpop.f32.mrf.mxu0 }
 0x892   : > { %v7463_v49 = vpop.f32.mrf.mxu3  ;;  %v4748_v12 = vadd.f32 %v4747_v19, %v4249_v3  ;;  %v6967_v27 = vpop.f32.mrf.mxu1  ;;  %v2505_v6 = vadd.f32 %v2504_v14, %v16782_v33  ;;  %v16793_v3 = vld [vmem:[#allocation197_spill] sm:$0xff]  ;;  %v16794_v19 = vld [vmem:[#allocation196_spill] sm:$0xff] }
 0x893   : > { %v7464_v62 = vadd.f32 %v7463_v49, %v6964_v42  ;;  %v16795_v49 = vld [vmem:[#allocation198_spill] sm:$0xff]  ;;  %v8604_v33 = vld [vmem:[%s12213_s4 + $0x2a0] sm:$0xf0] }
 0x894   : > { %v7626_v58 = vadd.f32 %v16781_v4, %v4748_v12  ;;  %9164 = vmatmul.msk.bf16.gmra.mxu0 %vm1561_vm0, %v8591_v38  ;;  %v4252_v23 = vadd.f32 %v16783_v9, %v2505_v6  ;;  %v5001_v38 = vadd.f32 %v16795_v49, %v16794_v19  ;;  %v16797_v4 = vld [vmem:[#allocation199_spill] sm:$0xff]  ;;  %v11387_v6 = vld [vmem:[%s12213_s4 + $0x264] sm:$0xf]  ;;  %v9534_v9 = vld [vmem:[%s12213_s4 + $0x268] sm:$0xf0] }
 0x895   : > { %v7724_v5 = vadd.f32 %v7464_v62, %v4993_v45  ;;  %7006 = vmatmul.bf16.gmra.mxu1 %v11060_v30  ;;  %v9537_v28 = vor.u32 %v11387_v6, %v9534_v9  ;;  %v11085_v19 = vld [vmem:[%s12213_s4 + $0x5f8] sm:$0xf0]  ;;  %v16808_v49 = vld [vmem:[#allocation209_spill] sm:$0xff] }
 0x896   : > { %7822 = vst.msk [vmem:[%s14605_s7 + $0x1b8] sm:$0xff] %vm1561_vm0, %v7626_v58  ;;  %10094 = vmatmul.msk.bf16.gmra.mxu2 %vm1561_vm0, %v9521_v34 }
 0x897   : > { %11294 = vmatmul.msk.bf16.gmra.mxu3 %vm1561_vm0, %v11064_v54  ;;  %7920 = vst.msk [vmem:[%s14605_s7 + $0x4c8] sm:$0xff] %vm1561_vm0, %v7724_v5  ;;  %v11595_v5 = vld [vmem:[%s12213_s4 + $0x29c] sm:$0xf] }
 0x899   : > { %v4750_v18 = vpop.f32.mrf.mxu2  ;;  %v2506_v29 = vpop.f32.mrf.mxu0 }
 0x89a   : > { %v7466_v24 = vpop.f32.mrf.mxu3  ;;  %v4751_v36 = vadd.f32 %v4750_v18, %v4252_v23  ;;  %v6969_v15 = vpop.f32.mrf.mxu1  ;;  %v2507_v47 = vadd.f32 %v2506_v29, %v16787_v22  ;;  %v11075_v23 = vld [vmem:[%s12213_s4 + $0x5e0] sm:$0xf]  ;;  %v11902_v18 = vld [vmem:[%s12213_s4 + $0x5e4] sm:$0xf0] }
 0x89b   : > { %v7467_v53 = vadd.f32 %v7466_v24, %v6967_v27  ;;  %v16796_v27 = vld [vmem:[#allocation419_spill] sm:$0xff]  ;;  %v11901_v24 = vld [vmem:[%s12213_s4 + $0x5e4] sm:$0xf] }
 0x89c   : > { %v7627_v46 = vadd.f32 %v16786_v2, %v4751_v36  ;;  %v4254_v16 = vadd.f32 %v16788_v63, %v2507_v47  ;;  %v16799_v36 = vld [vmem:[#allocation200_spill] sm:$0xff]  ;;  %v11080_v13 = vor.u32 %v11901_v24, %v11077_v50  ;;  %v16812_v50 = vld [vmem:[#allocation211_spill] sm:$0xff] }
 0x89d   : > { %v7725_v8 = vadd.f32 %v7467_v53, %v4996_v57  ;;  %v16800_v53 = vld [vmem:[#allocation202_spill] sm:$0xff] }
 0x89e   : > { %7823 = vst.msk [vmem:[%s14605_s7 + $0x1c0] sm:$0xff] %vm1561_vm0, %v7627_v46  ;;  %v5003_v29 = vadd.f32 %v16800_v53, %v16799_v36  ;;  %v8607_v46 = vor.u32 %v11595_v5, %v8604_v33 }
 0x89f   : > { %7921 = vst.msk [vmem:[%s14605_s7 + $0x4d0] sm:$0xff] %vm1561_vm0, %v7725_v8  ;;  %v11076_v8 = vor.u32 %v11902_v18, %v11075_v23  ;;  %v16811_v23 = vld [vmem:[#allocation422_spill] sm:$0xff] }
 0x8a1   : > { %v4752_v42 = vpop.f32.mrf.mxu2  ;;  %v2509_v10 = vpop.f32.mrf.mxu0 }
 0x8a2   : > { %v7468_v56 = vpop.f32.mrf.mxu3  ;;  %v4753_v60 = vadd.f32 %v4752_v42, %v4254_v16  ;;  %v6972_v61 = vpop.f32.mrf.mxu1  ;;  %v2510_v31 = vadd.f32 %v2509_v10, %v16792_v17  ;;  %v16803_v16 = vld [vmem:[#allocation205_spill] sm:$0xff]  ;;  %v16804_v42 = vld [vmem:[#allocation204_spill] sm:$0xff]  ;;  %v8612_v17 = vld [vmem:[%s12213_s4 + $0x2b0] sm:$0xf0] }
 0x8a3   : > { %v7469_v35 = vadd.f32 %v7468_v56, %v6969_v15  ;;  %v16805_v56 = vld [vmem:[#allocation206_spill] sm:$0xff] }
 0x8a4   : > { %v7628_v1 = vadd.f32 %v16791_v44, %v4753_v60  ;;  %9165 = vmatmul.msk.bf16.gmra.mxu0 %vm1561_vm0, %v8599_v52  ;;  %v4257_v39 = vadd.f32 %v16793_v3, %v2510_v31  ;;  %v5006_v52 = vadd.f32 %v16805_v56, %v16804_v42  ;;  %v16807_v44 = vld [vmem:[#allocation207_spill] sm:$0xff]  ;;  %v9542_v3 = vld [vmem:[%s12213_s4 + $0x278] sm:$0xf0]  ;;  %v11093_v42 = vld [vmem:[%s12213_s4 + $0x608] sm:$0xf0] }
 0x8a5   : > { %v7726_v59 = vadd.f32 %v7469_v35, %v4998_v55  ;;  %7011 = vmatmul.bf16.gmra.mxu1 %v11068_v20  ;;  %v11389_v31 = vld [vmem:[%s12213_s4 + $0x274] sm:$0xf]  ;;  %v16818_v56 = vld [vmem:[#allocation217_spill] sm:$0xff] }
 0x8a6   : > { %7824 = vst.msk [vmem:[%s14605_s7 + $0x1c8] sm:$0xff] %vm1561_vm0, %v7628_v1  ;;  %10095 = vmatmul.msk.bf16.gmra.mxu2 %vm1561_vm0, %v9529_v32  ;;  %v9545_v6 = vor.u32 %v11389_v31, %v9542_v3 }
 0x8a7   : > { %11295 = vmatmul.msk.bf16.gmra.mxu3 %vm1561_vm0, %v11072_v37  ;;  %7922 = vst.msk [vmem:[%s14605_s7 + $0x4d8] sm:$0xff] %vm1561_vm0, %v7726_v59  ;;  %v11597_v59 = vld [vmem:[%s12213_s4 + $0x2ac] sm:$0xf] }
 0x8a9   : > { %v4755_v0 = vpop.f32.mrf.mxu2  ;;  %v2511_v62 = vpop.f32.mrf.mxu0 }
 0x8aa   : > { %v7471_v45 = vpop.f32.mrf.mxu3  ;;  %v4756_v30 = vadd.f32 %v4755_v0, %v4257_v39  ;;  %v6974_v14 = vpop.f32.mrf.mxu1  ;;  %v2512_v58 = vadd.f32 %v2511_v62, %v16797_v4  ;;  %v11083_v39 = vld [vmem:[%s12213_s4 + $0x5f0] sm:$0xf]  ;;  %v11904_v0 = vld [vmem:[%s12213_s4 + $0x5f4] sm:$0xf0] }
 0x8ab   : > { %v7472_v12 = vadd.f32 %v7471_v45, %v6972_v61  ;;  %v16806_v61 = vld [vmem:[#allocation421_spill] sm:$0xff]  ;;  %v11903_v45 = vld [vmem:[%s12213_s4 + $0x5f4] sm:$0xf] }
 0x8ac   : > { %v7629_v34 = vadd.f32 %v16796_v27, %v4756_v30  ;;  %v4259_v57 = vadd.f32 %v16798_v7, %v2512_v58  ;;  %v16809_v30 = vld [vmem:[#allocation208_spill] sm:$0xff]  ;;  %v11088_v9 = vor.u32 %v11903_v45, %v11085_v19  ;;  %v16822_v19 = vld [vmem:[#allocation219_spill] sm:$0xff] }
 0x8ad   : > { %v7727_v54 = vadd.f32 %v7472_v12, %v5001_v38  ;;  %v16810_v12 = vld [vmem:[#allocation210_spill] sm:$0xff] }
 0x8ae   : > { %7825 = vst.msk [vmem:[%s14605_s7 + $0x1d0] sm:$0xff] %vm1561_vm0, %v7629_v34  ;;  %v5008_v62 = vadd.f32 %v16810_v12, %v16809_v30  ;;  %v8615_v34 = vor.u32 %v11597_v59, %v8612_v17 }
 0x8af   : > { %7923 = vst.msk [vmem:[%s14605_s7 + $0x4e0] sm:$0xff] %vm1561_vm0, %v7727_v54  ;;  %v11084_v54 = vor.u32 %v11904_v0, %v11083_v39  ;;  %v16821_v39 = vld [vmem:[#allocation424_spill] sm:$0xff] }
 0x8b1   : > { %v4757_v15 = vpop.f32.mrf.mxu2  ;;  %v2514_v21 = vpop.f32.mrf.mxu0 }
 0x8b2   : > { %v7473_v2 = vpop.f32.mrf.mxu3  ;;  %v4758_v22 = vadd.f32 %v4757_v15, %v4259_v57  ;;  %v6977_v41 = vpop.f32.mrf.mxu1  ;;  %v2515_v63 = vadd.f32 %v2514_v21, %v16802_v11  ;;  %v16813_v57 = vld [vmem:[#allocation213_spill] sm:$0xff]  ;;  %v16814_v15 = vld [vmem:[#allocation212_spill] sm:$0xff] }
 0x8b3   : > { %v7474_v47 = vadd.f32 %v7473_v2, %v6974_v14  ;;  %v16815_v2 = vld [vmem:[#allocation214_spill] sm:$0xff]  ;;  %v8620_v11 = vld [vmem:[%s12213_s4 + $0x2c0] sm:$0xf0] }
 0x8b4   : > { %v7630_v43 = vadd.f32 %v16801_v26, %v4758_v22  ;;  %9166 = vmatmul.msk.bf16.gmra.mxu0 %vm1561_vm0, %v8607_v46  ;;  %v4262_v40 = vadd.f32 %v16803_v16, %v2515_v63  ;;  %v5011_v46 = vadd.f32 %v16815_v2, %v16814_v15  ;;  %v16817_v26 = vld [vmem:[#allocation215_spill] sm:$0xff]  ;;  %v11391_v63 = vld [vmem:[%s12213_s4 + $0x284] sm:$0xf]  ;;  %v9550_v16 = vld [vmem:[%s12213_s4 + $0x288] sm:$0xf0] }
 0x8b5   : > { %v7728_v48 = vadd.f32 %v7474_v47, %v5003_v29  ;;  %7016 = vmatmul.bf16.gmra.mxu1 %v11076_v8  ;;  %v9553_v31 = vor.u32 %v11391_v63, %v9550_v16  ;;  %v11101_v15 = vld [vmem:[%s12213_s4 + $0x618] sm:$0xf0]  ;;  %v16828_v2 = vld [vmem:[#allocation225_spill] sm:$0xff] }
 0x8b6   : > { %7826 = vst.msk [vmem:[%s14605_s7 + $0x1d8] sm:$0xff] %vm1561_vm0, %v7630_v43  ;;  %10096 = vmatmul.msk.bf16.gmra.mxu2 %vm1561_vm0, %v9537_v28 }
 0x8b7   : > { %11296 = vmatmul.msk.bf16.gmra.mxu3 %vm1561_vm0, %v11080_v13  ;;  %7924 = vst.msk [vmem:[%s14605_s7 + $0x4e8] sm:$0xff] %vm1561_vm0, %v7728_v48  ;;  %v11599_v48 = vld [vmem:[%s12213_s4 + $0x2bc] sm:$0xf] }
 0x8b9   : > { %v4760_v25 = vpop.f32.mrf.mxu2  ;;  %v2516_v35 = vpop.f32.mrf.mxu0 }
 0x8ba   : > { %v7476_v55 = vpop.f32.mrf.mxu3  ;;  %v4761_v20 = vadd.f32 %v4760_v25, %v4262_v40  ;;  %v6979_v10 = vpop.f32.mrf.mxu1  ;;  %v2517_v1 = vadd.f32 %v2516_v35, %v16807_v44  ;;  %v11091_v40 = vld [vmem:[%s12213_s4 + $0x600] sm:$0xf]  ;;  %v11906_v25 = vld [vmem:[%s12213_s4 + $0x604] sm:$0xf0] }
 0x8bb   : > { %v7477_v60 = vadd.f32 %v7476_v55, %v6977_v41  ;;  %v16816_v41 = vld [vmem:[#allocation423_spill] sm:$0xff]  ;;  %v11905_v55 = vld [vmem:[%s12213_s4 + $0x604] sm:$0xf] }
 0x8bc   : > { %v7631_v32 = vadd.f32 %v16806_v61, %v4761_v20  ;;  %v4264_v38 = vadd.f32 %v16808_v49, %v2517_v1  ;;  %v16819_v20 = vld [vmem:[#allocation216_spill] sm:$0xff]  ;;  %v11096_v3 = vor.u32 %v11905_v55, %v11093_v42  ;;  %v16832_v42 = vld [vmem:[#allocation227_spill] sm:$0xff] }
 0x8bd   : > { %v7729_v37 = vadd.f32 %v7477_v60, %v5006_v52  ;;  %v16820_v60 = vld [vmem:[#allocation218_spill] sm:$0xff] }
 0x8be   : > { %7827 = vst.msk [vmem:[%s14605_s7 + $0x1e0] sm:$0xff] %vm1561_vm0, %v7631_v32  ;;  %v5013_v35 = vadd.f32 %v16820_v60, %v16819_v20  ;;  %v8623_v32 = vor.u32 %v11599_v48, %v8620_v11 }
 0x8bf   : > { %7925 = vst.msk [vmem:[%s14605_s7 + $0x4f0] sm:$0xff] %vm1561_vm0, %v7729_v37  ;;  %v11092_v37 = vor.u32 %v11906_v25, %v11091_v40  ;;  %v16831_v40 = vld [vmem:[#allocation426_spill] sm:$0xff] }
 0x8c1   : > { %v4762_v14 = vpop.f32.mrf.mxu2  ;;  %v2519_v5 = vpop.f32.mrf.mxu0 }
 0x8c2   : > { %v7478_v27 = vpop.f32.mrf.mxu3  ;;  %v4763_v4 = vadd.f32 %v4762_v14, %v4264_v38  ;;  %v6982_v33 = vpop.f32.mrf.mxu1  ;;  %v2520_v7 = vadd.f32 %v2519_v5, %v16812_v50  ;;  %v16823_v38 = vld [vmem:[#allocation221_spill] sm:$0xff]  ;;  %v16824_v14 = vld [vmem:[#allocation220_spill] sm:$0xff]  ;;  %v8628_v50 = vld [vmem:[%s12213_s4 + $0x2d0] sm:$0xf0] }
 0x8c3   : > { %v7479_v58 = vadd.f32 %v7478_v27, %v6979_v10  ;;  %v16825_v27 = vld [vmem:[#allocation222_spill] sm:$0xff] }
 0x8c4   : > { %v7632_v18 = vadd.f32 %v16811_v23, %v4763_v4  ;;  %9167 = vmatmul.msk.bf16.gmra.mxu0 %vm1561_vm0, %v8615_v34  ;;  %v4267_v36 = vadd.f32 %v16813_v57, %v2520_v7  ;;  %v5016_v34 = vadd.f32 %v16825_v27, %v16824_v14  ;;  %v16827_v23 = vld [vmem:[#allocation223_spill] sm:$0xff]  ;;  %v9558_v57 = vld [vmem:[%s12213_s4 + $0x298] sm:$0xf0]  ;;  %v11109_v14 = vld [vmem:[%s12213_s4 + $0x628] sm:$0xf0] }
 0x8c5   : > { %v7730_v24 = vadd.f32 %v7479_v58, %v5008_v62  ;;  %7021 = vmatmul.bf16.gmra.mxu1 %v11084_v54  ;;  %v11393_v7 = vld [vmem:[%s12213_s4 + $0x294] sm:$0xf]  ;;  %v16838_v27 = vld [vmem:[#allocation233_spill] sm:$0xff] }
 0x8c6   : > { %7828 = vst.msk [vmem:[%s14605_s7 + $0x1e8] sm:$0xff] %vm1561_vm0, %v7632_v18  ;;  %10097 = vmatmul.msk.bf16.gmra.mxu2 %vm1561_vm0, %v9545_v6  ;;  %v9561_v63 = vor.u32 %v11393_v7, %v9558_v57 }
 0x8c7   : > { %11297 = vmatmul.msk.bf16.gmra.mxu3 %vm1561_vm0, %v11088_v9  ;;  %7926 = vst.msk [vmem:[%s14605_s7 + $0x4f8] sm:$0xff] %vm1561_vm0, %v7730_v24  ;;  %v11601_v24 = vld [vmem:[%s12213_s4 + $0x2cc] sm:$0xf] }
 0x8c9   : > { %v4765_v53 = vpop.f32.mrf.mxu2  ;;  %v2521_v47 = vpop.f32.mrf.mxu0 }
 0x8ca   : > { %v7481_v29 = vpop.f32.mrf.mxu3  ;;  %v4766_v8 = vadd.f32 %v4765_v53, %v4267_v36  ;;  %v6984_v21 = vpop.f32.mrf.mxu1  ;;  %v2522_v43 = vadd.f32 %v2521_v47, %v16817_v26  ;;  %v11099_v36 = vld [vmem:[%s12213_s4 + $0x610] sm:$0xf]  ;;  %v11908_v53 = vld [vmem:[%s12213_s4 + $0x614] sm:$0xf0] }
 0x8cb   : > { %v7482_v22 = vadd.f32 %v7481_v29, %v6982_v33  ;;  %v16826_v33 = vld [vmem:[#allocation425_spill] sm:$0xff]  ;;  %v11907_v29 = vld [vmem:[%s12213_s4 + $0x614] sm:$0xf] }
 0x8cc   : > { %v7633_v28 = vadd.f32 %v16816_v41, %v4766_v8  ;;  %v4269_v52 = vadd.f32 %v16818_v56, %v2522_v43  ;;  %v16829_v8 = vld [vmem:[#allocation224_spill] sm:$0xff]  ;;  %v11104_v16 = vor.u32 %v11907_v29, %v11101_v15  ;;  %v16842_v15 = vld [vmem:[#allocation235_spill] sm:$0xff] }
 0x8cd   : > { %v7731_v13 = vadd.f32 %v7482_v22, %v5011_v46  ;;  %v16830_v22 = vld [vmem:[#allocation226_spill] sm:$0xff] }
 0x8ce   : > { %7829 = vst.msk [vmem:[%s14605_s7 + $0x1f0] sm:$0xff] %vm1561_vm0, %v7633_v28  ;;  %v5018_v47 = vadd.f32 %v16830_v22, %v16829_v8  ;;  %v8631_v28 = vor.u32 %v11601_v24, %v8628_v50 }
 0x8cf   : > { %7927 = vst.msk [vmem:[%s14605_s7 + $0x500] sm:$0xff] %vm1561_vm0, %v7731_v13  ;;  %v11100_v13 = vor.u32 %v11908_v53, %v11099_v36  ;;  %v16841_v36 = vld [vmem:[#allocation428_spill] sm:$0xff] }
 0x8d1   : > { %v4767_v10 = vpop.f32.mrf.mxu2  ;;  %v2524_v59 = vpop.f32.mrf.mxu0 }
 0x8d2   : > { %v7483_v61 = vpop.f32.mrf.mxu3  ;;  %v4768_v44 = vadd.f32 %v4767_v10, %v4269_v52  ;;  %v6987_v17 = vpop.f32.mrf.mxu1  ;;  %v2525_v49 = vadd.f32 %v2524_v59, %v16822_v19  ;;  %v16833_v52 = vld [vmem:[#allocation229_spill] sm:$0xff]  ;;  %v16834_v10 = vld [vmem:[#allocation228_spill] sm:$0xff] }
 0x8d3   : > { %v7484_v1 = vadd.f32 %v7483_v61, %v6984_v21  ;;  %v16835_v61 = vld [vmem:[#allocation230_spill] sm:$0xff]  ;;  %v8636_v19 = vld [vmem:[%s12213_s4 + $0x2e0] sm:$0xf0] }
 0x8d4   : > { %v7634_v0 = vadd.f32 %v16821_v39, %v4768_v44  ;;  %9168 = vmatmul.msk.bf16.gmra.mxu0 %vm1561_vm0, %v8623_v32  ;;  %v4272_v30 = vadd.f32 %v16823_v38, %v2525_v49  ;;  %v5021_v32 = vadd.f32 %v16835_v61, %v16834_v10  ;;  %v16837_v39 = vld [vmem:[#allocation231_spill] sm:$0xff]  ;;  %v11395_v49 = vld [vmem:[%s12213_s4 + $0x2a4] sm:$0xf]  ;;  %v9566_v38 = vld [vmem:[%s12213_s4 + $0x2a8] sm:$0xf0] }
 0x8d5   : > { %v7732_v45 = vadd.f32 %v7484_v1, %v5013_v35  ;;  %7026 = vmatmul.bf16.gmra.mxu1 %v11092_v37  ;;  %v9569_v7 = vor.u32 %v11395_v49, %v9566_v38  ;;  %v11117_v10 = vld [vmem:[%s12213_s4 + $0x638] sm:$0xf0]  ;;  %v16848_v61 = vld [vmem:[#allocation241_spill] sm:$0xff] }
 0x8d6   : > { %7830 = vst.msk [vmem:[%s14605_s7 + $0x1f8] sm:$0xff] %vm1561_vm0, %v7634_v0  ;;  %10098 = vmatmul.msk.bf16.gmra.mxu2 %vm1561_vm0, %v9553_v31 }
 0x8d7   : > { %11298 = vmatmul.msk.bf16.gmra.mxu3 %vm1561_vm0, %v11096_v3  ;;  %7928 = vst.msk [vmem:[%s14605_s7 + $0x508] sm:$0xff] %vm1561_vm0, %v7732_v45  ;;  %v11603_v45 = vld [vmem:[%s12213_s4 + $0x2dc] sm:$0xf] }
 0x8d9   : > { %v4770_v12 = vpop.f32.mrf.mxu2  ;;  %v2526_v58 = vpop.f32.mrf.mxu0 }
 0x8da   : > { %v7486_v62 = vpop.f32.mrf.mxu3  ;;  %v4771_v54 = vadd.f32 %v4770_v12, %v4272_v30  ;;  %v6989_v5 = vpop.f32.mrf.mxu1  ;;  %v2527_v18 = vadd.f32 %v2526_v58, %v16827_v23  ;;  %v11107_v30 = vld [vmem:[%s12213_s4 + $0x620] sm:$0xf]  ;;  %v11910_v12 = vld [vmem:[%s12213_s4 + $0x624] sm:$0xf0] }
 0x8db   : > { %v7487_v4 = vadd.f32 %v7486_v62, %v6987_v17  ;;  %v16836_v17 = vld [vmem:[#allocation427_spill] sm:$0xff]  ;;  %v11909_v62 = vld [vmem:[%s12213_s4 + $0x624] sm:$0xf] }
 0x8dc   : > { %v7635_v6 = vadd.f32 %v16826_v33, %v4771_v54  ;;  %v4274_v46 = vadd.f32 %v16828_v2, %v2527_v18  ;;  %v16839_v54 = vld [vmem:[#allocation232_spill] sm:$0xff]  ;;  %v11112_v57 = vor.u32 %v11909_v62, %v11109_v14  ;;  %v16852_v14 = vld [vmem:[#allocation243_spill] sm:$0xff] }
 0x8dd   : > { %v7733_v9 = vadd.f32 %v7487_v4, %v5016_v34  ;;  %v16840_v4 = vld [vmem:[#allocation234_spill] sm:$0xff] }
 0x8de   : > { %7831 = vst.msk [vmem:[%s14605_s7 + $0x200] sm:$0xff] %vm1561_vm0, %v7635_v6  ;;  %v5023_v58 = vadd.f32 %v16840_v4, %v16839_v54  ;;  %v8639_v6 = vor.u32 %v11603_v45, %v8636_v19 }
 0x8df   : > { %7929 = vst.msk [vmem:[%s14605_s7 + $0x510] sm:$0xff] %vm1561_vm0, %v7733_v9  ;;  %v11108_v9 = vor.u32 %v11910_v12, %v11107_v30  ;;  %v16851_v30 = vld [vmem:[#allocation430_spill] sm:$0xff] }
 0x8e1   : > { %v4772_v21 = vpop.f32.mrf.mxu2  ;;  %v2529_v48 = vpop.f32.mrf.mxu0 }
 0x8e2   : > { %v7488_v41 = vpop.f32.mrf.mxu3  ;;  %v4773_v26 = vadd.f32 %v4772_v21, %v4274_v46  ;;  %v6992_v11 = vpop.f32.mrf.mxu1  ;;  %v2530_v56 = vadd.f32 %v2529_v48, %v16832_v42  ;;  %v16843_v46 = vld [vmem:[#allocation237_spill] sm:$0xff]  ;;  %v16844_v21 = vld [vmem:[#allocation236_spill] sm:$0xff]  ;;  %v8644_v42 = vld [vmem:[%s12213_s4 + $0x2f0] sm:$0xf0] }
 0x8e3   : > { %v7489_v43 = vadd.f32 %v7488_v41, %v6989_v5  ;;  %v16845_v41 = vld [vmem:[#allocation238_spill] sm:$0xff] }
 0x8e4   : > { %v7636_v25 = vadd.f32 %v16831_v40, %v4773_v26  ;;  %9169 = vmatmul.msk.bf16.gmra.mxu0 %vm1561_vm0, %v8631_v28  ;;  %v4277_v20 = vadd.f32 %v16833_v52, %v2530_v56  ;;  %v5026_v28 = vadd.f32 %v16845_v41, %v16844_v21  ;;  %v16847_v40 = vld [vmem:[#allocation239_spill] sm:$0xff]  ;;  %v9574_v52 = vld [vmem:[%s12213_s4 + $0x2b8] sm:$0xf0]  ;;  %v11125_v21 = vld [vmem:[%s12213_s4 + $0x648] sm:$0xf0] }
 0x8e5   : > { %v7734_v55 = vadd.f32 %v7489_v43, %v5018_v47  ;;  %7031 = vmatmul.bf16.gmra.mxu1 %v11100_v13  ;;  %v11397_v56 = vld [vmem:[%s12213_s4 + $0x2b4] sm:$0xf]  ;;  %v16858_v41 = vld [vmem:[#allocation249_spill] sm:$0xff] }
 0x8e6   : > { %7832 = vst.msk [vmem:[%s14605_s7 + $0x208] sm:$0xff] %vm1561_vm0, %v7636_v25  ;;  %10099 = vmatmul.msk.bf16.gmra.mxu2 %vm1561_vm0, %v9561_v63  ;;  %v9577_v49 = vor.u32 %v11397_v56, %v9574_v52 }
 0x8e7   : > { %11299 = vmatmul.msk.bf16.gmra.mxu3 %vm1561_vm0, %v11104_v16  ;;  %7930 = vst.msk [vmem:[%s14605_s7 + $0x518] sm:$0xff] %vm1561_vm0, %v7734_v55  ;;  %v11605_v55 = vld [vmem:[%s12213_s4 + $0x2ec] sm:$0xf] }
 0x8e9   : > { %v4775_v60 = vpop.f32.mrf.mxu2  ;;  %v2531_v1 = vpop.f32.mrf.mxu0 }
 0x8ea   : > { %v7491_v35 = vpop.f32.mrf.mxu3  ;;  %v4776_v37 = vadd.f32 %v4775_v60, %v4277_v20  ;;  %v6994_v59 = vpop.f32.mrf.mxu1  ;;  %v2532_v0 = vadd.f32 %v2531_v1, %v16837_v39  ;;  %v11115_v20 = vld [vmem:[%s12213_s4 + $0x630] sm:$0xf]  ;;  %v11912_v60 = vld [vmem:[%s12213_s4 + $0x634] sm:$0xf0] }
 0x8eb   : > { %v7492_v44 = vadd.f32 %v7491_v35, %v6992_v11  ;;  %v16846_v11 = vld [vmem:[#allocation429_spill] sm:$0xff]  ;;  %v11911_v35 = vld [vmem:[%s12213_s4 + $0x634] sm:$0xf] }
 0x8ec   : > { %v7637_v31 = vadd.f32 %v16836_v17, %v4776_v37  ;;  %v4279_v34 = vadd.f32 %v16838_v27, %v2532_v0  ;;  %v16849_v37 = vld [vmem:[#allocation240_spill] sm:$0xff]  ;;  %v11120_v38 = vor.u32 %v11911_v35, %v11117_v10  ;;  %v16862_v10 = vld [vmem:[#allocation251_spill] sm:$0xff] }
 0x8ed   : > { %v7735_v3 = vadd.f32 %v7492_v44, %v5021_v32  ;;  %v16850_v44 = vld [vmem:[#allocation242_spill] sm:$0xff] }
 0x8ee   : > { %7833 = vst.msk [vmem:[%s14605_s7 + $0x210] sm:$0xff] %vm1561_vm0, %v7637_v31  ;;  %v5028_v1 = vadd.f32 %v16850_v44, %v16849_v37  ;;  %v8647_v31 = vor.u32 %v11605_v55, %v8644_v42 }
 0x8ef   : > { %7931 = vst.msk [vmem:[%s14605_s7 + $0x520] sm:$0xff] %vm1561_vm0, %v7735_v3  ;;  %v11116_v3 = vor.u32 %v11912_v60, %v11115_v20  ;;  %v16861_v20 = vld [vmem:[#allocation432_spill] sm:$0xff] }
 0x8f1   : > { %v4777_v5 = vpop.f32.mrf.mxu2  ;;  %v2534_v24 = vpop.f32.mrf.mxu0 }
 0x8f2   : > { %v7493_v33 = vpop.f32.mrf.mxu3  ;;  %v4778_v23 = vadd.f32 %v4777_v5, %v4279_v34  ;;  %v6997_v50 = vpop.f32.mrf.mxu1  ;;  %v2535_v2 = vadd.f32 %v2534_v24, %v16842_v15  ;;  %v16853_v34 = vld [vmem:[#allocation245_spill] sm:$0xff]  ;;  %v16854_v5 = vld [vmem:[#allocation244_spill] sm:$0xff] }
 0x8f3   : > { %v7494_v18 = vadd.f32 %v7493_v33, %v6994_v59  ;;  %v16855_v33 = vld [vmem:[#allocation246_spill] sm:$0xff]  ;;  %v8652_v15 = vld [vmem:[%s12213_s4 + $0x300] sm:$0xf0] }
 0x8f4   : > { %v7638_v53 = vadd.f32 %v16841_v36, %v4778_v23  ;;  %9170 = vmatmul.msk.bf16.gmra.mxu0 %vm1561_vm0, %v8639_v6  ;;  %v4282_v8 = vadd.f32 %v16843_v46, %v2535_v2  ;;  %v5031_v6 = vadd.f32 %v16855_v33, %v16854_v5  ;;  %v16857_v36 = vld [vmem:[#allocation247_spill] sm:$0xff]  ;;  %v11399_v2 = vld [vmem:[%s12213_s4 + $0x2c4] sm:$0xf]  ;;  %v9582_v46 = vld [vmem:[%s12213_s4 + $0x2c8] sm:$0xf0] }
 0x8f5   : > { %v7736_v29 = vadd.f32 %v7494_v18, %v5023_v58  ;;  %7036 = vmatmul.bf16.gmra.mxu1 %v11108_v9  ;;  %v9585_v56 = vor.u32 %v11399_v2, %v9582_v46  ;;  %v11133_v5 = vld [vmem:[%s12213_s4 + $0x658] sm:$0xf0]  ;;  %v16868_v33 = vld [vmem:[#allocation257_spill] sm:$0xff] }
 0x8f6   : > { %7834 = vst.msk [vmem:[%s14605_s7 + $0x218] sm:$0xff] %vm1561_vm0, %v7638_v53  ;;  %10100 = vmatmul.msk.bf16.gmra.mxu2 %vm1561_vm0, %v9569_v7 }
 0x8f7   : > { %11300 = vmatmul.msk.bf16.gmra.mxu3 %vm1561_vm0, %v11112_v57  ;;  %7932 = vst.msk [vmem:[%s14605_s7 + $0x528] sm:$0xff] %vm1561_vm0, %v7736_v29  ;;  %v11607_v29 = vld [vmem:[%s12213_s4 + $0x2fc] sm:$0xf] }
 0x8f9   : > { %v4780_v22 = vpop.f32.mrf.mxu2  ;;  %v2536_v43 = vpop.f32.mrf.mxu0 }
 0x8fa   : > { %v7496_v47 = vpop.f32.mrf.mxu3  ;;  %v4781_v13 = vadd.f32 %v4780_v22, %v4282_v8  ;;  %v6999_v48 = vpop.f32.mrf.mxu1  ;;  %v2537_v25 = vadd.f32 %v2536_v43, %v16847_v40  ;;  %v11123_v8 = vld [vmem:[%s12213_s4 + $0x640] sm:$0xf]  ;;  %v11914_v22 = vld [vmem:[%s12213_s4 + $0x644] sm:$0xf0] }
 0x8fb   : > { %v7497_v26 = vadd.f32 %v7496_v47, %v6997_v50  ;;  %v16856_v50 = vld [vmem:[#allocation431_spill] sm:$0xff]  ;;  %v11913_v47 = vld [vmem:[%s12213_s4 + $0x644] sm:$0xf] }
 0x8fc   : > { %v7639_v63 = vadd.f32 %v16846_v11, %v4781_v13  ;;  %v4284_v32 = vadd.f32 %v16848_v61, %v2537_v25  ;;  %v16859_v13 = vld [vmem:[#allocation248_spill] sm:$0xff]  ;;  %v11128_v52 = vor.u32 %v11913_v47, %v11125_v21  ;;  %v16872_v21 = vld [vmem:[#allocation259_spill] sm:$0xff] }
 0x8fd   : > { %v7737_v16 = vadd.f32 %v7497_v26, %v5026_v28  ;;  %v16860_v26 = vld [vmem:[#allocation250_spill] sm:$0xff] }
 0x8fe   : > { %7835 = vst.msk [vmem:[%s14605_s7 + $0x220] sm:$0xff] %vm1561_vm0, %v7639_v63  ;;  %v5033_v43 = vadd.f32 %v16860_v26, %v16859_v13  ;;  %v8655_v63 = vor.u32 %v11607_v29, %v8652_v15 }
 0x8ff   : > { %7933 = vst.msk [vmem:[%s14605_s7 + $0x530] sm:$0xff] %vm1561_vm0, %v7737_v16  ;;  %v11124_v16 = vor.u32 %v11914_v22, %v11123_v8  ;;  %v16871_v8 = vld [vmem:[#allocation434_spill] sm:$0xff] }
 0x901   : > { %v4782_v59 = vpop.f32.mrf.mxu2  ;;  %v2539_v45 = vpop.f32.mrf.mxu0 }
 0x902   : > { %v7498_v17 = vpop.f32.mrf.mxu3  ;;  %v4783_v39 = vadd.f32 %v4782_v59, %v4284_v32  ;;  %v7002_v19 = vpop.f32.mrf.mxu1  ;;  %v2540_v27 = vadd.f32 %v2539_v45, %v16852_v14  ;;  %v16863_v32 = vld [vmem:[#allocation253_spill] sm:$0xff]  ;;  %v16864_v59 = vld [vmem:[#allocation252_spill] sm:$0xff]  ;;  %v8660_v14 = vld [vmem:[%s12213_s4 + $0x310] sm:$0xf0] }
 0x903   : > { %v7499_v0 = vadd.f32 %v7498_v17, %v6999_v48  ;;  %v16865_v17 = vld [vmem:[#allocation254_spill] sm:$0xff] }
 0x904   : > { %v7640_v12 = vadd.f32 %v16851_v30, %v4783_v39  ;;  %9171 = vmatmul.msk.bf16.gmra.mxu0 %vm1561_vm0, %v8647_v31  ;;  %v4287_v54 = vadd.f32 %v16853_v34, %v2540_v27  ;;  %v5036_v31 = vadd.f32 %v16865_v17, %v16864_v59  ;;  %v16867_v30 = vld [vmem:[#allocation255_spill] sm:$0xff]  ;;  %v9590_v34 = vld [vmem:[%s12213_s4 + $0x2d8] sm:$0xf0]  ;;  %v11141_v59 = vld [vmem:[%s12213_s4 + $0x668] sm:$0xf0] }
 0x905   : > { %v7738_v62 = vadd.f32 %v7499_v0, %v5028_v1  ;;  %7041 = vmatmul.bf16.gmra.mxu1 %v11116_v3  ;;  %v11401_v27 = vld [vmem:[%s12213_s4 + $0x2d4] sm:$0xf]  ;;  %v16878_v17 = vld [vmem:[#allocation265_spill] sm:$0xff] }
 0x906   : > { %7836 = vst.msk [vmem:[%s14605_s7 + $0x228] sm:$0xff] %vm1561_vm0, %v7640_v12  ;;  %10101 = vmatmul.msk.bf16.gmra.mxu2 %vm1561_vm0, %v9577_v49  ;;  %v9593_v2 = vor.u32 %v11401_v27, %v9590_v34 }
 0x907   : > { %11301 = vmatmul.msk.bf16.gmra.mxu3 %vm1561_vm0, %v11120_v38  ;;  %7934 = vst.msk [vmem:[%s14605_s7 + $0x538] sm:$0xff] %vm1561_vm0, %v7738_v62  ;;  %v11609_v62 = vld [vmem:[%s12213_s4 + $0x30c] sm:$0xf] }
 0x909   : > { %v4785_v4 = vpop.f32.mrf.mxu2  ;;  %v2541_v18 = vpop.f32.mrf.mxu0 }
 0x90a   : > { %v7501_v58 = vpop.f32.mrf.mxu3  ;;  %v4786_v9 = vadd.f32 %v4785_v4, %v4287_v54  ;;  %v7004_v24 = vpop.f32.mrf.mxu1  ;;  %v2542_v53 = vadd.f32 %v2541_v18, %v16857_v36  ;;  %v11131_v54 = vld [vmem:[%s12213_s4 + $0x650] sm:$0xf]  ;;  %v11916_v4 = vld [vmem:[%s12213_s4 + $0x654] sm:$0xf0] }
 0x90b   : > { %v7502_v23 = vadd.f32 %v7501_v58, %v7002_v19  ;;  %v16866_v19 = vld [vmem:[#allocation433_spill] sm:$0xff]  ;;  %v11915_v58 = vld [vmem:[%s12213_s4 + $0x654] sm:$0xf] }
 0x90c   : > { %v7641_v7 = vadd.f32 %v16856_v50, %v4786_v9  ;;  %v4289_v28 = vadd.f32 %v16858_v41, %v2542_v53  ;;  %v16869_v9 = vld [vmem:[#allocation256_spill] sm:$0xff]  ;;  %v11136_v46 = vor.u32 %v11915_v58, %v11133_v5  ;;  %v16882_v5 = vld [vmem:[#allocation267_spill] sm:$0xff] }
 0x90d   : > { %v7739_v57 = vadd.f32 %v7502_v23, %v5031_v6  ;;  %v16870_v23 = vld [vmem:[#allocation258_spill] sm:$0xff] }
 0x90e   : > { %7837 = vst.msk [vmem:[%s14605_s7 + $0x230] sm:$0xff] %vm1561_vm0, %v7641_v7  ;;  %v5038_v18 = vadd.f32 %v16870_v23, %v16869_v9  ;;  %v8663_v7 = vor.u32 %v11609_v62, %v8660_v14 }
 0x90f   : > { %7935 = vst.msk [vmem:[%s14605_s7 + $0x540] sm:$0xff] %vm1561_vm0, %v7739_v57  ;;  %v11132_v57 = vor.u32 %v11916_v4, %v11131_v54  ;;  %v16881_v54 = vld [vmem:[#allocation436_spill] sm:$0xff] }
 0x911   : > { %v4787_v48 = vpop.f32.mrf.mxu2  ;;  %v2544_v55 = vpop.f32.mrf.mxu0 }
 0x912   : > { %v7503_v11 = vpop.f32.mrf.mxu3  ;;  %v4788_v40 = vadd.f32 %v4787_v48, %v4289_v28  ;;  %v7007_v42 = vpop.f32.mrf.mxu1  ;;  %v2545_v61 = vadd.f32 %v2544_v55, %v16862_v10  ;;  %v16873_v28 = vld [vmem:[#allocation261_spill] sm:$0xff]  ;;  %v16874_v48 = vld [vmem:[#allocation260_spill] sm:$0xff] }
 0x913   : > { %v7504_v25 = vadd.f32 %v7503_v11, %v7004_v24  ;;  %v16875_v11 = vld [vmem:[#allocation262_spill] sm:$0xff]  ;;  %v8668_v10 = vld [vmem:[%s12213_s4 + $0x320] sm:$0xf0] }
 0x914   : > { %v7642_v60 = vadd.f32 %v16861_v20, %v4788_v40  ;;  %9172 = vmatmul.msk.bf16.gmra.mxu0 %vm1561_vm0, %v8655_v63  ;;  %v4292_v37 = vadd.f32 %v16863_v32, %v2545_v61  ;;  %v5041_v63 = vadd.f32 %v16875_v11, %v16874_v48  ;;  %v16877_v20 = vld [vmem:[#allocation263_spill] sm:$0xff]  ;;  %v11403_v61 = vld [vmem:[%s12213_s4 + $0x2e4] sm:$0xf]  ;;  %v9598_v32 = vld [vmem:[%s12213_s4 + $0x2e8] sm:$0xf0] }
 0x915   : > { %v7740_v35 = vadd.f32 %v7504_v25, %v5033_v43  ;;  %7046 = vmatmul.bf16.gmra.mxu1 %v11124_v16  ;;  %v9601_v27 = vor.u32 %v11403_v61, %v9598_v32  ;;  %v11149_v48 = vld [vmem:[%s12213_s4 + $0x678] sm:$0xf0]  ;;  %v16888_v11 = vld [vmem:[#allocation273_spill] sm:$0xff] }
 0x916   : > { %7838 = vst.msk [vmem:[%s14605_s7 + $0x238] sm:$0xff] %vm1561_vm0, %v7642_v60  ;;  %10102 = vmatmul.msk.bf16.gmra.mxu2 %vm1561_vm0, %v9585_v56 }
 0x917   : > { %11302 = vmatmul.msk.bf16.gmra.mxu3 %vm1561_vm0, %v11128_v52  ;;  %7936 = vst.msk [vmem:[%s14605_s7 + $0x548] sm:$0xff] %vm1561_vm0, %v7740_v35  ;;  %v11611_v35 = vld [vmem:[%s12213_s4 + $0x31c] sm:$0xf] }
 0x919   : > { %v4790_v44 = vpop.f32.mrf.mxu2  ;;  %v2546_v0 = vpop.f32.mrf.mxu0 }
 0x91a   : > { %v7506_v1 = vpop.f32.mrf.mxu3  ;;  %v4791_v3 = vadd.f32 %v4790_v44, %v4292_v37  ;;  %v7009_v45 = vpop.f32.mrf.mxu1  ;;  %v2547_v12 = vadd.f32 %v2546_v0, %v16867_v30  ;;  %v11139_v37 = vld [vmem:[%s12213_s4 + $0x660] sm:$0xf]  ;;  %v11918_v44 = vld [vmem:[%s12213_s4 + $0x664] sm:$0xf0] }
 0x91b   : > { %v7507_v39 = vadd.f32 %v7506_v1, %v7007_v42  ;;  %v16876_v42 = vld [vmem:[#allocation435_spill] sm:$0xff]  ;;  %v11917_v1 = vld [vmem:[%s12213_s4 + $0x664] sm:$0xf] }
 0x91c   : > { %v7643_v49 = vadd.f32 %v16866_v19, %v4791_v3  ;;  %v4294_v6 = vadd.f32 %v16868_v33, %v2547_v12  ;;  %v16879_v3 = vld [vmem:[#allocation264_spill] sm:$0xff]  ;;  %v11144_v34 = vor.u32 %v11917_v1, %v11141_v59  ;;  %v16892_v59 = vld [vmem:[#allocation275_spill] sm:$0xff] }
 0x91d   : > { %v7741_v38 = vadd.f32 %v7507_v39, %v5036_v31  ;;  %v16880_v39 = vld [vmem:[#allocation266_spill] sm:$0xff] }
 0x91e   : > { %7839 = vst.msk [vmem:[%s14605_s7 + $0x240] sm:$0xff] %vm1561_vm0, %v7643_v49  ;;  %v5043_v0 = vadd.f32 %v16880_v39, %v16879_v3  ;;  %v8671_v49 = vor.u32 %v11611_v35, %v8668_v10 }
 0x91f   : > { %7937 = vst.msk [vmem:[%s14605_s7 + $0x550] sm:$0xff] %vm1561_vm0, %v7741_v38  ;;  %v11140_v38 = vor.u32 %v11918_v44, %v11139_v37  ;;  %v16891_v37 = vld [vmem:[#allocation438_spill] sm:$0xff] }
 0x921   : > { %v4792_v24 = vpop.f32.mrf.mxu2  ;;  %v2549_v29 = vpop.f32.mrf.mxu0 }
 0x922   : > { %v7508_v50 = vpop.f32.mrf.mxu3  ;;  %v4793_v36 = vadd.f32 %v4792_v24, %v4294_v6  ;;  %v7012_v15 = vpop.f32.mrf.mxu1  ;;  %v2550_v41 = vadd.f32 %v2549_v29, %v16872_v21  ;;  %v16883_v6 = vld [vmem:[#allocation269_spill] sm:$0xff]  ;;  %v16884_v24 = vld [vmem:[#allocation268_spill] sm:$0xff]  ;;  %v8676_v21 = vld [vmem:[%s12213_s4 + $0x330] sm:$0xf0] }
 0x923   : > { %v7509_v53 = vadd.f32 %v7508_v50, %v7009_v45  ;;  %v16885_v50 = vld [vmem:[#allocation270_spill] sm:$0xff] }
 0x924   : > { %v7644_v22 = vadd.f32 %v16871_v8, %v4793_v36  ;;  %9173 = vmatmul.msk.bf16.gmra.mxu0 %vm1561_vm0, %v8663_v7  ;;  %v4297_v13 = vadd.f32 %v16873_v28, %v2550_v41  ;;  %v5046_v7 = vadd.f32 %v16885_v50, %v16884_v24  ;;  %v16887_v8 = vld [vmem:[#allocation271_spill] sm:$0xff]  ;;  %v9606_v28 = vld [vmem:[%s12213_s4 + $0x2f8] sm:$0xf0] }
 0x925   : > { %v7742_v47 = vadd.f32 %v7509_v53, %v5038_v18  ;;  %7051 = vmatmul.bf16.gmra.mxu1 %v11132_v57  ;;  %v11405_v41 = vld [vmem:[%s12213_s4 + $0x2f4] sm:$0xf] }
 0x926   : > { %7840 = vst.msk [vmem:[%s14605_s7 + $0x248] sm:$0xff] %vm1561_vm0, %v7644_v22  ;;  %10103 = vmatmul.msk.bf16.gmra.mxu2 %vm1561_vm0, %v9593_v2  ;;  %v9609_v61 = vor.u32 %v11405_v41, %v9606_v28  ;;  %v16903_v28 = vld [vmem:[#allocation285_spill] sm:$0xff] }
 0x927   : > { %11303 = vmatmul.msk.bf16.gmra.mxu3 %vm1561_vm0, %v11136_v46  ;;  %7938 = vst.msk [vmem:[%s14605_s7 + $0x558] sm:$0xff] %vm1561_vm0, %v7742_v47  ;;  %v11613_v47 = vld [vmem:[%s12213_s4 + $0x32c] sm:$0xf] }
 0x929   : > { %v4795_v26 = vpop.f32.mrf.mxu2  ;;  %v2551_v25 = vpop.f32.mrf.mxu0 }
 0x92a   : > { %v7511_v43 = vpop.f32.mrf.mxu3  ;;  %v4796_v16 = vadd.f32 %v4795_v26, %v4297_v13  ;;  %v7014_v55 = vpop.f32.mrf.mxu1  ;;  %v2552_v60 = vadd.f32 %v2551_v25, %v16877_v20  ;;  %v11147_v13 = vld [vmem:[%s12213_s4 + $0x670] sm:$0xf]  ;;  %v11920_v26 = vld [vmem:[%s12213_s4 + $0x674] sm:$0xf0] }
 0x92b   : > { %v7512_v40 = vadd.f32 %v7511_v43, %v7012_v15  ;;  %v16886_v15 = vld [vmem:[#allocation437_spill] sm:$0xff]  ;;  %v11919_v43 = vld [vmem:[%s12213_s4 + $0x674] sm:$0xf] }
 0x92c   : > { %v7645_v56 = vadd.f32 %v16876_v42, %v4796_v16  ;;  %v4299_v31 = vadd.f32 %v16878_v17, %v2552_v60  ;;  %v16889_v16 = vld [vmem:[#allocation272_spill] sm:$0xff]  ;;  %v11152_v32 = vor.u32 %v11919_v43, %v11149_v48 }
 0x92d   : > { %v7743_v52 = vadd.f32 %v7512_v40, %v5041_v63  ;;  %v16890_v40 = vld [vmem:[#allocation274_spill] sm:$0xff]  ;;  %v16904_v48 = vld [vmem:[#allocation284_spill] sm:$0xff] }
 0x92e   : > { %7841 = vst.msk [vmem:[%s14605_s7 + $0x250] sm:$0xff] %vm1561_vm0, %v7645_v56  ;;  %v5048_v25 = vadd.f32 %v16890_v40, %v16889_v16  ;;  %v8679_v56 = vor.u32 %v11613_v47, %v8676_v21  ;;  %v16902_v21 = vld [vmem:[#allocation283_spill] sm:$0xff] }
 0x92f   : > { %7939 = vst.msk [vmem:[%s14605_s7 + $0x560] sm:$0xff] %vm1561_vm0, %v7743_v52  ;;  %v11148_v52 = vor.u32 %v11920_v26, %v11147_v13 }
 0x931   : > { %v4797_v45 = vpop.f32.mrf.mxu2  ;;  %v2554_v62 = vpop.f32.mrf.mxu0 }
 0x932   : > { %v7513_v19 = vpop.f32.mrf.mxu3  ;;  %v4798_v30 = vadd.f32 %v4797_v45, %v4299_v31  ;;  %v7017_v14 = vpop.f32.mrf.mxu1  ;;  %v2555_v33 = vadd.f32 %v2554_v62, %v16882_v5  ;;  %v16893_v31 = vld [vmem:[#allocation277_spill] sm:$0xff]  ;;  %v16894_v45 = vld [vmem:[#allocation276_spill] sm:$0xff]  ;;  %v11922_v5 = vld [vmem:[%s12213_s4 + $0x684] sm:$0xf0] }
 0x933   : > { %v7514_v12 = vadd.f32 %v7513_v19, %v7014_v55  ;;  %v16895_v19 = vld [vmem:[#allocation278_spill] sm:$0xff] }
 0x934   : > { %v7646_v4 = vadd.f32 %v16881_v54, %v4798_v30  ;;  %9174 = vmatmul.msk.bf16.gmra.mxu0 %vm1561_vm0, %v8671_v49  ;;  %v4302_v9 = vadd.f32 %v16883_v6, %v2555_v33  ;;  %v5051_v49 = vadd.f32 %v16895_v19, %v16894_v45  ;;  %v16897_v54 = vld [vmem:[#allocation279_spill] sm:$0xff]  ;;  %v11921_v33 = vld [vmem:[%s12213_s4 + $0x684] sm:$0xf]  ;;  %v11157_v6 = vld [vmem:[%s12213_s4 + $0x688] sm:$0xf0] }
 0x935   : > { %v7744_v58 = vadd.f32 %v7514_v12, %v5043_v0  ;;  %7056 = vmatmul.bf16.gmra.mxu1 %v11140_v38  ;;  %v16912_v19 = vld [vmem:[#allocation291_spill] sm:$0xff] }
 0x936   : > { %7842 = vst.msk [vmem:[%s14605_s7 + $0x258] sm:$0xff] %vm1561_vm0, %v7646_v4  ;;  %10104 = vmatmul.msk.bf16.gmra.mxu2 %vm1561_vm0, %v9601_v27 }
 0x937   : > { %11304 = vmatmul.msk.bf16.gmra.mxu3 %vm1561_vm0, %v11144_v34  ;;  %7940 = vst.msk [vmem:[%s14605_s7 + $0x568] sm:$0xff] %vm1561_vm0, %v7744_v58  ;;  %v11155_v58 = vld [vmem:[%s12213_s4 + $0x680] sm:$0xf] }
 0x938   : > { %v11156_v50 = vor.u32 %v11922_v5, %v11155_v58 }
 0x939   : > { %v4800_v23 = vpop.f32.mrf.mxu2  ;;  %v2556_v53 = vpop.f32.mrf.mxu0 }
 0x93a   : > { %v7516_v18 = vpop.f32.mrf.mxu3  ;;  %v4801_v57 = vadd.f32 %v4800_v23, %v4302_v9  ;;  %v7019_v29 = vpop.f32.mrf.mxu1  ;;  %v2557_v22 = vadd.f32 %v2556_v53, %v16887_v8  ;;  %v16898_v9 = vld [vmem:[#allocation281_spill] sm:$0xff]  ;;  %v16901_v8 = vld [vmem:[#allocation440_spill] sm:$0xff] }
 0x93b   : > { %v7517_v36 = vadd.f32 %v7516_v18, %v7017_v14  ;;  %v16896_v14 = vld [vmem:[#allocation439_spill] sm:$0xff] }
 0x93c   : > { %v7647_v2 = vadd.f32 %v16886_v15, %v4801_v57  ;;  %v4304_v63 = vadd.f32 %v16888_v11, %v2557_v22  ;;  %v16900_v57 = vld [vmem:[#allocation282_spill] sm:$0xff] }
 0x93d   : > { %v7745_v46 = vadd.f32 %v7517_v36, %v5046_v7  ;;  %v16899_v7 = vld [vmem:[#allocation280_spill] sm:$0xff]  ;;  %v16905_v11 = vld [vmem:[#allocation286_spill] sm:$0xff] }
 0x93e   : > { %7843 = vst.msk [vmem:[%s14605_s7 + $0x260] sm:$0xff] %vm1561_vm0, %v7647_v2  ;;  %v5053_v36 = vadd.f32 %v16900_v57, %v16899_v7 }
 0x93f   : > { %7941 = vst.msk [vmem:[%s14605_s7 + $0x570] sm:$0xff] %vm1561_vm0, %v7745_v46  ;;  %v11160_v46 = vor.u32 %v11921_v33, %v11157_v6  ;;  %v16916_v33 = vld [vmem:[#allocation443_spill] sm:$0xff] }
 0x941   : > { %v4802_v55 = vpop.f32.mrf.mxu2  ;;  %v2559_v35 = vpop.f32.mrf.mxu0 }
 0x942   : > { %v7518_v42 = vpop.f32.mrf.mxu3  ;;  %v4803_v20 = vadd.f32 %v4802_v55, %v4304_v63  ;;  %v7022_v10 = vpop.f32.mrf.mxu1  ;;  %v2560_v17 = vadd.f32 %v2559_v35, %v16892_v59  ;;  %v5056_v63 = vadd.f32 %v16905_v11, %v16904_v48  ;;  %v16908_v35 = vld [vmem:[#allocation289_spill] sm:$0xff]  ;;  %v16924_v11 = vld [vmem:[#allocation300_spill] sm:$0xff] }
 0x943   : > { %v7519_v60 = vadd.f32 %v7518_v42, %v7019_v29  ;;  %v16906_v42 = vld [vmem:[#allocation441_spill] sm:$0xff] }
 0x944   : > { %v7648_v44 = vadd.f32 %v16891_v37, %v4803_v20  ;;  %9175 = vmatmul.msk.bf16.gmra.mxu0 %vm1561_vm0, %v8679_v56  ;;  %v4307_v3 = vadd.f32 %v16893_v31, %v2560_v17  ;;  %v16907_v20 = vld [vmem:[#allocation287_spill] sm:$0xff]  ;;  %v16909_v37 = vld [vmem:[#allocation288_spill] sm:$0xff] }
 0x945   : > { %v7746_v1 = vadd.f32 %v7519_v60, %v5048_v25  ;;  %7061 = vmatmul.bf16.gmra.mxu1 %v11148_v52 }
 0x946   : > { %7844 = vst.msk [vmem:[%s14605_s7 + $0x268] sm:$0xff] %vm1561_vm0, %v7648_v44  ;;  %10105 = vmatmul.msk.bf16.gmra.mxu2 %vm1561_vm0, %v9609_v61  ;;  %v16910_v44 = vld [vmem:[#allocation290_spill] sm:$0xff] }
 0x947   : > { %11305 = vmatmul.msk.bf16.gmra.mxu3 %vm1561_vm0, %v11152_v32  ;;  %7942 = vst.msk [vmem:[%s14605_s7 + $0x578] sm:$0xff] %vm1561_vm0, %v7746_v1  ;;  %v5058_v1 = vadd.f32 %v16910_v44, %v16909_v37  ;;  %v16929_v44 = vld [vmem:[#allocation304_spill] sm:$0xff] }
 0x949   : > { %v4805_v39 = vpop.f32.mrf.mxu2  ;;  %v2561_v12 = vpop.f32.mrf.mxu0 }
 0x94a   : > { %v7521_v0 = vpop.f32.mrf.mxu3  ;;  %v4806_v38 = vadd.f32 %v4805_v39, %v4307_v3  ;;  %v7024_v62 = vpop.f32.mrf.mxu1  ;;  %v2562_v4 = vadd.f32 %v2561_v12, %v16897_v54  ;;  %v16911_v39 = vld [vmem:[#allocation442_spill] sm:$0xff] }
 0x94b   : > { %v7522_v30 = vadd.f32 %v7521_v0, %v7022_v10 }
 0x94c   : > { %v7649_v27 = vadd.f32 %v16896_v14, %v4806_v38  ;;  %v4309_v23 = vadd.f32 %v16898_v9, %v2562_v4  ;;  %v16913_v38 = vld [vmem:[#allocation293_spill] sm:$0xff]  ;;  %v16914_v14 = vld [vmem:[#allocation292_spill] sm:$0xff] }
 0x94d   : > { %v7747_v34 = vadd.f32 %v7522_v30, %v5051_v49 }
 0x94e   : > { %7845 = vst.msk [vmem:[%s14605_s7 + $0x270] sm:$0xff] %vm1561_vm0, %v7649_v27  ;;  %v16915_v27 = vld [vmem:[#allocation294_spill] sm:$0xff] }
 0x94f   : > { %7943 = vst.msk [vmem:[%s14605_s7 + $0x580] sm:$0xff] %vm1561_vm0, %v7747_v34  ;;  %v5061_v34 = vadd.f32 %v16915_v27, %v16914_v14  ;;  %v16934_v27 = vld [vmem:[#allocation308_spill] sm:$0xff] }
 0x951   : > { %v4807_v18 = vpop.f32.mrf.mxu2  ;;  %v2564_v15 = vpop.f32.mrf.mxu0 }
 0x952   : > { %v7523_v24 = vpop.f32.mrf.mxu3  ;;  %v4808_v53 = vadd.f32 %v4807_v18, %v4309_v23  ;;  %v7027_v2 = vpop.f32.mrf.mxu1  ;;  %v2565_v41 = vadd.f32 %v2564_v15, %v16902_v21  ;;  %v16917_v23 = vld [vmem:[#allocation295_spill] sm:$0xff] }
 0x953   : > { %v7524_v29 = vadd.f32 %v7523_v24, %v7024_v62  ;;  %v16918_v24 = vld [vmem:[#allocation297_spill] sm:$0xff] }
 0x954   : > { %v7650_v22 = vadd.f32 %v16901_v8, %v4808_v53  ;;  %v4312_v13 = vadd.f32 %v16903_v28, %v2565_v41  ;;  %v16920_v53 = vld [vmem:[#allocation298_spill] sm:$0xff]  ;;  %v16922_v41 = vld [vmem:[#allocation299_spill] sm:$0xff] }
 0x955   : > { %v7748_v47 = vadd.f32 %v7524_v29, %v5053_v36  ;;  %7066 = vmatmul.bf16.gmra.mxu1 %v11156_v50  ;;  %v16919_v36 = vld [vmem:[#allocation296_spill] sm:$0xff] }
 0x956   : > { %7846 = vst.msk [vmem:[%s14605_s7 + $0x278] sm:$0xff] %vm1561_vm0, %v7650_v22  ;;  %v5063_v29 = vadd.f32 %v16920_v53, %v16919_v36  ;;  %v16921_v22 = vld [vmem:[#allocation444_spill] sm:$0xff] }
 0x957   : > { %11306 = vmatmul.msk.bf16.gmra.mxu3 %vm1561_vm0, %v11160_v46  ;;  %7944 = vst.msk [vmem:[%s14605_s7 + $0x588] sm:$0xff] %vm1561_vm0, %v7748_v47  ;;  %v16939_v53 = vld [vmem:[#allocation312_spill] sm:$0xff] }
 0x959   : > { %v4810_v26 = vpop.f32.mrf.mxu2  ;;  %v2566_v25 = vpop.f32.mrf.mxu0 }
 0x95a   : > { %v7526_v43 = vpop.f32.mrf.mxu3  ;;  %v4811_v16 = vadd.f32 %v4810_v26, %v4312_v13  ;;  %v7029_v55 = vpop.f32.mrf.mxu1  ;;  %v2567_v60 = vadd.f32 %v2566_v25, %v16907_v20  ;;  %v16923_v13 = vld [vmem:[#allocation301_spill] sm:$0xff] }
 0x95b   : > { %v7527_v40 = vadd.f32 %v7526_v43, %v7027_v2 }
 0x95c   : > { %v7651_v56 = vadd.f32 %v16906_v42, %v4811_v16  ;;  %v4314_v10 = vadd.f32 %v16908_v35, %v2567_v60  ;;  %v16927_v60 = vld [vmem:[#allocation303_spill] sm:$0xff] }
 0x95d   : > { %v7749_v52 = vadd.f32 %v7527_v40, %v5056_v63  ;;  %v16925_v63 = vld [vmem:[#allocation302_spill] sm:$0xff] }
 0x95e   : > { %7847 = vst.msk [vmem:[%s14605_s7 + $0x280] sm:$0xff] %vm1561_vm0, %v7651_v56  ;;  %v5066_v16 = vadd.f32 %v16925_v63, %v16924_v11  ;;  %v16926_v56 = vld [vmem:[#allocation445_spill] sm:$0xff]  ;;  %v16944_v63 = vld [vmem:[#allocation316_spill] sm:$0xff] }
 0x95f   : > { %7945 = vst.msk [vmem:[%s14605_s7 + $0x590] sm:$0xff] %vm1561_vm0, %v7749_v52 }
 0x961   : > { %v4812_v61 = vpop.f32.mrf.mxu2  ;;  %v2569_v31 = vpop.f32.mrf.mxu0 }
 0x962   : > { %v7528_v32 = vpop.f32.mrf.mxu3  ;;  %v4813_v59 = vadd.f32 %v4812_v61, %v4314_v10  ;;  %v7032_v3 = vpop.f32.mrf.mxu1  ;;  %v2570_v49 = vadd.f32 %v2569_v31, %v16912_v19  ;;  %v16928_v10 = vld [vmem:[#allocation305_spill] sm:$0xff] }
 0x963   : > { %v7529_v17 = vadd.f32 %v7528_v32, %v7029_v55 }
 0x964   : > { %v7652_v0 = vadd.f32 %v16911_v39, %v4813_v59  ;;  %v4317_v30 = vadd.f32 %v16913_v38, %v2570_v49  ;;  %v16932_v49 = vld [vmem:[#allocation307_spill] sm:$0xff] }
 0x965   : > { %v7750_v45 = vadd.f32 %v7529_v17, %v5058_v1  ;;  %v16930_v1 = vld [vmem:[#allocation306_spill] sm:$0xff] }
 0x966   : > { %7848 = vst.msk [vmem:[%s14605_s7 + $0x288] sm:$0xff] %vm1561_vm0, %v7652_v0  ;;  %v5068_v59 = vadd.f32 %v16930_v1, %v16929_v44  ;;  %v16931_v0 = vld [vmem:[#allocation446_spill] sm:$0xff]  ;;  %v16949_v1 = vld [vmem:[#allocation320_spill] sm:$0xff] }
 0x967   : > { %7946 = vst.msk [vmem:[%s14605_s7 + $0x598] sm:$0xff] %vm1561_vm0, %v7750_v45 }
 0x969   : > { %v4815_v12 = vpop.f32.mrf.mxu2  ;;  %v2571_v58 = vpop.f32.mrf.mxu0 }
 0x96a   : > { %v7531_v62 = vpop.f32.mrf.mxu3  ;;  %v4816_v54 = vadd.f32 %v4815_v12, %v4317_v30  ;;  %v7034_v5 = vpop.f32.mrf.mxu1  ;;  %v2572_v18 = vadd.f32 %v2571_v58, %v16917_v23  ;;  %v16933_v30 = vld [vmem:[#allocation309_spill] sm:$0xff] }
 0x96b   : > { %v7532_v4 = vadd.f32 %v7531_v62, %v7032_v3 }
 0x96c   : > { %v7653_v6 = vadd.f32 %v16916_v33, %v4816_v54  ;;  %v4319_v50 = vadd.f32 %v16918_v24, %v2572_v18  ;;  %v16937_v18 = vld [vmem:[#allocation311_spill] sm:$0xff] }
 0x96d   : > { %v7751_v9 = vadd.f32 %v7532_v4, %v5061_v34  ;;  %v16935_v34 = vld [vmem:[#allocation310_spill] sm:$0xff] }
 0x96e   : > { %7849 = vst.msk [vmem:[%s14605_s7 + $0x290] sm:$0xff] %vm1561_vm0, %v7653_v6  ;;  %v5071_v54 = vadd.f32 %v16935_v34, %v16934_v27  ;;  %v16936_v6 = vld [vmem:[#allocation447_spill] sm:$0xff]  ;;  %v16954_v34 = vld [vmem:[#allocation324_spill] sm:$0xff] }
 0x96f   : > { %7947 = vst.msk [vmem:[%s14605_s7 + $0x5a0] sm:$0xff] %vm1561_vm0, %v7751_v9 }
 0x971   : > { %v4817_v7 = vpop.f32.mrf.mxu2  ;;  %v2574_v46 = vpop.f32.mrf.mxu0 }
 0x972   : > { %v7533_v57 = vpop.f32.mrf.mxu3  ;;  %v4818_v15 = vadd.f32 %v4817_v7, %v4319_v50  ;;  %v7037_v8 = vpop.f32.mrf.mxu1  ;;  %v2575_v28 = vadd.f32 %v2574_v46, %v16922_v41  ;;  %v16938_v50 = vld [vmem:[#allocation313_spill] sm:$0xff] }
 0x973   : > { %v7534_v2 = vadd.f32 %v7533_v57, %v7034_v5 }
 0x974   : > { %v7654_v47 = vadd.f32 %v16921_v22, %v4818_v15  ;;  %v4322_v26 = vadd.f32 %v16923_v13, %v2575_v28  ;;  %v16942_v28 = vld [vmem:[#allocation315_spill] sm:$0xff] }
 0x975   : > { %v7752_v21 = vadd.f32 %v7534_v2, %v5063_v29  ;;  %v16940_v29 = vld [vmem:[#allocation314_spill] sm:$0xff] }
 0x976   : > { %7850 = vst.msk [vmem:[%s14605_s7 + $0x298] sm:$0xff] %vm1561_vm0, %v7654_v47  ;;  %v5073_v15 = vadd.f32 %v16940_v29, %v16939_v53  ;;  %v16941_v47 = vld [vmem:[#allocation448_spill] sm:$0xff] }
 0x977   : > { %7948 = vst.msk [vmem:[%s14605_s7 + $0x5a8] sm:$0xff] %vm1561_vm0, %v7752_v21  ;;  %v16959_v29 = vld [vmem:[#allocation328_spill] sm:$0xff] }
 0x979   : > { %v4820_v43 = vpop.f32.mrf.mxu2  ;;  %v2576_v55 = vpop.f32.mrf.mxu0 }
 0x97a   : > { %v7536_v48 = vpop.f32.mrf.mxu3  ;;  %v4821_v40 = vadd.f32 %v4820_v43, %v4322_v26  ;;  %v7039_v42 = vpop.f32.mrf.mxu1  ;;  %v2577_v35 = vadd.f32 %v2576_v55, %v16927_v60  ;;  %v16943_v26 = vld [vmem:[#allocation317_spill] sm:$0xff] }
 0x97b   : > { %v7537_v25 = vadd.f32 %v7536_v48, %v7037_v8 }
 0x97c   : > { %v7655_v52 = vadd.f32 %v16926_v56, %v4821_v40  ;;  %v4324_v61 = vadd.f32 %v16928_v10, %v2577_v35  ;;  %v16947_v35 = vld [vmem:[#allocation319_spill] sm:$0xff] }
 0x97d   : > { %v7753_v20 = vadd.f32 %v7537_v25, %v5066_v16  ;;  %v16945_v16 = vld [vmem:[#allocation318_spill] sm:$0xff] }
 0x97e   : > { %7851 = vst.msk [vmem:[%s14605_s7 + $0x2a0] sm:$0xff] %vm1561_vm0, %v7655_v52  ;;  %v5076_v40 = vadd.f32 %v16945_v16, %v16944_v63  ;;  %v16946_v52 = vld [vmem:[#allocation449_spill] sm:$0xff]  ;;  %v16964_v16 = vld [vmem:[#allocation332_spill] sm:$0xff] }
 0x97f   : > { %7949 = vst.msk [vmem:[%s14605_s7 + $0x5b0] sm:$0xff] %vm1561_vm0, %v7753_v20 }
 0x981   : > { %v4822_v32 = vpop.f32.mrf.mxu2  ;;  %v2579_v3 = vpop.f32.mrf.mxu0 }
 0x982   : > { %v7538_v37 = vpop.f32.mrf.mxu3  ;;  %v4823_v17 = vadd.f32 %v4822_v32, %v4324_v61  ;;  %v7042_v39 = vpop.f32.mrf.mxu1  ;;  %v2580_v38 = vadd.f32 %v2579_v3, %v16932_v49  ;;  %v16948_v61 = vld [vmem:[#allocation321_spill] sm:$0xff] }
 0x983   : > { %v7539_v31 = vadd.f32 %v7538_v37, %v7039_v42 }
 0x984   : > { %v7656_v45 = vadd.f32 %v16931_v0, %v4823_v17  ;;  %v4327_v12 = vadd.f32 %v16933_v30, %v2580_v38  ;;  %v16952_v38 = vld [vmem:[#allocation323_spill] sm:$0xff] }
 0x985   : > { %v7754_v19 = vadd.f32 %v7539_v31, %v5068_v59  ;;  %v16950_v59 = vld [vmem:[#allocation322_spill] sm:$0xff] }
 0x986   : > { %7852 = vst.msk [vmem:[%s14605_s7 + $0x2a8] sm:$0xff] %vm1561_vm0, %v7656_v45  ;;  %v5078_v17 = vadd.f32 %v16950_v59, %v16949_v1  ;;  %v16951_v45 = vld [vmem:[#allocation450_spill] sm:$0xff]  ;;  %v16969_v59 = vld [vmem:[#allocation336_spill] sm:$0xff] }
 0x987   : > { %7950 = vst.msk [vmem:[%s14605_s7 + $0x5b8] sm:$0xff] %vm1561_vm0, %v7754_v19 }
 0x989   : > { %v4825_v62 = vpop.f32.mrf.mxu2  ;;  %v2581_v5 = vpop.f32.mrf.mxu0 }
 0x98a   : > { %v7541_v14 = vpop.f32.mrf.mxu3  ;;  %v4826_v4 = vadd.f32 %v4825_v62, %v4327_v12  ;;  %v7044_v33 = vpop.f32.mrf.mxu1  ;;  %v2582_v24 = vadd.f32 %v2581_v5, %v16937_v18  ;;  %v16953_v12 = vld [vmem:[#allocation325_spill] sm:$0xff] }
 0x98b   : > { %v7542_v58 = vadd.f32 %v7541_v14, %v7042_v39 }
 0x98c   : > { %v7657_v9 = vadd.f32 %v16936_v6, %v4826_v4  ;;  %v4329_v7 = vadd.f32 %v16938_v50, %v2582_v24  ;;  %v16957_v24 = vld [vmem:[#allocation327_spill] sm:$0xff] }
 0x98d   : > { %v7755_v23 = vadd.f32 %v7542_v58, %v5071_v54  ;;  %v16955_v54 = vld [vmem:[#allocation326_spill] sm:$0xff] }
 0x98e   : > { %7853 = vst.msk [vmem:[%s14605_s7 + $0x2b0] sm:$0xff] %vm1561_vm0, %v7657_v9  ;;  %v5081_v4 = vadd.f32 %v16955_v54, %v16954_v34  ;;  %v16956_v9 = vld [vmem:[#allocation451_spill] sm:$0xff]  ;;  %v16974_v54 = vld [vmem:[#allocation340_spill] sm:$0xff] }
 0x98f   : > { %7951 = vst.msk [vmem:[%s14605_s7 + $0x5c0] sm:$0xff] %vm1561_vm0, %v7755_v23 }
 0x991   : > { %v4827_v57 = vpop.f32.mrf.mxu2  ;;  %v2584_v8 = vpop.f32.mrf.mxu0 }
 0x992   : > { %v7543_v36 = vpop.f32.mrf.mxu3  ;;  %v4828_v2 = vadd.f32 %v4827_v57, %v4329_v7  ;;  %v7047_v22 = vpop.f32.mrf.mxu1  ;;  %v2585_v13 = vadd.f32 %v2584_v8, %v16942_v28  ;;  %v16958_v7 = vld [vmem:[#allocation329_spill] sm:$0xff] }
 0x993   : > { %v7544_v46 = vadd.f32 %v7543_v36, %v7044_v33 }
 0x994   : > { %v7658_v21 = vadd.f32 %v16941_v47, %v4828_v2  ;;  %v4332_v43 = vadd.f32 %v16943_v26, %v2585_v13  ;;  %v16962_v13 = vld [vmem:[#allocation331_spill] sm:$0xff] }
 0x995   : > { %v7756_v41 = vadd.f32 %v7544_v46, %v5073_v15  ;;  %v16960_v15 = vld [vmem:[#allocation330_spill] sm:$0xff] }
 0x996   : > { %7854 = vst.msk [vmem:[%s14605_s7 + $0x2b8] sm:$0xff] %vm1561_vm0, %v7658_v21  ;;  %v5083_v2 = vadd.f32 %v16960_v15, %v16959_v29  ;;  %v16961_v21 = vld [vmem:[#allocation452_spill] sm:$0xff] }
 0x997   : > { %7952 = vst.msk [vmem:[%s14605_s7 + $0x5c8] sm:$0xff] %vm1561_vm0, %v7756_v41  ;;  %v16979_v15 = vld [vmem:[#allocation344_spill] sm:$0xff] }
 0x999   : > { %v4830_v48 = vpop.f32.mrf.mxu2  ;;  %v2586_v42 = vpop.f32.mrf.mxu0 }
 0x99a   : > { %v7546_v11 = vpop.f32.mrf.mxu3  ;;  %v4831_v25 = vadd.f32 %v4830_v48, %v4332_v43  ;;  %v7049_v56 = vpop.f32.mrf.mxu1  ;;  %v2587_v10 = vadd.f32 %v2586_v42, %v16947_v35  ;;  %v16963_v43 = vld [vmem:[#allocation333_spill] sm:$0xff] }
 0x99b   : > { %v7547_v55 = vadd.f32 %v7546_v11, %v7047_v22 }
 0x99c   : > { %v7659_v20 = vadd.f32 %v16946_v52, %v4831_v25  ;;  %v4334_v32 = vadd.f32 %v16948_v61, %v2587_v10  ;;  %v16967_v10 = vld [vmem:[#allocation335_spill] sm:$0xff] }
 0x99d   : > { %v7757_v60 = vadd.f32 %v7547_v55, %v5076_v40  ;;  %v16965_v40 = vld [vmem:[#allocation334_spill] sm:$0xff] }
 0x99e   : > { %7855 = vst.msk [vmem:[%s14605_s7 + $0x2c0] sm:$0xff] %vm1561_vm0, %v7659_v20  ;;  %v5086_v25 = vadd.f32 %v16965_v40, %v16964_v16  ;;  %v16966_v20 = vld [vmem:[#allocation453_spill] sm:$0xff] }
 0x99f   : > { %7953 = vst.msk [vmem:[%s14605_s7 + $0x5d0] sm:$0xff] %vm1561_vm0, %v7757_v60 }
 0x9a1   : > { %v4832_v37 = vpop.f32.mrf.mxu2  ;;  %v2589_v39 = vpop.f32.mrf.mxu0 }
 0x9a2   : > { %v7548_v44 = vpop.f32.mrf.mxu3  ;;  %v4833_v31 = vadd.f32 %v4832_v37, %v4334_v32  ;;  %v7052_v0 = vpop.f32.mrf.mxu1  ;;  %v2590_v30 = vadd.f32 %v2589_v39, %v16952_v38  ;;  %v16968_v32 = vld [vmem:[#allocation337_spill] sm:$0xff] }
 0x9a3   : > { %v7549_v3 = vadd.f32 %v7548_v44, %v7049_v56 }
 0x9a4   : > { %v7660_v19 = vadd.f32 %v16951_v45, %v4833_v31  ;;  %v4337_v62 = vadd.f32 %v16953_v12, %v2590_v30  ;;  %v16972_v30 = vld [vmem:[#allocation339_spill] sm:$0xff] }
 0x9a5   : > { %v7758_v49 = vadd.f32 %v7549_v3, %v5078_v17  ;;  %v16970_v17 = vld [vmem:[#allocation338_spill] sm:$0xff] }
 0x9a6   : > { %7856 = vst.msk [vmem:[%s14605_s7 + $0x2c8] sm:$0xff] %vm1561_vm0, %v7660_v19  ;;  %v5088_v31 = vadd.f32 %v16970_v17, %v16969_v59  ;;  %v16971_v19 = vld [vmem:[#allocation454_spill] sm:$0xff] }
 0x9a7   : > { %7954 = vst.msk [vmem:[%s14605_s7 + $0x5d8] sm:$0xff] %vm1561_vm0, %v7758_v49 }
 0x9a9   : > { %v4835_v14 = vpop.f32.mrf.mxu2  ;;  %v2591_v33 = vpop.f32.mrf.mxu0 }
 0x9aa   : > { %v7551_v27 = vpop.f32.mrf.mxu3  ;;  %v4836_v58 = vadd.f32 %v4835_v14, %v4337_v62  ;;  %v7054_v6 = vpop.f32.mrf.mxu1  ;;  %v2592_v50 = vadd.f32 %v2591_v33, %v16957_v24  ;;  %v16973_v62 = vld [vmem:[#allocation341_spill] sm:$0xff]  ;;  %v16977_v24 = vld [vmem:[#allocation343_spill] sm:$0xff] }
 0x9ab   : > { %v7552_v5 = vadd.f32 %v7551_v27, %v7052_v0 }
 0x9ac   : > { %v7661_v23 = vadd.f32 %v16956_v9, %v4836_v58  ;;  %v4339_v57 = vadd.f32 %v16958_v7, %v2592_v50  ;;  %v16976_v9 = vld [vmem:[#allocation455_spill] sm:$0xff] }
 0x9ad   : > { %v7759_v18 = vadd.f32 %v7552_v5, %v5081_v4  ;;  %v16975_v4 = vld [vmem:[#allocation342_spill] sm:$0xff] }
 0x9ae   : > { %7857 = vst.msk [vmem:[%s14605_s7 + $0x2d0] sm:$0xff] %vm1561_vm0, %v7661_v23  ;;  %v5091_v58 = vadd.f32 %v16975_v4, %v16974_v54 }
 0x9af   : > { %7955 = vst.msk [vmem:[%s14605_s7 + $0x5e0] sm:$0xff] %vm1561_vm0, %v7759_v18 }
 0x9b1   : > { %v4837_v36 = vpop.f32.mrf.mxu2  ;;  %v2594_v22 = vpop.f32.mrf.mxu0 }
 0x9b2   : > { %v7553_v53 = vpop.f32.mrf.mxu3  ;;  %v4838_v46 = vadd.f32 %v4837_v36, %v4339_v57  ;;  %v7057_v47 = vpop.f32.mrf.mxu1  ;;  %v2595_v26 = vadd.f32 %v2594_v22, %v16962_v13  ;;  %v16978_v57 = vld [vmem:[#allocation345_spill] sm:$0xff] }
 0x9b3   : > { %v7554_v8 = vadd.f32 %v7553_v53, %v7054_v6 }
 0x9b4   : > { %v7662_v41 = vadd.f32 %v16961_v21, %v4838_v46  ;;  %v4342_v48 = vadd.f32 %v16963_v43, %v2595_v26  ;;  %v16982_v26 = vld [vmem:[#allocation347_spill] sm:$0xff]  ;;  %v16983_v43 = vld [vmem:[#allocation348_spill] sm:$0xff] }
 0x9b5   : > { %v7760_v28 = vadd.f32 %v7554_v8, %v5083_v2  ;;  %v16980_v2 = vld [vmem:[#allocation346_spill] sm:$0xff] }
 0x9b6   : > { %7858 = vst.msk [vmem:[%s14605_s7 + $0x2d8] sm:$0xff] %vm1561_vm0, %v7662_v41  ;;  %v5093_v46 = vadd.f32 %v16980_v2, %v16979_v15 }
 0x9b7   : > { %7956 = vst.msk [vmem:[%s14605_s7 + $0x5e8] sm:$0xff] %vm1561_vm0, %v7760_v28 }
 0x9b9   : > { %v4840_v11 = vpop.f32.mrf.mxu2  ;;  %v2596_v56 = vpop.f32.mrf.mxu0 }
 0x9ba   : > { %v7556_v63 = vpop.f32.mrf.mxu3  ;;  %v4841_v55 = vadd.f32 %v4840_v11, %v4342_v48  ;;  %v7059_v52 = vpop.f32.mrf.mxu1  ;;  %v2597_v61 = vadd.f32 %v2596_v56, %v16967_v10  ;;  %v5096_v48 = vadd.f32 %v16983_v43, %v16982_v26 }
 0x9bb   : > { %v7557_v42 = vadd.f32 %v7556_v63, %v7057_v47  ;;  %v16981_v47 = vld [vmem:[#allocation456_spill] sm:$0xff] }
 0x9bc   : > { %v7663_v60 = vadd.f32 %v16966_v20, %v4841_v55  ;;  %v4344_v37 = vadd.f32 %v16968_v32, %v2597_v61 }
 0x9bd   : > { %v7761_v35 = vadd.f32 %v7557_v42, %v5086_v25  ;;  %v16984_v25 = vld [vmem:[#allocation351_spill] sm:$0xff] }
 0x9be   : > { %7859 = vst.msk [vmem:[%s14605_s7 + $0x2e0] sm:$0xff] %vm1561_vm0, %v7663_v60  ;;  %v5098_v55 = vadd.f32 %v16984_v25, %v14617_v51 }
 0x9bf   : > { %7957 = vst.msk [vmem:[%s14605_s7 + $0x5f0] sm:$0xff] %vm1561_vm0, %v7761_v35 }
 0x9c1   : > { %v4842_v44 = vpop.f32.mrf.mxu2  ;;  %v2599_v0 = vpop.f32.mrf.mxu0 }
 0x9c2   : > { %v7558_v1 = vpop.f32.mrf.mxu3  ;;  %v4843_v3 = vadd.f32 %v4842_v44, %v4344_v37  ;;  %v7062_v45 = vpop.f32.mrf.mxu1  ;;  %v2600_v12 = vadd.f32 %v2599_v0, %v16972_v30 }
 0x9c3   : > { %v7559_v39 = vadd.f32 %v7558_v1, %v7059_v52 }
 0x9c4   : > { %v7664_v49 = vadd.f32 %v16971_v19, %v4843_v3  ;;  %v4347_v14 = vadd.f32 %v16973_v62, %v2600_v12 }
 0x9c5   : > { %v7762_v38 = vadd.f32 %v7559_v39, %v5088_v31 }
 0x9c6   : > { %7860 = vst.msk [vmem:[%s14605_s7 + $0x2e8] sm:$0xff] %vm1561_vm0, %v7664_v49 }
 0x9c7   : > { %7958 = vst.msk [vmem:[%s14605_s7 + $0x5f8] sm:$0xff] %vm1561_vm0, %v7762_v38 }
 0x9c9   : > { %v4845_v27 = vpop.f32.mrf.mxu2  ;;  %v2601_v6 = vpop.f32.mrf.mxu0 }
 0x9ca   : > { %v7561_v34 = vpop.f32.mrf.mxu3  ;;  %v4846_v5 = vadd.f32 %v4845_v27, %v4347_v14  ;;  %v2602_v50 = vadd.f32 %v2601_v6, %v16977_v24  ;;  %v7064_v7 = vpop.f32.mrf.mxu1 }
 0x9cb   : > { %v7562_v33 = vadd.f32 %v7561_v34, %v7062_v45 }
 0x9cc   : > { %v7665_v23 = vadd.f32 %v16976_v9, %v4846_v5  ;;  %v4349_v36 = vadd.f32 %v16978_v57, %v2602_v50 }
 0x9cd   : > { %v7763_v18 = vadd.f32 %v7562_v33, %v5091_v58 }
 0x9ce   : > { %7861 = vst.msk [vmem:[%s14605_s7 + $0x2f0] sm:$0xff] %vm1561_vm0, %v7665_v23 }
 0x9cf   : > { %7959 = vst.msk [vmem:[%s14605_s7 + $0x600] sm:$0xff] %vm1561_vm0, %v7763_v18 }
 0x9d1   : > { %v4847_v53 = vpop.f32.mrf.mxu2 }
 0x9d2   : > { %v7563_v29 = vpop.f32.mrf.mxu3  ;;  %v4848_v8 = vadd.f32 %v4847_v53, %v4349_v36  ;;  %v7067_v28 = vpop.f32.mrf.mxu1 }
 0x9d3   : > { %v7564_v22 = vadd.f32 %v7563_v29, %v7064_v7 }
 0x9d4   : > { %v7666_v21 = vadd.f32 %v16981_v47, %v4848_v8 }
 0x9d5   : > { %v7764_v41 = vadd.f32 %v7564_v22, %v5093_v46 }
 0x9d6   : > { %7862 = vst.msk [vmem:[%s14605_s7 + $0x2f8] sm:$0xff] %vm1561_vm0, %v7666_v21 }
 0x9d7   : > { %7960 = vst.msk [vmem:[%s14605_s7 + $0x608] sm:$0xff] %vm1561_vm0, %v7764_v41 }
 0x9da   : > { %v7566_v13 = vpop.f32.mrf.mxu3  ;;  %v7069_v16 = vpop.f32.mrf.mxu1 }
 0x9db   : > { %v7567_v11 = vadd.f32 %v7566_v13, %v7067_v28 }
 0x9dd   : > { %v7765_v63 = vadd.f32 %v7567_v11, %v5096_v48 }
 0x9df   : > { %7961 = vst.msk [vmem:[%s14605_s7 + $0x610] sm:$0xff] %vm1561_vm0, %v7765_v63 }
 0x9e2   : > { %v7568_v40 = vpop.f32.mrf.mxu3 }
 0x9e3   : > { %v7569_v42 = vadd.f32 %v7568_v40, %v7069_v16 }
 0x9e5   : > { %v7766_v56 = vadd.f32 %v7569_v42, %v5098_v55 }
 0x9e7   : > { %7962 = vst.msk [vmem:[%s14605_s7 + $0x618] sm:$0xff] %vm1561_vm0, %v7766_v56 }
 0x9e8   : > { %12030 = shalt.err (!%p12027_p3)
}
 0x9e9   : > { %s12083_s29 = smov 128   ;;  %s12084_s30 = smov 8  }
 0x9ea   : > { %11945 = dma.vmem_to_hbm [thread:$0]  (%p12140_p4), %s7980_s16, 25088, %s7982_s20, %s7964_s12, %s12083_s29, %s12083_s29, %s12084_s30  }
 0x9eb PF: > { %p11952_p5 = scmp.ge.s32.totalorder %s12081_s14, 2  ;;  %s7996_s3 = sand.u32 1, %s12061_s9  }
 0x9ec   : > { %s7997_s5 = scalar_lea.sflag [#allocation3], %s7996_s3 }
 0x9ed   : > { %p11948_p6 = pnand %p11952_p5, %p12147_p8 }
 0x9ef   : > { %p11949_p7 = pneg %p11948_p6 }
 0x9f1   : > { %12056 = dma.done.wait (%p11949_p7), %s7997_s5, 25088  }
 0x9f2   : > { %12058 = vsyncadd (%p11949_p7), %s7997_s5, 4294942208  ;;  %s15_s14 = sadd.s32 1, %s12081_s14   ;;  %s16985_s9 = smov %s12065_s10 }
 0x9f3   : > { %p12_p9 = scmp.ge.s32.totalorder %s15_s14, 4   ;;  %s16986_s10 = smov %s12069_s11 }
 0x9f4   : > { %s16987_s11 = smov %s12153_s22  ;;  %s16988_s12 = smov %s12077_s13 }
 0x9f5   : > { %s16989_s13 = smov %s16991_s17  ;;  %14 = sbr.rel (!%p12_p9) target bundleno = 4 (0x4), region = 68 }
 0x9fa   :  { %8003 = vsyncpa [#allocation3], 1 }
 0x9fb   :  { %8005 = vsyncpa [#allocation3 + $0x1], 1 }

</bundles_post_ra>
